<compile_context>
chip_gen: v7x
topology: tpu7x:2x2x1
jax: 0.10.0
libtpu: 0.0.40
codegen_flags: <defaults>
</compile_context>

<pallas_src>
import jax
import jax.numpy as jnp
from jax.experimental import pallas as pl
from jax.experimental.pallas import tpu as pltpu

IN_FEATURES = 1920     # = 15 * 128, lane-aligned
OUT_FEATURES = 12280   # NOT a multiple of 128
OUT_PADDED = 12288     # = 96 * 128 (weights / bias zero-padded to this)


def _select_tiling():
    """Pick (TILE_N, vmem_limit_bytes) per TPU generation."""
    try:
        kind = jax.devices()[0].device_kind.lower()
    except Exception:
        kind = ""
    single_tc_big_vmem = ("v6" in kind) or ("v5e" in kind) or ("lite" in kind)
    if single_tc_big_vmem:
        # One TensorCore, 128 MiB physical VMEM: bigger tiles -> fewer grid steps,
        # bigger contiguous DMAs. ~32 MiB of double-buffered weight tiles.
        return 4096, 64 * 1024 * 1024
    # v7x (2 TCs, 64 MiB VMEM per TC) or unknown chip: keep an EVEN grid-step count
    # (6 -> 3+3 megacore split) and stay well under the per-TC VMEM budget.
    return 2048, 40 * 1024 * 1024


def _linear_kernel(x_ref, w_ref, b_ref, o_ref):
    # x_ref: (B, 1920)        bf16  resident (constant index_map)
    # w_ref: (1920, TILE_N)   bf16  one CONTIGUOUS tile per grid step (leading dim squeezed)
    # b_ref: (1, TILE_N)      f32   streamed per grid step
    # o_ref: (B, TILE_N)      f32   lane-dense padded output tile
    acc = jnp.dot(x_ref[...], w_ref[...], preferred_element_type=jnp.float32)
    o_ref[...] = acc + b_ref[...]


def make_tudui_forward(tile_n: int, vmem_limit_bytes: int):
    n_tiles = OUT_PADDED // tile_n

    @jax.jit
    def forward(x, w_tiles_bf16, b_padded_2d):
        """x: (B, 1920) f32; w_tiles_bf16: (n_tiles, 1920, tile_n) bf16;
        b_padded_2d: (1, 12288) f32."""
        B = x.shape[0]
        x_bf16 = x.astype(jnp.bfloat16)

        cost = pl.CostEstimate(
            flops=2 * B * IN_FEATURES * OUT_PADDED,
            transcendentals=0,
            bytes_accessed=(IN_FEATURES * OUT_PADDED * 2    # weights (bf16)
                            + B * IN_FEATURES * 2           # activations (bf16)
                            + OUT_PADDED * 4                # bias (f32)
                            + B * OUT_PADDED * 4),          # output (f32, padded)
        )

        out_padded = pl.pallas_call(
            _linear_kernel,
            out_shape=jax.ShapeDtypeStruct((B, OUT_PADDED), jnp.float32),
            grid_spec=pltpu.PrefetchScalarGridSpec(
                num_scalar_prefetch=0,
                grid=(n_tiles,),
                in_specs=[
                    # x: whole, resident across all grid steps.
                    pl.BlockSpec((B, IN_FEATURES), lambda j: (0, 0)),
                    # W^T tile: contiguous (1920, tile_n) slab per step, leading dim squeezed.
                    pl.BlockSpec((None, IN_FEATURES, tile_n), lambda j: (j, 0, 0)),
                    # bias: one (1, tile_n) chunk streamed per step.
                    pl.BlockSpec((1, tile_n), lambda j: (0, j)),
                ],
                out_specs=pl.BlockSpec((B, tile_n), lambda j: (0, j)),
            ),
            compiler_params=pltpu.CompilerParams(
                dimension_semantics=("parallel",),   # shards output tiles across TCs on v7x
                vmem_limit_bytes=vmem_limit_bytes,
            ),
            cost_estimate=cost,
        )(x_bf16, w_tiles_bf16, b_padded_2d)

        # Drop the zero columns 12280..12287 (weights/bias are zero-padded there).
        return out_padded[:, :OUT_FEATURES]

    return forward


def init_params(key, tile_n):
    """Deterministic init mimicking nn.Linear default (uniform +/- 1/sqrt(fan_in))."""
    n_tiles = OUT_PADDED // tile_n
    kw, kb = jax.random.split(key)
    bound = 1.0 / jnp.sqrt(jnp.float32(IN_FEATURES))
    # PyTorch stores weight as (out, in); we keep it transposed: (in, out).
    w_t = jax.random.uniform(
        kw, (IN_FEATURES, OUT_FEATURES), jnp.float32, minval=-bound, maxval=bound
    )
    b = jax.random.uniform(
        kb, (OUT_FEATURES,), jnp.float32, minval=-bound, maxval=bound
    )
    # bf16 weights, zero-padded along the output axis, then pre-tiled to
    # (n_tiles, 1920, tile_n) so each per-step weight DMA is a single contiguous slab.
    w_t_padded = (
        jnp.zeros((IN_FEATURES, OUT_PADDED), jnp.bfloat16)
        .at[:, :OUT_FEATURES]
        .set(w_t.astype(jnp.bfloat16))
    )
    w_tiles = w_t_padded.reshape(IN_FEATURES, n_tiles, tile_n).transpose(1, 0, 2)
    b_padded_2d = jnp.zeros((1, OUT_PADDED), jnp.float32).at[0, :OUT_FEATURES].set(b)
    return w_t, b, w_tiles, b_padded_2d


if __name__ == "__main__":
    tile_n, vmem_limit = _select_tiling()
    tudui_forward = make_tudui_forward(tile_n, vmem_limit)

    key = jax.random.PRNGKey(0)
    kx, kp = jax.random.split(key)

    batch = 8  # small, sublane-aligned batch (Linear dims fixed by the module: 1920 -> 12280)
    x = jax.random.normal(kx, (batch, IN_FEATURES), jnp.float32)

    w_t, b, w_tiles, b_padded_2d = init_params(kp, tile_n)

    out = jax.block_until_ready(tudui_forward(x, w_tiles, b_padded_2d))

    # Reference with the same numerics as the kernel (bf16 inputs, f32 accumulate + f32 bias).
    ref_bf16 = (
        jnp.dot(x.astype(jnp.bfloat16), w_t.astype(jnp.bfloat16),
                preferred_element_type=jnp.float32)
        + b[None, :]
    )
    # Full-precision reference (what the original f32 nn.Linear computes).
    ref_f32 = x @ w_t + b[None, :]

    assert out.shape == (batch, OUT_FEATURES), out.shape
    assert jnp.allclose(out, ref_bf16, atol=1e-2, rtol=1e-2), float(
        jnp.max(jnp.abs(out - ref_bf16))
    )
    # bf16 weight/activation storage trades a small amount of precision for ~2x HBM bandwidth.
    assert jnp.allclose(out, ref_f32, atol=5e-2, rtol=5e-2), float(
        jnp.max(jnp.abs(out - ref_f32))
    )

    print("KERNEL_OK")
</pallas_src>

<mosaic_0001>
module attributes {stable_mosaic.version = 11 : i64} {
  func.func @_linear_kernel(%arg0: i32, %arg1: memref<8x1920xbf16, #tpu.memory_space<vmem>>, %arg2: memref<1x1920x2048xbf16, #tpu.memory_space<vmem>>, %arg3: memref<1x2048xf32, #tpu.memory_space<vmem>>, %arg4: memref<8x2048xf32, #tpu.memory_space<vmem>>) attributes {dimension_semantics = [#tpu.dimension_semantics<parallel>], iteration_bounds = array<i64: 6>, scalar_prefetch = 0 : i64, scratch_operands = 0 : i64, tpu.core_type = #tpu.core_type<tc>, window_params = [{pipeline_mode = #tpu.pipeline_mode<synchronous>, transform_indices = @transform_0, window_bounds = array<i64: 8, 1920>}, {transform_indices = @transform_1, window_bounds = array<i64: 1, 1920, 2048>}, {transform_indices = @transform_2, window_bounds = array<i64: 1, 2048>}, {transform_indices = @transform_3, window_bounds = array<i64: 8, 2048>}]} {
    %c0 = arith.constant 0 : index
    %c0_0 = arith.constant 0 : index
    %0 = vector.load %arg1[%c0, %c0_0] : memref<8x1920xbf16, #tpu.memory_space<vmem>>, vector<8x1920xbf16>
    %c0_1 = arith.constant 0 : index
    %c0_2 = arith.constant 0 : index
    %c0_3 = arith.constant 0 : index
    %1 = vector.load %arg2[%c0_1, %c0_2, %c0_3] : memref<1x1920x2048xbf16, #tpu.memory_space<vmem>>, vector<1x1920x2048xbf16>
    %2 = vector.shape_cast %1 : vector<1x1920x2048xbf16> to vector<1920x2048xbf16>
    %cst = arith.constant dense<0.000000e+00> : vector<8x2048xf32>
    %3 = tpu.matmul %0, %2, %cst {dimension_numbers = #tpu.dot_dimension_numbers<[1], [0], [0], [1], [0, 0, 1, 1], [], []>} : vector<8x1920xbf16>, vector<1920x2048xbf16>, vector<8x2048xf32> -> vector<8x2048xf32>
    %c0_4 = arith.constant 0 : index
    %c0_5 = arith.constant 0 : index
    %4 = vector.load %arg3[%c0_4, %c0_5] : memref<1x2048xf32, #tpu.memory_space<vmem>>, vector<1x2048xf32>
    %5 = vector.broadcast %4 : vector<1x2048xf32> to vector<8x2048xf32>
    %6 = arith.addf %3, %5 : vector<8x2048xf32>
    %c0_6 = arith.constant 0 : index
    %c0_7 = arith.constant 0 : index
    %7 = vector.load %arg4[%c0_6, %c0_7] : memref<8x2048xf32, #tpu.memory_space<vmem>>, vector<8x2048xf32>
    tpu.vector_store %arg4[%c0_6, %c0_7], %6 {strides = array<i32>} : memref<8x2048xf32, #tpu.memory_space<vmem>>, vector<8x2048xf32>,
    return
  }
  func.func @transform_0(%arg0: i32) -> (i32, i32) {
    %c0_i32 = arith.constant 0 : i32
    %c0_i32_0 = arith.constant 0 : i32
    %c0_i32_1 = arith.constant 0 : i32
    return %c0_i32, %c0_i32_0 : i32, i32
  }
  func.func @transform_1(%arg0: i32) -> (i32, i32, i32) {
    %c0_i32 = arith.constant 0 : i32
    %c0_i32_0 = arith.constant 0 : i32
    %c0_i32_1 = arith.constant 0 : i32
    return %arg0, %c0_i32, %c0_i32_0 : i32, i32, i32
  }
  func.func @transform_2(%arg0: i32) -> (i32, i32) {
    %c0_i32 = arith.constant 0 : i32
    %c0_i32_0 = arith.constant 0 : i32
    return %c0_i32, %arg0 : i32, i32
  }
  func.func @transform_3(%arg0: i32) -> (i32, i32) {
    %c0_i32 = arith.constant 0 : i32
    %c0_i32_0 = arith.constant 0 : i32
    return %c0_i32, %arg0 : i32, i32
  }
}

</mosaic_0001>

<bundles_post_ra>
// kernel: forward.1
= control target key start
LH: loop header
LB: loop body
LE: loop exit
PB: predicated region body
PF: predicated region fallthrough
CT: control target
= control target key end

     0   :  { %8 = vsyncpa [#allocation3], 0  ;;  %s19477_s0 = inlined_call_operand.vmem [shape: bf16[8,1920], index: 0, kind: input, shape index: {}]   ;;  %s19478_s1 = inlined_call_operand.hbm [shape: bf16[6,1920,2048], index: 1, kind: input, shape index: {}]   ;;  %s19479_s2 = inlined_call_operand.hbm [shape: f32[1,12288], index: 2, kind: input, shape index: {}]   ;;  %s19480_s3 = inlined_call_operand.hbm [shape: f32[8,12288], index: 3, kind: output, shape index: {}]  }
   0x1   :  { %10 = vsyncpa [#allocation3 + $0x1], 0 }
   0x2   :  { %11 = vsyncpa [#allocation6], 0 }
   0x3   :  { %13 = vsyncpa [#allocation6 + $0x1], 0 }
   0x4   :  { %14 = vsyncpa [#allocation4], 0 }
   0x5   :  { %16 = vsyncpa [#allocation4 + $0x1], 0  ;;  %s17070_s12 = smov 0   ;;  %s17072_s13 = smov 0  }
   0x6   :  { %s17074_s14 = smov 0   ;;  %s17076_s15 = smov 0  }
   0x7 LB: > { %s17091_s16 = sadd.s32 4294967295, %s17042_s15   ;;  %s14643_s17 = sadd.s32 4294967294, %s17042_s15   ;;  %s17042_s15 = sphi %s17076_s15, %s19495_s15   ;;  %s17038_s14 = sphi %s17074_s14, %s19494_s14   ;;  %s17034_s13 = sphi %s17072_s13, %s19493_s13   ;;  %s17030_s12 = sphi %s17070_s12, %s19492_s12  }
   0x8   : > { %s17095_s18 = sadd.s32 1, %s17042_s15   ;;  %s50_s19 = sadd.s32 1, %s17038_s14 }
   0x9   : > { %s47_s20 = ssub.s32 %s17042_s15, %s17095_s18  ;;  %p57_p0 = scmp.ne.s32.totalorder %s17038_s14, %s17034_s13 }
   0xa   : > { %p48_p1 = scmp.eq.s32.totalorder %s47_s20, 0  ;;  %p58_p2 = scmp.eq.s32.totalorder %s17042_s15, 0 }
   0xb   : > { %p63_p3 = scmp.ne.s32.totalorder %s17034_s13, %s17030_s12  ;;  %p64_p4 = scmp.eq.s32.totalorder %s17091_s16, 0 }
   0xc   : > { %s17107_s21 = scalar_select %p48_p1, %s17038_s14, %s50_s19  }
   0xd   : > { %p59_p5 = por %p58_p2, %p57_p0  ;;  %p17109_p6 = por %p64_p4, %p63_p3 }
   0xe   : > { %p113_p7 = scmp.eq.s32.totalorder %s17091_s16, 5  ;;  %p119_p8 = scmp.eq.s32.totalorder %s14643_s17, 5 }
   0xf   : > { %s19483_s22 = scalar_select %p17109_p6, 1, 0 }
  0x10   : > { %p16855_p9 = scmp.lt.s32.totalorder %s17042_s15, 6  ;;  %p17115_p10 = por %p113_p7, %p57_p0 }
  0x11   : > { %p17119_p11 = por %p119_p8, %p63_p3  ;;  %s17124_s25 = sand.u32 1, %s17038_s14  }
  0x12   : > { %s19484_s23 = scalar_select %p17115_p10, 1, 0 }
  0x13   : > { %s19485_s24 = scalar_select %p17119_p11, 1, 0 }
  0x14   : > { %s16836_s26 = smul.u32 245760, %s17042_s15  ;;  %p17133_p12 = pnand %p16855_p9, %p59_p5 }
  0x15   : > { %s16835_s27 = smul.u32 15360, %s17124_s25  ;;  %s143_s7 = scalar_lea.sflag [#allocation3], %s17124_s25 }
  0x16   : > { %s17131_s30 = scalar_lea.hbm %s19478_s1, %s16836_s26  ;;  %p16914_p0 = pneg %p17133_p12 }
  0x17   : > { %s146_s5 = scalar_lea.vmem [#allocation2], %s16835_s27  ;;  %s16912_s8 = scalar_lea.hbm %s17131_s30, 245760 }
  0x18   : > { %s153_s6 = sshll.u32 %s146_s5, 4  ;;  %p16913_p13 = scmp.ne.s32.totalorder %s17131_s30, %s16912_s8  ;;  %s17137_s6 = int_to_ptr.vmem [resolvable:$true] %s153_s6 }
  0x19   : > { %s16917_s11 = scalar_lea.hbm %s19478_s1, 1474560  ;;  %p16918_p3 = scmp.lt.u32.totalorder %s17131_s30, %s19478_s1 }
  0x1a   : > { %p16915_p1 = pnand %p16914_p0, %p16913_p13  ;;  %p16919_p4 = scmp.lt.u32.totalorder %s16917_s11, %s16912_s8 }
  0x1b   : > { %p16921_p7 = scmp.lt.u32.totalorder %s16912_s8, %s17131_s30 }
  0x1c   : > { %p16916_p2 = pneg %p16915_p1  ;;  %p16920_p5 = por %p16919_p4, %p16918_p3 }
  0x1e   : > { %p16922_p8 = por %p16921_p7, %p16920_p5 }
  0x20   : > { %p16923_p9 = pnand %p16922_p8, %p16916_p2 }
  0x22   : > { %16926 = shalt.err (!%p16923_p9)
}
  0x23   : > { %s16927_s20 = scalar_lea.vmem %s17137_s6, 245760  ;;  %s17044_s26 = smov [#allocation2]  }
  0x24   : > { %p16928_p13 = scmp.ne.s32.totalorder %s17137_s6, %s16927_s20  ;;  %s16932_s27 = sshll.u32 %s17044_s26, 4  ;;  %s16933_s27 = int_to_ptr.vmem [resolvable:$false] %s16932_s27 }
  0x25   : > { %s16934_s28 = scalar_lea.vmem %s16933_s27, 491520  ;;  %p16935_p10 = scmp.lt.s32.totalorder %s17137_s6, %s16933_s27 }
  0x26   : > { %p16930_p1 = pnand %p16928_p13, %p16914_p0  ;;  %p16936_p3 = scmp.lt.s32.totalorder %s16934_s28, %s16927_s20 }
  0x28   : > { %p16931_p11 = pneg %p16930_p1  ;;  %p16937_p4 = por %p16936_p3, %p16935_p10 }
  0x2a   : > { %p16938_p5 = pnand %p16937_p4, %p16931_p11 }
  0x2c   : > { %16941 = shalt.err (!%p16938_p5)
}
  0x2d   : > { %s17045_s29 = smov 1024   ;;  %s17046_s5 = smov 64  }
  0x2e   : > { %16847 = dma.hbm_to_vmem [thread:$0]  (!%p17133_p12), %s17131_s30, 245760, %s17137_s6, %s143_s7, %s17045_s29, %s17045_s29, %s17046_s5  }
  0x2f   : > { %p14650_p2 = scmp.ge.s32.totalorder %s17042_s15, 1  ;;  %p180_p7 = scmp.lt.s32.totalorder %s17042_s15, 7 }
  0x30   : > { %s14647_s8 = sshll.u32 %s17124_s25, 4  ;;  %s16593_s10 = sshll.u32 %s17042_s15, 8 }
  0x31   : > { %p17170_p10 = pnand %p14650_p2, %p180_p7  ;;  %s167_s11 = scalar_lea.vmem [#allocation5], %s14647_s8 }
  0x32   : > { %s175_s17 = sshll.u32 %s167_s11, 4  ;;  %s17178_s26 = scalar_lea.hbm %s19479_s2, %s16593_s10  ;;  %s176_s17 = int_to_ptr.vmem [resolvable:$true] %s175_s17 }
  0x33   : > { %s19487_s9 = scalar_select %p17170_p10, 1, 0 }
  0x34   : > { %s164_s30 = scalar_lea.sflag [#allocation6], %s17124_s25  ;;  %s16942_s6 = scalar_lea.hbm %s17178_s26, 256 }
  0x35   : > { %p16943_p11 = scmp.ne.s32.totalorder %s17178_s26, %s16942_s6  ;;  %s16947_s28 = scalar_lea.hbm %s19479_s2, 1536 }
  0x36   : > { %p16948_p13 = scmp.lt.u32.totalorder %s17178_s26, %s19479_s2  ;;  %p16949_p1 = scmp.lt.u32.totalorder %s16947_s28, %s16942_s6 }
  0x37   : > { %p16945_p8 = pnand %p16943_p11, %p16914_p0  ;;  %p16951_p4 = scmp.lt.u32.totalorder %s16942_s6, %s17178_s26 }
  0x38   : > { %p16950_p3 = por %p16949_p1, %p16948_p13 }
  0x39   : > { %p16946_p9 = pneg %p16945_p8 }
  0x3a   : > { %p16952_p5 = por %p16951_p4, %p16950_p3 }
  0x3c   : > { %p16953_p2 = pnand %p16952_p5, %p16946_p9 }
  0x3e   : > { %16956 = shalt.err (!%p16953_p2)
}
  0x3f   : > { %s16957_s25 = scalar_lea.vmem %s176_s17, 256  ;;  %s17047_s8 = smov [#allocation5]  }
  0x40   : > { %p16958_p7 = scmp.ne.s32.totalorder %s176_s17, %s16957_s25  ;;  %s16962_s10 = sshll.u32 %s17047_s8, 4  ;;  %s16963_s10 = int_to_ptr.vmem [resolvable:$false] %s16962_s10 }
  0x41   : > { %s16964_s11 = scalar_lea.vmem %s16963_s10, 512  ;;  %p16965_p6 = scmp.lt.s32.totalorder %s176_s17, %s16963_s10 }
  0x42   : > { %p16960_p11 = pnand %p16958_p7, %p16914_p0  ;;  %p16966_p10 = scmp.lt.s32.totalorder %s16964_s11, %s16957_s25 }
  0x44   : > { %p16961_p8 = pneg %p16960_p11  ;;  %p16967_p1 = por %p16966_p10, %p16965_p6 }
  0x46   : > { %p16968_p13 = pnand %p16967_p1, %p16961_p8 }
  0x48   : > { %16971 = shalt.err (!%p16968_p13)
}
  0x49   : > { %16850 = dma.hbm_to_vmem [thread:$0]  (!%p17133_p12), %s17178_s26, 256, %s176_s17, %s164_s30  }
  0x4a   : > { %p19488_p9 = scmp.ne.s32.totalorder %s19487_s9, 0 }
  0x4b   : > { %s17203_s19 = sand.u32 (!%p19488_p9), 1, %s17034_s13   ;;  %p19489_p6 = scmp.ne.s32.totalorder (!%p19488_p9), %s19483_s22, 0 }
  0x4c   : > { %184 = sbr.rel (%p19488_p9) target bundleno = 2240 (0x8c0), region = 32  ;;  %s187_s6 = scalar_lea.sflag (!%p19488_p9), [#allocation3], %s17203_s19 }
  0x4d   : > { %s16837_s20 = smul.u32 (!%p19488_p9), 15360, %s17203_s19 }
  0x4f   : > { %s17207_s7 = scalar_lea.vmem (!%p19488_p9), [#allocation2], %s16837_s20 }
  0x53   : > { %17017 = dma.done.wait (%p19489_p6), %s187_s6, 245760  }
  0x54   : > { %17019 = vsyncadd (%p19489_p6), %s187_s6, 4294721536  ;;  %s14651_s4 = sshll.u32 %s17203_s19, 4  ;;  %s196_s9 = scalar_lea.sflag [#allocation6], %s17203_s19 }
  0x55   : > { %s17215_s17 = scalar_lea.vmem [#allocation5], %s14651_s4 }
  0x56   : > { %17021 = dma.done.wait (%p19489_p6), %s196_s9, 256  }
  0x57   : > { %17023 = vsyncadd (%p19489_p6), %s196_s9, 4294967040  ;;  %v238_v0 = vld [vmem:[%s17207_s7] sm:$0xff]  ;;  %v239_v2 = vld [vmem:[%s17207_s7 + $0x8] sm:$0xff]  ;;  %s14652_s26 = sshll.u32 %s17203_s19, 7  ;;  %s16594_s8 = sshll.u32 %s17091_s16, 11 }
  0x58   : > { %v246_v1 = vld [vmem:[%s17207_s7 + $0x40] sm:$0xff]  ;;  %v247_v4 = vld [vmem:[%s17207_s7 + $0x48] sm:$0xff]  ;;  %s18079_s30 = scalar_lea.vmem [#allocation7], %s14652_s26  ;;  %s19431_s16 = scalar_lea.hbm %s19480_s3, %s16594_s8 }
  0x59   : > { %v14669_v3 = vcombine.high %v238_v0, %v246_v1  ;;  %v14668_v5 = vcombine.low %v238_v0, %v246_v1  ;;  %v254_v6 = vld [vmem:[%s17207_s7 + $0x80] sm:$0xff]  ;;  %v14671_v8 = vcombine.high %v239_v2, %v247_v4  ;;  %v14670_v9 = vcombine.low %v239_v2, %v247_v4  ;;  %v255_v11 = vld [vmem:[%s17207_s7 + $0x88] sm:$0xff]  ;;  %s14550_s10 = sshll.u32 %s18079_s30, 4  ;;  %s14536_s20 = scalar_lea.sflag [#allocation4], %s17203_s19  ;;  %s19433_s10 = int_to_ptr.vmem [resolvable:$true] %s14550_s10 }
  0x5a   : > { %v262_v7 = vld [vmem:[%s17207_s7 + $0xc0] sm:$0xff]  ;;  %v263_v12 = vld [vmem:[%s17207_s7 + $0xc8] sm:$0xff]  ;;  %s16972_s6 = scalar_lea.vmem %s19433_s10, 2048  ;;  %p19490_p0 = scmp.ne.s32.totalorder %s19484_s23, 0 }
  0x5b   : > { %v14685_v10 = vcombine.high %v254_v6, %v262_v7  ;;  %v270_v13 = vld [vmem:[%s17207_s7 + $0x100] sm:$0xff]  ;;  %11895 = vmatprep.subr.bf16.mxu0 %v14669_v3  ;;  %v14687_v14 = vcombine.high %v255_v11, %v263_v12  ;;  %v271_v16 = vld [vmem:[%s17207_s7 + $0x108] sm:$0xff]  ;;  %12223 = vmatprep.subr.bf16.mxu1 %v14671_v8  ;;  %v14684_v18 = vcombine.low %v254_v6, %v262_v7  ;;  %p16973_p12 = scmp.ne.s32.totalorder %s19433_s10, %s16972_s6  ;;  %s17049_s4 = smov [#allocation7]  }
  0x5c   : > { %v278_v15 = vld [vmem:[%s17207_s7 + $0x140] sm:$0xff]  ;;  %v279_v17 = vld [vmem:[%s17207_s7 + $0x148] sm:$0xff]  ;;  %11896 = vmatpush1.bf16.msra.mxu0 %v14668_v5  ;;  %12224 = vmatpush1.bf16.msra.mxu1 %v14670_v9  ;;  %v14686_v19 = vcombine.low %v255_v11, %v263_v12  ;;  %s16976_s9 = sshll.u32 %s17049_s4, 4  ;;  %s16977_s9 = int_to_ptr.vmem [resolvable:$false] %s16976_s9 }
  0x5d   : > { %11897 = vmatprep.subr.bf16.mxu0 %v14685_v10  ;;  %v14701_v20 = vcombine.high %v270_v13, %v278_v15  ;;  %12225 = vmatprep.subr.bf16.mxu1 %v14687_v14  ;;  %v14703_v21 = vcombine.high %v271_v16, %v279_v17  ;;  %v286_v22 = vld [vmem:[%s17207_s7 + $0x180] sm:$0xff]  ;;  %v287_v24 = vld [vmem:[%s17207_s7 + $0x188] sm:$0xff]  ;;  %v14700_v26 = vcombine.low %v270_v13, %v278_v15  ;;  %p16974_p10 = pnand %p16973_p12, %p19490_p0  ;;  %s16978_s22 = scalar_lea.vmem %s16977_s9, 4096 }
  0x5e   : > { %v294_v23 = vld [vmem:[%s17207_s7 + $0x1c0] sm:$0xff]  ;;  %v295_v25 = vld [vmem:[%s17207_s7 + $0x1c8] sm:$0xff]  ;;  %v14702_v27 = vcombine.low %v271_v16, %v279_v17  ;;  %p16979_p4 = scmp.lt.s32.totalorder %s19433_s10, %s16977_s9  ;;  %p16980_p5 = scmp.lt.s32.totalorder %s16978_s22, %s16972_s6 }
  0x5f   : > { %v14717_v28 = vcombine.high %v286_v22, %v294_v23  ;;  %v14719_v29 = vcombine.high %v287_v24, %v295_v25  ;;  %v302_v30 = vld [vmem:[%s17207_s7 + $0x200] sm:$0xff]  ;;  %v303_v32 = vld [vmem:[%s17207_s7 + $0x208] sm:$0xff]  ;;  %v14716_v34 = vcombine.low %v286_v22, %v294_v23  ;;  %v14718_v35 = vcombine.low %v287_v24, %v295_v25  ;;  %p16975_p3 = pneg %p16974_p10 }
  0x60   : > { %11898 = vmatpush1.bf16.msra.mxu0 %v14684_v18  ;;  %12226 = vmatpush1.bf16.msra.mxu1 %v14686_v19  ;;  %v310_v31 = vld [vmem:[%s17207_s7 + $0x240] sm:$0xff]  ;;  %v311_v33 = vld [vmem:[%s17207_s7 + $0x248] sm:$0xff]  ;;  %p16981_p2 = por %p16980_p5, %p16979_p4 }
  0x61   : > { %11899 = vmatprep.subr.bf16.mxu0 %v14701_v20  ;;  %12227 = vmatprep.subr.bf16.mxu1 %v14703_v21  ;;  %v14733_v36 = vcombine.high %v302_v30, %v310_v31  ;;  %v14735_v37 = vcombine.high %v303_v32, %v311_v33  ;;  %v318_v38 = vld [vmem:[%s17207_s7 + $0x280] sm:$0xff]  ;;  %v319_v40 = vld [vmem:[%s17207_s7 + $0x288] sm:$0xff]  ;;  %v14732_v42 = vcombine.low %v302_v30, %v310_v31 }
  0x62   : > { %v326_v39 = vld [vmem:[%s17207_s7 + $0x2c0] sm:$0xff]  ;;  %v327_v41 = vld [vmem:[%s17207_s7 + $0x2c8] sm:$0xff]  ;;  %v14734_v43 = vcombine.low %v303_v32, %v311_v33  ;;  %p16982_p7 = pnand %p16981_p2, %p16975_p3 }
  0x63   : > { %v14749_v44 = vcombine.high %v318_v38, %v326_v39  ;;  %v14751_v45 = vcombine.high %v319_v40, %v327_v41  ;;  %v334_v46 = vld [vmem:[%s17207_s7 + $0x300] sm:$0xff]  ;;  %v335_v48 = vld [vmem:[%s17207_s7 + $0x308] sm:$0xff]  ;;  %v14748_v50 = vcombine.low %v318_v38, %v326_v39  ;;  %v14750_v51 = vcombine.low %v319_v40, %v327_v41 }
  0x64   : > { %11900 = vmatpush1.bf16.msra.mxu0 %v14700_v26  ;;  %12228 = vmatpush1.bf16.msra.mxu1 %v14702_v27  ;;  %v342_v47 = vld [vmem:[%s17207_s7 + $0x340] sm:$0xff]  ;;  %v343_v49 = vld [vmem:[%s17207_s7 + $0x348] sm:$0xff] }
  0x65   : > { %11901 = vmatprep.subr.bf16.mxu0 %v14717_v28  ;;  %12229 = vmatprep.subr.bf16.mxu1 %v14719_v29  ;;  %v14765_v52 = vcombine.high %v334_v46, %v342_v47  ;;  %v17252_v53 = vld [vmem:[%s19477_s0] sm:$0xff]  ;;  %v14767_v54 = vcombine.high %v335_v48, %v343_v49  ;;  %v351_v58 = vld [vmem:[%s17207_s7 + $0x388] sm:$0xff]  ;;  %v14764_v60 = vcombine.low %v334_v46, %v342_v47 }
  0x66   : > { %v350_v55 = vld [vmem:[%s17207_s7 + $0x380] sm:$0xff]  ;;  %v17258_v57 = vcombine.high %v17252_v53, %v17252_v53  ;;  %v359_v59 = vld [vmem:[%s17207_s7 + $0x3c8] sm:$0xff]  ;;  %v14766_v61 = vcombine.low %v335_v48, %v343_v49 }
  0x67   : > { %v358_v56 = vld [vmem:[%s17207_s7 + $0x3c0] sm:$0xff]  ;;  %v14783_v63 = vcombine.high %v351_v58, %v359_v59  ;;  %v367_v2 = vld [vmem:[%s17207_s7 + $0x408] sm:$0xff]  ;;  %v14782_v5 = vcombine.low %v351_v58, %v359_v59 }
  0x68   : > { %11902 = vmatpush1.bf16.msra.mxu0 %v14716_v34  ;;  %12230 = vmatpush1.bf16.msra.mxu1 %v14718_v35  ;;  %v14781_v62 = vcombine.high %v350_v55, %v358_v56  ;;  %v366_v0 = vld [vmem:[%s17207_s7 + $0x400] sm:$0xff]  ;;  %v375_v3 = vld [vmem:[%s17207_s7 + $0x448] sm:$0xff]  ;;  %v14780_v4 = vcombine.low %v350_v55, %v358_v56 }
  0x69   : > { %11903 = vmatprep.subr.bf16.mxu0 %v14733_v36  ;;  %12231 = vmatprep.subr.bf16.mxu1 %v14735_v37  ;;  %v374_v1 = vld [vmem:[%s17207_s7 + $0x440] sm:$0xff]  ;;  %v14799_v7 = vcombine.high %v367_v2, %v375_v3  ;;  %v383_v10 = vld [vmem:[%s17207_s7 + $0x488] sm:$0xff]  ;;  %v14798_v13 = vcombine.low %v367_v2, %v375_v3 }
  0x6a   : > { %11927 = vmatprep.mubr.bf16.mxu0 %v17258_v57  ;;  %12255 = vmatprep.mubr.bf16.mxu1 %v17258_v57  ;;  %v14797_v6 = vcombine.high %v366_v0, %v374_v1  ;;  %v382_v8 = vld [vmem:[%s17207_s7 + $0x480] sm:$0xff]  ;;  %v391_v11 = vld [vmem:[%s17207_s7 + $0x4c8] sm:$0xff]  ;;  %v14796_v12 = vcombine.low %v366_v0, %v374_v1 }
  0x6b   : > { %v390_v9 = vld [vmem:[%s17207_s7 + $0x4c0] sm:$0xff]  ;;  %v14815_v15 = vcombine.high %v383_v10, %v391_v11  ;;  %v399_v18 = vld [vmem:[%s17207_s7 + $0x508] sm:$0xff]  ;;  %v14814_v21 = vcombine.low %v383_v10, %v391_v11 }
  0x6c   : > { %11904 = vmatpush1.bf16.msra.mxu0 %v14732_v42  ;;  %12232 = vmatpush1.bf16.msra.mxu1 %v14734_v43  ;;  %v14813_v14 = vcombine.high %v382_v8, %v390_v9  ;;  %v398_v16 = vld [vmem:[%s17207_s7 + $0x500] sm:$0xff]  ;;  %v407_v19 = vld [vmem:[%s17207_s7 + $0x548] sm:$0xff]  ;;  %v14812_v20 = vcombine.low %v382_v8, %v390_v9 }
  0x6d   : > { %11905 = vmatprep.subr.bf16.mxu0 %v14749_v44  ;;  %12233 = vmatprep.subr.bf16.mxu1 %v14751_v45  ;;  %v406_v17 = vld [vmem:[%s17207_s7 + $0x540] sm:$0xff]  ;;  %v14831_v23 = vcombine.high %v399_v18, %v407_v19  ;;  %v415_v26 = vld [vmem:[%s17207_s7 + $0x588] sm:$0xff]  ;;  %v14830_v29 = vcombine.low %v399_v18, %v407_v19 }
  0x6e   : > { %v14829_v22 = vcombine.high %v398_v16, %v406_v17  ;;  %v414_v24 = vld [vmem:[%s17207_s7 + $0x580] sm:$0xff]  ;;  %v423_v27 = vld [vmem:[%s17207_s7 + $0x5c8] sm:$0xff]  ;;  %v14828_v28 = vcombine.low %v398_v16, %v406_v17 }
  0x6f   : > { %v422_v25 = vld [vmem:[%s17207_s7 + $0x5c0] sm:$0xff]  ;;  %v14847_v31 = vcombine.high %v415_v26, %v423_v27  ;;  %v431_v34 = vld [vmem:[%s17207_s7 + $0x608] sm:$0xff]  ;;  %v14846_v37 = vcombine.low %v415_v26, %v423_v27 }
  0x70   : > { %11906 = vmatpush1.bf16.msra.mxu0 %v14748_v50  ;;  %12234 = vmatpush1.bf16.msra.mxu1 %v14750_v51  ;;  %v14845_v30 = vcombine.high %v414_v24, %v422_v25  ;;  %v430_v32 = vld [vmem:[%s17207_s7 + $0x600] sm:$0xff]  ;;  %v439_v35 = vld [vmem:[%s17207_s7 + $0x648] sm:$0xff]  ;;  %v14844_v36 = vcombine.low %v414_v24, %v422_v25 }
  0x71   : > { %11907 = vmatprep.subr.bf16.mxu0 %v14765_v52  ;;  %12235 = vmatprep.subr.bf16.mxu1 %v14767_v54  ;;  %v438_v33 = vld [vmem:[%s17207_s7 + $0x640] sm:$0xff]  ;;  %v14863_v39 = vcombine.high %v431_v34, %v439_v35  ;;  %v447_v42 = vld [vmem:[%s17207_s7 + $0x688] sm:$0xff]  ;;  %v14862_v45 = vcombine.low %v431_v34, %v439_v35 }
  0x72   : > { %v14861_v38 = vcombine.high %v430_v32, %v438_v33  ;;  %v446_v40 = vld [vmem:[%s17207_s7 + $0x680] sm:$0xff]  ;;  %v455_v43 = vld [vmem:[%s17207_s7 + $0x6c8] sm:$0xff]  ;;  %v14860_v44 = vcombine.low %v430_v32, %v438_v33 }
  0x73   : > { %v454_v41 = vld [vmem:[%s17207_s7 + $0x6c0] sm:$0xff]  ;;  %v14879_v47 = vcombine.high %v447_v42, %v455_v43  ;;  %v463_v50 = vld [vmem:[%s17207_s7 + $0x708] sm:$0xff]  ;;  %v14878_v54 = vcombine.low %v447_v42, %v455_v43 }
  0x74   : > { %11908 = vmatpush1.bf16.msra.mxu0 %v14764_v60  ;;  %12236 = vmatpush1.bf16.msra.mxu1 %v14766_v61  ;;  %v14877_v46 = vcombine.high %v446_v40, %v454_v41  ;;  %v462_v48 = vld [vmem:[%s17207_s7 + $0x700] sm:$0xff]  ;;  %v471_v51 = vld [vmem:[%s17207_s7 + $0x748] sm:$0xff]  ;;  %v14876_v52 = vcombine.low %v446_v40, %v454_v41 }
  0x75   : > { %11909 = vmatprep.subr.bf16.mxu0 %v14781_v62  ;;  %12237 = vmatprep.subr.bf16.mxu1 %v14783_v63  ;;  %v470_v49 = vld [vmem:[%s17207_s7 + $0x740] sm:$0xff]  ;;  %v14895_v56 = vcombine.high %v463_v50, %v471_v51  ;;  %v479_v60 = vld [vmem:[%s17207_s7 + $0x788] sm:$0xff]  ;;  %v14894_v63 = vcombine.low %v463_v50, %v471_v51 }
  0x76   : > { %v14893_v55 = vcombine.high %v462_v48, %v470_v49  ;;  %v478_v58 = vld [vmem:[%s17207_s7 + $0x780] sm:$0xff]  ;;  %v487_v61 = vld [vmem:[%s17207_s7 + $0x7c8] sm:$0xff]  ;;  %v14892_v62 = vcombine.low %v462_v48, %v470_v49 }
  0x77   : > { %v486_v59 = vld [vmem:[%s17207_s7 + $0x7c0] sm:$0xff]  ;;  %v14911_v1 = vcombine.high %v479_v60, %v487_v61 }
  0x78   : > { %11910 = vmatpush1.bf16.msra.mxu0 %v14780_v4  ;;  %12238 = vmatpush1.bf16.msra.mxu1 %v14782_v5  ;;  %v14909_v0 = vcombine.high %v478_v58, %v486_v59  ;;  %v494_v2 = vld [vmem:[%s17207_s7 + $0x800] sm:$0xff]  ;;  %v495_v4 = vld [vmem:[%s17207_s7 + $0x808] sm:$0xff] }
  0x79   : > { %11911 = vmatprep.subr.bf16.mxu0 %v14797_v6  ;;  %12239 = vmatprep.subr.bf16.mxu1 %v14799_v7  ;;  %v502_v3 = vld [vmem:[%s17207_s7 + $0x840] sm:$0xff]  ;;  %v503_v5 = vld [vmem:[%s17207_s7 + $0x848] sm:$0xff]  ;;  %v14908_v6 = vcombine.low %v478_v58, %v486_v59  ;;  %v14910_v7 = vcombine.low %v479_v60, %v487_v61 }
  0x7a   : > { %v14925_v8 = vcombine.high %v494_v2, %v502_v3  ;;  %v14927_v9 = vcombine.high %v495_v4, %v503_v5  ;;  %v510_v10 = vld [vmem:[%s17207_s7 + $0x880] sm:$0xff]  ;;  %v14924_v16 = vcombine.low %v494_v2, %v502_v3  ;;  %v14926_v17 = vcombine.low %v495_v4, %v503_v5 }
  0x7b   : > { %v518_v11 = vld [vmem:[%s17207_s7 + $0x8c0] sm:$0xff] }
  0x7c   : > { %11912 = vmatpush1.bf16.msra.mxu0 %v14796_v12  ;;  %12240 = vmatpush1.bf16.msra.mxu1 %v14798_v13  ;;  %v17304_v12 = vcombine.low %v17252_v53, %v17252_v53  ;;  %v511_v13 = vld [vmem:[%s17207_s7 + $0x888] sm:$0xff]  ;;  %v14941_v18 = vcombine.high %v510_v10, %v518_v11  ;;  %v526_v53 = vld [vmem:[%s17207_s7 + $0x900] sm:$0xff]  ;;  %v14940_v24 = vcombine.low %v510_v10, %v518_v11 }
  0x7d   : > { %11913 = vmatprep.subr.bf16.mxu0 %v14813_v14  ;;  %12241 = vmatprep.subr.bf16.mxu1 %v14815_v15  ;;  %v519_v14 = vld [vmem:[%s17207_s7 + $0x8c8] sm:$0xff] }
  0x7e   : > { %v17311_v15 = vld [vmem:[%s19477_s0 + $0x8] sm:$0xff]  ;;  %v14943_v19 = vcombine.high %v511_v13, %v519_v14  ;;  %v14942_v25 = vcombine.low %v511_v13, %v519_v14 }
  0x80   : > { %11914 = vmatpush1.bf16.msra.mxu0 %v14812_v20  ;;  %12242 = vmatpush1.bf16.msra.mxu1 %v14814_v21  ;;  %v534_v20 = vld [vmem:[%s17207_s7 + $0x940] sm:$0xff]  ;;  %v17317_v21 = vcombine.high %v17311_v15, %v17311_v15 }
  0x81   : > { %11915 = vmatprep.subr.bf16.mxu0 %v14829_v22  ;;  %12243 = vmatprep.subr.bf16.mxu1 %v14831_v23  ;;  %v527_v22 = vld [vmem:[%s17207_s7 + $0x908] sm:$0xff]  ;;  %v14957_v26 = vcombine.high %v526_v53, %v534_v20  ;;  %v14956_v32 = vcombine.low %v526_v53, %v534_v20 }
  0x82   : > { %v535_v23 = vld [vmem:[%s17207_s7 + $0x948] sm:$0xff] }
  0x83   : > { %v14959_v27 = vcombine.high %v527_v22, %v535_v23  ;;  %v14958_v33 = vcombine.low %v527_v22, %v535_v23 }
  0x84   : > { %11916 = vmatpush1.bf16.msra.mxu0 %v14828_v28  ;;  %12244 = vmatpush1.bf16.msra.mxu1 %v14830_v29  ;;  %v542_v28 = vld [vmem:[%s17207_s7 + $0x980] sm:$0xff] }
  0x85   : > { %11917 = vmatprep.subr.bf16.mxu0 %v14845_v30  ;;  %12245 = vmatprep.subr.bf16.mxu1 %v14847_v31  ;;  %v550_v29 = vld [vmem:[%s17207_s7 + $0x9c0] sm:$0xff]  ;;  %v543_v30 = vld [vmem:[%s17207_s7 + $0x988] sm:$0xff] }
  0x86   : > { %v551_v31 = vld [vmem:[%s17207_s7 + $0x9c8] sm:$0xff]  ;;  %v14973_v34 = vcombine.high %v542_v28, %v550_v29  ;;  %v14972_v40 = vcombine.low %v542_v28, %v550_v29 }
  0x87   : > { %v14975_v35 = vcombine.high %v543_v30, %v551_v31  ;;  %v14974_v41 = vcombine.low %v543_v30, %v551_v31 }
  0x88   : > { %11918 = vmatpush1.bf16.msra.mxu0 %v14844_v36  ;;  %12246 = vmatpush1.bf16.msra.mxu1 %v14846_v37  ;;  %v558_v36 = vld [vmem:[%s17207_s7 + $0xa00] sm:$0xff] }
  0x89   : > { %11919 = vmatprep.subr.bf16.mxu0 %v14861_v38  ;;  %12247 = vmatprep.subr.bf16.mxu1 %v14863_v39  ;;  %v566_v37 = vld [vmem:[%s17207_s7 + $0xa40] sm:$0xff]  ;;  %v559_v38 = vld [vmem:[%s17207_s7 + $0xa08] sm:$0xff] }
  0x8a   : > { %v567_v39 = vld [vmem:[%s17207_s7 + $0xa48] sm:$0xff]  ;;  %v14989_v42 = vcombine.high %v558_v36, %v566_v37  ;;  %v14988_v48 = vcombine.low %v558_v36, %v566_v37 }
  0x8b   : > { %v14991_v43 = vcombine.high %v559_v38, %v567_v39  ;;  %v14990_v49 = vcombine.low %v559_v38, %v567_v39 }
  0x8c   : > { %11920 = vmatpush1.bf16.msra.mxu0 %v14860_v44  ;;  %12248 = vmatpush1.bf16.msra.mxu1 %v14862_v45  ;;  %v574_v44 = vld [vmem:[%s17207_s7 + $0xa80] sm:$0xff] }
  0x8d   : > { %11921 = vmatprep.subr.bf16.mxu0 %v14877_v46  ;;  %12249 = vmatprep.subr.bf16.mxu1 %v14879_v47  ;;  %v582_v45 = vld [vmem:[%s17207_s7 + $0xac0] sm:$0xff]  ;;  %v575_v46 = vld [vmem:[%s17207_s7 + $0xa88] sm:$0xff] }
  0x8e   : > { %v583_v47 = vld [vmem:[%s17207_s7 + $0xac8] sm:$0xff]  ;;  %v15005_v50 = vcombine.high %v574_v44, %v582_v45  ;;  %v15004_v58 = vcombine.low %v574_v44, %v582_v45 }
  0x8f   : > { %v15007_v51 = vcombine.high %v575_v46, %v583_v47  ;;  %v15006_v59 = vcombine.low %v575_v46, %v583_v47 }
  0x90   : > { %11922 = vmatpush1.bf16.msra.mxu0 %v14876_v52  ;;  %12250 = vmatpush1.bf16.msra.mxu1 %v14878_v54  ;;  %v590_v52 = vld [vmem:[%s17207_s7 + $0xb00] sm:$0xff] }
  0x91   : > { %11923 = vmatprep.subr.bf16.mxu0 %v14893_v55  ;;  %12251 = vmatprep.subr.bf16.mxu1 %v14895_v56  ;;  %v598_v54 = vld [vmem:[%s17207_s7 + $0xb40] sm:$0xff]  ;;  %v591_v55 = vld [vmem:[%s17207_s7 + $0xb08] sm:$0xff] }
  0x92   : > { %v599_v56 = vld [vmem:[%s17207_s7 + $0xb48] sm:$0xff]  ;;  %v15021_v60 = vcombine.high %v590_v52, %v598_v54  ;;  %v15020_v2 = vcombine.low %v590_v52, %v598_v54 }
  0x93   : > { %v15023_v61 = vcombine.high %v591_v55, %v599_v56  ;;  %v15022_v3 = vcombine.low %v591_v55, %v599_v56 }
  0x94   : > { %11924 = vmatpush1.bf16.msra.mxu0 %v14892_v62  ;;  %12252 = vmatpush1.bf16.msra.mxu1 %v14894_v63  ;;  %v606_v62 = vld [vmem:[%s17207_s7 + $0xb80] sm:$0xff] }
  0x95   : > { %11925 = vmatprep.subr.bf16.mxu0 %v14909_v0  ;;  %12253 = vmatprep.subr.bf16.mxu1 %v14911_v1  ;;  %v614_v63 = vld [vmem:[%s17207_s7 + $0xbc0] sm:$0xff]  ;;  %v607_v0 = vld [vmem:[%s17207_s7 + $0xb88] sm:$0xff] }
  0x96   : > { %v615_v1 = vld [vmem:[%s17207_s7 + $0xbc8] sm:$0xff]  ;;  %v15037_v4 = vcombine.high %v606_v62, %v614_v63  ;;  %v15036_v10 = vcombine.low %v606_v62, %v614_v63 }
  0x97   : > { %v15039_v5 = vcombine.high %v607_v0, %v615_v1  ;;  %v15038_v11 = vcombine.low %v607_v0, %v615_v1 }
  0x98   : > { %11926 = vmatpush1.bf16.msra.mxu0 %v14908_v6  ;;  %12254 = vmatpush1.bf16.msra.mxu1 %v14910_v7  ;;  %v622_v6 = vld [vmem:[%s17207_s7 + $0xc00] sm:$0xff] }
  0x99   : > { %11936 = vmatprep.subr.bf16.mxu0 %v14925_v8  ;;  %12264 = vmatprep.subr.bf16.mxu1 %v14927_v9  ;;  %v630_v7 = vld [vmem:[%s17207_s7 + $0xc40] sm:$0xff]  ;;  %v623_v8 = vld [vmem:[%s17207_s7 + $0xc08] sm:$0xff] }
  0x9a   : > { %v631_v9 = vld [vmem:[%s17207_s7 + $0xc48] sm:$0xff]  ;;  %v15053_v13 = vcombine.high %v622_v6, %v630_v7  ;;  %v15052_v53 = vcombine.low %v622_v6, %v630_v7 }
  0x9b   : > { %11928 = vmatmul.mubr.bf16.vlgmr.msra.gmra.mrb[0].mxu0 %v17304_v12  ;;  %12256 = vmatmul.mubr.bf16.vlgmr.msra.gmra.mrb[0].mxu1 %v17304_v12  ;;  %v15055_v14 = vcombine.high %v623_v8, %v631_v9  ;;  %v15054_v20 = vcombine.low %v623_v8, %v631_v9 }
  0x9c   : > { %11937 = vmatpush1.bf16.msra.mxu0 %v14924_v16  ;;  %12265 = vmatpush1.bf16.msra.mxu1 %v14926_v17  ;;  %v638_v16 = vld [vmem:[%s17207_s7 + $0xc80] sm:$0xff] }
  0x9d   : > { %11938 = vmatprep.subr.bf16.mxu0 %v14941_v18  ;;  %12266 = vmatprep.subr.bf16.mxu1 %v14943_v19  ;;  %v646_v17 = vld [vmem:[%s17207_s7 + $0xcc0] sm:$0xff]  ;;  %v639_v18 = vld [vmem:[%s17207_s7 + $0xc88] sm:$0xff] }
  0x9e   : > { %11968 = vmatprep.mubr.bf16.mxu0 %v17317_v21  ;;  %12296 = vmatprep.mubr.bf16.mxu1 %v17317_v21  ;;  %v647_v19 = vld [vmem:[%s17207_s7 + $0xcc8] sm:$0xff]  ;;  %v15069_v22 = vcombine.high %v638_v16, %v646_v17  ;;  %v15068_v28 = vcombine.low %v638_v16, %v646_v17 }
  0x9f   : > { %v15071_v23 = vcombine.high %v639_v18, %v647_v19  ;;  %v15070_v29 = vcombine.low %v639_v18, %v647_v19 }
  0xa0   : > { %11939 = vmatpush1.bf16.msra.mxu0 %v14940_v24  ;;  %12267 = vmatpush1.bf16.msra.mxu1 %v14942_v25  ;;  %v654_v24 = vld [vmem:[%s17207_s7 + $0xd00] sm:$0xff] }
  0xa1   : > { %11940 = vmatprep.subr.bf16.mxu0 %v14957_v26  ;;  %12268 = vmatprep.subr.bf16.mxu1 %v14959_v27  ;;  %v662_v25 = vld [vmem:[%s17207_s7 + $0xd40] sm:$0xff]  ;;  %v655_v26 = vld [vmem:[%s17207_s7 + $0xd08] sm:$0xff] }
  0xa2   : > { %v663_v27 = vld [vmem:[%s17207_s7 + $0xd48] sm:$0xff]  ;;  %v15085_v30 = vcombine.high %v654_v24, %v662_v25  ;;  %v15084_v36 = vcombine.low %v654_v24, %v662_v25  ;;  %v17392_v25 = vld [vmem:[%s19477_s0 + $0x10] sm:$0xff] }
  0xa3   : > { %v15087_v31 = vcombine.high %v655_v26, %v663_v27  ;;  %v15086_v37 = vcombine.low %v655_v26, %v663_v27  ;;  %v775_v24 = vld [vmem:[%s17207_s7 + $0x10c8] sm:$0xff] }
  0xa4   : > { %11941 = vmatpush1.bf16.msra.mxu0 %v14956_v32  ;;  %12269 = vmatpush1.bf16.msra.mxu1 %v14958_v33  ;;  %v670_v32 = vld [vmem:[%s17207_s7 + $0xd80] sm:$0xff] }
  0xa5   : > { %11942 = vmatprep.subr.bf16.mxu0 %v14973_v34  ;;  %12270 = vmatprep.subr.bf16.mxu1 %v14975_v35  ;;  %v678_v33 = vld [vmem:[%s17207_s7 + $0xdc0] sm:$0xff]  ;;  %v671_v34 = vld [vmem:[%s17207_s7 + $0xd88] sm:$0xff] }
  0xa6   : > { %v679_v35 = vld [vmem:[%s17207_s7 + $0xdc8] sm:$0xff]  ;;  %v15101_v38 = vcombine.high %v670_v32, %v678_v33  ;;  %v15100_v44 = vcombine.low %v670_v32, %v678_v33 }
  0xa7   : > { %v15103_v39 = vcombine.high %v671_v34, %v679_v35  ;;  %v15102_v45 = vcombine.low %v671_v34, %v679_v35  ;;  %v783_v32 = vld [vmem:[%s17207_s7 + $0x1108] sm:$0xff] }
  0xa8   : > { %11943 = vmatpush1.bf16.msra.mxu0 %v14972_v40  ;;  %12271 = vmatpush1.bf16.msra.mxu1 %v14974_v41  ;;  %v686_v40 = vld [vmem:[%s17207_s7 + $0xe00] sm:$0xff]  ;;  %v791_v33 = vld [vmem:[%s17207_s7 + $0x1148] sm:$0xff] }
  0xa9   : > { %11944 = vmatprep.subr.bf16.mxu0 %v14989_v42  ;;  %12272 = vmatprep.subr.bf16.mxu1 %v14991_v43  ;;  %v694_v41 = vld [vmem:[%s17207_s7 + $0xe40] sm:$0xff]  ;;  %v687_v42 = vld [vmem:[%s17207_s7 + $0xe08] sm:$0xff] }
  0xaa   : > { %v695_v43 = vld [vmem:[%s17207_s7 + $0xe48] sm:$0xff]  ;;  %v15117_v46 = vcombine.high %v686_v40, %v694_v41  ;;  %v15116_v52 = vcombine.low %v686_v40, %v694_v41 }
  0xab   : > { %v15119_v47 = vcombine.high %v687_v42, %v695_v43  ;;  %v15118_v54 = vcombine.low %v687_v42, %v695_v43  ;;  %v799_v40 = vld [vmem:[%s17207_s7 + $0x1188] sm:$0xff]  ;;  %v15214_v43 = vcombine.low %v783_v32, %v791_v33 }
  0xac   : > { %11945 = vmatpush1.bf16.msra.mxu0 %v14988_v48  ;;  %12273 = vmatpush1.bf16.msra.mxu1 %v14990_v49  ;;  %v702_v48 = vld [vmem:[%s17207_s7 + $0xe80] sm:$0xff]  ;;  %v807_v41 = vld [vmem:[%s17207_s7 + $0x11c8] sm:$0xff] }
  0xad   : > { %11946 = vmatprep.subr.bf16.mxu0 %v15005_v50  ;;  %12274 = vmatprep.subr.bf16.mxu1 %v15007_v51  ;;  %v710_v49 = vld [vmem:[%s17207_s7 + $0xec0] sm:$0xff]  ;;  %v703_v50 = vld [vmem:[%s17207_s7 + $0xe88] sm:$0xff] }
  0xae   : > { %v711_v51 = vld [vmem:[%s17207_s7 + $0xec8] sm:$0xff]  ;;  %v15133_v55 = vcombine.high %v702_v48, %v710_v49  ;;  %v15132_v62 = vcombine.low %v702_v48, %v710_v49 }
  0xaf   : > { %v15135_v56 = vcombine.high %v703_v50, %v711_v51  ;;  %v15134_v63 = vcombine.low %v703_v50, %v711_v51  ;;  %v815_v48 = vld [vmem:[%s17207_s7 + $0x1208] sm:$0xff]  ;;  %v15230_v51 = vcombine.low %v799_v40, %v807_v41 }
  0xb0   : > { %11947 = vmatpush1.bf16.msra.mxu0 %v15004_v58  ;;  %12275 = vmatpush1.bf16.msra.mxu1 %v15006_v59  ;;  %v718_v58 = vld [vmem:[%s17207_s7 + $0xf00] sm:$0xff]  ;;  %v823_v49 = vld [vmem:[%s17207_s7 + $0x1248] sm:$0xff] }
  0xb1   : > { %11948 = vmatprep.subr.bf16.mxu0 %v15021_v60  ;;  %12276 = vmatprep.subr.bf16.mxu1 %v15023_v61  ;;  %v726_v59 = vld [vmem:[%s17207_s7 + $0xf40] sm:$0xff]  ;;  %v719_v60 = vld [vmem:[%s17207_s7 + $0xf08] sm:$0xff] }
  0xb2   : > { %v727_v61 = vld [vmem:[%s17207_s7 + $0xf48] sm:$0xff]  ;;  %v15149_v0 = vcombine.high %v718_v58, %v726_v59  ;;  %v15148_v6 = vcombine.low %v718_v58, %v726_v59 }
  0xb3   : > { %v15151_v1 = vcombine.high %v719_v60, %v727_v61  ;;  %v15150_v7 = vcombine.low %v719_v60, %v727_v61  ;;  %v831_v58 = vld [vmem:[%s17207_s7 + $0x1288] sm:$0xff]  ;;  %v15246_v61 = vcombine.low %v815_v48, %v823_v49 }
  0xb4   : > { %11949 = vmatpush1.bf16.msra.mxu0 %v15020_v2  ;;  %12277 = vmatpush1.bf16.msra.mxu1 %v15022_v3  ;;  %v734_v2 = vld [vmem:[%s17207_s7 + $0xf80] sm:$0xff]  ;;  %v839_v59 = vld [vmem:[%s17207_s7 + $0x12c8] sm:$0xff] }
  0xb5   : > { %11950 = vmatprep.subr.bf16.mxu0 %v15037_v4  ;;  %12278 = vmatprep.subr.bf16.mxu1 %v15039_v5  ;;  %v742_v3 = vld [vmem:[%s17207_s7 + $0xfc0] sm:$0xff]  ;;  %v735_v4 = vld [vmem:[%s17207_s7 + $0xf88] sm:$0xff] }
  0xb6   : > { %v743_v5 = vld [vmem:[%s17207_s7 + $0xfc8] sm:$0xff]  ;;  %v15165_v8 = vcombine.high %v734_v2, %v742_v3  ;;  %v15164_v16 = vcombine.low %v734_v2, %v742_v3 }
  0xb7   : > { %v15167_v9 = vcombine.high %v735_v4, %v743_v5  ;;  %v15166_v17 = vcombine.low %v735_v4, %v743_v5  ;;  %v847_v2 = vld [vmem:[%s17207_s7 + $0x1308] sm:$0xff]  ;;  %v15262_v5 = vcombine.low %v831_v58, %v839_v59 }
  0xb8   : > { %11951 = vmatpush1.bf16.msra.mxu0 %v15036_v10  ;;  %12279 = vmatpush1.bf16.msra.mxu1 %v15038_v11  ;;  %v750_v10 = vld [vmem:[%s17207_s7 + $0x1000] sm:$0xff]  ;;  %v855_v3 = vld [vmem:[%s17207_s7 + $0x1348] sm:$0xff] }
  0xb9   : > { %11952 = vmatprep.subr.bf16.mxu0 %v15053_v13  ;;  %12280 = vmatprep.subr.bf16.mxu1 %v15055_v14  ;;  %v758_v11 = vld [vmem:[%s17207_s7 + $0x1040] sm:$0xff]  ;;  %v751_v13 = vld [vmem:[%s17207_s7 + $0x1008] sm:$0xff] }
  0xba   : > { %v759_v14 = vld [vmem:[%s17207_s7 + $0x1048] sm:$0xff]  ;;  %v15181_v18 = vcombine.high %v750_v10, %v758_v11  ;;  %v15180_v26 = vcombine.low %v750_v10, %v758_v11 }
  0xbb   : > { %v15183_v19 = vcombine.high %v751_v13, %v759_v14  ;;  %v15182_v27 = vcombine.low %v751_v13, %v759_v14  ;;  %v863_v10 = vld [vmem:[%s17207_s7 + $0x1388] sm:$0xff]  ;;  %v15278_v14 = vcombine.low %v847_v2, %v855_v3 }
  0xbc   : > { %11953 = vmatpush1.bf16.msra.mxu0 %v15052_v53  ;;  %12281 = vmatpush1.bf16.msra.mxu1 %v15054_v20  ;;  %v766_v53 = vld [vmem:[%s17207_s7 + $0x1080] sm:$0xff]  ;;  %v871_v11 = vld [vmem:[%s17207_s7 + $0x13c8] sm:$0xff] }
  0xbd   : > { %11954 = vmatprep.subr.bf16.mxu0 %v15069_v22  ;;  %12282 = vmatprep.subr.bf16.mxu1 %v15071_v23  ;;  %v774_v20 = vld [vmem:[%s17207_s7 + $0x10c0] sm:$0xff]  ;;  %v17385_v22 = vcombine.low %v17311_v15, %v17311_v15  ;;  %v767_v23 = vld [vmem:[%s17207_s7 + $0x1088] sm:$0xff] }
  0xbe   : > { %v782_v15 = vld [vmem:[%s17207_s7 + $0x1100] sm:$0xff]  ;;  %v15196_v34 = vcombine.low %v766_v53, %v774_v20  ;;  %v15198_v35 = vcombine.low %v767_v23, %v775_v24 }
  0xc0   : > { %11955 = vmatpush1.bf16.msra.mxu0 %v15068_v28  ;;  %12283 = vmatpush1.bf16.msra.mxu1 %v15070_v29  ;;  %v15197_v28 = vcombine.high %v766_v53, %v774_v20  ;;  %v15199_v29 = vcombine.high %v767_v23, %v775_v24  ;;  %v879_v53 = vld [vmem:[%s17207_s7 + $0x1408] sm:$0xff]  ;;  %v15294_v24 = vcombine.low %v863_v10, %v871_v11 }
  0xc1   : > { %11956 = vmatprep.subr.bf16.mxu0 %v15085_v30  ;;  %12284 = vmatprep.subr.bf16.mxu1 %v15087_v31  ;;  %v790_v30 = vld [vmem:[%s17207_s7 + $0x1140] sm:$0xff]  ;;  %v17398_v31 = vcombine.high %v17392_v25, %v17392_v25  ;;  %v887_v20 = vld [vmem:[%s17207_s7 + $0x1448] sm:$0xff] }
  0xc2   : > { %v15212_v42 = vcombine.low %v782_v15, %v790_v30 }
  0xc4   : > { %11957 = vmatpush1.bf16.msra.mxu0 %v15084_v36  ;;  %12285 = vmatpush1.bf16.msra.mxu1 %v15086_v37  ;;  %v15213_v36 = vcombine.high %v782_v15, %v790_v30  ;;  %v15215_v37 = vcombine.high %v783_v32, %v791_v33  ;;  %v895_v15 = vld [vmem:[%s17207_s7 + $0x1488] sm:$0xff]  ;;  %v15310_v33 = vcombine.low %v879_v53, %v887_v20 }
  0xc5   : > { %11958 = vmatprep.subr.bf16.mxu0 %v15101_v38  ;;  %12286 = vmatprep.subr.bf16.mxu1 %v15103_v39  ;;  %v798_v38 = vld [vmem:[%s17207_s7 + $0x1180] sm:$0xff]  ;;  %v903_v30 = vld [vmem:[%s17207_s7 + $0x14c8] sm:$0xff] }
  0xc6   : > { %v806_v39 = vld [vmem:[%s17207_s7 + $0x11c0] sm:$0xff] }
  0xc7   : > { %v15228_v50 = vcombine.low %v798_v38, %v806_v39 }
  0xc8   : > { %11959 = vmatpush1.bf16.msra.mxu0 %v15100_v44  ;;  %12287 = vmatpush1.bf16.msra.mxu1 %v15102_v45  ;;  %v15229_v44 = vcombine.high %v798_v38, %v806_v39  ;;  %v15231_v45 = vcombine.high %v799_v40, %v807_v41  ;;  %v911_v38 = vld [vmem:[%s17207_s7 + $0x1508] sm:$0xff]  ;;  %v15326_v41 = vcombine.low %v895_v15, %v903_v30 }
  0xc9   : > { %11960 = vmatprep.subr.bf16.mxu0 %v15117_v46  ;;  %12288 = vmatprep.subr.bf16.mxu1 %v15119_v47  ;;  %v814_v46 = vld [vmem:[%s17207_s7 + $0x1200] sm:$0xff]  ;;  %v919_v39 = vld [vmem:[%s17207_s7 + $0x1548] sm:$0xff] }
  0xca   : > { %v822_v47 = vld [vmem:[%s17207_s7 + $0x1240] sm:$0xff] }
  0xcb   : > { %v15244_v60 = vcombine.low %v814_v46, %v822_v47 }
  0xcc   : > { %11961 = vmatpush1.bf16.msra.mxu0 %v15116_v52  ;;  %12289 = vmatpush1.bf16.msra.mxu1 %v15118_v54  ;;  %v15245_v52 = vcombine.high %v814_v46, %v822_v47  ;;  %v15247_v54 = vcombine.high %v815_v48, %v823_v49  ;;  %v927_v46 = vld [vmem:[%s17207_s7 + $0x1588] sm:$0xff]  ;;  %v15342_v49 = vcombine.low %v911_v38, %v919_v39 }
  0xcd   : > { %11962 = vmatprep.subr.bf16.mxu0 %v15133_v55  ;;  %12290 = vmatprep.subr.bf16.mxu1 %v15135_v56  ;;  %v830_v55 = vld [vmem:[%s17207_s7 + $0x1280] sm:$0xff]  ;;  %v935_v47 = vld [vmem:[%s17207_s7 + $0x15c8] sm:$0xff] }
  0xce   : > { %v838_v56 = vld [vmem:[%s17207_s7 + $0x12c0] sm:$0xff] }
  0xcf   : > { %v15260_v4 = vcombine.low %v830_v55, %v838_v56 }
  0xd0   : > { %11963 = vmatpush1.bf16.msra.mxu0 %v15132_v62  ;;  %12291 = vmatpush1.bf16.msra.mxu1 %v15134_v63  ;;  %v15261_v62 = vcombine.high %v830_v55, %v838_v56  ;;  %v15263_v63 = vcombine.high %v831_v58, %v839_v59  ;;  %v943_v55 = vld [vmem:[%s17207_s7 + $0x1608] sm:$0xff]  ;;  %v15358_v59 = vcombine.low %v927_v46, %v935_v47 }
  0xd1   : > { %11964 = vmatprep.subr.bf16.mxu0 %v15149_v0  ;;  %12292 = vmatprep.subr.bf16.mxu1 %v15151_v1  ;;  %v846_v0 = vld [vmem:[%s17207_s7 + $0x1300] sm:$0xff]  ;;  %v951_v56 = vld [vmem:[%s17207_s7 + $0x1648] sm:$0xff] }
  0xd2   : > { %v854_v1 = vld [vmem:[%s17207_s7 + $0x1340] sm:$0xff] }
  0xd3   : > { %v15276_v13 = vcombine.low %v846_v0, %v854_v1 }
  0xd4   : > { %11965 = vmatpush1.bf16.msra.mxu0 %v15148_v6  ;;  %12293 = vmatpush1.bf16.msra.mxu1 %v15150_v7  ;;  %v15277_v6 = vcombine.high %v846_v0, %v854_v1  ;;  %v15279_v7 = vcombine.high %v847_v2, %v855_v3  ;;  %v959_v0 = vld [vmem:[%s17207_s7 + $0x1688] sm:$0xff]  ;;  %v15374_v3 = vcombine.low %v943_v55, %v951_v56 }
  0xd5   : > { %11966 = vmatprep.subr.bf16.mxu0 %v15165_v8  ;;  %12294 = vmatprep.subr.bf16.mxu1 %v15167_v9  ;;  %v862_v8 = vld [vmem:[%s17207_s7 + $0x1380] sm:$0xff]  ;;  %v967_v1 = vld [vmem:[%s17207_s7 + $0x16c8] sm:$0xff] }
  0xd6   : > { %v870_v9 = vld [vmem:[%s17207_s7 + $0x13c0] sm:$0xff] }
  0xd7   : > { %v15292_v23 = vcombine.low %v862_v8, %v870_v9 }
  0xd8   : > { %11967 = vmatpush1.bf16.msra.mxu0 %v15164_v16  ;;  %12295 = vmatpush1.bf16.msra.mxu1 %v15166_v17  ;;  %v15293_v16 = vcombine.high %v862_v8, %v870_v9  ;;  %v15295_v17 = vcombine.high %v863_v10, %v871_v11  ;;  %v975_v8 = vld [vmem:[%s17207_s7 + $0x1708] sm:$0xff]  ;;  %v15390_v11 = vcombine.low %v959_v0, %v967_v1 }
  0xd9   : > { %11977 = vmatprep.subr.bf16.mxu0 %v15181_v18  ;;  %12305 = vmatprep.subr.bf16.mxu1 %v15183_v19  ;;  %v878_v18 = vld [vmem:[%s17207_s7 + $0x1400] sm:$0xff]  ;;  %v983_v9 = vld [vmem:[%s17207_s7 + $0x1748] sm:$0xff] }
  0xda   : > { %v886_v19 = vld [vmem:[%s17207_s7 + $0x1440] sm:$0xff] }
  0xdb   : > { %11969 = vmatmul.mubr.bf16.vlgmr.msra.gmra.mrb[0].mxu0 %v17385_v22  ;;  %12297 = vmatmul.mubr.bf16.vlgmr.msra.gmra.mrb[0].mxu1 %v17385_v22  ;;  %v15308_v32 = vcombine.low %v878_v18, %v886_v19 }
  0xdc   : > { %11978 = vmatpush1.bf16.msra.mxu0 %v15180_v26  ;;  %12306 = vmatpush1.bf16.msra.mxu1 %v15182_v27  ;;  %v15309_v26 = vcombine.high %v878_v18, %v886_v19  ;;  %v15311_v27 = vcombine.high %v879_v53, %v887_v20  ;;  %v991_v18 = vld [vmem:[%s17207_s7 + $0x1788] sm:$0xff]  ;;  %v15406_v20 = vcombine.low %v975_v8, %v983_v9 }
  0xdd   : > { %11979 = vmatprep.subr.bf16.mxu0 %v15197_v28  ;;  %12307 = vmatprep.subr.bf16.mxu1 %v15199_v29  ;;  %v894_v28 = vld [vmem:[%s17207_s7 + $0x1480] sm:$0xff]  ;;  %v999_v19 = vld [vmem:[%s17207_s7 + $0x17c8] sm:$0xff] }
  0xde   : > { %12009 = vmatprep.mubr.bf16.mxu0 %v17398_v31  ;;  %12337 = vmatprep.mubr.bf16.mxu1 %v17398_v31  ;;  %v902_v29 = vld [vmem:[%s17207_s7 + $0x14c0] sm:$0xff] }
  0xdf   : > { %v15324_v40 = vcombine.low %v894_v28, %v902_v29 }
  0xe0   : > { %11980 = vmatpush1.bf16.msra.mxu0 %v15196_v34  ;;  %12308 = vmatpush1.bf16.msra.mxu1 %v15198_v35  ;;  %v15325_v34 = vcombine.high %v894_v28, %v902_v29  ;;  %v15327_v35 = vcombine.high %v895_v15, %v903_v30  ;;  %v1007_v28 = vld [vmem:[%s17207_s7 + $0x1808] sm:$0xff]  ;;  %v15422_v30 = vcombine.low %v991_v18, %v999_v19 }
  0xe1   : > { %11981 = vmatprep.subr.bf16.mxu0 %v15213_v36  ;;  %12309 = vmatprep.subr.bf16.mxu1 %v15215_v37  ;;  %v910_v36 = vld [vmem:[%s17207_s7 + $0x1500] sm:$0xff]  ;;  %v1015_v29 = vld [vmem:[%s17207_s7 + $0x1848] sm:$0xff] }
  0xe2   : > { %v918_v37 = vld [vmem:[%s17207_s7 + $0x1540] sm:$0xff] }
  0xe3   : > { %v15340_v48 = vcombine.low %v910_v36, %v918_v37 }
  0xe4   : > { %11982 = vmatpush1.bf16.msra.mxu0 %v15212_v42  ;;  %12310 = vmatpush1.bf16.msra.mxu1 %v15214_v43  ;;  %v15341_v42 = vcombine.high %v910_v36, %v918_v37  ;;  %v15343_v43 = vcombine.high %v911_v38, %v919_v39  ;;  %v17466_v36 = vcombine.low %v17392_v25, %v17392_v25  ;;  %v1023_v37 = vld [vmem:[%s17207_s7 + $0x1888] sm:$0xff]  ;;  %v17473_v39 = vld [vmem:[%s19477_s0 + $0x18] sm:$0xff]  ;;  %v1038_v25 = vld [vmem:[%s17207_s7 + $0x1900] sm:$0xff] }
  0xe5   : > { %11983 = vmatprep.subr.bf16.mxu0 %v15229_v44  ;;  %12311 = vmatprep.subr.bf16.mxu1 %v15231_v45  ;;  %v926_v44 = vld [vmem:[%s17207_s7 + $0x1580] sm:$0xff]  ;;  %v1031_v38 = vld [vmem:[%s17207_s7 + $0x18c8] sm:$0xff] }
  0xe6   : > { %v934_v45 = vld [vmem:[%s17207_s7 + $0x15c0] sm:$0xff] }
  0xe7   : > { %v15356_v58 = vcombine.low %v926_v44, %v934_v45 }
  0xe8   : > { %11984 = vmatpush1.bf16.msra.mxu0 %v15228_v50  ;;  %12312 = vmatpush1.bf16.msra.mxu1 %v15230_v51  ;;  %v15357_v50 = vcombine.high %v926_v44, %v934_v45  ;;  %v15359_v51 = vcombine.high %v927_v46, %v935_v47  ;;  %v1046_v44 = vld [vmem:[%s17207_s7 + $0x1940] sm:$0xff]  ;;  %v17479_v45 = vcombine.high %v17473_v39, %v17473_v39  ;;  %v1039_v46 = vld [vmem:[%s17207_s7 + $0x1908] sm:$0xff] }
  0xe9   : > { %11985 = vmatprep.subr.bf16.mxu0 %v15245_v52  ;;  %12313 = vmatprep.subr.bf16.mxu1 %v15247_v54  ;;  %v942_v52 = vld [vmem:[%s17207_s7 + $0x1600] sm:$0xff]  ;;  %v1047_v47 = vld [vmem:[%s17207_s7 + $0x1948] sm:$0xff] }
  0xea   : > { %v950_v54 = vld [vmem:[%s17207_s7 + $0x1640] sm:$0xff] }
  0xeb   : > { %v15372_v2 = vcombine.low %v942_v52, %v950_v54 }
  0xec   : > { %11986 = vmatpush1.bf16.msra.mxu0 %v15244_v60  ;;  %12314 = vmatpush1.bf16.msra.mxu1 %v15246_v61  ;;  %v15373_v60 = vcombine.high %v942_v52, %v950_v54  ;;  %v15375_v61 = vcombine.high %v943_v55, %v951_v56  ;;  %v1054_v52 = vld [vmem:[%s17207_s7 + $0x1980] sm:$0xff]  ;;  %v1055_v55 = vld [vmem:[%s17207_s7 + $0x1988] sm:$0xff] }
  0xed   : > { %11987 = vmatprep.subr.bf16.mxu0 %v15261_v62  ;;  %12315 = vmatprep.subr.bf16.mxu1 %v15263_v63  ;;  %v958_v62 = vld [vmem:[%s17207_s7 + $0x1680] sm:$0xff]  ;;  %v1063_v56 = vld [vmem:[%s17207_s7 + $0x19c8] sm:$0xff] }
  0xee   : > { %v966_v63 = vld [vmem:[%s17207_s7 + $0x16c0] sm:$0xff] }
  0xef   : > { %v15388_v10 = vcombine.low %v958_v62, %v966_v63  ;;  %v1062_v54 = vld [vmem:[%s17207_s7 + $0x19c0] sm:$0xff] }
  0xf0   : > { %11988 = vmatpush1.bf16.msra.mxu0 %v15260_v4  ;;  %12316 = vmatpush1.bf16.msra.mxu1 %v15262_v5  ;;  %v15389_v4 = vcombine.high %v958_v62, %v966_v63  ;;  %v15391_v5 = vcombine.high %v959_v0, %v967_v1  ;;  %v1070_v62 = vld [vmem:[%s17207_s7 + $0x1a00] sm:$0xff]  ;;  %v1071_v0 = vld [vmem:[%s17207_s7 + $0x1a08] sm:$0xff] }
  0xf1   : > { %11989 = vmatprep.subr.bf16.mxu0 %v15277_v6  ;;  %12317 = vmatprep.subr.bf16.mxu1 %v15279_v7  ;;  %v974_v6 = vld [vmem:[%s17207_s7 + $0x1700] sm:$0xff]  ;;  %v1079_v1 = vld [vmem:[%s17207_s7 + $0x1a48] sm:$0xff] }
  0xf2   : > { %v982_v7 = vld [vmem:[%s17207_s7 + $0x1740] sm:$0xff] }
  0xf3   : > { %v15404_v53 = vcombine.low %v974_v6, %v982_v7  ;;  %v1078_v63 = vld [vmem:[%s17207_s7 + $0x1a40] sm:$0xff] }
  0xf4   : > { %11990 = vmatpush1.bf16.msra.mxu0 %v15276_v13  ;;  %12318 = vmatpush1.bf16.msra.mxu1 %v15278_v14  ;;  %v15405_v13 = vcombine.high %v974_v6, %v982_v7  ;;  %v15407_v14 = vcombine.high %v975_v8, %v983_v9  ;;  %v1086_v6 = vld [vmem:[%s17207_s7 + $0x1a80] sm:$0xff]  ;;  %v1087_v8 = vld [vmem:[%s17207_s7 + $0x1a88] sm:$0xff] }
  0xf5   : > { %11991 = vmatprep.subr.bf16.mxu0 %v15293_v16  ;;  %12319 = vmatprep.subr.bf16.mxu1 %v15295_v17  ;;  %v990_v16 = vld [vmem:[%s17207_s7 + $0x1780] sm:$0xff]  ;;  %v1095_v9 = vld [vmem:[%s17207_s7 + $0x1ac8] sm:$0xff] }
  0xf6   : > { %v998_v17 = vld [vmem:[%s17207_s7 + $0x17c0] sm:$0xff] }
  0xf7   : > { %v15420_v15 = vcombine.low %v990_v16, %v998_v17  ;;  %v1094_v7 = vld [vmem:[%s17207_s7 + $0x1ac0] sm:$0xff] }
  0xf8   : > { %11992 = vmatpush1.bf16.msra.mxu0 %v15292_v23  ;;  %12320 = vmatpush1.bf16.msra.mxu1 %v15294_v24  ;;  %v15421_v23 = vcombine.high %v990_v16, %v998_v17  ;;  %v15423_v24 = vcombine.high %v991_v18, %v999_v19  ;;  %v1102_v16 = vld [vmem:[%s17207_s7 + $0x1b00] sm:$0xff]  ;;  %v1103_v18 = vld [vmem:[%s17207_s7 + $0x1b08] sm:$0xff] }
  0xf9   : > { %11993 = vmatprep.subr.bf16.mxu0 %v15309_v26  ;;  %12321 = vmatprep.subr.bf16.mxu1 %v15311_v27  ;;  %v1006_v26 = vld [vmem:[%s17207_s7 + $0x1800] sm:$0xff]  ;;  %v1111_v19 = vld [vmem:[%s17207_s7 + $0x1b48] sm:$0xff] }
  0xfa   : > { %v1014_v27 = vld [vmem:[%s17207_s7 + $0x1840] sm:$0xff] }
  0xfb   : > { %v1110_v17 = vld [vmem:[%s17207_s7 + $0x1b40] sm:$0xff] }
  0xfc   : > { %11994 = vmatpush1.bf16.msra.mxu0 %v15308_v32  ;;  %12322 = vmatpush1.bf16.msra.mxu1 %v15310_v33  ;;  %v15437_v32 = vcombine.high %v1006_v26, %v1014_v27  ;;  %v15439_v33 = vcombine.high %v1007_v28, %v1015_v29 }
  0xfd   : > { %11995 = vmatprep.subr.bf16.mxu0 %v15325_v34  ;;  %12323 = vmatprep.subr.bf16.mxu1 %v15327_v35  ;;  %v1022_v34 = vld [vmem:[%s17207_s7 + $0x1880] sm:$0xff] }
  0xfe   : > { %v1030_v35 = vld [vmem:[%s17207_s7 + $0x18c0] sm:$0xff] }
 0x100   : > { %11996 = vmatpush1.bf16.msra.mxu0 %v15324_v40  ;;  %12324 = vmatpush1.bf16.msra.mxu1 %v15326_v41  ;;  %v15436_v40 = vcombine.low %v1006_v26, %v1014_v27  ;;  %v15438_v41 = vcombine.low %v1007_v28, %v1015_v29  ;;  %v1118_v26 = vld [vmem:[%s17207_s7 + $0x1b80] sm:$0xff]  ;;  %v1119_v28 = vld [vmem:[%s17207_s7 + $0x1b88] sm:$0xff] }
 0x101   : > { %11997 = vmatprep.subr.bf16.mxu0 %v15341_v42  ;;  %12325 = vmatprep.subr.bf16.mxu1 %v15343_v43  ;;  %v15453_v42 = vcombine.high %v1022_v34, %v1030_v35  ;;  %v15455_v43 = vcombine.high %v1023_v37, %v1031_v38  ;;  %v1126_v27 = vld [vmem:[%s17207_s7 + $0x1bc0] sm:$0xff]  ;;  %v1127_v29 = vld [vmem:[%s17207_s7 + $0x1bc8] sm:$0xff] }
 0x104   : > { %11998 = vmatpush1.bf16.msra.mxu0 %v15340_v48  ;;  %12326 = vmatpush1.bf16.msra.mxu1 %v15342_v49  ;;  %v15452_v48 = vcombine.low %v1022_v34, %v1030_v35  ;;  %v15454_v49 = vcombine.low %v1023_v37, %v1031_v38  ;;  %v1134_v34 = vld [vmem:[%s17207_s7 + $0x1c00] sm:$0xff]  ;;  %v1135_v37 = vld [vmem:[%s17207_s7 + $0x1c08] sm:$0xff] }
 0x105   : > { %11999 = vmatprep.subr.bf16.mxu0 %v15357_v50  ;;  %12327 = vmatprep.subr.bf16.mxu1 %v15359_v51  ;;  %v15469_v50 = vcombine.high %v1038_v25, %v1046_v44  ;;  %v15471_v51 = vcombine.high %v1039_v46, %v1047_v47  ;;  %v1142_v35 = vld [vmem:[%s17207_s7 + $0x1c40] sm:$0xff]  ;;  %v1143_v38 = vld [vmem:[%s17207_s7 + $0x1c48] sm:$0xff] }
 0x108   : > { %12000 = vmatpush1.bf16.msra.mxu0 %v15356_v58  ;;  %12328 = vmatpush1.bf16.msra.mxu1 %v15358_v59  ;;  %v15468_v58 = vcombine.low %v1038_v25, %v1046_v44  ;;  %v15470_v59 = vcombine.low %v1039_v46, %v1047_v47  ;;  %v1150_v25 = vld [vmem:[%s17207_s7 + $0x1c80] sm:$0xff]  ;;  %v1151_v46 = vld [vmem:[%s17207_s7 + $0x1c88] sm:$0xff] }
 0x109   : > { %12001 = vmatprep.subr.bf16.mxu0 %v15373_v60  ;;  %12329 = vmatprep.subr.bf16.mxu1 %v15375_v61  ;;  %v15485_v60 = vcombine.high %v1054_v52, %v1062_v54  ;;  %v15487_v61 = vcombine.high %v1055_v55, %v1063_v56  ;;  %v1158_v44 = vld [vmem:[%s17207_s7 + $0x1cc0] sm:$0xff]  ;;  %v1159_v47 = vld [vmem:[%s17207_s7 + $0x1cc8] sm:$0xff] }
 0x10c   : > { %12002 = vmatpush1.bf16.msra.mxu0 %v15372_v2  ;;  %12330 = vmatpush1.bf16.msra.mxu1 %v15374_v3  ;;  %v15484_v2 = vcombine.low %v1054_v52, %v1062_v54  ;;  %v15486_v3 = vcombine.low %v1055_v55, %v1063_v56  ;;  %v1166_v52 = vld [vmem:[%s17207_s7 + $0x1d00] sm:$0xff]  ;;  %v1167_v55 = vld [vmem:[%s17207_s7 + $0x1d08] sm:$0xff] }
 0x10d   : > { %12003 = vmatprep.subr.bf16.mxu0 %v15389_v4  ;;  %12331 = vmatprep.subr.bf16.mxu1 %v15391_v5  ;;  %v15501_v4 = vcombine.high %v1070_v62, %v1078_v63  ;;  %v15503_v5 = vcombine.high %v1071_v0, %v1079_v1  ;;  %v1174_v54 = vld [vmem:[%s17207_s7 + $0x1d40] sm:$0xff]  ;;  %v1175_v56 = vld [vmem:[%s17207_s7 + $0x1d48] sm:$0xff] }
 0x110   : > { %12004 = vmatpush1.bf16.msra.mxu0 %v15388_v10  ;;  %12332 = vmatpush1.bf16.msra.mxu1 %v15390_v11  ;;  %v15500_v10 = vcombine.low %v1070_v62, %v1078_v63  ;;  %v15502_v11 = vcombine.low %v1071_v0, %v1079_v1  ;;  %v1182_v62 = vld [vmem:[%s17207_s7 + $0x1d80] sm:$0xff]  ;;  %v1183_v0 = vld [vmem:[%s17207_s7 + $0x1d88] sm:$0xff] }
 0x111   : > { %12005 = vmatprep.subr.bf16.mxu0 %v15405_v13  ;;  %12333 = vmatprep.subr.bf16.mxu1 %v15407_v14  ;;  %v15517_v13 = vcombine.high %v1086_v6, %v1094_v7  ;;  %v15519_v14 = vcombine.high %v1087_v8, %v1095_v9  ;;  %v1190_v63 = vld [vmem:[%s17207_s7 + $0x1dc0] sm:$0xff]  ;;  %v1191_v1 = vld [vmem:[%s17207_s7 + $0x1dc8] sm:$0xff] }
 0x114   : > { %12006 = vmatpush1.bf16.msra.mxu0 %v15404_v53  ;;  %12334 = vmatpush1.bf16.msra.mxu1 %v15406_v20  ;;  %v15516_v53 = vcombine.low %v1086_v6, %v1094_v7  ;;  %v15518_v20 = vcombine.low %v1087_v8, %v1095_v9  ;;  %v1198_v6 = vld [vmem:[%s17207_s7 + $0x1e00] sm:$0xff]  ;;  %v1199_v8 = vld [vmem:[%s17207_s7 + $0x1e08] sm:$0xff] }
 0x115   : > { %12007 = vmatprep.subr.bf16.mxu0 %v15421_v23  ;;  %12335 = vmatprep.subr.bf16.mxu1 %v15423_v24  ;;  %v15533_v23 = vcombine.high %v1102_v16, %v1110_v17  ;;  %v15535_v24 = vcombine.high %v1103_v18, %v1111_v19  ;;  %v1206_v7 = vld [vmem:[%s17207_s7 + $0x1e40] sm:$0xff]  ;;  %v1207_v9 = vld [vmem:[%s17207_s7 + $0x1e48] sm:$0xff] }
 0x118   : > { %12008 = vmatpush1.bf16.msra.mxu0 %v15420_v15  ;;  %12336 = vmatpush1.bf16.msra.mxu1 %v15422_v30  ;;  %v15532_v15 = vcombine.low %v1102_v16, %v1110_v17  ;;  %v15534_v30 = vcombine.low %v1103_v18, %v1111_v19  ;;  %v1214_v16 = vld [vmem:[%s17207_s7 + $0x1e80] sm:$0xff]  ;;  %v1215_v18 = vld [vmem:[%s17207_s7 + $0x1e88] sm:$0xff] }
 0x119   : > { %12018 = vmatprep.subr.bf16.mxu0 %v15437_v32  ;;  %12346 = vmatprep.subr.bf16.mxu1 %v15439_v33  ;;  %v15549_v32 = vcombine.high %v1118_v26, %v1126_v27  ;;  %v15551_v33 = vcombine.high %v1119_v28, %v1127_v29  ;;  %v1222_v17 = vld [vmem:[%s17207_s7 + $0x1ec0] sm:$0xff]  ;;  %v1223_v19 = vld [vmem:[%s17207_s7 + $0x1ec8] sm:$0xff] }
 0x11b   : > { %12010 = vmatmul.mubr.bf16.vlgmr.msra.gmra.mrb[0].mxu0 %v17466_v36  ;;  %12338 = vmatmul.mubr.bf16.vlgmr.msra.gmra.mrb[0].mxu1 %v17466_v36 }
 0x11c   : > { %12019 = vmatpush1.bf16.msra.mxu0 %v15436_v40  ;;  %12347 = vmatpush1.bf16.msra.mxu1 %v15438_v41  ;;  %v15548_v40 = vcombine.low %v1118_v26, %v1126_v27  ;;  %v15550_v41 = vcombine.low %v1119_v28, %v1127_v29  ;;  %v1230_v26 = vld [vmem:[%s17207_s7 + $0x1f00] sm:$0xff]  ;;  %v1231_v28 = vld [vmem:[%s17207_s7 + $0x1f08] sm:$0xff] }
 0x11d   : > { %12020 = vmatprep.subr.bf16.mxu0 %v15453_v42  ;;  %12348 = vmatprep.subr.bf16.mxu1 %v15455_v43  ;;  %v15565_v42 = vcombine.high %v1134_v34, %v1142_v35  ;;  %v15567_v43 = vcombine.high %v1135_v37, %v1143_v38  ;;  %v1238_v27 = vld [vmem:[%s17207_s7 + $0x1f40] sm:$0xff]  ;;  %v1239_v29 = vld [vmem:[%s17207_s7 + $0x1f48] sm:$0xff] }
 0x11e   : > { %12050 = vmatprep.mubr.bf16.mxu0 %v17479_v45  ;;  %12378 = vmatprep.mubr.bf16.mxu1 %v17479_v45 }
 0x120   : > { %12021 = vmatpush1.bf16.msra.mxu0 %v15452_v48  ;;  %12349 = vmatpush1.bf16.msra.mxu1 %v15454_v49  ;;  %v15564_v48 = vcombine.low %v1134_v34, %v1142_v35  ;;  %v15566_v49 = vcombine.low %v1135_v37, %v1143_v38  ;;  %v1246_v34 = vld [vmem:[%s17207_s7 + $0x1f80] sm:$0xff]  ;;  %v1247_v37 = vld [vmem:[%s17207_s7 + $0x1f88] sm:$0xff] }
 0x121   : > { %12022 = vmatprep.subr.bf16.mxu0 %v15469_v50  ;;  %12350 = vmatprep.subr.bf16.mxu1 %v15471_v51  ;;  %v15581_v50 = vcombine.high %v1150_v25, %v1158_v44  ;;  %v15583_v51 = vcombine.high %v1151_v46, %v1159_v47  ;;  %v1254_v35 = vld [vmem:[%s17207_s7 + $0x1fc0] sm:$0xff]  ;;  %v1255_v38 = vld [vmem:[%s17207_s7 + $0x1fc8] sm:$0xff] }
 0x124   : > { %12023 = vmatpush1.bf16.msra.mxu0 %v15468_v58  ;;  %12351 = vmatpush1.bf16.msra.mxu1 %v15470_v59  ;;  %v15580_v58 = vcombine.low %v1150_v25, %v1158_v44  ;;  %v15582_v59 = vcombine.low %v1151_v46, %v1159_v47  ;;  %v1262_v25 = vld [vmem:[%s17207_s7 + $0x2000] sm:$0xff]  ;;  %v1263_v46 = vld [vmem:[%s17207_s7 + $0x2008] sm:$0xff] }
 0x125   : > { %12024 = vmatprep.subr.bf16.mxu0 %v15485_v60  ;;  %12352 = vmatprep.subr.bf16.mxu1 %v15487_v61  ;;  %v15597_v60 = vcombine.high %v1166_v52, %v1174_v54  ;;  %v15599_v61 = vcombine.high %v1167_v55, %v1175_v56  ;;  %v1270_v44 = vld [vmem:[%s17207_s7 + $0x2040] sm:$0xff]  ;;  %v1271_v47 = vld [vmem:[%s17207_s7 + $0x2048] sm:$0xff] }
 0x128   : > { %12025 = vmatpush1.bf16.msra.mxu0 %v15484_v2  ;;  %12353 = vmatpush1.bf16.msra.mxu1 %v15486_v3  ;;  %v15596_v2 = vcombine.low %v1166_v52, %v1174_v54  ;;  %v15598_v3 = vcombine.low %v1167_v55, %v1175_v56  ;;  %v1278_v52 = vld [vmem:[%s17207_s7 + $0x2080] sm:$0xff]  ;;  %v17547_v55 = vcombine.low %v17473_v39, %v17473_v39  ;;  %v1279_v56 = vld [vmem:[%s17207_s7 + $0x2088] sm:$0xff] }
 0x129   : > { %12026 = vmatprep.subr.bf16.mxu0 %v15501_v4  ;;  %12354 = vmatprep.subr.bf16.mxu1 %v15503_v5  ;;  %v15613_v4 = vcombine.high %v1182_v62, %v1190_v63  ;;  %v15615_v5 = vcombine.high %v1183_v0, %v1191_v1  ;;  %v1286_v54 = vld [vmem:[%s17207_s7 + $0x20c0] sm:$0xff] }
 0x12a   : > { %v1294_v39 = vld [vmem:[%s17207_s7 + $0x2100] sm:$0xff] }
 0x12c   : > { %12027 = vmatpush1.bf16.msra.mxu0 %v15500_v10  ;;  %12355 = vmatpush1.bf16.msra.mxu1 %v15502_v11  ;;  %v15612_v10 = vcombine.low %v1182_v62, %v1190_v63  ;;  %v15614_v11 = vcombine.low %v1183_v0, %v1191_v1  ;;  %v15709_v62 = vcombine.high %v1278_v52, %v1286_v54  ;;  %v1302_v0 = vld [vmem:[%s17207_s7 + $0x2140] sm:$0xff] }
 0x12d   : > { %12028 = vmatprep.subr.bf16.mxu0 %v15517_v13  ;;  %12356 = vmatprep.subr.bf16.mxu1 %v15519_v14  ;;  %v15629_v13 = vcombine.high %v1198_v6, %v1206_v7  ;;  %v15631_v14 = vcombine.high %v1199_v8, %v1207_v9 }
 0x130   : > { %12029 = vmatpush1.bf16.msra.mxu0 %v15516_v53  ;;  %12357 = vmatpush1.bf16.msra.mxu1 %v15518_v20  ;;  %v15628_v53 = vcombine.low %v1198_v6, %v1206_v7  ;;  %v15630_v20 = vcombine.low %v1199_v8, %v1207_v9  ;;  %v15725_v6 = vcombine.high %v1294_v39, %v1302_v0  ;;  %v1310_v8 = vld [vmem:[%s17207_s7 + $0x2180] sm:$0xff] }
 0x131   : > { %12030 = vmatprep.subr.bf16.mxu0 %v15533_v23  ;;  %12358 = vmatprep.subr.bf16.mxu1 %v15535_v24  ;;  %v15645_v23 = vcombine.high %v1214_v16, %v1222_v17  ;;  %v15647_v24 = vcombine.high %v1215_v18, %v1223_v19  ;;  %v1318_v9 = vld [vmem:[%s17207_s7 + $0x21c0] sm:$0xff] }
 0x134   : > { %12031 = vmatpush1.bf16.msra.mxu0 %v15532_v15  ;;  %12359 = vmatpush1.bf16.msra.mxu1 %v15534_v30  ;;  %v15644_v15 = vcombine.low %v1214_v16, %v1222_v17  ;;  %v15646_v30 = vcombine.low %v1215_v18, %v1223_v19  ;;  %v15741_v16 = vcombine.high %v1310_v8, %v1318_v9  ;;  %v1326_v18 = vld [vmem:[%s17207_s7 + $0x2200] sm:$0xff] }
 0x135   : > { %12032 = vmatprep.subr.bf16.mxu0 %v15549_v32  ;;  %12360 = vmatprep.subr.bf16.mxu1 %v15551_v33  ;;  %v15661_v32 = vcombine.high %v1230_v26, %v1238_v27  ;;  %v15663_v33 = vcombine.high %v1231_v28, %v1239_v29  ;;  %v1334_v19 = vld [vmem:[%s17207_s7 + $0x2240] sm:$0xff] }
 0x138   : > { %12033 = vmatpush1.bf16.msra.mxu0 %v15548_v40  ;;  %12361 = vmatpush1.bf16.msra.mxu1 %v15550_v41  ;;  %v15660_v40 = vcombine.low %v1230_v26, %v1238_v27  ;;  %v15662_v41 = vcombine.low %v1231_v28, %v1239_v29  ;;  %v15757_v26 = vcombine.high %v1326_v18, %v1334_v19  ;;  %v1342_v28 = vld [vmem:[%s17207_s7 + $0x2280] sm:$0xff] }
 0x139   : > { %12034 = vmatprep.subr.bf16.mxu0 %v15565_v42  ;;  %12362 = vmatprep.subr.bf16.mxu1 %v15567_v43  ;;  %v15677_v42 = vcombine.high %v1246_v34, %v1254_v35  ;;  %v15679_v43 = vcombine.high %v1247_v37, %v1255_v38  ;;  %v1350_v29 = vld [vmem:[%s17207_s7 + $0x22c0] sm:$0xff] }
 0x13c   : > { %12035 = vmatpush1.bf16.msra.mxu0 %v15564_v48  ;;  %12363 = vmatpush1.bf16.msra.mxu1 %v15566_v49  ;;  %v15676_v48 = vcombine.low %v1246_v34, %v1254_v35  ;;  %v15678_v49 = vcombine.low %v1247_v37, %v1255_v38  ;;  %v15773_v34 = vcombine.high %v1342_v28, %v1350_v29  ;;  %v1358_v37 = vld [vmem:[%s17207_s7 + $0x2300] sm:$0xff] }
 0x13d   : > { %12036 = vmatprep.subr.bf16.mxu0 %v15581_v50  ;;  %12364 = vmatprep.subr.bf16.mxu1 %v15583_v51  ;;  %v15693_v50 = vcombine.high %v1262_v25, %v1270_v44  ;;  %v15695_v51 = vcombine.high %v1263_v46, %v1271_v47  ;;  %v1366_v38 = vld [vmem:[%s17207_s7 + $0x2340] sm:$0xff] }
 0x140   : > { %12037 = vmatpush1.bf16.msra.mxu0 %v15580_v58  ;;  %12365 = vmatpush1.bf16.msra.mxu1 %v15582_v59  ;;  %v1287_v58 = vld [vmem:[%s17207_s7 + $0x20c8] sm:$0xff]  ;;  %v17554_v59 = vld [vmem:[%s19477_s0 + $0x20] sm:$0xff] }
 0x141   : > { %12038 = vmatprep.subr.bf16.mxu0 %v15597_v60  ;;  %12366 = vmatprep.subr.bf16.mxu1 %v15599_v61  ;;  %v15692_v60 = vcombine.low %v1262_v25, %v1270_v44  ;;  %v15694_v61 = vcombine.low %v1263_v46, %v1271_v47  ;;  %v15711_v63 = vcombine.high %v1279_v56, %v1287_v58  ;;  %v1374_v46 = vld [vmem:[%s17207_s7 + $0x2380] sm:$0xff] }
 0x142   : > { %v17560_v1 = vcombine.high %v17554_v59, %v17554_v59  ;;  %v15789_v25 = vcombine.high %v1358_v37, %v1366_v38  ;;  %v1382_v47 = vld [vmem:[%s17207_s7 + $0x23c0] sm:$0xff] }
 0x144   : > { %12039 = vmatpush1.bf16.msra.mxu0 %v15596_v2  ;;  %12367 = vmatpush1.bf16.msra.mxu1 %v15598_v3  ;;  %v1295_v2 = vld [vmem:[%s17207_s7 + $0x2108] sm:$0xff] }
 0x145   : > { %12040 = vmatprep.subr.bf16.mxu0 %v15613_v4  ;;  %12368 = vmatprep.subr.bf16.mxu1 %v15615_v5  ;;  %v1303_v3 = vld [vmem:[%s17207_s7 + $0x2148] sm:$0xff]  ;;  %v15708_v4 = vcombine.low %v1278_v52, %v1286_v54  ;;  %v15710_v5 = vcombine.low %v1279_v56, %v1287_v58  ;;  %v15805_v52 = vcombine.high %v1374_v46, %v1382_v47  ;;  %v1390_v56 = vld [vmem:[%s17207_s7 + $0x2400] sm:$0xff] }
 0x146   : > { %v15727_v7 = vcombine.high %v1295_v2, %v1303_v3  ;;  %v1398_v58 = vld [vmem:[%s17207_s7 + $0x2440] sm:$0xff] }
 0x148   : > { %12041 = vmatpush1.bf16.msra.mxu0 %v15612_v10  ;;  %12369 = vmatpush1.bf16.msra.mxu1 %v15614_v11  ;;  %v1311_v10 = vld [vmem:[%s17207_s7 + $0x2188] sm:$0xff] }
 0x149   : > { %12042 = vmatprep.subr.bf16.mxu0 %v15629_v13  ;;  %12370 = vmatprep.subr.bf16.mxu1 %v15631_v14  ;;  %v1319_v11 = vld [vmem:[%s17207_s7 + $0x21c8] sm:$0xff]  ;;  %v15724_v13 = vcombine.low %v1294_v39, %v1302_v0  ;;  %v15726_v14 = vcombine.low %v1295_v2, %v1303_v3  ;;  %v15821_v39 = vcombine.high %v1390_v56, %v1398_v58  ;;  %v1406_v2 = vld [vmem:[%s17207_s7 + $0x2480] sm:$0xff] }
 0x14a   : > { %v15743_v17 = vcombine.high %v1311_v10, %v1319_v11  ;;  %v1414_v3 = vld [vmem:[%s17207_s7 + $0x24c0] sm:$0xff] }
 0x14c   : > { %12043 = vmatpush1.bf16.msra.mxu0 %v15628_v53  ;;  %12371 = vmatpush1.bf16.msra.mxu1 %v15630_v20  ;;  %v1327_v53 = vld [vmem:[%s17207_s7 + $0x2208] sm:$0xff] }
 0x14d   : > { %12044 = vmatprep.subr.bf16.mxu0 %v15645_v23  ;;  %12372 = vmatprep.subr.bf16.mxu1 %v15647_v24  ;;  %v1335_v20 = vld [vmem:[%s17207_s7 + $0x2248] sm:$0xff]  ;;  %v15740_v23 = vcombine.low %v1310_v8, %v1318_v9  ;;  %v15742_v24 = vcombine.low %v1311_v10, %v1319_v11  ;;  %v15837_v8 = vcombine.high %v1406_v2, %v1414_v3  ;;  %v1422_v10 = vld [vmem:[%s17207_s7 + $0x2500] sm:$0xff] }
 0x14e   : > { %v15759_v27 = vcombine.high %v1327_v53, %v1335_v20  ;;  %v1430_v11 = vld [vmem:[%s17207_s7 + $0x2540] sm:$0xff] }
 0x150   : > { %12045 = vmatpush1.bf16.msra.mxu0 %v15644_v15  ;;  %12373 = vmatpush1.bf16.msra.mxu1 %v15646_v30  ;;  %v1343_v15 = vld [vmem:[%s17207_s7 + $0x2288] sm:$0xff] }
 0x151   : > { %12046 = vmatprep.subr.bf16.mxu0 %v15661_v32  ;;  %12374 = vmatprep.subr.bf16.mxu1 %v15663_v33  ;;  %v1351_v30 = vld [vmem:[%s17207_s7 + $0x22c8] sm:$0xff]  ;;  %v15756_v32 = vcombine.low %v1326_v18, %v1334_v19  ;;  %v15758_v33 = vcombine.low %v1327_v53, %v1335_v20  ;;  %v15853_v18 = vcombine.high %v1422_v10, %v1430_v11  ;;  %v1438_v53 = vld [vmem:[%s17207_s7 + $0x2580] sm:$0xff] }
 0x152   : > { %v15775_v35 = vcombine.high %v1343_v15, %v1351_v30  ;;  %v1446_v20 = vld [vmem:[%s17207_s7 + $0x25c0] sm:$0xff] }
 0x154   : > { %12047 = vmatpush1.bf16.msra.mxu0 %v15660_v40  ;;  %12375 = vmatpush1.bf16.msra.mxu1 %v15662_v41  ;;  %v1359_v40 = vld [vmem:[%s17207_s7 + $0x2308] sm:$0xff] }
 0x155   : > { %12048 = vmatprep.subr.bf16.mxu0 %v15677_v42  ;;  %12376 = vmatprep.subr.bf16.mxu1 %v15679_v43  ;;  %v1367_v41 = vld [vmem:[%s17207_s7 + $0x2348] sm:$0xff]  ;;  %v15772_v42 = vcombine.low %v1342_v28, %v1350_v29  ;;  %v15774_v43 = vcombine.low %v1343_v15, %v1351_v30  ;;  %v15869_v28 = vcombine.high %v1438_v53, %v1446_v20  ;;  %v1454_v15 = vld [vmem:[%s17207_s7 + $0x2600] sm:$0xff] }
 0x156   : > { %v15791_v44 = vcombine.high %v1359_v40, %v1367_v41  ;;  %v1462_v30 = vld [vmem:[%s17207_s7 + $0x2640] sm:$0xff] }
 0x158   : > { %12049 = vmatpush1.bf16.msra.mxu0 %v15676_v48  ;;  %12377 = vmatpush1.bf16.msra.mxu1 %v15678_v49  ;;  %v1375_v48 = vld [vmem:[%s17207_s7 + $0x2388] sm:$0xff] }
 0x159   : > { %12059 = vmatprep.subr.bf16.mxu0 %v15693_v50  ;;  %12387 = vmatprep.subr.bf16.mxu1 %v15695_v51  ;;  %v1383_v49 = vld [vmem:[%s17207_s7 + $0x23c8] sm:$0xff]  ;;  %v15788_v50 = vcombine.low %v1358_v37, %v1366_v38  ;;  %v15790_v51 = vcombine.low %v1359_v40, %v1367_v41  ;;  %v15885_v37 = vcombine.high %v1454_v15, %v1462_v30  ;;  %v1470_v40 = vld [vmem:[%s17207_s7 + $0x2680] sm:$0xff] }
 0x15a   : > { %v15807_v54 = vcombine.high %v1375_v48, %v1383_v49  ;;  %v1478_v41 = vld [vmem:[%s17207_s7 + $0x26c0] sm:$0xff] }
 0x15b   : > { %12051 = vmatmul.mubr.bf16.vlgmr.msra.gmra.mrb[0].mxu0 %v17547_v55  ;;  %12379 = vmatmul.mubr.bf16.vlgmr.msra.gmra.mrb[0].mxu1 %v17547_v55 }
 0x15c   : > { %12060 = vmatpush1.bf16.msra.mxu0 %v15692_v60  ;;  %12388 = vmatpush1.bf16.msra.mxu1 %v15694_v61  ;;  %v1391_v60 = vld [vmem:[%s17207_s7 + $0x2408] sm:$0xff] }
 0x15d   : > { %12061 = vmatprep.subr.bf16.mxu0 %v15709_v62  ;;  %12389 = vmatprep.subr.bf16.mxu1 %v15711_v63  ;;  %v1399_v61 = vld [vmem:[%s17207_s7 + $0x2448] sm:$0xff]  ;;  %v15804_v62 = vcombine.low %v1374_v46, %v1382_v47  ;;  %v15806_v63 = vcombine.low %v1375_v48, %v1383_v49  ;;  %v15901_v46 = vcombine.high %v1470_v40, %v1478_v41  ;;  %v1486_v48 = vld [vmem:[%s17207_s7 + $0x2700] sm:$0xff] }
 0x15e   : > { %12091 = vmatprep.mubr.bf16.mxu0 %v17560_v1  ;;  %12419 = vmatprep.mubr.bf16.mxu1 %v17560_v1  ;;  %v15823_v0 = vcombine.high %v1391_v60, %v1399_v61  ;;  %v1494_v49 = vld [vmem:[%s17207_s7 + $0x2740] sm:$0xff] }
 0x160   : > { %12062 = vmatpush1.bf16.msra.mxu0 %v15708_v4  ;;  %12390 = vmatpush1.bf16.msra.mxu1 %v15710_v5  ;;  %v1407_v4 = vld [vmem:[%s17207_s7 + $0x2488] sm:$0xff] }
 0x161   : > { %12063 = vmatprep.subr.bf16.mxu0 %v15725_v6  ;;  %12391 = vmatprep.subr.bf16.mxu1 %v15727_v7  ;;  %v1415_v5 = vld [vmem:[%s17207_s7 + $0x24c8] sm:$0xff]  ;;  %v15820_v6 = vcombine.low %v1390_v56, %v1398_v58  ;;  %v15822_v7 = vcombine.low %v1391_v60, %v1399_v61  ;;  %v15917_v56 = vcombine.high %v1486_v48, %v1494_v49  ;;  %v1502_v60 = vld [vmem:[%s17207_s7 + $0x2780] sm:$0xff] }
 0x162   : > { %v15839_v9 = vcombine.high %v1407_v4, %v1415_v5  ;;  %v1510_v61 = vld [vmem:[%s17207_s7 + $0x27c0] sm:$0xff] }
 0x164   : > { %12064 = vmatpush1.bf16.msra.mxu0 %v15724_v13  ;;  %12392 = vmatpush1.bf16.msra.mxu1 %v15726_v14  ;;  %v1423_v13 = vld [vmem:[%s17207_s7 + $0x2508] sm:$0xff] }
 0x165   : > { %12065 = vmatprep.subr.bf16.mxu0 %v15741_v16  ;;  %12393 = vmatprep.subr.bf16.mxu1 %v15743_v17  ;;  %v1431_v14 = vld [vmem:[%s17207_s7 + $0x2548] sm:$0xff]  ;;  %v15836_v16 = vcombine.low %v1406_v2, %v1414_v3  ;;  %v15838_v17 = vcombine.low %v1407_v4, %v1415_v5  ;;  %v15933_v2 = vcombine.high %v1502_v60, %v1510_v61  ;;  %v1518_v4 = vld [vmem:[%s17207_s7 + $0x2800] sm:$0xff] }
 0x166   : > { %v15855_v19 = vcombine.high %v1423_v13, %v1431_v14  ;;  %v1526_v5 = vld [vmem:[%s17207_s7 + $0x2840] sm:$0xff] }
 0x168   : > { %12066 = vmatpush1.bf16.msra.mxu0 %v15740_v23  ;;  %12394 = vmatpush1.bf16.msra.mxu1 %v15742_v24  ;;  %v1439_v23 = vld [vmem:[%s17207_s7 + $0x2588] sm:$0xff] }
 0x169   : > { %12067 = vmatprep.subr.bf16.mxu0 %v15757_v26  ;;  %12395 = vmatprep.subr.bf16.mxu1 %v15759_v27  ;;  %v1447_v24 = vld [vmem:[%s17207_s7 + $0x25c8] sm:$0xff]  ;;  %v15852_v26 = vcombine.low %v1422_v10, %v1430_v11  ;;  %v15854_v27 = vcombine.low %v1423_v13, %v1431_v14  ;;  %v15949_v10 = vcombine.high %v1518_v4, %v1526_v5  ;;  %v1534_v13 = vld [vmem:[%s17207_s7 + $0x2880] sm:$0xff] }
 0x16a   : > { %v15871_v29 = vcombine.high %v1439_v23, %v1447_v24  ;;  %v1542_v14 = vld [vmem:[%s17207_s7 + $0x28c0] sm:$0xff] }
 0x16c   : > { %12068 = vmatpush1.bf16.msra.mxu0 %v15756_v32  ;;  %12396 = vmatpush1.bf16.msra.mxu1 %v15758_v33  ;;  %v1455_v32 = vld [vmem:[%s17207_s7 + $0x2608] sm:$0xff] }
 0x16d   : > { %12069 = vmatprep.subr.bf16.mxu0 %v15773_v34  ;;  %12397 = vmatprep.subr.bf16.mxu1 %v15775_v35  ;;  %v1463_v33 = vld [vmem:[%s17207_s7 + $0x2648] sm:$0xff]  ;;  %v15868_v34 = vcombine.low %v1438_v53, %v1446_v20  ;;  %v15870_v35 = vcombine.low %v1439_v23, %v1447_v24  ;;  %v15948_v53 = vcombine.low %v1518_v4, %v1526_v5 }
 0x16e   : > { %v15887_v38 = vcombine.high %v1455_v32, %v1463_v33  ;;  %v15965_v23 = vcombine.high %v1534_v13, %v1542_v14 }
 0x170   : > { %12070 = vmatpush1.bf16.msra.mxu0 %v15772_v42  ;;  %12398 = vmatpush1.bf16.msra.mxu1 %v15774_v43  ;;  %v1471_v42 = vld [vmem:[%s17207_s7 + $0x2688] sm:$0xff] }
 0x171   : > { %12071 = vmatprep.subr.bf16.mxu0 %v15789_v25  ;;  %12399 = vmatprep.subr.bf16.mxu1 %v15791_v44  ;;  %v1479_v43 = vld [vmem:[%s17207_s7 + $0x26c8] sm:$0xff]  ;;  %v15884_v25 = vcombine.low %v1454_v15, %v1462_v30  ;;  %v15886_v44 = vcombine.low %v1455_v32, %v1463_v33  ;;  %v15964_v15 = vcombine.low %v1534_v13, %v1542_v14 }
 0x172   : > { %v15903_v47 = vcombine.high %v1471_v42, %v1479_v43 }
 0x174   : > { %12072 = vmatpush1.bf16.msra.mxu0 %v15788_v50  ;;  %12400 = vmatpush1.bf16.msra.mxu1 %v15790_v51  ;;  %v1487_v50 = vld [vmem:[%s17207_s7 + $0x2708] sm:$0xff] }
 0x175   : > { %12073 = vmatprep.subr.bf16.mxu0 %v15805_v52  ;;  %12401 = vmatprep.subr.bf16.mxu1 %v15807_v54  ;;  %v1495_v51 = vld [vmem:[%s17207_s7 + $0x2748] sm:$0xff]  ;;  %v15900_v52 = vcombine.low %v1470_v40, %v1478_v41  ;;  %v15902_v54 = vcombine.low %v1471_v42, %v1479_v43 }
 0x176   : > { %v15919_v58 = vcombine.high %v1487_v50, %v1495_v51 }
 0x178   : > { %12074 = vmatpush1.bf16.msra.mxu0 %v15804_v62  ;;  %12402 = vmatpush1.bf16.msra.mxu1 %v15806_v63  ;;  %v1503_v62 = vld [vmem:[%s17207_s7 + $0x2788] sm:$0xff] }
 0x179   : > { %12075 = vmatprep.subr.bf16.mxu0 %v15821_v39  ;;  %12403 = vmatprep.subr.bf16.mxu1 %v15823_v0  ;;  %v1511_v63 = vld [vmem:[%s17207_s7 + $0x27c8] sm:$0xff]  ;;  %v15916_v39 = vcombine.low %v1486_v48, %v1494_v49  ;;  %v15918_v0 = vcombine.low %v1487_v50, %v1495_v51 }
 0x17a   : > { %v15935_v3 = vcombine.high %v1503_v62, %v1511_v63 }
 0x17c   : > { %12076 = vmatpush1.bf16.msra.mxu0 %v15820_v6  ;;  %12404 = vmatpush1.bf16.msra.mxu1 %v15822_v7  ;;  %v1519_v6 = vld [vmem:[%s17207_s7 + $0x2808] sm:$0xff] }
 0x17d   : > { %12077 = vmatprep.subr.bf16.mxu0 %v15837_v8  ;;  %12405 = vmatprep.subr.bf16.mxu1 %v15839_v9  ;;  %v1527_v7 = vld [vmem:[%s17207_s7 + $0x2848] sm:$0xff]  ;;  %v15932_v8 = vcombine.low %v1502_v60, %v1510_v61  ;;  %v15934_v9 = vcombine.low %v1503_v62, %v1511_v63 }
 0x17e   : > { %v15951_v11 = vcombine.high %v1519_v6, %v1527_v7  ;;  %v15950_v20 = vcombine.low %v1519_v6, %v1527_v7 }
 0x180   : > { %12078 = vmatpush1.bf16.msra.mxu0 %v15836_v16  ;;  %12406 = vmatpush1.bf16.msra.mxu1 %v15838_v17  ;;  %v17628_v16 = vcombine.low %v17554_v59, %v17554_v59  ;;  %v1535_v17 = vld [vmem:[%s17207_s7 + $0x2888] sm:$0xff]  ;;  %v1550_v59 = vld [vmem:[%s17207_s7 + $0x2900] sm:$0xff] }
 0x181   : > { %12079 = vmatprep.subr.bf16.mxu0 %v15853_v18  ;;  %12407 = vmatprep.subr.bf16.mxu1 %v15855_v19  ;;  %v1543_v18 = vld [vmem:[%s17207_s7 + $0x28c8] sm:$0xff] }
 0x182   : > { %v17635_v19 = vld [vmem:[%s19477_s0 + $0x28] sm:$0xff]  ;;  %v15967_v24 = vcombine.high %v1535_v17, %v1543_v18  ;;  %v15966_v30 = vcombine.low %v1535_v17, %v1543_v18 }
 0x184   : > { %12080 = vmatpush1.bf16.msra.mxu0 %v15852_v26  ;;  %12408 = vmatpush1.bf16.msra.mxu1 %v15854_v27  ;;  %v1558_v26 = vld [vmem:[%s17207_s7 + $0x2940] sm:$0xff]  ;;  %v17641_v27 = vcombine.high %v17635_v19, %v17635_v19 }
 0x185   : > { %12081 = vmatprep.subr.bf16.mxu0 %v15869_v28  ;;  %12409 = vmatprep.subr.bf16.mxu1 %v15871_v29  ;;  %v1551_v28 = vld [vmem:[%s17207_s7 + $0x2908] sm:$0xff]  ;;  %v15981_v32 = vcombine.high %v1550_v59, %v1558_v26  ;;  %v15980_v40 = vcombine.low %v1550_v59, %v1558_v26 }
 0x186   : > { %v1559_v29 = vld [vmem:[%s17207_s7 + $0x2948] sm:$0xff] }
 0x187   : > { %v15983_v33 = vcombine.high %v1551_v28, %v1559_v29  ;;  %v15982_v41 = vcombine.low %v1551_v28, %v1559_v29 }
 0x188   : > { %12082 = vmatpush1.bf16.msra.mxu0 %v15868_v34  ;;  %12410 = vmatpush1.bf16.msra.mxu1 %v15870_v35  ;;  %v1566_v34 = vld [vmem:[%s17207_s7 + $0x2980] sm:$0xff] }
 0x189   : > { %12083 = vmatprep.subr.bf16.mxu0 %v15885_v37  ;;  %12411 = vmatprep.subr.bf16.mxu1 %v15887_v38  ;;  %v1574_v35 = vld [vmem:[%s17207_s7 + $0x29c0] sm:$0xff]  ;;  %v1567_v37 = vld [vmem:[%s17207_s7 + $0x2988] sm:$0xff] }
 0x18a   : > { %v1575_v38 = vld [vmem:[%s17207_s7 + $0x29c8] sm:$0xff]  ;;  %v15997_v42 = vcombine.high %v1566_v34, %v1574_v35  ;;  %v15996_v48 = vcombine.low %v1566_v34, %v1574_v35 }
 0x18b   : > { %v15999_v43 = vcombine.high %v1567_v37, %v1575_v38  ;;  %v15998_v49 = vcombine.low %v1567_v37, %v1575_v38 }
 0x18c   : > { %12084 = vmatpush1.bf16.msra.mxu0 %v15884_v25  ;;  %12412 = vmatpush1.bf16.msra.mxu1 %v15886_v44  ;;  %v1582_v25 = vld [vmem:[%s17207_s7 + $0x2a00] sm:$0xff] }
 0x18d   : > { %12085 = vmatprep.subr.bf16.mxu0 %v15901_v46  ;;  %12413 = vmatprep.subr.bf16.mxu1 %v15903_v47  ;;  %v1590_v44 = vld [vmem:[%s17207_s7 + $0x2a40] sm:$0xff]  ;;  %v1583_v46 = vld [vmem:[%s17207_s7 + $0x2a08] sm:$0xff] }
 0x18e   : > { %v1591_v47 = vld [vmem:[%s17207_s7 + $0x2a48] sm:$0xff]  ;;  %v16013_v50 = vcombine.high %v1582_v25, %v1590_v44  ;;  %v16012_v60 = vcombine.low %v1582_v25, %v1590_v44 }
 0x18f   : > { %v16015_v51 = vcombine.high %v1583_v46, %v1591_v47  ;;  %v16014_v61 = vcombine.low %v1583_v46, %v1591_v47 }
 0x190   : > { %12086 = vmatpush1.bf16.msra.mxu0 %v15900_v52  ;;  %12414 = vmatpush1.bf16.msra.mxu1 %v15902_v54  ;;  %v1598_v52 = vld [vmem:[%s17207_s7 + $0x2a80] sm:$0xff] }
 0x191   : > { %12087 = vmatprep.subr.bf16.mxu0 %v15917_v56  ;;  %12415 = vmatprep.subr.bf16.mxu1 %v15919_v58  ;;  %v1606_v54 = vld [vmem:[%s17207_s7 + $0x2ac0] sm:$0xff]  ;;  %v1599_v56 = vld [vmem:[%s17207_s7 + $0x2a88] sm:$0xff] }
 0x192   : > { %v1607_v58 = vld [vmem:[%s17207_s7 + $0x2ac8] sm:$0xff]  ;;  %v16029_v62 = vcombine.high %v1598_v52, %v1606_v54  ;;  %v16028_v4 = vcombine.low %v1598_v52, %v1606_v54 }
 0x193   : > { %v16031_v63 = vcombine.high %v1599_v56, %v1607_v58  ;;  %v16030_v5 = vcombine.low %v1599_v56, %v1607_v58 }
 0x194   : > { %12088 = vmatpush1.bf16.msra.mxu0 %v15916_v39  ;;  %12416 = vmatpush1.bf16.msra.mxu1 %v15918_v0  ;;  %v1614_v39 = vld [vmem:[%s17207_s7 + $0x2b00] sm:$0xff] }
 0x195   : > { %12089 = vmatprep.subr.bf16.mxu0 %v15933_v2  ;;  %12417 = vmatprep.subr.bf16.mxu1 %v15935_v3  ;;  %v1622_v0 = vld [vmem:[%s17207_s7 + $0x2b40] sm:$0xff]  ;;  %v1615_v2 = vld [vmem:[%s17207_s7 + $0x2b08] sm:$0xff] }
 0x196   : > { %v1623_v3 = vld [vmem:[%s17207_s7 + $0x2b48] sm:$0xff]  ;;  %v16045_v6 = vcombine.high %v1614_v39, %v1622_v0  ;;  %v16044_v13 = vcombine.low %v1614_v39, %v1622_v0 }
 0x197   : > { %v16047_v7 = vcombine.high %v1615_v2, %v1623_v3  ;;  %v16046_v14 = vcombine.low %v1615_v2, %v1623_v3 }
 0x198   : > { %12090 = vmatpush1.bf16.msra.mxu0 %v15932_v8  ;;  %12418 = vmatpush1.bf16.msra.mxu1 %v15934_v9  ;;  %v1630_v8 = vld [vmem:[%s17207_s7 + $0x2b80] sm:$0xff] }
 0x199   : > { %12100 = vmatprep.subr.bf16.mxu0 %v15949_v10  ;;  %12428 = vmatprep.subr.bf16.mxu1 %v15951_v11  ;;  %v1638_v9 = vld [vmem:[%s17207_s7 + $0x2bc0] sm:$0xff]  ;;  %v1631_v10 = vld [vmem:[%s17207_s7 + $0x2b88] sm:$0xff] }
 0x19a   : > { %v1639_v11 = vld [vmem:[%s17207_s7 + $0x2bc8] sm:$0xff]  ;;  %v16061_v17 = vcombine.high %v1630_v8, %v1638_v9  ;;  %v16060_v59 = vcombine.low %v1630_v8, %v1638_v9 }
 0x19b   : > { %12092 = vmatmul.mubr.bf16.vlgmr.msra.gmra.mrb[0].mxu0 %v17628_v16  ;;  %12420 = vmatmul.mubr.bf16.vlgmr.msra.gmra.mrb[0].mxu1 %v17628_v16  ;;  %v16063_v18 = vcombine.high %v1631_v10, %v1639_v11  ;;  %v16062_v26 = vcombine.low %v1631_v10, %v1639_v11 }
 0x19c   : > { %12101 = vmatpush1.bf16.msra.mxu0 %v15948_v53  ;;  %12429 = vmatpush1.bf16.msra.mxu1 %v15950_v20  ;;  %v1646_v53 = vld [vmem:[%s17207_s7 + $0x2c00] sm:$0xff] }
 0x19d   : > { %12102 = vmatprep.subr.bf16.mxu0 %v15965_v23  ;;  %12430 = vmatprep.subr.bf16.mxu1 %v15967_v24  ;;  %v1654_v20 = vld [vmem:[%s17207_s7 + $0x2c40] sm:$0xff]  ;;  %v1647_v23 = vld [vmem:[%s17207_s7 + $0x2c08] sm:$0xff] }
 0x19e   : > { %12132 = vmatprep.mubr.bf16.mxu0 %v17641_v27  ;;  %12460 = vmatprep.mubr.bf16.mxu1 %v17641_v27  ;;  %v1655_v24 = vld [vmem:[%s17207_s7 + $0x2c48] sm:$0xff]  ;;  %v16077_v28 = vcombine.high %v1646_v53, %v1654_v20  ;;  %v16076_v34 = vcombine.low %v1646_v53, %v1654_v20 }
 0x19f   : > { %v16079_v29 = vcombine.high %v1647_v23, %v1655_v24  ;;  %v16078_v35 = vcombine.low %v1647_v23, %v1655_v24 }
 0x1a0   : > { %12103 = vmatpush1.bf16.msra.mxu0 %v15964_v15  ;;  %12431 = vmatpush1.bf16.msra.mxu1 %v15966_v30  ;;  %v1662_v15 = vld [vmem:[%s17207_s7 + $0x2c80] sm:$0xff] }
 0x1a1   : > { %12104 = vmatprep.subr.bf16.mxu0 %v15981_v32  ;;  %12432 = vmatprep.subr.bf16.mxu1 %v15983_v33  ;;  %v1670_v30 = vld [vmem:[%s17207_s7 + $0x2cc0] sm:$0xff]  ;;  %v1663_v32 = vld [vmem:[%s17207_s7 + $0x2c88] sm:$0xff] }
 0x1a2   : > { %v1671_v33 = vld [vmem:[%s17207_s7 + $0x2cc8] sm:$0xff]  ;;  %v16093_v37 = vcombine.high %v1662_v15, %v1670_v30  ;;  %v16092_v25 = vcombine.low %v1662_v15, %v1670_v30 }
 0x1a3   : > { %v16095_v38 = vcombine.high %v1663_v32, %v1671_v33  ;;  %v16094_v44 = vcombine.low %v1663_v32, %v1671_v33 }
 0x1a4   : > { %12105 = vmatpush1.bf16.msra.mxu0 %v15980_v40  ;;  %12433 = vmatpush1.bf16.msra.mxu1 %v15982_v41  ;;  %v1678_v40 = vld [vmem:[%s17207_s7 + $0x2d00] sm:$0xff] }
 0x1a5   : > { %12106 = vmatprep.subr.bf16.mxu0 %v15997_v42  ;;  %12434 = vmatprep.subr.bf16.mxu1 %v15999_v43  ;;  %v1686_v41 = vld [vmem:[%s17207_s7 + $0x2d40] sm:$0xff]  ;;  %v1679_v42 = vld [vmem:[%s17207_s7 + $0x2d08] sm:$0xff] }
 0x1a6   : > { %v1687_v43 = vld [vmem:[%s17207_s7 + $0x2d48] sm:$0xff]  ;;  %v16109_v46 = vcombine.high %v1678_v40, %v1686_v41  ;;  %v16108_v52 = vcombine.low %v1678_v40, %v1686_v41 }
 0x1a7   : > { %v16111_v47 = vcombine.high %v1679_v42, %v1687_v43  ;;  %v16110_v54 = vcombine.low %v1679_v42, %v1687_v43 }
 0x1a8   : > { %12107 = vmatpush1.bf16.msra.mxu0 %v15996_v48  ;;  %12435 = vmatpush1.bf16.msra.mxu1 %v15998_v49  ;;  %v1694_v48 = vld [vmem:[%s17207_s7 + $0x2d80] sm:$0xff] }
 0x1a9   : > { %12108 = vmatprep.subr.bf16.mxu0 %v16013_v50  ;;  %12436 = vmatprep.subr.bf16.mxu1 %v16015_v51  ;;  %v1702_v49 = vld [vmem:[%s17207_s7 + $0x2dc0] sm:$0xff]  ;;  %v1695_v50 = vld [vmem:[%s17207_s7 + $0x2d88] sm:$0xff] }
 0x1aa   : > { %v1703_v51 = vld [vmem:[%s17207_s7 + $0x2dc8] sm:$0xff]  ;;  %v16125_v56 = vcombine.high %v1694_v48, %v1702_v49  ;;  %v16124_v39 = vcombine.low %v1694_v48, %v1702_v49  ;;  %v17716_v49 = vld [vmem:[%s19477_s0 + $0x30] sm:$0xff] }
 0x1ab   : > { %v16127_v58 = vcombine.high %v1695_v50, %v1703_v51  ;;  %v16126_v0 = vcombine.low %v1695_v50, %v1703_v51  ;;  %v1799_v48 = vld [vmem:[%s17207_s7 + $0x30c8] sm:$0xff] }
 0x1ac   : > { %12109 = vmatpush1.bf16.msra.mxu0 %v16012_v60  ;;  %12437 = vmatpush1.bf16.msra.mxu1 %v16014_v61  ;;  %v1710_v60 = vld [vmem:[%s17207_s7 + $0x2e00] sm:$0xff] }
 0x1ad   : > { %12110 = vmatprep.subr.bf16.mxu0 %v16029_v62  ;;  %12438 = vmatprep.subr.bf16.mxu1 %v16031_v63  ;;  %v1718_v61 = vld [vmem:[%s17207_s7 + $0x2e40] sm:$0xff]  ;;  %v1711_v62 = vld [vmem:[%s17207_s7 + $0x2e08] sm:$0xff] }
 0x1ae   : > { %v1719_v63 = vld [vmem:[%s17207_s7 + $0x2e48] sm:$0xff]  ;;  %v16141_v2 = vcombine.high %v1710_v60, %v1718_v61  ;;  %v16140_v8 = vcombine.low %v1710_v60, %v1718_v61 }
 0x1af   : > { %v16143_v3 = vcombine.high %v1711_v62, %v1719_v63  ;;  %v16142_v9 = vcombine.low %v1711_v62, %v1719_v63  ;;  %v1807_v60 = vld [vmem:[%s17207_s7 + $0x3108] sm:$0xff] }
 0x1b0   : > { %12111 = vmatpush1.bf16.msra.mxu0 %v16028_v4  ;;  %12439 = vmatpush1.bf16.msra.mxu1 %v16030_v5  ;;  %v1726_v4 = vld [vmem:[%s17207_s7 + $0x2e80] sm:$0xff]  ;;  %v1815_v61 = vld [vmem:[%s17207_s7 + $0x3148] sm:$0xff] }
 0x1b1   : > { %12112 = vmatprep.subr.bf16.mxu0 %v16045_v6  ;;  %12440 = vmatprep.subr.bf16.mxu1 %v16047_v7  ;;  %v1734_v5 = vld [vmem:[%s17207_s7 + $0x2ec0] sm:$0xff]  ;;  %v1727_v6 = vld [vmem:[%s17207_s7 + $0x2e88] sm:$0xff] }
 0x1b2   : > { %v1735_v7 = vld [vmem:[%s17207_s7 + $0x2ec8] sm:$0xff]  ;;  %v16157_v10 = vcombine.high %v1726_v4, %v1734_v5  ;;  %v16156_v53 = vcombine.low %v1726_v4, %v1734_v5 }
 0x1b3   : > { %v16159_v11 = vcombine.high %v1727_v6, %v1735_v7  ;;  %v16158_v20 = vcombine.low %v1727_v6, %v1735_v7  ;;  %v1823_v4 = vld [vmem:[%s17207_s7 + $0x3188] sm:$0xff]  ;;  %v16238_v7 = vcombine.low %v1807_v60, %v1815_v61 }
 0x1b4   : > { %12113 = vmatpush1.bf16.msra.mxu0 %v16044_v13  ;;  %12441 = vmatpush1.bf16.msra.mxu1 %v16046_v14  ;;  %v1742_v13 = vld [vmem:[%s17207_s7 + $0x2f00] sm:$0xff]  ;;  %v1831_v5 = vld [vmem:[%s17207_s7 + $0x31c8] sm:$0xff] }
 0x1b5   : > { %12114 = vmatprep.subr.bf16.mxu0 %v16061_v17  ;;  %12442 = vmatprep.subr.bf16.mxu1 %v16063_v18  ;;  %v1750_v14 = vld [vmem:[%s17207_s7 + $0x2f40] sm:$0xff]  ;;  %v1743_v17 = vld [vmem:[%s17207_s7 + $0x2f08] sm:$0xff] }
 0x1b6   : > { %v1751_v18 = vld [vmem:[%s17207_s7 + $0x2f48] sm:$0xff]  ;;  %v16173_v23 = vcombine.high %v1742_v13, %v1750_v14  ;;  %v16172_v15 = vcombine.low %v1742_v13, %v1750_v14 }
 0x1b7   : > { %v16175_v24 = vcombine.high %v1743_v17, %v1751_v18  ;;  %v16174_v30 = vcombine.low %v1743_v17, %v1751_v18  ;;  %v1839_v13 = vld [vmem:[%s17207_s7 + $0x3208] sm:$0xff]  ;;  %v16254_v18 = vcombine.low %v1823_v4, %v1831_v5 }
 0x1b8   : > { %12115 = vmatpush1.bf16.msra.mxu0 %v16060_v59  ;;  %12443 = vmatpush1.bf16.msra.mxu1 %v16062_v26  ;;  %v1758_v59 = vld [vmem:[%s17207_s7 + $0x2f80] sm:$0xff]  ;;  %v1847_v14 = vld [vmem:[%s17207_s7 + $0x3248] sm:$0xff] }
 0x1b9   : > { %12116 = vmatprep.subr.bf16.mxu0 %v16077_v28  ;;  %12444 = vmatprep.subr.bf16.mxu1 %v16079_v29  ;;  %v1766_v26 = vld [vmem:[%s17207_s7 + $0x2fc0] sm:$0xff]  ;;  %v1759_v28 = vld [vmem:[%s17207_s7 + $0x2f88] sm:$0xff] }
 0x1ba   : > { %v1767_v29 = vld [vmem:[%s17207_s7 + $0x2fc8] sm:$0xff]  ;;  %v16189_v32 = vcombine.high %v1758_v59, %v1766_v26  ;;  %v16188_v40 = vcombine.low %v1758_v59, %v1766_v26 }
 0x1bb   : > { %v16191_v33 = vcombine.high %v1759_v28, %v1767_v29  ;;  %v16190_v41 = vcombine.low %v1759_v28, %v1767_v29  ;;  %v1855_v59 = vld [vmem:[%s17207_s7 + $0x3288] sm:$0xff]  ;;  %v16270_v29 = vcombine.low %v1839_v13, %v1847_v14 }
 0x1bc   : > { %12117 = vmatpush1.bf16.msra.mxu0 %v16076_v34  ;;  %12445 = vmatpush1.bf16.msra.mxu1 %v16078_v35  ;;  %v1774_v34 = vld [vmem:[%s17207_s7 + $0x3000] sm:$0xff]  ;;  %v1863_v26 = vld [vmem:[%s17207_s7 + $0x32c8] sm:$0xff] }
 0x1bd   : > { %12118 = vmatprep.subr.bf16.mxu0 %v16093_v37  ;;  %12446 = vmatprep.subr.bf16.mxu1 %v16095_v38  ;;  %v1782_v35 = vld [vmem:[%s17207_s7 + $0x3040] sm:$0xff]  ;;  %v1775_v37 = vld [vmem:[%s17207_s7 + $0x3008] sm:$0xff] }
 0x1be   : > { %v1783_v38 = vld [vmem:[%s17207_s7 + $0x3048] sm:$0xff]  ;;  %v16205_v42 = vcombine.high %v1774_v34, %v1782_v35  ;;  %v16204_v50 = vcombine.low %v1774_v34, %v1782_v35 }
 0x1bf   : > { %v16207_v43 = vcombine.high %v1775_v37, %v1783_v38  ;;  %v16206_v51 = vcombine.low %v1775_v37, %v1783_v38  ;;  %v1871_v34 = vld [vmem:[%s17207_s7 + $0x3308] sm:$0xff]  ;;  %v16286_v38 = vcombine.low %v1855_v59, %v1863_v26 }
 0x1c0   : > { %12119 = vmatpush1.bf16.msra.mxu0 %v16092_v25  ;;  %12447 = vmatpush1.bf16.msra.mxu1 %v16094_v44  ;;  %v1790_v25 = vld [vmem:[%s17207_s7 + $0x3080] sm:$0xff]  ;;  %v1879_v35 = vld [vmem:[%s17207_s7 + $0x3348] sm:$0xff] }
 0x1c1   : > { %12120 = vmatprep.subr.bf16.mxu0 %v16109_v46  ;;  %12448 = vmatprep.subr.bf16.mxu1 %v16111_v47  ;;  %v1798_v44 = vld [vmem:[%s17207_s7 + $0x30c0] sm:$0xff]  ;;  %v17709_v46 = vcombine.low %v17635_v19, %v17635_v19  ;;  %v1791_v47 = vld [vmem:[%s17207_s7 + $0x3088] sm:$0xff] }
 0x1c2   : > { %v1806_v19 = vld [vmem:[%s17207_s7 + $0x3100] sm:$0xff]  ;;  %v16220_v62 = vcombine.low %v1790_v25, %v1798_v44  ;;  %v16222_v63 = vcombine.low %v1791_v47, %v1799_v48 }
 0x1c4   : > { %12121 = vmatpush1.bf16.msra.mxu0 %v16108_v52  ;;  %12449 = vmatpush1.bf16.msra.mxu1 %v16110_v54  ;;  %v16221_v52 = vcombine.high %v1790_v25, %v1798_v44  ;;  %v16223_v54 = vcombine.high %v1791_v47, %v1799_v48  ;;  %v1887_v25 = vld [vmem:[%s17207_s7 + $0x3388] sm:$0xff]  ;;  %v16302_v48 = vcombine.low %v1871_v34, %v1879_v35 }
 0x1c5   : > { %12122 = vmatprep.subr.bf16.mxu0 %v16125_v56  ;;  %12450 = vmatprep.subr.bf16.mxu1 %v16127_v58  ;;  %v1814_v56 = vld [vmem:[%s17207_s7 + $0x3140] sm:$0xff]  ;;  %v17722_v58 = vcombine.high %v17716_v49, %v17716_v49  ;;  %v1895_v44 = vld [vmem:[%s17207_s7 + $0x33c8] sm:$0xff] }
 0x1c6   : > { %v16236_v6 = vcombine.low %v1806_v19, %v1814_v56 }
 0x1c8   : > { %12123 = vmatpush1.bf16.msra.mxu0 %v16124_v39  ;;  %12451 = vmatpush1.bf16.msra.mxu1 %v16126_v0  ;;  %v16237_v39 = vcombine.high %v1806_v19, %v1814_v56  ;;  %v16239_v0 = vcombine.high %v1807_v60, %v1815_v61  ;;  %v1903_v19 = vld [vmem:[%s17207_s7 + $0x3408] sm:$0xff]  ;;  %v16318_v61 = vcombine.low %v1887_v25, %v1895_v44 }
 0x1c9   : > { %12124 = vmatprep.subr.bf16.mxu0 %v16141_v2  ;;  %12452 = vmatprep.subr.bf16.mxu1 %v16143_v3  ;;  %v1822_v2 = vld [vmem:[%s17207_s7 + $0x3180] sm:$0xff]  ;;  %v1911_v56 = vld [vmem:[%s17207_s7 + $0x3448] sm:$0xff] }
 0x1ca   : > { %v1830_v3 = vld [vmem:[%s17207_s7 + $0x31c0] sm:$0xff] }
 0x1cb   : > { %v16252_v17 = vcombine.low %v1822_v2, %v1830_v3 }
 0x1cc   : > { %12125 = vmatpush1.bf16.msra.mxu0 %v16140_v8  ;;  %12453 = vmatpush1.bf16.msra.mxu1 %v16142_v9  ;;  %v16253_v8 = vcombine.high %v1822_v2, %v1830_v3  ;;  %v16255_v9 = vcombine.high %v1823_v4, %v1831_v5  ;;  %v1919_v2 = vld [vmem:[%s17207_s7 + $0x3488] sm:$0xff]  ;;  %v16334_v5 = vcombine.low %v1903_v19, %v1911_v56 }
 0x1cd   : > { %12126 = vmatprep.subr.bf16.mxu0 %v16157_v10  ;;  %12454 = vmatprep.subr.bf16.mxu1 %v16159_v11  ;;  %v1838_v10 = vld [vmem:[%s17207_s7 + $0x3200] sm:$0xff]  ;;  %v1927_v3 = vld [vmem:[%s17207_s7 + $0x34c8] sm:$0xff] }
 0x1ce   : > { %v1846_v11 = vld [vmem:[%s17207_s7 + $0x3240] sm:$0xff] }
 0x1cf   : > { %v16268_v28 = vcombine.low %v1838_v10, %v1846_v11 }
 0x1d0   : > { %12127 = vmatpush1.bf16.msra.mxu0 %v16156_v53  ;;  %12455 = vmatpush1.bf16.msra.mxu1 %v16158_v20  ;;  %v16269_v53 = vcombine.high %v1838_v10, %v1846_v11  ;;  %v16271_v20 = vcombine.high %v1839_v13, %v1847_v14  ;;  %v1935_v10 = vld [vmem:[%s17207_s7 + $0x3508] sm:$0xff]  ;;  %v16350_v14 = vcombine.low %v1919_v2, %v1927_v3 }
 0x1d1   : > { %12128 = vmatprep.subr.bf16.mxu0 %v16173_v23  ;;  %12456 = vmatprep.subr.bf16.mxu1 %v16175_v24  ;;  %v1854_v23 = vld [vmem:[%s17207_s7 + $0x3280] sm:$0xff]  ;;  %v1943_v11 = vld [vmem:[%s17207_s7 + $0x3548] sm:$0xff] }
 0x1d2   : > { %v1862_v24 = vld [vmem:[%s17207_s7 + $0x32c0] sm:$0xff] }
 0x1d3   : > { %v16284_v37 = vcombine.low %v1854_v23, %v1862_v24 }
 0x1d4   : > { %12129 = vmatpush1.bf16.msra.mxu0 %v16172_v15  ;;  %12457 = vmatpush1.bf16.msra.mxu1 %v16174_v30  ;;  %v16285_v15 = vcombine.high %v1854_v23, %v1862_v24  ;;  %v16287_v30 = vcombine.high %v1855_v59, %v1863_v26  ;;  %v1951_v23 = vld [vmem:[%s17207_s7 + $0x3588] sm:$0xff]  ;;  %v16366_v26 = vcombine.low %v1935_v10, %v1943_v11 }
 0x1d5   : > { %12130 = vmatprep.subr.bf16.mxu0 %v16189_v32  ;;  %12458 = vmatprep.subr.bf16.mxu1 %v16191_v33  ;;  %v1870_v32 = vld [vmem:[%s17207_s7 + $0x3300] sm:$0xff]  ;;  %v1959_v24 = vld [vmem:[%s17207_s7 + $0x35c8] sm:$0xff] }
 0x1d6   : > { %v1878_v33 = vld [vmem:[%s17207_s7 + $0x3340] sm:$0xff] }
 0x1d7   : > { %v16300_v47 = vcombine.low %v1870_v32, %v1878_v33 }
 0x1d8   : > { %12131 = vmatpush1.bf16.msra.mxu0 %v16188_v40  ;;  %12459 = vmatpush1.bf16.msra.mxu1 %v16190_v41  ;;  %v16301_v40 = vcombine.high %v1870_v32, %v1878_v33  ;;  %v16303_v41 = vcombine.high %v1871_v34, %v1879_v35  ;;  %v1967_v32 = vld [vmem:[%s17207_s7 + $0x3608] sm:$0xff]  ;;  %v16382_v35 = vcombine.low %v1951_v23, %v1959_v24 }
 0x1d9   : > { %12141 = vmatprep.subr.bf16.mxu0 %v16205_v42  ;;  %12469 = vmatprep.subr.bf16.mxu1 %v16207_v43  ;;  %v1886_v42 = vld [vmem:[%s17207_s7 + $0x3380] sm:$0xff]  ;;  %v1975_v33 = vld [vmem:[%s17207_s7 + $0x3648] sm:$0xff] }
 0x1da   : > { %v1894_v43 = vld [vmem:[%s17207_s7 + $0x33c0] sm:$0xff] }
 0x1db   : > { %12133 = vmatmul.mubr.bf16.vlgmr.msra.gmra.mrb[0].mxu0 %v17709_v46  ;;  %12461 = vmatmul.mubr.bf16.vlgmr.msra.gmra.mrb[0].mxu1 %v17709_v46  ;;  %v16316_v60 = vcombine.low %v1886_v42, %v1894_v43 }
 0x1dc   : > { %12142 = vmatpush1.bf16.msra.mxu0 %v16204_v50  ;;  %12470 = vmatpush1.bf16.msra.mxu1 %v16206_v51  ;;  %v16317_v50 = vcombine.high %v1886_v42, %v1894_v43  ;;  %v16319_v51 = vcombine.high %v1887_v25, %v1895_v44  ;;  %v1983_v42 = vld [vmem:[%s17207_s7 + $0x3688] sm:$0xff]  ;;  %v16398_v44 = vcombine.low %v1967_v32, %v1975_v33 }
 0x1dd   : > { %12143 = vmatprep.subr.bf16.mxu0 %v16221_v52  ;;  %12471 = vmatprep.subr.bf16.mxu1 %v16223_v54  ;;  %v1902_v52 = vld [vmem:[%s17207_s7 + $0x3400] sm:$0xff]  ;;  %v1991_v43 = vld [vmem:[%s17207_s7 + $0x36c8] sm:$0xff] }
 0x1de   : > { %12173 = vmatprep.mubr.bf16.mxu0 %v17722_v58  ;;  %12501 = vmatprep.mubr.bf16.mxu1 %v17722_v58  ;;  %v1910_v54 = vld [vmem:[%s17207_s7 + $0x3440] sm:$0xff] }
 0x1df   : > { %v16332_v4 = vcombine.low %v1902_v52, %v1910_v54 }
 0x1e0   : > { %12144 = vmatpush1.bf16.msra.mxu0 %v16220_v62  ;;  %12472 = vmatpush1.bf16.msra.mxu1 %v16222_v63  ;;  %v16333_v62 = vcombine.high %v1902_v52, %v1910_v54  ;;  %v16335_v63 = vcombine.high %v1903_v19, %v1911_v56  ;;  %v1999_v52 = vld [vmem:[%s17207_s7 + $0x3708] sm:$0xff]  ;;  %v16414_v56 = vcombine.low %v1983_v42, %v1991_v43 }
 0x1e1   : > { %12145 = vmatprep.subr.bf16.mxu0 %v16237_v39  ;;  %12473 = vmatprep.subr.bf16.mxu1 %v16239_v0  ;;  %v1918_v39 = vld [vmem:[%s17207_s7 + $0x3480] sm:$0xff]  ;;  %v2007_v54 = vld [vmem:[%s17207_s7 + $0x3748] sm:$0xff] }
 0x1e2   : > { %v1926_v0 = vld [vmem:[%s17207_s7 + $0x34c0] sm:$0xff] }
 0x1e3   : > { %v16348_v13 = vcombine.low %v1918_v39, %v1926_v0 }
 0x1e4   : > { %12146 = vmatpush1.bf16.msra.mxu0 %v16236_v6  ;;  %12474 = vmatpush1.bf16.msra.mxu1 %v16238_v7  ;;  %v16349_v6 = vcombine.high %v1918_v39, %v1926_v0  ;;  %v16351_v7 = vcombine.high %v1919_v2, %v1927_v3  ;;  %v2015_v39 = vld [vmem:[%s17207_s7 + $0x3788] sm:$0xff]  ;;  %v16430_v3 = vcombine.low %v1999_v52, %v2007_v54 }
 0x1e5   : > { %12147 = vmatprep.subr.bf16.mxu0 %v16253_v8  ;;  %12475 = vmatprep.subr.bf16.mxu1 %v16255_v9  ;;  %v1934_v8 = vld [vmem:[%s17207_s7 + $0x3500] sm:$0xff]  ;;  %v2023_v0 = vld [vmem:[%s17207_s7 + $0x37c8] sm:$0xff] }
 0x1e6   : > { %v1942_v9 = vld [vmem:[%s17207_s7 + $0x3540] sm:$0xff] }
 0x1e7   : > { %v16364_v59 = vcombine.low %v1934_v8, %v1942_v9 }
 0x1e8   : > { %12148 = vmatpush1.bf16.msra.mxu0 %v16252_v17  ;;  %12476 = vmatpush1.bf16.msra.mxu1 %v16254_v18  ;;  %v16365_v17 = vcombine.high %v1934_v8, %v1942_v9  ;;  %v16367_v18 = vcombine.high %v1935_v10, %v1943_v11  ;;  %v2031_v8 = vld [vmem:[%s17207_s7 + $0x3808] sm:$0xff]  ;;  %v16446_v11 = vcombine.low %v2015_v39, %v2023_v0 }
 0x1e9   : > { %12149 = vmatprep.subr.bf16.mxu0 %v16269_v53  ;;  %12477 = vmatprep.subr.bf16.mxu1 %v16271_v20  ;;  %v1950_v53 = vld [vmem:[%s17207_s7 + $0x3580] sm:$0xff]  ;;  %v2039_v9 = vld [vmem:[%s17207_s7 + $0x3848] sm:$0xff] }
 0x1ea   : > { %v1958_v20 = vld [vmem:[%s17207_s7 + $0x35c0] sm:$0xff] }
 0x1eb   : > { %v16380_v34 = vcombine.low %v1950_v53, %v1958_v20 }
 0x1ec   : > { %12150 = vmatpush1.bf16.msra.mxu0 %v16268_v28  ;;  %12478 = vmatpush1.bf16.msra.mxu1 %v16270_v29  ;;  %v16381_v28 = vcombine.high %v1950_v53, %v1958_v20  ;;  %v16383_v29 = vcombine.high %v1951_v23, %v1959_v24  ;;  %v17790_v53 = vcombine.low %v17716_v49, %v17716_v49  ;;  %v2047_v20 = vld [vmem:[%s17207_s7 + $0x3888] sm:$0xff] }
 0x1ed   : > { %12151 = vmatprep.subr.bf16.mxu0 %v16285_v15  ;;  %12479 = vmatprep.subr.bf16.mxu1 %v16287_v30  ;;  %v1966_v15 = vld [vmem:[%s17207_s7 + $0x3600] sm:$0xff]  ;;  %v2055_v23 = vld [vmem:[%s17207_s7 + $0x38c8] sm:$0xff] }
 0x1ee   : > { %v1974_v30 = vld [vmem:[%s17207_s7 + $0x3640] sm:$0xff]  ;;  %v2071_v49 = vld [vmem:[%s17207_s7 + $0x3948] sm:$0xff] }
 0x1ef   : > { %v16396_v25 = vcombine.low %v1966_v15, %v1974_v30 }
 0x1f0   : > { %12152 = vmatpush1.bf16.msra.mxu0 %v16284_v37  ;;  %12480 = vmatpush1.bf16.msra.mxu1 %v16286_v38  ;;  %v16397_v37 = vcombine.high %v1966_v15, %v1974_v30  ;;  %v16399_v38 = vcombine.high %v1967_v32, %v1975_v33  ;;  %v2070_v15 = vld [vmem:[%s17207_s7 + $0x3940] sm:$0xff]  ;;  %v2063_v30 = vld [vmem:[%s17207_s7 + $0x3908] sm:$0xff]  ;;  %v16478_v33 = vcombine.low %v2047_v20, %v2055_v23 }
 0x1f1   : > { %12153 = vmatprep.subr.bf16.mxu0 %v16301_v40  ;;  %12481 = vmatprep.subr.bf16.mxu1 %v16303_v41  ;;  %v1982_v40 = vld [vmem:[%s17207_s7 + $0x3680] sm:$0xff] }
 0x1f2   : > { %v1990_v41 = vld [vmem:[%s17207_s7 + $0x36c0] sm:$0xff] }
 0x1f3   : > { %v16412_v19 = vcombine.low %v1982_v40, %v1990_v41 }
 0x1f4   : > { %12154 = vmatpush1.bf16.msra.mxu0 %v16300_v47  ;;  %12482 = vmatpush1.bf16.msra.mxu1 %v16302_v48  ;;  %v16413_v47 = vcombine.high %v1982_v40, %v1990_v41  ;;  %v16415_v48 = vcombine.high %v1983_v42, %v1991_v43  ;;  %v17048_v40 = vmov 0   ;;  %v2079_v41 = vld [vmem:[%s17207_s7 + $0x3988] sm:$0xff] }
 0x1f5   : > { %12155 = vmatprep.subr.bf16.mxu0 %v16317_v50  ;;  %12483 = vmatprep.subr.bf16.mxu1 %v16319_v51  ;;  %v1998_v50 = vld [vmem:[%s17207_s7 + $0x3700] sm:$0xff]  ;;  %v2087_v42 = vld [vmem:[%s17207_s7 + $0x39c8] sm:$0xff] }
 0x1f6   : > { %v2006_v51 = vld [vmem:[%s17207_s7 + $0x3740] sm:$0xff] }
 0x1f7   : > { %v16428_v2 = vcombine.low %v1998_v50, %v2006_v51 }
 0x1f8   : > { %12156 = vmatpush1.bf16.msra.mxu0 %v16316_v60  ;;  %12484 = vmatpush1.bf16.msra.mxu1 %v16318_v61  ;;  %v16429_v60 = vcombine.high %v1998_v50, %v2006_v51  ;;  %v16431_v61 = vcombine.high %v1999_v52, %v2007_v54  ;;  %v2102_v50 = vld [vmem:[%s17207_s7 + $0x3a40] sm:$0xff]  ;;  %v2095_v51 = vld [vmem:[%s17207_s7 + $0x3a08] sm:$0xff] }
 0x1f9   : > { %12157 = vmatprep.subr.bf16.mxu0 %v16333_v62  ;;  %12485 = vmatprep.subr.bf16.mxu1 %v16335_v63  ;;  %v2014_v62 = vld [vmem:[%s17207_s7 + $0x3780] sm:$0xff]  ;;  %v2103_v52 = vld [vmem:[%s17207_s7 + $0x3a48] sm:$0xff] }
 0x1fa   : > { %v2022_v63 = vld [vmem:[%s17207_s7 + $0x37c0] sm:$0xff] }
 0x1fb   : > { %v16444_v10 = vcombine.low %v2014_v62, %v2022_v63 }
 0x1fc   : > { %12158 = vmatpush1.bf16.msra.mxu0 %v16332_v4  ;;  %12486 = vmatpush1.bf16.msra.mxu1 %v16334_v5  ;;  %v16445_v4 = vcombine.high %v2014_v62, %v2022_v63  ;;  %v16447_v5 = vcombine.high %v2015_v39, %v2023_v0  ;;  %v2118_v62 = vld [vmem:[%s17207_s7 + $0x3ac0] sm:$0xff]  ;;  %v2111_v63 = vld [vmem:[%s17207_s7 + $0x3a88] sm:$0xff] }
 0x1fd   : > { %12159 = vmatprep.subr.bf16.mxu0 %v16349_v6  ;;  %12487 = vmatprep.subr.bf16.mxu1 %v16351_v7  ;;  %v2030_v6 = vld [vmem:[%s17207_s7 + $0x3800] sm:$0xff]  ;;  %v2119_v39 = vld [vmem:[%s17207_s7 + $0x3ac8] sm:$0xff] }
 0x1fe   : > { %v2038_v7 = vld [vmem:[%s17207_s7 + $0x3840] sm:$0xff] }
 0x1ff   : > { %v16460_v24 = vcombine.low %v2030_v6, %v2038_v7 }
 0x200   : > { %12160 = vmatpush1.bf16.msra.mxu0 %v16348_v13  ;;  %12488 = vmatpush1.bf16.msra.mxu1 %v16350_v14  ;;  %v16461_v13 = vcombine.high %v2030_v6, %v2038_v7  ;;  %v16463_v14 = vcombine.high %v2031_v8, %v2039_v9  ;;  %v2134_v6 = vld [vmem:[%s17207_s7 + $0x3b40] sm:$0xff]  ;;  %v2127_v7 = vld [vmem:[%s17207_s7 + $0x3b08] sm:$0xff] }
 0x201   : > { %12161 = vmatprep.subr.bf16.mxu0 %v16365_v17  ;;  %12489 = vmatprep.subr.bf16.mxu1 %v16367_v18  ;;  %v2046_v17 = vld [vmem:[%s17207_s7 + $0x3880] sm:$0xff] }
 0x202   : > { %v2054_v18 = vld [vmem:[%s17207_s7 + $0x38c0] sm:$0xff] }
 0x203   : > { %v16476_v32 = vcombine.low %v2046_v17, %v2054_v18 }
 0x204   : > { %12162 = vmatpush1.bf16.msra.mxu0 %v16364_v59  ;;  %12490 = vmatpush1.bf16.msra.mxu1 %v16366_v26  ;;  %v16462_v59 = vcombine.low %v2031_v8, %v2039_v9  ;;  %v16477_v26 = vcombine.high %v2046_v17, %v2054_v18  ;;  %v2135_v8 = vld [vmem:[%s17207_s7 + $0x3b48] sm:$0xff]  ;;  %v2150_v17 = vld [vmem:[%s17207_s7 + $0x3bc0] sm:$0xff] }
 0x205   : > { %12163 = vmatprep.subr.bf16.mxu0 %v16381_v28  ;;  %12491 = vmatprep.subr.bf16.mxu1 %v16383_v29  ;;  %v16479_v28 = vcombine.high %v2047_v20, %v2055_v23  ;;  %v2062_v29 = vld [vmem:[%s17207_s7 + $0x3900] sm:$0xff]  ;;  %v2143_v18 = vld [vmem:[%s17207_s7 + $0x3b88] sm:$0xff] }
 0x206   : > { %v16492_v43 = vcombine.low %v2062_v29, %v2070_v15  ;;  %v2151_v20 = vld [vmem:[%s17207_s7 + $0x3bc8] sm:$0xff] }
 0x208   : > { %12164 = vmatpush1.bf16.msra.mxu0 %v16380_v34  ;;  %12492 = vmatpush1.bf16.msra.mxu1 %v16382_v35  ;;  %v16493_v34 = vcombine.high %v2062_v29, %v2070_v15  ;;  %v16495_v35 = vcombine.high %v2063_v30, %v2071_v49  ;;  %v248_v29 = vld [vmem:[%s17207_s7 + $0x50] sm:$0xff]  ;;  %v241_v15 = vld [vmem:[%s17207_s7 + $0x18] sm:$0xff] }
 0x209   : > { %12165 = vmatprep.subr.bf16.mxu0 %v16397_v37  ;;  %12493 = vmatprep.subr.bf16.mxu1 %v16399_v38  ;;  %v2078_v37 = vld [vmem:[%s17207_s7 + $0x3980] sm:$0xff] }
 0x20a   : > { %v2086_v38 = vld [vmem:[%s17207_s7 + $0x39c0] sm:$0xff] }
 0x20b   : > { %v16508_v54 = vcombine.low %v2078_v37, %v2086_v38 }
 0x20c   : > { %12166 = vmatpush1.bf16.msra.mxu0 %v16396_v25  ;;  %12494 = vmatpush1.bf16.msra.mxu1 %v16398_v44  ;;  %v16494_v25 = vcombine.low %v2063_v30, %v2071_v49  ;;  %v16509_v44 = vcombine.high %v2078_v37, %v2086_v38  ;;  %v249_v30 = vld [vmem:[%s17207_s7 + $0x58] sm:$0xff]  ;;  %v264_v37 = vld [vmem:[%s17207_s7 + $0xd0] sm:$0xff] }
 0x20d   : > { %12167 = vmatprep.subr.bf16.mxu0 %v16413_v47  ;;  %12495 = vmatprep.subr.bf16.mxu1 %v16415_v48  ;;  %v16511_v47 = vcombine.high %v2079_v41, %v2087_v42  ;;  %v2094_v48 = vld [vmem:[%s17207_s7 + $0x3a00] sm:$0xff]  ;;  %v16906_v38 = vld [vmem:[%s19477_s0 + $0x38] ss:$0 sps:$4 sm:$0xff]  }
 0x20e   : > { %v16524_v0 = vcombine.low %v2094_v48, %v2102_v50 }
 0x210   : > { %12168 = vmatpush1.bf16.msra.mxu0 %v16412_v19  ;;  %12496 = vmatpush1.bf16.msra.mxu1 %v16414_v56  ;;  %v16510_v19 = vcombine.low %v2079_v41, %v2087_v42  ;;  %v16525_v56 = vcombine.high %v2094_v48, %v2102_v50  ;;  %v257_v41 = vld [vmem:[%s17207_s7 + $0x98] sm:$0xff]  ;;  %v272_v48 = vld [vmem:[%s17207_s7 + $0x110] sm:$0xff] }
 0x211   : > { %12169 = vmatprep.subr.bf16.mxu0 %v16429_v60  ;;  %12497 = vmatprep.subr.bf16.mxu1 %v16431_v61  ;;  %v16527_v60 = vcombine.high %v2095_v51, %v2103_v52  ;;  %v2110_v61 = vld [vmem:[%s17207_s7 + $0x3a80] sm:$0xff]  ;;  %v265_v42 = vld [vmem:[%s17207_s7 + $0xd8] sm:$0xff]  ;;  %v280_v50 = vld [vmem:[%s17207_s7 + $0x150] sm:$0xff] }
 0x212   : > { %v16540_v9 = vcombine.low %v2110_v61, %v2118_v62 }
 0x214   : > { %12170 = vmatpush1.bf16.msra.mxu0 %v16428_v2  ;;  %12498 = vmatpush1.bf16.msra.mxu1 %v16430_v3  ;;  %v16526_v2 = vcombine.low %v2095_v51, %v2103_v52  ;;  %v16541_v3 = vcombine.high %v2110_v61, %v2118_v62  ;;  %v273_v51 = vld [vmem:[%s17207_s7 + $0x118] sm:$0xff]  ;;  %v288_v61 = vld [vmem:[%s17207_s7 + $0x190] sm:$0xff] }
 0x215   : > { %12171 = vmatprep.subr.bf16.mxu0 %v16445_v4  ;;  %12499 = vmatprep.subr.bf16.mxu1 %v16447_v5  ;;  %v16543_v4 = vcombine.high %v2111_v63, %v2119_v39  ;;  %v2126_v5 = vld [vmem:[%s17207_s7 + $0x3b00] sm:$0xff]  ;;  %v281_v52 = vld [vmem:[%s17207_s7 + $0x158] sm:$0xff]  ;;  %v296_v62 = vld [vmem:[%s17207_s7 + $0x1d0] sm:$0xff] }
 0x216   : > { %v16556_v23 = vcombine.low %v2126_v5, %v2134_v6 }
 0x218   : > { %12172 = vmatpush1.bf16.msra.mxu0 %v16444_v10  ;;  %12500 = vmatpush1.bf16.msra.mxu1 %v16446_v11  ;;  %v16542_v10 = vcombine.low %v2111_v63, %v2119_v39  ;;  %v16557_v11 = vcombine.high %v2126_v5, %v2134_v6  ;;  %v289_v63 = vld [vmem:[%s17207_s7 + $0x198] sm:$0xff]  ;;  %v304_v5 = vld [vmem:[%s17207_s7 + $0x210] sm:$0xff] }
 0x219   : > { %12182 = vmatprep.subr.bf16.mxu0 %v16461_v13  ;;  %12510 = vmatprep.subr.bf16.mxu1 %v16463_v14  ;;  %v16559_v13 = vcombine.high %v2127_v7, %v2135_v8  ;;  %v2142_v14 = vld [vmem:[%s17207_s7 + $0x3b80] sm:$0xff]  ;;  %v297_v39 = vld [vmem:[%s17207_s7 + $0x1d8] sm:$0xff]  ;;  %v312_v6 = vld [vmem:[%s17207_s7 + $0x250] sm:$0xff] }
 0x21a   : > { %v16572_v49 = vcombine.low %v2142_v14, %v2150_v17 }
 0x21b   : > { %12174 = vmatmul.mubr.bf16.vlgmr.msra.gmra.mrb[0].mxu0 %v17790_v53  ;;  %12502 = vmatmul.mubr.bf16.vlgmr.msra.gmra.mrb[0].mxu1 %v17790_v53 }
 0x21c   : > { %12183 = vmatpush1.bf16.msra.mxu0 %v16460_v24  ;;  %12511 = vmatpush1.bf16.msra.mxu1 %v16462_v59  ;;  %v16558_v24 = vcombine.low %v2127_v7, %v2135_v8  ;;  %v16573_v59 = vcombine.high %v2142_v14, %v2150_v17  ;;  %v305_v7 = vld [vmem:[%s17207_s7 + $0x218] sm:$0xff]  ;;  %v320_v14 = vld [vmem:[%s17207_s7 + $0x290] sm:$0xff] }
 0x21d   : > { %12184 = vmatprep.subr.bf16.mxu0 %v16477_v26  ;;  %12512 = vmatprep.subr.bf16.mxu1 %v16479_v28  ;;  %v16575_v26 = vcombine.high %v2143_v18, %v2151_v20  ;;  %v240_v28 = vld [vmem:[%s17207_s7 + $0x10] sm:$0xff]  ;;  %v313_v8 = vld [vmem:[%s17207_s7 + $0x258] sm:$0xff] }
 0x21e   : > { %12214 = vmatprep.mubr.bf16.mxu0 %v17048_v40  ;;  %12542 = vmatprep.mubr.bf16.mxu1 %v17048_v40  ;;  %v328_v17 = vld [vmem:[%s17207_s7 + $0x2d0] sm:$0xff] }
 0x220   : > { %12185 = vmatpush1.bf16.msra.mxu0 %v16476_v32  ;;  %12513 = vmatpush1.bf16.msra.mxu1 %v16478_v33  ;;  %v16574_v32 = vcombine.low %v2143_v18, %v2151_v20  ;;  %v14673_v33 = vcombine.high %v240_v28, %v248_v29  ;;  %v321_v18 = vld [vmem:[%s17207_s7 + $0x298] sm:$0xff] }
 0x221   : > { %12186 = vmatprep.subr.bf16.mxu0 %v16493_v34  ;;  %12514 = vmatprep.subr.bf16.mxu1 %v16495_v35  ;;  %v14675_v34 = vcombine.high %v241_v15, %v249_v30  ;;  %v256_v35 = vld [vmem:[%s17207_s7 + $0x90] sm:$0xff]  ;;  %v329_v20 = vld [vmem:[%s17207_s7 + $0x2d8] sm:$0xff] }
 0x224   : > { %12187 = vmatpush1.bf16.msra.mxu0 %v16492_v43  ;;  %12515 = vmatpush1.bf16.msra.mxu1 %v16494_v25  ;;  %v14672_v43 = vcombine.low %v240_v28, %v248_v29  ;;  %v14674_v25 = vcombine.low %v241_v15, %v249_v30  ;;  %v336_v28 = vld [vmem:[%s17207_s7 + $0x310] sm:$0xff]  ;;  %v337_v15 = vld [vmem:[%s17207_s7 + $0x318] sm:$0xff] }
 0x225   : > { %12188 = vmatprep.subr.bf16.mxu0 %v16509_v44  ;;  %12516 = vmatprep.subr.bf16.mxu1 %v16511_v47  ;;  %v14689_v44 = vcombine.high %v256_v35, %v264_v37  ;;  %v14691_v47 = vcombine.high %v257_v41, %v265_v42  ;;  %v344_v29 = vld [vmem:[%s17207_s7 + $0x350] sm:$0xff]  ;;  %v345_v30 = vld [vmem:[%s17207_s7 + $0x358] sm:$0xff] }
 0x228   : > { %12189 = vmatpush1.bf16.msra.mxu0 %v16508_v54  ;;  %12517 = vmatpush1.bf16.msra.mxu1 %v16510_v19  ;;  %v14688_v54 = vcombine.low %v256_v35, %v264_v37  ;;  %v14690_v19 = vcombine.low %v257_v41, %v265_v42  ;;  %v352_v35 = vld [vmem:[%s17207_s7 + $0x390] sm:$0xff]  ;;  %v361_v41 = vld [vmem:[%s17207_s7 + $0x3d8] sm:$0xff]  ;;  %v14768_v42 = vcombine.low %v336_v28, %v344_v29 }
 0x229   : > { %12190 = vmatprep.subr.bf16.mxu0 %v16525_v56  ;;  %12518 = vmatprep.subr.bf16.mxu1 %v16527_v60  ;;  %v14705_v56 = vcombine.high %v272_v48, %v280_v50  ;;  %v14707_v60 = vcombine.high %v273_v51, %v281_v52  ;;  %v360_v37 = vld [vmem:[%s17207_s7 + $0x3d0] sm:$0xff] }
 0x22c   : > { %12191 = vmatpush1.bf16.msra.mxu0 %v16524_v0  ;;  %12519 = vmatpush1.bf16.msra.mxu1 %v16526_v2  ;;  %v14704_v0 = vcombine.low %v272_v48, %v280_v50  ;;  %v14706_v2 = vcombine.low %v273_v51, %v281_v52  ;;  %v376_v48 = vld [vmem:[%s17207_s7 + $0x450] sm:$0xff]  ;;  %v369_v50 = vld [vmem:[%s17207_s7 + $0x418] sm:$0xff]  ;;  %v14784_v52 = vcombine.low %v352_v35, %v360_v37 }
 0x22d   : > { %12192 = vmatprep.subr.bf16.mxu0 %v16541_v3  ;;  %12520 = vmatprep.subr.bf16.mxu1 %v16543_v4  ;;  %v14721_v3 = vcombine.high %v288_v61, %v296_v62  ;;  %v14723_v4 = vcombine.high %v289_v63, %v297_v39  ;;  %v377_v51 = vld [vmem:[%s17207_s7 + $0x458] sm:$0xff] }
 0x230   : > { %12193 = vmatpush1.bf16.msra.mxu0 %v16540_v9  ;;  %12521 = vmatpush1.bf16.msra.mxu1 %v16542_v10  ;;  %v14720_v9 = vcombine.low %v288_v61, %v296_v62  ;;  %v14722_v10 = vcombine.low %v289_v63, %v297_v39  ;;  %v392_v61 = vld [vmem:[%s17207_s7 + $0x4d0] sm:$0xff]  ;;  %v385_v62 = vld [vmem:[%s17207_s7 + $0x498] sm:$0xff] }
 0x231   : > { %12194 = vmatprep.subr.bf16.mxu0 %v16557_v11  ;;  %12522 = vmatprep.subr.bf16.mxu1 %v16559_v13  ;;  %v14737_v11 = vcombine.high %v304_v5, %v312_v6  ;;  %v14739_v13 = vcombine.high %v305_v7, %v313_v8  ;;  %v393_v63 = vld [vmem:[%s17207_s7 + $0x4d8] sm:$0xff] }
 0x234   : > { %12195 = vmatpush1.bf16.msra.mxu0 %v16556_v23  ;;  %12523 = vmatpush1.bf16.msra.mxu1 %v16558_v24  ;;  %v14736_v23 = vcombine.low %v304_v5, %v312_v6  ;;  %v14738_v24 = vcombine.low %v305_v7, %v313_v8  ;;  %v408_v5 = vld [vmem:[%s17207_s7 + $0x550] sm:$0xff]  ;;  %v401_v6 = vld [vmem:[%s17207_s7 + $0x518] sm:$0xff] }
 0x235   : > { %12196 = vmatprep.subr.bf16.mxu0 %v16573_v59  ;;  %12524 = vmatprep.subr.bf16.mxu1 %v16575_v26  ;;  %v14753_v59 = vcombine.high %v320_v14, %v328_v17  ;;  %v14755_v26 = vcombine.high %v321_v18, %v329_v20  ;;  %v409_v7 = vld [vmem:[%s17207_s7 + $0x558] sm:$0xff] }
 0x238   : > { %12197 = vmatpush1.bf16.msra.mxu0 %v16572_v49  ;;  %12525 = vmatpush1.bf16.msra.mxu1 %v16574_v32  ;;  %v14752_v49 = vcombine.low %v320_v14, %v328_v17  ;;  %v14754_v32 = vcombine.low %v321_v18, %v329_v20  ;;  %v424_v14 = vld [vmem:[%s17207_s7 + $0x5d0] sm:$0xff]  ;;  %v417_v17 = vld [vmem:[%s17207_s7 + $0x598] sm:$0xff] }
 0x239   : > { %12551 = vmatprep.subr.bf16.mxu0 %v14673_v33  ;;  %12879 = vmatprep.subr.bf16.mxu1 %v14675_v34  ;;  %v14769_v33 = vcombine.high %v336_v28, %v344_v29  ;;  %v14771_v34 = vcombine.high %v337_v15, %v345_v30  ;;  %v425_v18 = vld [vmem:[%s17207_s7 + $0x5d8] sm:$0xff]  ;;  %v440_v28 = vld [vmem:[%s17207_s7 + $0x650] sm:$0xff] }
 0x23a   : > { %v433_v29 = vld [vmem:[%s17207_s7 + $0x618] sm:$0xff] }
 0x23b   : > { %12215 = vmatmul.mubr.bf16.vlgmr.msra.gmra.mrb[0].mxu0 %v16906_v38  ;;  %12543 = vmatmul.mubr.bf16.vlgmr.msra.gmra.mrb[0].mxu1 %v16906_v38  ;;  %v353_v38 = vld [vmem:[%s17207_s7 + $0x398] sm:$0xff] }
 0x23c   : > { %12552 = vmatpush1.bf16.msra.mxu0 %v14672_v43  ;;  %12880 = vmatpush1.bf16.msra.mxu1 %v14674_v25  ;;  %v14770_v43 = vcombine.low %v337_v15, %v345_v30  ;;  %v14785_v25 = vcombine.high %v352_v35, %v360_v37  ;;  %v441_v15 = vld [vmem:[%s17207_s7 + $0x658] sm:$0xff]  ;;  %v456_v35 = vld [vmem:[%s17207_s7 + $0x6d0] sm:$0xff] }
 0x23d   : > { %12553 = vmatprep.subr.bf16.mxu0 %v14689_v44  ;;  %12881 = vmatprep.subr.bf16.mxu1 %v14691_v47  ;;  %v14787_v44 = vcombine.high %v353_v38, %v361_v41  ;;  %v368_v47 = vld [vmem:[%s17207_s7 + $0x410] sm:$0xff]  ;;  %v449_v37 = vld [vmem:[%s17207_s7 + $0x698] sm:$0xff] }
 0x23e   : > { %12583 = vmatprep.mubr.bf16.mxu0 %v17258_v57  ;;  %12911 = vmatprep.mubr.bf16.mxu1 %v17258_v57  ;;  %v14800_v39 = vcombine.low %v368_v47, %v376_v48 }
 0x240   : > { %12554 = vmatpush1.bf16.msra.mxu0 %v14688_v54  ;;  %12882 = vmatpush1.bf16.msra.mxu1 %v14690_v19  ;;  %v14786_v54 = vcombine.low %v353_v38, %v361_v41  ;;  %v14801_v19 = vcombine.high %v368_v47, %v376_v48  ;;  %v457_v38 = vld [vmem:[%s17207_s7 + $0x6d8] sm:$0xff]  ;;  %v472_v47 = vld [vmem:[%s17207_s7 + $0x750] sm:$0xff] }
 0x241   : > { %12555 = vmatprep.subr.bf16.mxu0 %v14705_v56  ;;  %12883 = vmatprep.subr.bf16.mxu1 %v14707_v60  ;;  %v14803_v56 = vcombine.high %v369_v50, %v377_v51  ;;  %v384_v60 = vld [vmem:[%s17207_s7 + $0x490] sm:$0xff]  ;;  %v465_v48 = vld [vmem:[%s17207_s7 + $0x718] sm:$0xff] }
 0x242   : > { %v14816_v8 = vcombine.low %v384_v60, %v392_v61 }
 0x244   : > { %12556 = vmatpush1.bf16.msra.mxu0 %v14704_v0  ;;  %12884 = vmatpush1.bf16.msra.mxu1 %v14706_v2  ;;  %v14802_v0 = vcombine.low %v369_v50, %v377_v51  ;;  %v14817_v2 = vcombine.high %v384_v60, %v392_v61  ;;  %v473_v50 = vld [vmem:[%s17207_s7 + $0x758] sm:$0xff]  ;;  %v488_v60 = vld [vmem:[%s17207_s7 + $0x7d0] sm:$0xff] }
 0x245   : > { %12557 = vmatprep.subr.bf16.mxu0 %v14721_v3  ;;  %12885 = vmatprep.subr.bf16.mxu1 %v14723_v4  ;;  %v14819_v3 = vcombine.high %v385_v62, %v393_v63  ;;  %v400_v4 = vld [vmem:[%s17207_s7 + $0x510] sm:$0xff]  ;;  %v481_v61 = vld [vmem:[%s17207_s7 + $0x798] sm:$0xff] }
 0x246   : > { %v14832_v20 = vcombine.low %v400_v4, %v408_v5 }
 0x248   : > { %12558 = vmatpush1.bf16.msra.mxu0 %v14720_v9  ;;  %12886 = vmatpush1.bf16.msra.mxu1 %v14722_v10  ;;  %v14818_v9 = vcombine.low %v385_v62, %v393_v63  ;;  %v14833_v10 = vcombine.high %v400_v4, %v408_v5  ;;  %v489_v62 = vld [vmem:[%s17207_s7 + $0x7d8] sm:$0xff]  ;;  %v504_v4 = vld [vmem:[%s17207_s7 + $0x850] sm:$0xff] }
 0x249   : > { %12559 = vmatprep.subr.bf16.mxu0 %v14737_v11  ;;  %12887 = vmatprep.subr.bf16.mxu1 %v14739_v13  ;;  %v14835_v11 = vcombine.high %v401_v6, %v409_v7  ;;  %v416_v13 = vld [vmem:[%s17207_s7 + $0x590] sm:$0xff]  ;;  %v497_v5 = vld [vmem:[%s17207_s7 + $0x818] sm:$0xff] }
 0x24a   : > { %v14848_v30 = vcombine.low %v416_v13, %v424_v14 }
 0x24c   : > { %12560 = vmatpush1.bf16.msra.mxu0 %v14736_v23  ;;  %12888 = vmatpush1.bf16.msra.mxu1 %v14738_v24  ;;  %v14834_v23 = vcombine.low %v401_v6, %v409_v7  ;;  %v14849_v24 = vcombine.high %v416_v13, %v424_v14  ;;  %v505_v6 = vld [vmem:[%s17207_s7 + $0x858] sm:$0xff]  ;;  %v520_v13 = vld [vmem:[%s17207_s7 + $0x8d0] sm:$0xff] }
 0x24d   : > { %12561 = vmatprep.subr.bf16.mxu0 %v14753_v59  ;;  %12889 = vmatprep.subr.bf16.mxu1 %v14755_v26  ;;  %v14851_v59 = vcombine.high %v417_v17, %v425_v18  ;;  %v432_v26 = vld [vmem:[%s17207_s7 + $0x610] sm:$0xff]  ;;  %v513_v14 = vld [vmem:[%s17207_s7 + $0x898] sm:$0xff] }
 0x24e   : > { %v14864_v41 = vcombine.low %v432_v26, %v440_v28 }
 0x250   : > { %12562 = vmatpush1.bf16.msra.mxu0 %v14752_v49  ;;  %12890 = vmatpush1.bf16.msra.mxu1 %v14754_v32  ;;  %v14850_v49 = vcombine.low %v417_v17, %v425_v18  ;;  %v14865_v32 = vcombine.high %v432_v26, %v440_v28  ;;  %v521_v17 = vld [vmem:[%s17207_s7 + $0x8d8] sm:$0xff]  ;;  %v536_v26 = vld [vmem:[%s17207_s7 + $0x950] sm:$0xff] }
 0x251   : > { %12563 = vmatprep.subr.bf16.mxu0 %v14769_v33  ;;  %12891 = vmatprep.subr.bf16.mxu1 %v14771_v34  ;;  %v14867_v33 = vcombine.high %v433_v29, %v441_v15  ;;  %v448_v34 = vld [vmem:[%s17207_s7 + $0x690] sm:$0xff]  ;;  %v529_v28 = vld [vmem:[%s17207_s7 + $0x918] sm:$0xff] }
 0x252   : > { %v14880_v51 = vcombine.low %v448_v34, %v456_v35 }
 0x254   : > { %12564 = vmatpush1.bf16.msra.mxu0 %v14768_v42  ;;  %12892 = vmatpush1.bf16.msra.mxu1 %v14770_v43  ;;  %v14866_v42 = vcombine.low %v433_v29, %v441_v15  ;;  %v14881_v43 = vcombine.high %v448_v34, %v456_v35  ;;  %v537_v29 = vld [vmem:[%s17207_s7 + $0x958] sm:$0xff]  ;;  %v552_v34 = vld [vmem:[%s17207_s7 + $0x9d0] sm:$0xff] }
 0x255   : > { %12565 = vmatprep.subr.bf16.mxu0 %v14785_v25  ;;  %12893 = vmatprep.subr.bf16.mxu1 %v14787_v44  ;;  %v14883_v25 = vcombine.high %v449_v37, %v457_v38  ;;  %v464_v44 = vld [vmem:[%s17207_s7 + $0x710] sm:$0xff]  ;;  %v545_v35 = vld [vmem:[%s17207_s7 + $0x998] sm:$0xff] }
 0x256   : > { %v14896_v63 = vcombine.low %v464_v44, %v472_v47 }
 0x258   : > { %12566 = vmatpush1.bf16.msra.mxu0 %v14784_v52  ;;  %12894 = vmatpush1.bf16.msra.mxu1 %v14786_v54  ;;  %v14882_v52 = vcombine.low %v449_v37, %v457_v38  ;;  %v14897_v54 = vcombine.high %v464_v44, %v472_v47  ;;  %v553_v37 = vld [vmem:[%s17207_s7 + $0x9d8] sm:$0xff]  ;;  %v568_v44 = vld [vmem:[%s17207_s7 + $0xa50] sm:$0xff] }
 0x259   : > { %12567 = vmatprep.subr.bf16.mxu0 %v14801_v19  ;;  %12895 = vmatprep.subr.bf16.mxu1 %v14803_v56  ;;  %v14899_v19 = vcombine.high %v465_v48, %v473_v50  ;;  %v480_v56 = vld [vmem:[%s17207_s7 + $0x790] sm:$0xff]  ;;  %v561_v47 = vld [vmem:[%s17207_s7 + $0xa18] sm:$0xff] }
 0x25a   : > { %v14912_v7 = vcombine.low %v480_v56, %v488_v60 }
 0x25c   : > { %12568 = vmatpush1.bf16.msra.mxu0 %v14800_v39  ;;  %12896 = vmatpush1.bf16.msra.mxu1 %v14802_v0  ;;  %v14898_v39 = vcombine.low %v465_v48, %v473_v50  ;;  %v14913_v0 = vcombine.high %v480_v56, %v488_v60  ;;  %v569_v48 = vld [vmem:[%s17207_s7 + $0xa58] sm:$0xff]  ;;  %v584_v56 = vld [vmem:[%s17207_s7 + $0xad0] sm:$0xff] }
 0x25d   : > { %12569 = vmatprep.subr.bf16.mxu0 %v14817_v2  ;;  %12897 = vmatprep.subr.bf16.mxu1 %v14819_v3  ;;  %v14915_v2 = vcombine.high %v481_v61, %v489_v62  ;;  %v496_v3 = vld [vmem:[%s17207_s7 + $0x810] sm:$0xff]  ;;  %v577_v60 = vld [vmem:[%s17207_s7 + $0xa98] sm:$0xff] }
 0x25e   : > { %v14928_v18 = vcombine.low %v496_v3, %v504_v4 }
 0x260   : > { %12570 = vmatpush1.bf16.msra.mxu0 %v14816_v8  ;;  %12898 = vmatpush1.bf16.msra.mxu1 %v14818_v9  ;;  %v14914_v8 = vcombine.low %v481_v61, %v489_v62  ;;  %v14929_v9 = vcombine.high %v496_v3, %v504_v4  ;;  %v585_v61 = vld [vmem:[%s17207_s7 + $0xad8] sm:$0xff]  ;;  %v600_v3 = vld [vmem:[%s17207_s7 + $0xb50] sm:$0xff] }
 0x261   : > { %12571 = vmatprep.subr.bf16.mxu0 %v14833_v10  ;;  %12899 = vmatprep.subr.bf16.mxu1 %v14835_v11  ;;  %v14931_v10 = vcombine.high %v497_v5, %v505_v6  ;;  %v512_v11 = vld [vmem:[%s17207_s7 + $0x890] sm:$0xff]  ;;  %v593_v4 = vld [vmem:[%s17207_s7 + $0xb18] sm:$0xff] }
 0x262   : > { %v14944_v15 = vcombine.low %v512_v11, %v520_v13 }
 0x264   : > { %12572 = vmatpush1.bf16.msra.mxu0 %v14832_v20  ;;  %12900 = vmatpush1.bf16.msra.mxu1 %v14834_v23  ;;  %v14930_v20 = vcombine.low %v497_v5, %v505_v6  ;;  %v14945_v23 = vcombine.high %v512_v11, %v520_v13  ;;  %v601_v5 = vld [vmem:[%s17207_s7 + $0xb58] sm:$0xff]  ;;  %v616_v11 = vld [vmem:[%s17207_s7 + $0xbd0] sm:$0xff] }
 0x265   : > { %12573 = vmatprep.subr.bf16.mxu0 %v14849_v24  ;;  %12901 = vmatprep.subr.bf16.mxu1 %v14851_v59  ;;  %v14947_v24 = vcombine.high %v513_v14, %v521_v17  ;;  %v528_v59 = vld [vmem:[%s17207_s7 + $0x910] sm:$0xff]  ;;  %v609_v13 = vld [vmem:[%s17207_s7 + $0xb98] sm:$0xff] }
 0x266   : > { %v14960_v38 = vcombine.low %v528_v59, %v536_v26 }
 0x268   : > { %12574 = vmatpush1.bf16.msra.mxu0 %v14848_v30  ;;  %12902 = vmatpush1.bf16.msra.mxu1 %v14850_v49  ;;  %v14946_v30 = vcombine.low %v513_v14, %v521_v17  ;;  %v14961_v49 = vcombine.high %v528_v59, %v536_v26  ;;  %v617_v14 = vld [vmem:[%s17207_s7 + $0xbd8] sm:$0xff]  ;;  %v632_v59 = vld [vmem:[%s17207_s7 + $0xc50] sm:$0xff] }
 0x269   : > { %12575 = vmatprep.subr.bf16.mxu0 %v14865_v32  ;;  %12903 = vmatprep.subr.bf16.mxu1 %v14867_v33  ;;  %v14963_v32 = vcombine.high %v529_v28, %v537_v29  ;;  %v544_v33 = vld [vmem:[%s17207_s7 + $0x990] sm:$0xff]  ;;  %v625_v26 = vld [vmem:[%s17207_s7 + $0xc18] sm:$0xff] }
 0x26a   : > { %v14976_v50 = vcombine.low %v544_v33, %v552_v34 }
 0x26c   : > { %12576 = vmatpush1.bf16.msra.mxu0 %v14864_v41  ;;  %12904 = vmatpush1.bf16.msra.mxu1 %v14866_v42  ;;  %v14962_v41 = vcombine.low %v529_v28, %v537_v29  ;;  %v14977_v42 = vcombine.high %v544_v33, %v552_v34  ;;  %v633_v28 = vld [vmem:[%s17207_s7 + $0xc58] sm:$0xff]  ;;  %v648_v33 = vld [vmem:[%s17207_s7 + $0xcd0] sm:$0xff] }
 0x26d   : > { %12577 = vmatprep.subr.bf16.mxu0 %v14881_v43  ;;  %12905 = vmatprep.subr.bf16.mxu1 %v14883_v25  ;;  %v14979_v43 = vcombine.high %v545_v35, %v553_v37  ;;  %v560_v25 = vld [vmem:[%s17207_s7 + $0xa10] sm:$0xff]  ;;  %v641_v34 = vld [vmem:[%s17207_s7 + $0xc98] sm:$0xff] }
 0x26e   : > { %v14992_v62 = vcombine.low %v560_v25, %v568_v44 }
 0x270   : > { %12578 = vmatpush1.bf16.msra.mxu0 %v14880_v51  ;;  %12906 = vmatpush1.bf16.msra.mxu1 %v14882_v52  ;;  %v14978_v51 = vcombine.low %v545_v35, %v553_v37  ;;  %v14993_v52 = vcombine.high %v560_v25, %v568_v44  ;;  %v649_v35 = vld [vmem:[%s17207_s7 + $0xcd8] sm:$0xff]  ;;  %v664_v25 = vld [vmem:[%s17207_s7 + $0xd50] sm:$0xff] }
 0x271   : > { %12579 = vmatprep.subr.bf16.mxu0 %v14897_v54  ;;  %12907 = vmatprep.subr.bf16.mxu1 %v14899_v19  ;;  %v14995_v54 = vcombine.high %v561_v47, %v569_v48  ;;  %v576_v19 = vld [vmem:[%s17207_s7 + $0xa90] sm:$0xff]  ;;  %v657_v44 = vld [vmem:[%s17207_s7 + $0xd18] sm:$0xff] }
 0x272   : > { %v15008_v6 = vcombine.low %v576_v19, %v584_v56 }
 0x274   : > { %12580 = vmatpush1.bf16.msra.mxu0 %v14896_v63  ;;  %12908 = vmatpush1.bf16.msra.mxu1 %v14898_v39  ;;  %v14994_v63 = vcombine.low %v561_v47, %v569_v48  ;;  %v15009_v39 = vcombine.high %v576_v19, %v584_v56  ;;  %v665_v47 = vld [vmem:[%s17207_s7 + $0xd58] sm:$0xff]  ;;  %v680_v19 = vld [vmem:[%s17207_s7 + $0xdd0] sm:$0xff] }
 0x275   : > { %12581 = vmatprep.subr.bf16.mxu0 %v14913_v0  ;;  %12909 = vmatprep.subr.bf16.mxu1 %v14915_v2  ;;  %v15011_v0 = vcombine.high %v577_v60, %v585_v61  ;;  %v592_v2 = vld [vmem:[%s17207_s7 + $0xb10] sm:$0xff]  ;;  %v673_v56 = vld [vmem:[%s17207_s7 + $0xd98] sm:$0xff] }
 0x276   : > { %v15024_v17 = vcombine.low %v592_v2, %v600_v3 }
 0x278   : > { %12582 = vmatpush1.bf16.msra.mxu0 %v14912_v7  ;;  %12910 = vmatpush1.bf16.msra.mxu1 %v14914_v8  ;;  %v15010_v7 = vcombine.low %v577_v60, %v585_v61  ;;  %v15025_v8 = vcombine.high %v592_v2, %v600_v3  ;;  %v681_v60 = vld [vmem:[%s17207_s7 + $0xdd8] sm:$0xff]  ;;  %v696_v2 = vld [vmem:[%s17207_s7 + $0xe50] sm:$0xff] }
 0x279   : > { %12592 = vmatprep.subr.bf16.mxu0 %v14929_v9  ;;  %12920 = vmatprep.subr.bf16.mxu1 %v14931_v10  ;;  %v15027_v9 = vcombine.high %v593_v4, %v601_v5  ;;  %v608_v10 = vld [vmem:[%s17207_s7 + $0xb90] sm:$0xff]  ;;  %v689_v3 = vld [vmem:[%s17207_s7 + $0xe18] sm:$0xff] }
 0x27a   : > { %v15040_v29 = vcombine.low %v608_v10, %v616_v11 }
 0x27b   : > { %12584 = vmatmul.mubr.bf16.vlgmr.msra.gmra.mrb[4].mxu0 %v17304_v12  ;;  %12912 = vmatmul.mubr.bf16.vlgmr.msra.gmra.mrb[4].mxu1 %v17304_v12 }
 0x27c   : > { %12593 = vmatpush1.bf16.msra.mxu0 %v14928_v18  ;;  %12921 = vmatpush1.bf16.msra.mxu1 %v14930_v20  ;;  %v15026_v18 = vcombine.low %v593_v4, %v601_v5  ;;  %v15041_v20 = vcombine.high %v608_v10, %v616_v11  ;;  %v697_v4 = vld [vmem:[%s17207_s7 + $0xe58] sm:$0xff]  ;;  %v712_v10 = vld [vmem:[%s17207_s7 + $0xed0] sm:$0xff] }
 0x27d   : > { %12594 = vmatprep.subr.bf16.mxu0 %v14945_v23  ;;  %12922 = vmatprep.subr.bf16.mxu1 %v14947_v24  ;;  %v15043_v23 = vcombine.high %v609_v13, %v617_v14  ;;  %v624_v24 = vld [vmem:[%s17207_s7 + $0xc10] sm:$0xff]  ;;  %v705_v11 = vld [vmem:[%s17207_s7 + $0xe98] sm:$0xff] }
 0x27e   : > { %12624 = vmatprep.mubr.bf16.mxu0 %v17317_v21  ;;  %12952 = vmatprep.mubr.bf16.mxu1 %v17317_v21  ;;  %v15056_v37 = vcombine.low %v624_v24, %v632_v59 }
 0x280   : > { %12595 = vmatpush1.bf16.msra.mxu0 %v14944_v15  ;;  %12923 = vmatpush1.bf16.msra.mxu1 %v14946_v30  ;;  %v15042_v15 = vcombine.low %v609_v13, %v617_v14  ;;  %v15057_v30 = vcombine.high %v624_v24, %v632_v59  ;;  %v713_v13 = vld [vmem:[%s17207_s7 + $0xed8] sm:$0xff]  ;;  %v728_v24 = vld [vmem:[%s17207_s7 + $0xf50] sm:$0xff] }
 0x281   : > { %12596 = vmatprep.subr.bf16.mxu0 %v14961_v49  ;;  %12924 = vmatprep.subr.bf16.mxu1 %v14963_v32  ;;  %v15059_v49 = vcombine.high %v625_v26, %v633_v28  ;;  %v640_v32 = vld [vmem:[%s17207_s7 + $0xc90] sm:$0xff]  ;;  %v721_v59 = vld [vmem:[%s17207_s7 + $0xf18] sm:$0xff] }
 0x282   : > { %v15072_v48 = vcombine.low %v640_v32, %v648_v33 }
 0x284   : > { %12597 = vmatpush1.bf16.msra.mxu0 %v14960_v38  ;;  %12925 = vmatpush1.bf16.msra.mxu1 %v14962_v41  ;;  %v15058_v38 = vcombine.low %v625_v26, %v633_v28  ;;  %v15073_v41 = vcombine.high %v640_v32, %v648_v33  ;;  %v729_v26 = vld [vmem:[%s17207_s7 + $0xf58] sm:$0xff]  ;;  %v744_v32 = vld [vmem:[%s17207_s7 + $0xfd0] sm:$0xff] }
 0x285   : > { %12598 = vmatprep.subr.bf16.mxu0 %v14977_v42  ;;  %12926 = vmatprep.subr.bf16.mxu1 %v14979_v43  ;;  %v15075_v42 = vcombine.high %v641_v34, %v649_v35  ;;  %v656_v43 = vld [vmem:[%s17207_s7 + $0xd10] sm:$0xff]  ;;  %v737_v33 = vld [vmem:[%s17207_s7 + $0xf98] sm:$0xff] }
 0x286   : > { %v15088_v61 = vcombine.low %v656_v43, %v664_v25 }
 0x288   : > { %12599 = vmatpush1.bf16.msra.mxu0 %v14976_v50  ;;  %12927 = vmatpush1.bf16.msra.mxu1 %v14978_v51  ;;  %v15074_v50 = vcombine.low %v641_v34, %v649_v35  ;;  %v15089_v51 = vcombine.high %v656_v43, %v664_v25  ;;  %v745_v34 = vld [vmem:[%s17207_s7 + $0xfd8] sm:$0xff]  ;;  %v760_v43 = vld [vmem:[%s17207_s7 + $0x1050] sm:$0xff] }
 0x289   : > { %12600 = vmatprep.subr.bf16.mxu0 %v14993_v52  ;;  %12928 = vmatprep.subr.bf16.mxu1 %v14995_v54  ;;  %v15091_v52 = vcombine.high %v657_v44, %v665_v47  ;;  %v672_v54 = vld [vmem:[%s17207_s7 + $0xd90] sm:$0xff]  ;;  %v753_v25 = vld [vmem:[%s17207_s7 + $0x1018] sm:$0xff] }
 0x28a   : > { %v15104_v5 = vcombine.low %v672_v54, %v680_v19 }
 0x28c   : > { %12601 = vmatpush1.bf16.msra.mxu0 %v14992_v62  ;;  %12929 = vmatpush1.bf16.msra.mxu1 %v14994_v63  ;;  %v15090_v62 = vcombine.low %v657_v44, %v665_v47  ;;  %v15105_v63 = vcombine.high %v672_v54, %v680_v19  ;;  %v761_v44 = vld [vmem:[%s17207_s7 + $0x1058] sm:$0xff]  ;;  %v776_v54 = vld [vmem:[%s17207_s7 + $0x10d0] sm:$0xff] }
 0x28d   : > { %12602 = vmatprep.subr.bf16.mxu0 %v15009_v39  ;;  %12930 = vmatprep.subr.bf16.mxu1 %v15011_v0  ;;  %v15107_v39 = vcombine.high %v673_v56, %v681_v60  ;;  %v688_v0 = vld [vmem:[%s17207_s7 + $0xe10] sm:$0xff]  ;;  %v769_v19 = vld [vmem:[%s17207_s7 + $0x1098] sm:$0xff] }
 0x28e   : > { %v15120_v14 = vcombine.low %v688_v0, %v696_v2 }
 0x290   : > { %12603 = vmatpush1.bf16.msra.mxu0 %v15008_v6  ;;  %12931 = vmatpush1.bf16.msra.mxu1 %v15010_v7  ;;  %v15106_v6 = vcombine.low %v673_v56, %v681_v60  ;;  %v15121_v7 = vcombine.high %v688_v0, %v696_v2  ;;  %v777_v56 = vld [vmem:[%s17207_s7 + $0x10d8] sm:$0xff]  ;;  %v792_v0 = vld [vmem:[%s17207_s7 + $0x1150] sm:$0xff] }
 0x291   : > { %12604 = vmatprep.subr.bf16.mxu0 %v15025_v8  ;;  %12932 = vmatprep.subr.bf16.mxu1 %v15027_v9  ;;  %v15123_v8 = vcombine.high %v689_v3, %v697_v4  ;;  %v704_v9 = vld [vmem:[%s17207_s7 + $0xe90] sm:$0xff]  ;;  %v785_v2 = vld [vmem:[%s17207_s7 + $0x1118] sm:$0xff] }
 0x292   : > { %v15136_v28 = vcombine.low %v704_v9, %v712_v10 }
 0x294   : > { %12605 = vmatpush1.bf16.msra.mxu0 %v15024_v17  ;;  %12933 = vmatpush1.bf16.msra.mxu1 %v15026_v18  ;;  %v15122_v17 = vcombine.low %v689_v3, %v697_v4  ;;  %v15137_v18 = vcombine.high %v704_v9, %v712_v10  ;;  %v793_v3 = vld [vmem:[%s17207_s7 + $0x1158] sm:$0xff]  ;;  %v808_v9 = vld [vmem:[%s17207_s7 + $0x11d0] sm:$0xff] }
 0x295   : > { %12606 = vmatprep.subr.bf16.mxu0 %v15041_v20  ;;  %12934 = vmatprep.subr.bf16.mxu1 %v15043_v23  ;;  %v15139_v20 = vcombine.high %v705_v11, %v713_v13  ;;  %v720_v23 = vld [vmem:[%s17207_s7 + $0xf10] sm:$0xff]  ;;  %v801_v10 = vld [vmem:[%s17207_s7 + $0x1198] sm:$0xff] }
 0x296   : > { %v15152_v35 = vcombine.low %v720_v23, %v728_v24 }
 0x298   : > { %12607 = vmatpush1.bf16.msra.mxu0 %v15040_v29  ;;  %12935 = vmatpush1.bf16.msra.mxu1 %v15042_v15  ;;  %v15138_v29 = vcombine.low %v705_v11, %v713_v13  ;;  %v15153_v15 = vcombine.high %v720_v23, %v728_v24  ;;  %v809_v11 = vld [vmem:[%s17207_s7 + $0x11d8] sm:$0xff]  ;;  %v824_v23 = vld [vmem:[%s17207_s7 + $0x1250] sm:$0xff] }
 0x299   : > { %12608 = vmatprep.subr.bf16.mxu0 %v15057_v30  ;;  %12936 = vmatprep.subr.bf16.mxu1 %v15059_v49  ;;  %v15155_v30 = vcombine.high %v721_v59, %v729_v26  ;;  %v736_v49 = vld [vmem:[%s17207_s7 + $0xf90] sm:$0xff]  ;;  %v817_v24 = vld [vmem:[%s17207_s7 + $0x1218] sm:$0xff] }
 0x29a   : > { %v15168_v47 = vcombine.low %v736_v49, %v744_v32 }
 0x29c   : > { %12609 = vmatpush1.bf16.msra.mxu0 %v15056_v37  ;;  %12937 = vmatpush1.bf16.msra.mxu1 %v15058_v38  ;;  %v15154_v37 = vcombine.low %v721_v59, %v729_v26  ;;  %v15169_v38 = vcombine.high %v736_v49, %v744_v32  ;;  %v825_v59 = vld [vmem:[%s17207_s7 + $0x1258] sm:$0xff]  ;;  %v840_v49 = vld [vmem:[%s17207_s7 + $0x12d0] sm:$0xff] }
 0x29d   : > { %12610 = vmatprep.subr.bf16.mxu0 %v15073_v41  ;;  %12938 = vmatprep.subr.bf16.mxu1 %v15075_v42  ;;  %v15171_v41 = vcombine.high %v737_v33, %v745_v34  ;;  %v752_v42 = vld [vmem:[%s17207_s7 + $0x1010] sm:$0xff]  ;;  %v833_v32 = vld [vmem:[%s17207_s7 + $0x1298] sm:$0xff] }
 0x29e   : > { %v15184_v60 = vcombine.low %v752_v42, %v760_v43 }
 0x2a0   : > { %12611 = vmatpush1.bf16.msra.mxu0 %v15072_v48  ;;  %12939 = vmatpush1.bf16.msra.mxu1 %v15074_v50  ;;  %v15170_v48 = vcombine.low %v737_v33, %v745_v34  ;;  %v15185_v50 = vcombine.high %v752_v42, %v760_v43  ;;  %v841_v33 = vld [vmem:[%s17207_s7 + $0x12d8] sm:$0xff]  ;;  %v856_v42 = vld [vmem:[%s17207_s7 + $0x1350] sm:$0xff] }
 0x2a1   : > { %12612 = vmatprep.subr.bf16.mxu0 %v15089_v51  ;;  %12940 = vmatprep.subr.bf16.mxu1 %v15091_v52  ;;  %v15187_v51 = vcombine.high %v753_v25, %v761_v44  ;;  %v768_v52 = vld [vmem:[%s17207_s7 + $0x1090] sm:$0xff]  ;;  %v849_v43 = vld [vmem:[%s17207_s7 + $0x1318] sm:$0xff] }
 0x2a2   : > { %v15200_v4 = vcombine.low %v768_v52, %v776_v54 }
 0x2a4   : > { %12613 = vmatpush1.bf16.msra.mxu0 %v15088_v61  ;;  %12941 = vmatpush1.bf16.msra.mxu1 %v15090_v62  ;;  %v15186_v61 = vcombine.low %v753_v25, %v761_v44  ;;  %v15201_v62 = vcombine.high %v768_v52, %v776_v54  ;;  %v857_v25 = vld [vmem:[%s17207_s7 + $0x1358] sm:$0xff]  ;;  %v872_v52 = vld [vmem:[%s17207_s7 + $0x13d0] sm:$0xff] }
 0x2a5   : > { %12614 = vmatprep.subr.bf16.mxu0 %v15105_v63  ;;  %12942 = vmatprep.subr.bf16.mxu1 %v15107_v39  ;;  %v15203_v63 = vcombine.high %v769_v19, %v777_v56  ;;  %v784_v39 = vld [vmem:[%s17207_s7 + $0x1110] sm:$0xff]  ;;  %v865_v54 = vld [vmem:[%s17207_s7 + $0x1398] sm:$0xff] }
 0x2a6   : > { %v15216_v13 = vcombine.low %v784_v39, %v792_v0 }
 0x2a8   : > { %12615 = vmatpush1.bf16.msra.mxu0 %v15104_v5  ;;  %12943 = vmatpush1.bf16.msra.mxu1 %v15106_v6  ;;  %v15202_v5 = vcombine.low %v769_v19, %v777_v56  ;;  %v15217_v6 = vcombine.high %v784_v39, %v792_v0  ;;  %v873_v19 = vld [vmem:[%s17207_s7 + $0x13d8] sm:$0xff]  ;;  %v888_v39 = vld [vmem:[%s17207_s7 + $0x1450] sm:$0xff] }
 0x2a9   : > { %12616 = vmatprep.subr.bf16.mxu0 %v15121_v7  ;;  %12944 = vmatprep.subr.bf16.mxu1 %v15123_v8  ;;  %v15219_v7 = vcombine.high %v785_v2, %v793_v3  ;;  %v800_v8 = vld [vmem:[%s17207_s7 + $0x1190] sm:$0xff]  ;;  %v881_v0 = vld [vmem:[%s17207_s7 + $0x1418] sm:$0xff] }
 0x2aa   : > { %v15232_v26 = vcombine.low %v800_v8, %v808_v9 }
 0x2ac   : > { %12617 = vmatpush1.bf16.msra.mxu0 %v15120_v14  ;;  %12945 = vmatpush1.bf16.msra.mxu1 %v15122_v17  ;;  %v15218_v14 = vcombine.low %v785_v2, %v793_v3  ;;  %v15233_v17 = vcombine.high %v800_v8, %v808_v9  ;;  %v889_v2 = vld [vmem:[%s17207_s7 + $0x1458] sm:$0xff]  ;;  %v904_v8 = vld [vmem:[%s17207_s7 + $0x14d0] sm:$0xff] }
 0x2ad   : > { %12618 = vmatprep.subr.bf16.mxu0 %v15137_v18  ;;  %12946 = vmatprep.subr.bf16.mxu1 %v15139_v20  ;;  %v15235_v18 = vcombine.high %v801_v10, %v809_v11  ;;  %v816_v20 = vld [vmem:[%s17207_s7 + $0x1210] sm:$0xff]  ;;  %v897_v9 = vld [vmem:[%s17207_s7 + $0x1498] sm:$0xff] }
 0x2ae   : > { %v15248_v34 = vcombine.low %v816_v20, %v824_v23 }
 0x2b0   : > { %12619 = vmatpush1.bf16.msra.mxu0 %v15136_v28  ;;  %12947 = vmatpush1.bf16.msra.mxu1 %v15138_v29  ;;  %v15234_v28 = vcombine.low %v801_v10, %v809_v11  ;;  %v15249_v29 = vcombine.high %v816_v20, %v824_v23  ;;  %v905_v10 = vld [vmem:[%s17207_s7 + $0x14d8] sm:$0xff]  ;;  %v920_v20 = vld [vmem:[%s17207_s7 + $0x1550] sm:$0xff] }
 0x2b1   : > { %12620 = vmatprep.subr.bf16.mxu0 %v15153_v15  ;;  %12948 = vmatprep.subr.bf16.mxu1 %v15155_v30  ;;  %v15251_v15 = vcombine.high %v817_v24, %v825_v59  ;;  %v832_v30 = vld [vmem:[%s17207_s7 + $0x1290] sm:$0xff]  ;;  %v913_v23 = vld [vmem:[%s17207_s7 + $0x1518] sm:$0xff] }
 0x2b2   : > { %v15264_v44 = vcombine.low %v832_v30, %v840_v49 }
 0x2b4   : > { %12621 = vmatpush1.bf16.msra.mxu0 %v15152_v35  ;;  %12949 = vmatpush1.bf16.msra.mxu1 %v15154_v37  ;;  %v15250_v35 = vcombine.low %v817_v24, %v825_v59  ;;  %v15265_v37 = vcombine.high %v832_v30, %v840_v49  ;;  %v921_v24 = vld [vmem:[%s17207_s7 + $0x1558] sm:$0xff]  ;;  %v936_v30 = vld [vmem:[%s17207_s7 + $0x15d0] sm:$0xff] }
 0x2b5   : > { %12622 = vmatprep.subr.bf16.mxu0 %v15169_v38  ;;  %12950 = vmatprep.subr.bf16.mxu1 %v15171_v41  ;;  %v15267_v38 = vcombine.high %v833_v32, %v841_v33  ;;  %v848_v41 = vld [vmem:[%s17207_s7 + $0x1310] sm:$0xff]  ;;  %v929_v49 = vld [vmem:[%s17207_s7 + $0x1598] sm:$0xff] }
 0x2b6   : > { %v15280_v56 = vcombine.low %v848_v41, %v856_v42 }
 0x2b8   : > { %12623 = vmatpush1.bf16.msra.mxu0 %v15168_v47  ;;  %12951 = vmatpush1.bf16.msra.mxu1 %v15170_v48  ;;  %v15266_v47 = vcombine.low %v833_v32, %v841_v33  ;;  %v15281_v48 = vcombine.high %v848_v41, %v856_v42  ;;  %v937_v32 = vld [vmem:[%s17207_s7 + $0x15d8] sm:$0xff]  ;;  %v952_v41 = vld [vmem:[%s17207_s7 + $0x1650] sm:$0xff] }
 0x2b9   : > { %12633 = vmatprep.subr.bf16.mxu0 %v15185_v50  ;;  %12961 = vmatprep.subr.bf16.mxu1 %v15187_v51  ;;  %v15283_v50 = vcombine.high %v849_v43, %v857_v25  ;;  %v864_v51 = vld [vmem:[%s17207_s7 + $0x1390] sm:$0xff]  ;;  %v945_v42 = vld [vmem:[%s17207_s7 + $0x1618] sm:$0xff] }
 0x2ba   : > { %v15296_v3 = vcombine.low %v864_v51, %v872_v52 }
 0x2bb   : > { %12625 = vmatmul.mubr.bf16.vlgmr.msra.gmra.mrb[4].mxu0 %v17385_v22  ;;  %12953 = vmatmul.mubr.bf16.vlgmr.msra.gmra.mrb[4].mxu1 %v17385_v22 }
 0x2bc   : > { %12634 = vmatpush1.bf16.msra.mxu0 %v15184_v60  ;;  %12962 = vmatpush1.bf16.msra.mxu1 %v15186_v61  ;;  %v15282_v60 = vcombine.low %v849_v43, %v857_v25  ;;  %v15297_v61 = vcombine.high %v864_v51, %v872_v52  ;;  %v953_v43 = vld [vmem:[%s17207_s7 + $0x1658] sm:$0xff]  ;;  %v968_v51 = vld [vmem:[%s17207_s7 + $0x16d0] sm:$0xff] }
 0x2bd   : > { %12635 = vmatprep.subr.bf16.mxu0 %v15201_v62  ;;  %12963 = vmatprep.subr.bf16.mxu1 %v15203_v63  ;;  %v15299_v62 = vcombine.high %v865_v54, %v873_v19  ;;  %v880_v63 = vld [vmem:[%s17207_s7 + $0x1410] sm:$0xff]  ;;  %v961_v52 = vld [vmem:[%s17207_s7 + $0x1698] sm:$0xff] }
 0x2be   : > { %12665 = vmatprep.mubr.bf16.mxu0 %v17398_v31  ;;  %12993 = vmatprep.mubr.bf16.mxu1 %v17398_v31  ;;  %v15312_v11 = vcombine.low %v880_v63, %v888_v39 }
 0x2c0   : > { %12636 = vmatpush1.bf16.msra.mxu0 %v15200_v4  ;;  %12964 = vmatpush1.bf16.msra.mxu1 %v15202_v5  ;;  %v15298_v4 = vcombine.low %v865_v54, %v873_v19  ;;  %v15313_v5 = vcombine.high %v880_v63, %v888_v39  ;;  %v969_v54 = vld [vmem:[%s17207_s7 + $0x16d8] sm:$0xff]  ;;  %v984_v63 = vld [vmem:[%s17207_s7 + $0x1750] sm:$0xff] }
 0x2c1   : > { %12637 = vmatprep.subr.bf16.mxu0 %v15217_v6  ;;  %12965 = vmatprep.subr.bf16.mxu1 %v15219_v7  ;;  %v15315_v6 = vcombine.high %v881_v0, %v889_v2  ;;  %v896_v7 = vld [vmem:[%s17207_s7 + $0x1490] sm:$0xff]  ;;  %v977_v39 = vld [vmem:[%s17207_s7 + $0x1718] sm:$0xff] }
 0x2c2   : > { %v15328_v59 = vcombine.low %v896_v7, %v904_v8 }
 0x2c4   : > { %12638 = vmatpush1.bf16.msra.mxu0 %v15216_v13  ;;  %12966 = vmatpush1.bf16.msra.mxu1 %v15218_v14  ;;  %v15314_v13 = vcombine.low %v881_v0, %v889_v2  ;;  %v15329_v14 = vcombine.high %v896_v7, %v904_v8  ;;  %v985_v0 = vld [vmem:[%s17207_s7 + $0x1758] sm:$0xff]  ;;  %v1000_v7 = vld [vmem:[%s17207_s7 + $0x17d0] sm:$0xff] }
 0x2c5   : > { %12639 = vmatprep.subr.bf16.mxu0 %v15233_v17  ;;  %12967 = vmatprep.subr.bf16.mxu1 %v15235_v18  ;;  %v15331_v17 = vcombine.high %v897_v9, %v905_v10  ;;  %v912_v18 = vld [vmem:[%s17207_s7 + $0x1510] sm:$0xff]  ;;  %v993_v8 = vld [vmem:[%s17207_s7 + $0x1798] sm:$0xff] }
 0x2c6   : > { %v15344_v33 = vcombine.low %v912_v18, %v920_v20 }
 0x2c8   : > { %12640 = vmatpush1.bf16.msra.mxu0 %v15232_v26  ;;  %12968 = vmatpush1.bf16.msra.mxu1 %v15234_v28  ;;  %v15330_v26 = vcombine.low %v897_v9, %v905_v10  ;;  %v15345_v28 = vcombine.high %v912_v18, %v920_v20  ;;  %v1001_v9 = vld [vmem:[%s17207_s7 + $0x17d8] sm:$0xff]  ;;  %v1016_v18 = vld [vmem:[%s17207_s7 + $0x1850] sm:$0xff] }
 0x2c9   : > { %12641 = vmatprep.subr.bf16.mxu0 %v15249_v29  ;;  %12969 = vmatprep.subr.bf16.mxu1 %v15251_v15  ;;  %v15347_v29 = vcombine.high %v913_v23, %v921_v24  ;;  %v928_v15 = vld [vmem:[%s17207_s7 + $0x1590] sm:$0xff]  ;;  %v1009_v20 = vld [vmem:[%s17207_s7 + $0x1818] sm:$0xff] }
 0x2ca   : > { %v15360_v25 = vcombine.low %v928_v15, %v936_v30 }
 0x2cc   : > { %12642 = vmatpush1.bf16.msra.mxu0 %v15248_v34  ;;  %12970 = vmatpush1.bf16.msra.mxu1 %v15250_v35  ;;  %v15346_v34 = vcombine.low %v913_v23, %v921_v24  ;;  %v15361_v35 = vcombine.high %v928_v15, %v936_v30  ;;  %v1017_v23 = vld [vmem:[%s17207_s7 + $0x1858] sm:$0xff]  ;;  %v1032_v15 = vld [vmem:[%s17207_s7 + $0x18d0] sm:$0xff] }
 0x2cd   : > { %12643 = vmatprep.subr.bf16.mxu0 %v15265_v37  ;;  %12971 = vmatprep.subr.bf16.mxu1 %v15267_v38  ;;  %v15363_v37 = vcombine.high %v929_v49, %v937_v32  ;;  %v944_v38 = vld [vmem:[%s17207_s7 + $0x1610] sm:$0xff]  ;;  %v1025_v30 = vld [vmem:[%s17207_s7 + $0x1898] sm:$0xff] }
 0x2ce   : > { %v15376_v19 = vcombine.low %v944_v38, %v952_v41 }
 0x2d0   : > { %12644 = vmatpush1.bf16.msra.mxu0 %v15264_v44  ;;  %12972 = vmatpush1.bf16.msra.mxu1 %v15266_v47  ;;  %v15362_v44 = vcombine.low %v929_v49, %v937_v32  ;;  %v15377_v47 = vcombine.high %v944_v38, %v952_v41  ;;  %v1033_v49 = vld [vmem:[%s17207_s7 + $0x18d8] sm:$0xff]  ;;  %v1048_v38 = vld [vmem:[%s17207_s7 + $0x1950] sm:$0xff] }
 0x2d1   : > { %12645 = vmatprep.subr.bf16.mxu0 %v15281_v48  ;;  %12973 = vmatprep.subr.bf16.mxu1 %v15283_v50  ;;  %v15379_v48 = vcombine.high %v945_v42, %v953_v43  ;;  %v960_v50 = vld [vmem:[%s17207_s7 + $0x1690] sm:$0xff]  ;;  %v1041_v41 = vld [vmem:[%s17207_s7 + $0x1918] sm:$0xff] }
 0x2d2   : > { %v15392_v2 = vcombine.low %v960_v50, %v968_v51 }
 0x2d4   : > { %12646 = vmatpush1.bf16.msra.mxu0 %v15280_v56  ;;  %12974 = vmatpush1.bf16.msra.mxu1 %v15282_v60  ;;  %v15378_v56 = vcombine.low %v945_v42, %v953_v43  ;;  %v15393_v60 = vcombine.high %v960_v50, %v968_v51  ;;  %v1049_v42 = vld [vmem:[%s17207_s7 + $0x1958] sm:$0xff]  ;;  %v1064_v50 = vld [vmem:[%s17207_s7 + $0x19d0] sm:$0xff] }
 0x2d5   : > { %12647 = vmatprep.subr.bf16.mxu0 %v15297_v61  ;;  %12975 = vmatprep.subr.bf16.mxu1 %v15299_v62  ;;  %v15395_v61 = vcombine.high %v961_v52, %v969_v54  ;;  %v976_v62 = vld [vmem:[%s17207_s7 + $0x1710] sm:$0xff]  ;;  %v1057_v51 = vld [vmem:[%s17207_s7 + $0x1998] sm:$0xff] }
 0x2d6   : > { %v15408_v10 = vcombine.low %v976_v62, %v984_v63 }
 0x2d8   : > { %12648 = vmatpush1.bf16.msra.mxu0 %v15296_v3  ;;  %12976 = vmatpush1.bf16.msra.mxu1 %v15298_v4  ;;  %v15394_v3 = vcombine.low %v961_v52, %v969_v54  ;;  %v15409_v4 = vcombine.high %v976_v62, %v984_v63  ;;  %v1065_v52 = vld [vmem:[%s17207_s7 + $0x19d8] sm:$0xff]  ;;  %v2162_v54 = vlaneseq  ;;  %v1072_v62 = vld [vmem:[%s17207_s7 + $0x1a10] sm:$0xff] }
 0x2d9   : > { %12649 = vmatprep.subr.bf16.mxu0 %v15313_v5  ;;  %12977 = vmatprep.subr.bf16.mxu1 %v15315_v6  ;;  %v15411_v5 = vcombine.high %v977_v39, %v985_v0  ;;  %v992_v6 = vld [vmem:[%s17207_s7 + $0x1790] sm:$0xff] }
 0x2da   : > { %v15424_v24 = vcombine.low %v992_v6, %v1000_v7  ;;  %v1080_v63 = vld [vmem:[%s17207_s7 + $0x1a50] sm:$0xff] }
 0x2dc   : > { %12650 = vmatpush1.bf16.msra.mxu0 %v15312_v11  ;;  %12978 = vmatpush1.bf16.msra.mxu1 %v15314_v13  ;;  %v15410_v11 = vcombine.low %v977_v39, %v985_v0  ;;  %v15425_v13 = vcombine.high %v992_v6, %v1000_v7  ;;  %v1073_v39 = vld [vmem:[%s17207_s7 + $0x1a18] sm:$0xff]  ;;  %v1088_v7 = vld [vmem:[%s17207_s7 + $0x1a90] sm:$0xff] }
 0x2dd   : > { %12651 = vmatprep.subr.bf16.mxu0 %v15329_v14  ;;  %12979 = vmatprep.subr.bf16.mxu1 %v15331_v17  ;;  %v15427_v14 = vcombine.high %v993_v8, %v1001_v9  ;;  %v1008_v17 = vld [vmem:[%s17207_s7 + $0x1810] sm:$0xff]  ;;  %v1081_v0 = vld [vmem:[%s17207_s7 + $0x1a58] sm:$0xff] }
 0x2de   : > { %v15440_v32 = vcombine.low %v1008_v17, %v1016_v18  ;;  %v15507_v6 = vcombine.high %v1073_v39, %v1081_v0 }
 0x2e0   : > { %12652 = vmatpush1.bf16.msra.mxu0 %v15328_v59  ;;  %12980 = vmatpush1.bf16.msra.mxu1 %v15330_v26  ;;  %v15426_v59 = vcombine.low %v993_v8, %v1001_v9  ;;  %v15441_v26 = vcombine.high %v1008_v17, %v1016_v18  ;;  %v1096_v8 = vld [vmem:[%s17207_s7 + $0x1ad0] sm:$0xff] }
 0x2e1   : > { %12653 = vmatprep.subr.bf16.mxu0 %v15345_v28  ;;  %12981 = vmatprep.subr.bf16.mxu1 %v15347_v29  ;;  %v15443_v28 = vcombine.high %v1009_v20, %v1017_v23  ;;  %v1024_v29 = vld [vmem:[%s17207_s7 + $0x1890] sm:$0xff] }
 0x2e2   : > { %v15456_v43 = vcombine.low %v1024_v29, %v1032_v15 }
 0x2e4   : > { %12654 = vmatpush1.bf16.msra.mxu0 %v15344_v33  ;;  %12982 = vmatpush1.bf16.msra.mxu1 %v15346_v34  ;;  %v15442_v33 = vcombine.low %v1009_v20, %v1017_v23  ;;  %v15457_v34 = vcombine.high %v1024_v29, %v1032_v15  ;;  %v15506_v20 = vcombine.low %v1073_v39, %v1081_v0  ;;  %v1105_v15 = vld [vmem:[%s17207_s7 + $0x1b18] sm:$0xff] }
 0x2e5   : > { %12655 = vmatprep.subr.bf16.mxu0 %v15361_v35  ;;  %12983 = vmatprep.subr.bf16.mxu1 %v15363_v37  ;;  %v15459_v35 = vcombine.high %v1025_v30, %v1033_v49  ;;  %v1040_v37 = vld [vmem:[%s17207_s7 + $0x1910] sm:$0xff] }
 0x2e8   : > { %12656 = vmatpush1.bf16.msra.mxu0 %v15360_v25  ;;  %12984 = vmatpush1.bf16.msra.mxu1 %v15362_v44  ;;  %v15458_v25 = vcombine.low %v1025_v30, %v1033_v49  ;;  %v15473_v44 = vcombine.high %v1040_v37, %v1048_v38  ;;  %v1113_v30 = vld [vmem:[%s17207_s7 + $0x1b58] sm:$0xff] }
 0x2e9   : > { %12657 = vmatprep.subr.bf16.mxu0 %v15377_v47  ;;  %12985 = vmatprep.subr.bf16.mxu1 %v15379_v48  ;;  %v15475_v47 = vcombine.high %v1041_v41, %v1049_v42  ;;  %v1056_v48 = vld [vmem:[%s17207_s7 + $0x1990] sm:$0xff] }
 0x2ec   : > { %12658 = vmatpush1.bf16.msra.mxu0 %v15376_v19  ;;  %12986 = vmatpush1.bf16.msra.mxu1 %v15378_v56  ;;  %v15472_v19 = vcombine.low %v1040_v37, %v1048_v38  ;;  %v15474_v56 = vcombine.low %v1041_v41, %v1049_v42  ;;  %v15539_v41 = vcombine.high %v1105_v15, %v1113_v30  ;;  %v1120_v42 = vld [vmem:[%s17207_s7 + $0x1b90] sm:$0xff] }
 0x2ed   : > { %12659 = vmatprep.subr.bf16.mxu0 %v15393_v60  ;;  %12987 = vmatprep.subr.bf16.mxu1 %v15395_v61  ;;  %v15489_v60 = vcombine.high %v1056_v48, %v1064_v50  ;;  %v15491_v61 = vcombine.high %v1057_v51, %v1065_v52 }
 0x2f0   : > { %12660 = vmatpush1.bf16.msra.mxu0 %v15392_v2  ;;  %12988 = vmatpush1.bf16.msra.mxu1 %v15394_v3  ;;  %v18051_v2 = vshrl.u32 %v2162_v54, 7  ;;  %v15488_v3 = vcombine.low %v1056_v48, %v1064_v50  ;;  %v1121_v48 = vld [vmem:[%s17207_s7 + $0x1b98] sm:$0xff] }
 0x2f1   : > { %12661 = vmatprep.subr.bf16.mxu0 %v15409_v4  ;;  %12989 = vmatprep.subr.bf16.mxu1 %v15411_v5  ;;  %v15490_v4 = vcombine.low %v1057_v51, %v1065_v52  ;;  %v15505_v5 = vcombine.high %v1072_v62, %v1080_v63  ;;  %v1129_v50 = vld [vmem:[%s17207_s7 + $0x1bd8] sm:$0xff] }
 0x2f2   : > { %v2164_v9 = vsub.s32 0, %v18051_v2  ;;  %v2172_v17 = vsub.s32 2, %v18051_v2  ;;  %v2168_v18 = vsub.s32 1, %v18051_v2  ;;  %v2176_v23 = vsub.s32 3, %v18051_v2 }
 0x2f4   : > { %12662 = vmatpush1.bf16.msra.mxu0 %v15408_v10  ;;  %12990 = vmatpush1.bf16.msra.mxu1 %v15410_v11  ;;  %v1089_v10 = vld [vmem:[%s17207_s7 + $0x1a98] sm:$0xff] }
 0x2f5   : > { %12663 = vmatprep.subr.bf16.mxu0 %v15425_v13  ;;  %12991 = vmatprep.subr.bf16.mxu1 %v15427_v14  ;;  %v1097_v11 = vld [vmem:[%s17207_s7 + $0x1ad8] sm:$0xff]  ;;  %v15504_v13 = vcombine.low %v1072_v62, %v1080_v63  ;;  %v2158_v14 = vld [vmem:[%s17215_s17] sm:$0xff]  ;;  %v15538_v63 = vcombine.low %v1105_v15, %v1113_v30 }
 0x2f6   : > { %v2165_v29 = vrot.slane %v2158_v14, %v2164_v9  ;;  %v2173_v49 = vrot.slane %v2158_v14, %v2172_v17  ;;  %v1168_v30 = vld [vmem:[%s17207_s7 + $0x1d10] sm:$0xff] }
 0x2f8   : > { %12664 = vmatpush1.bf16.msra.mxu0 %v15424_v24  ;;  %12992 = vmatpush1.bf16.msra.mxu1 %v15426_v59  ;;  %v15521_v24 = vcombine.high %v1088_v7, %v1096_v8  ;;  %v15523_v59 = vcombine.high %v1089_v10, %v1097_v11 }
 0x2f9   : > { %12674 = vmatprep.subr.bf16.mxu0 %v15441_v26  ;;  %13002 = vmatprep.subr.bf16.mxu1 %v15443_v28  ;;  %v1104_v26 = vld [vmem:[%s17207_s7 + $0x1b10] sm:$0xff] }
 0x2fa   : > { %v1112_v28 = vld [vmem:[%s17207_s7 + $0x1b50] sm:$0xff] }
 0x2fb   : > { %12666 = vmatmul.mubr.bf16.vlgmr.msra.gmra.mrb[4].mxu0 %v17466_v36  ;;  %12994 = vmatmul.mubr.bf16.vlgmr.msra.gmra.mrb[4].mxu1 %v17466_v36  ;;  %v15537_v37 = vcombine.high %v1104_v26, %v1112_v28 }
 0x2fc   : > { %12675 = vmatpush1.bf16.msra.mxu0 %v15440_v32  ;;  %13003 = vmatpush1.bf16.msra.mxu1 %v15442_v33  ;;  %v2169_v32 = vrot.slane %v2158_v14, %v2168_v18  ;;  %v15520_v33 = vcombine.low %v1088_v7, %v1096_v8  ;;  %v1145_v7 = vld [vmem:[%s17207_s7 + $0x1c58] sm:$0xff] }
 0x2fd   : > { %12676 = vmatprep.subr.bf16.mxu0 %v15457_v34  ;;  %13004 = vmatprep.subr.bf16.mxu1 %v15459_v35  ;;  %v2177_v34 = vrot.slane %v2158_v14, %v2176_v23  ;;  %v15522_v35 = vcombine.low %v1089_v10, %v1097_v11  ;;  %v15554_v10 = vcombine.low %v1121_v48, %v1129_v50  ;;  %v1152_v14 = vld [vmem:[%s17207_s7 + $0x1c90] sm:$0xff] }
 0x2fe   : > { %12706 = vmatprep.mubr.bf16.mxu0 %v17479_v45  ;;  %13034 = vmatprep.mubr.bf16.mxu1 %v17479_v45 }
 0x300   : > { %12677 = vmatpush1.bf16.msra.mxu0 %v15456_v43  ;;  %13005 = vmatpush1.bf16.msra.mxu1 %v15458_v25  ;;  %v1128_v43 = vld [vmem:[%s17207_s7 + $0x1bd0] sm:$0xff] }
 0x301   : > { %12678 = vmatprep.subr.bf16.mxu0 %v15473_v44  ;;  %13006 = vmatprep.subr.bf16.mxu1 %v15475_v47  ;;  %v15553_v39 = vcombine.high %v1120_v42, %v1128_v43  ;;  %v15552_v8 = vcombine.low %v1120_v42, %v1128_v43  ;;  %v1192_v42 = vld [vmem:[%s17207_s7 + $0x1dd0] sm:$0xff]  ;;  %v1185_v43 = vld [vmem:[%s17207_s7 + $0x1d98] sm:$0xff] }
 0x304   : > { %12679 = vmatpush1.bf16.msra.mxu0 %v15472_v19  ;;  %13007 = vmatpush1.bf16.msra.mxu1 %v15474_v56  ;;  %v15536_v56 = vcombine.low %v1104_v26, %v1112_v28 }
 0x305   : > { %12680 = vmatprep.subr.bf16.mxu0 %v15489_v60  ;;  %13008 = vmatprep.subr.bf16.mxu1 %v15491_v61 }
 0x308   : > { %12681 = vmatpush1.bf16.msra.mxu0 %v15488_v3  ;;  %13009 = vmatpush1.bf16.msra.mxu1 %v15490_v4  ;;  %v15555_v3 = vcombine.high %v1121_v48, %v1129_v50  ;;  %v1136_v4 = vld [vmem:[%s17207_s7 + $0x1c10] sm:$0xff] }
 0x309   : > { %12682 = vmatprep.subr.bf16.mxu0 %v15505_v5  ;;  %13010 = vmatprep.subr.bf16.mxu1 %v15507_v6  ;;  %v1144_v5 = vld [vmem:[%s17207_s7 + $0x1c50] sm:$0xff]  ;;  %v1137_v6 = vld [vmem:[%s17207_s7 + $0x1c18] sm:$0xff] }
 0x30a   : > { %v15569_v11 = vcombine.high %v1136_v4, %v1144_v5  ;;  %v15568_v26 = vcombine.low %v1136_v4, %v1144_v5  ;;  %v15570_v28 = vcombine.low %v1137_v6, %v1145_v7 }
 0x30c   : > { %12683 = vmatpush1.bf16.msra.mxu0 %v15504_v13  ;;  %13011 = vmatpush1.bf16.msra.mxu1 %v15506_v20  ;;  %v15571_v13 = vcombine.high %v1137_v6, %v1145_v7  ;;  %v1160_v20 = vld [vmem:[%s17207_s7 + $0x1cd0] sm:$0xff] }
 0x30d   : > { %12684 = vmatprep.subr.bf16.mxu0 %v15521_v24  ;;  %13012 = vmatprep.subr.bf16.mxu1 %v15523_v59  ;;  %v1153_v24 = vld [vmem:[%s17207_s7 + $0x1c98] sm:$0xff] }
 0x30e   : > { %v12216_v38 = vpop.f32.mrb[0].mxu0  ;;  %v12544_v44 = vpop.f32.mrb[0].mxu1  ;;  %v1161_v59 = vld [vmem:[%s17207_s7 + $0x1cd8] sm:$0xff] }
 0x30f   : > { %v16595_v25 = vadd.f32 %v12216_v38, %v2165_v29  ;;  %v12218_v47 = vpop.f32.mrb[1].mxu0  ;;  %v16597_v51 = vadd.f32 %v12544_v44, %v2173_v49  ;;  %v12546_v54 = vpop.f32.mrb[1].mxu1  ;;  %v15585_v29 = vcombine.high %v1152_v14, %v1160_v20  ;;  %v15587_v15 = vcombine.high %v1153_v24, %v1161_v59  ;;  %v1176_v49 = vld [vmem:[%s17207_s7 + $0x1d50] sm:$0xff] }
 0x310   : > { %v16596_v52 = vadd.f32 %v12218_v47, %v2169_v32  ;;  %v12220_v19 = vpop.f32.mrb[2].mxu0  ;;  %12685 = vmatpush1.bf16.msra.mxu0 %v15520_v33  ;;  %v16598_v60 = vadd.f32 %v12546_v54, %v2177_v34  ;;  %v12548_v61 = vpop.f32.mrb[2].mxu1  ;;  %13013 = vmatpush1.bf16.msra.mxu1 %v15522_v35  ;;  %v1169_v32 = vld [vmem:[%s17207_s7 + $0x1d18] sm:$0xff]  ;;  %v15584_v34 = vcombine.low %v1152_v14, %v1160_v20 }
 0x311   : > { %14519 = vst [vmem:[%s18079_s30] sm:$0xff] %v16595_v25  ;;  %v12221_v62 = vpop.f32.mrb[3].mxu0  ;;  %12686 = vmatprep.subr.bf16.mxu0 %v15537_v37  ;;  %14521 = vst [vmem:[%s18079_s30 + $0x10] sm:$0xff] %v16597_v51  ;;  %v12549_v0 = vpop.f32.mrb[3].mxu1  ;;  %13014 = vmatprep.subr.bf16.mxu1 %v15539_v41  ;;  %v1177_v33 = vld [vmem:[%s17207_s7 + $0x1d58] sm:$0xff]  ;;  %v15586_v35 = vcombine.low %v1153_v24, %v1161_v59  ;;  %v15601_v37 = vcombine.high %v1168_v30, %v1176_v49  ;;  %v1184_v41 = vld [vmem:[%s17207_s7 + $0x1d90] sm:$0xff] }
 0x312   : > { %14520 = vst [vmem:[%s18079_s30 + $0x8] sm:$0xff] %v16596_v52  ;;  %14522 = vst [vmem:[%s18079_s30 + $0x18] sm:$0xff] %v16598_v60  ;;  %v15603_v38 = vcombine.high %v1169_v32, %v1177_v33  ;;  %v1193_v25 = vld [vmem:[%s17207_s7 + $0x1dd8] sm:$0xff]  ;;  %v15600_v44 = vcombine.low %v1168_v30, %v1176_v49  ;;  %v15602_v47 = vcombine.low %v1169_v32, %v1177_v33  ;;  %v1200_v51 = vld [vmem:[%s17207_s7 + $0x1e10] sm:$0xff] }
 0x313   : > { %v15617_v48 = vcombine.high %v1184_v41, %v1192_v42  ;;  %v15619_v50 = vcombine.high %v1185_v43, %v1193_v25  ;;  %v1208_v52 = vld [vmem:[%s17207_s7 + $0x1e50] sm:$0xff]  ;;  %v1201_v54 = vld [vmem:[%s17207_s7 + $0x1e18] sm:$0xff]  ;;  %v15618_v60 = vcombine.low %v1185_v43, %v1193_v25 }
 0x314   : > { %12687 = vmatpush1.bf16.msra.mxu0 %v15536_v56  ;;  %13015 = vmatpush1.bf16.msra.mxu1 %v15538_v63  ;;  %v1209_v19 = vld [vmem:[%s17207_s7 + $0x1e58] sm:$0xff]  ;;  %v15616_v56 = vcombine.low %v1184_v41, %v1192_v42  ;;  %v15633_v61 = vcombine.high %v1200_v51, %v1208_v52  ;;  %v1216_v63 = vld [vmem:[%s17207_s7 + $0x1e90] sm:$0xff]  ;;  %v15632_v4 = vcombine.low %v1200_v51, %v1208_v52 }
 0x315   : > { %12688 = vmatprep.subr.bf16.mxu0 %v15553_v39  ;;  %13016 = vmatprep.subr.bf16.mxu1 %v15555_v3  ;;  %v15635_v62 = vcombine.high %v1201_v54, %v1209_v19  ;;  %v1224_v39 = vld [vmem:[%s17207_s7 + $0x1ed0] sm:$0xff]  ;;  %v1217_v0 = vld [vmem:[%s17207_s7 + $0x1e98] sm:$0xff]  ;;  %v15634_v5 = vcombine.low %v1201_v54, %v1209_v19 }
 0x316   : > { %v1225_v3 = vld [vmem:[%s17207_s7 + $0x1ed8] sm:$0xff]  ;;  %v15649_v6 = vcombine.high %v1216_v63, %v1224_v39  ;;  %v15648_v14 = vcombine.low %v1216_v63, %v1224_v39 }
 0x317   : > { %v15651_v7 = vcombine.high %v1217_v0, %v1225_v3  ;;  %v15650_v20 = vcombine.low %v1217_v0, %v1225_v3 }
 0x318   : > { %12689 = vmatpush1.bf16.msra.mxu0 %v15552_v8  ;;  %13017 = vmatpush1.bf16.msra.mxu1 %v15554_v10  ;;  %v1232_v8 = vld [vmem:[%s17207_s7 + $0x1f10] sm:$0xff] }
 0x319   : > { %12690 = vmatprep.subr.bf16.mxu0 %v15569_v11  ;;  %13018 = vmatprep.subr.bf16.mxu1 %v15571_v13  ;;  %v1240_v10 = vld [vmem:[%s17207_s7 + $0x1f50] sm:$0xff]  ;;  %v1233_v11 = vld [vmem:[%s17207_s7 + $0x1f18] sm:$0xff] }
 0x31a   : > { %v1241_v13 = vld [vmem:[%s17207_s7 + $0x1f58] sm:$0xff]  ;;  %v15665_v24 = vcombine.high %v1232_v8, %v1240_v10  ;;  %v15664_v30 = vcombine.low %v1232_v8, %v1240_v10 }
 0x31b   : > { %v15667_v59 = vcombine.high %v1233_v11, %v1241_v13  ;;  %v15666_v49 = vcombine.low %v1233_v11, %v1241_v13 }
 0x31c   : > { %12691 = vmatpush1.bf16.msra.mxu0 %v15568_v26  ;;  %13019 = vmatpush1.bf16.msra.mxu1 %v15570_v28  ;;  %v1248_v26 = vld [vmem:[%s17207_s7 + $0x1f90] sm:$0xff] }
 0x31d   : > { %12692 = vmatprep.subr.bf16.mxu0 %v15585_v29  ;;  %13020 = vmatprep.subr.bf16.mxu1 %v15587_v15  ;;  %v1256_v28 = vld [vmem:[%s17207_s7 + $0x1fd0] sm:$0xff]  ;;  %v1249_v29 = vld [vmem:[%s17207_s7 + $0x1f98] sm:$0xff] }
 0x31e   : > { %v1257_v15 = vld [vmem:[%s17207_s7 + $0x1fd8] sm:$0xff]  ;;  %v15681_v32 = vcombine.high %v1248_v26, %v1256_v28  ;;  %v15680_v41 = vcombine.low %v1248_v26, %v1256_v28 }
 0x31f   : > { %v15683_v33 = vcombine.high %v1249_v29, %v1257_v15  ;;  %v15682_v42 = vcombine.low %v1249_v29, %v1257_v15 }
 0x320   : > { %12693 = vmatpush1.bf16.msra.mxu0 %v15584_v34  ;;  %13021 = vmatpush1.bf16.msra.mxu1 %v15586_v35  ;;  %v1264_v34 = vld [vmem:[%s17207_s7 + $0x2010] sm:$0xff] }
 0x321   : > { %12694 = vmatprep.subr.bf16.mxu0 %v15601_v37  ;;  %13022 = vmatprep.subr.bf16.mxu1 %v15603_v38  ;;  %v1272_v35 = vld [vmem:[%s17207_s7 + $0x2050] sm:$0xff]  ;;  %v1265_v37 = vld [vmem:[%s17207_s7 + $0x2018] sm:$0xff] }
 0x322   : > { %v1273_v38 = vld [vmem:[%s17207_s7 + $0x2058] sm:$0xff]  ;;  %v15697_v43 = vcombine.high %v1264_v34, %v1272_v35  ;;  %v15696_v51 = vcombine.low %v1264_v34, %v1272_v35 }
 0x323   : > { %v15699_v25 = vcombine.high %v1265_v37, %v1273_v38  ;;  %v15698_v52 = vcombine.low %v1265_v37, %v1273_v38 }
 0x324   : > { %12695 = vmatpush1.bf16.msra.mxu0 %v15600_v44  ;;  %13023 = vmatpush1.bf16.msra.mxu1 %v15602_v47  ;;  %v1280_v44 = vld [vmem:[%s17207_s7 + $0x2090] sm:$0xff] }
 0x325   : > { %12696 = vmatprep.subr.bf16.mxu0 %v15617_v48  ;;  %13024 = vmatprep.subr.bf16.mxu1 %v15619_v50  ;;  %v1288_v47 = vld [vmem:[%s17207_s7 + $0x20d0] sm:$0xff]  ;;  %v1281_v48 = vld [vmem:[%s17207_s7 + $0x2098] sm:$0xff] }
 0x326   : > { %v1289_v50 = vld [vmem:[%s17207_s7 + $0x20d8] sm:$0xff]  ;;  %v15713_v54 = vcombine.high %v1280_v44, %v1288_v47  ;;  %v15712_v63 = vcombine.low %v1280_v44, %v1288_v47 }
 0x327   : > { %v15715_v19 = vcombine.high %v1281_v48, %v1289_v50  ;;  %v15714_v39 = vcombine.low %v1281_v48, %v1289_v50 }
 0x328   : > { %12697 = vmatpush1.bf16.msra.mxu0 %v15616_v56  ;;  %13025 = vmatpush1.bf16.msra.mxu1 %v15618_v60  ;;  %v1296_v56 = vld [vmem:[%s17207_s7 + $0x2110] sm:$0xff] }
 0x329   : > { %12698 = vmatprep.subr.bf16.mxu0 %v15633_v61  ;;  %13026 = vmatprep.subr.bf16.mxu1 %v15635_v62  ;;  %v1304_v60 = vld [vmem:[%s17207_s7 + $0x2150] sm:$0xff]  ;;  %v1297_v61 = vld [vmem:[%s17207_s7 + $0x2118] sm:$0xff] }
 0x32a   : > { %v1305_v62 = vld [vmem:[%s17207_s7 + $0x2158] sm:$0xff]  ;;  %v15729_v0 = vcombine.high %v1296_v56, %v1304_v60  ;;  %v15728_v8 = vcombine.low %v1296_v56, %v1304_v60 }
 0x32b   : > { %v15731_v3 = vcombine.high %v1297_v61, %v1305_v62  ;;  %v15730_v10 = vcombine.low %v1297_v61, %v1305_v62 }
 0x32c   : > { %12699 = vmatpush1.bf16.msra.mxu0 %v15632_v4  ;;  %13027 = vmatpush1.bf16.msra.mxu1 %v15634_v5  ;;  %v1312_v4 = vld [vmem:[%s17207_s7 + $0x2190] sm:$0xff] }
 0x32d   : > { %12700 = vmatprep.subr.bf16.mxu0 %v15649_v6  ;;  %13028 = vmatprep.subr.bf16.mxu1 %v15651_v7  ;;  %v1320_v5 = vld [vmem:[%s17207_s7 + $0x21d0] sm:$0xff]  ;;  %v1313_v6 = vld [vmem:[%s17207_s7 + $0x2198] sm:$0xff] }
 0x32e   : > { %v1321_v7 = vld [vmem:[%s17207_s7 + $0x21d8] sm:$0xff]  ;;  %v15745_v11 = vcombine.high %v1312_v4, %v1320_v5  ;;  %v15744_v26 = vcombine.low %v1312_v4, %v1320_v5 }
 0x32f   : > { %v15747_v13 = vcombine.high %v1313_v6, %v1321_v7  ;;  %v15746_v28 = vcombine.low %v1313_v6, %v1321_v7 }
 0x330   : > { %12701 = vmatpush1.bf16.msra.mxu0 %v15648_v14  ;;  %13029 = vmatpush1.bf16.msra.mxu1 %v15650_v20  ;;  %v1328_v14 = vld [vmem:[%s17207_s7 + $0x2210] sm:$0xff] }
 0x331   : > { %12702 = vmatprep.subr.bf16.mxu0 %v15665_v24  ;;  %13030 = vmatprep.subr.bf16.mxu1 %v15667_v59  ;;  %v1336_v20 = vld [vmem:[%s17207_s7 + $0x2250] sm:$0xff]  ;;  %v1329_v24 = vld [vmem:[%s17207_s7 + $0x2218] sm:$0xff] }
 0x332   : > { %v1337_v59 = vld [vmem:[%s17207_s7 + $0x2258] sm:$0xff]  ;;  %v15761_v29 = vcombine.high %v1328_v14, %v1336_v20  ;;  %v15760_v34 = vcombine.low %v1328_v14, %v1336_v20 }
 0x333   : > { %v15763_v15 = vcombine.high %v1329_v24, %v1337_v59  ;;  %v15762_v35 = vcombine.low %v1329_v24, %v1337_v59 }
 0x334   : > { %12703 = vmatpush1.bf16.msra.mxu0 %v15664_v30  ;;  %13031 = vmatpush1.bf16.msra.mxu1 %v15666_v49  ;;  %v1344_v30 = vld [vmem:[%s17207_s7 + $0x2290] sm:$0xff] }
 0x335   : > { %12704 = vmatprep.subr.bf16.mxu0 %v15681_v32  ;;  %13032 = vmatprep.subr.bf16.mxu1 %v15683_v33  ;;  %v1352_v49 = vld [vmem:[%s17207_s7 + $0x22d0] sm:$0xff]  ;;  %v1345_v32 = vld [vmem:[%s17207_s7 + $0x2298] sm:$0xff] }
 0x336   : > { %v1353_v33 = vld [vmem:[%s17207_s7 + $0x22d8] sm:$0xff]  ;;  %v15777_v37 = vcombine.high %v1344_v30, %v1352_v49  ;;  %v15776_v44 = vcombine.low %v1344_v30, %v1352_v49 }
 0x337   : > { %v15779_v38 = vcombine.high %v1345_v32, %v1353_v33  ;;  %v15778_v47 = vcombine.low %v1345_v32, %v1353_v33 }
 0x338   : > { %12705 = vmatpush1.bf16.msra.mxu0 %v15680_v41  ;;  %13033 = vmatpush1.bf16.msra.mxu1 %v15682_v42  ;;  %v1360_v41 = vld [vmem:[%s17207_s7 + $0x2310] sm:$0xff] }
 0x339   : > { %12715 = vmatprep.subr.bf16.mxu0 %v15697_v43  ;;  %13043 = vmatprep.subr.bf16.mxu1 %v15699_v25  ;;  %v1368_v42 = vld [vmem:[%s17207_s7 + $0x2350] sm:$0xff]  ;;  %v1361_v43 = vld [vmem:[%s17207_s7 + $0x2318] sm:$0xff] }
 0x33a   : > { %v1369_v25 = vld [vmem:[%s17207_s7 + $0x2358] sm:$0xff]  ;;  %v15793_v48 = vcombine.high %v1360_v41, %v1368_v42  ;;  %v15792_v56 = vcombine.low %v1360_v41, %v1368_v42 }
 0x33b   : > { %12707 = vmatmul.mubr.bf16.vlgmr.msra.gmra.mrb[4].mxu0 %v17547_v55  ;;  %13035 = vmatmul.mubr.bf16.vlgmr.msra.gmra.mrb[4].mxu1 %v17547_v55  ;;  %v15795_v50 = vcombine.high %v1361_v43, %v1369_v25  ;;  %v15794_v60 = vcombine.low %v1361_v43, %v1369_v25 }
 0x33c   : > { %12716 = vmatpush1.bf16.msra.mxu0 %v15696_v51  ;;  %13044 = vmatpush1.bf16.msra.mxu1 %v15698_v52  ;;  %v1376_v51 = vld [vmem:[%s17207_s7 + $0x2390] sm:$0xff] }
 0x33d   : > { %12717 = vmatprep.subr.bf16.mxu0 %v15713_v54  ;;  %13045 = vmatprep.subr.bf16.mxu1 %v15715_v19  ;;  %v1384_v52 = vld [vmem:[%s17207_s7 + $0x23d0] sm:$0xff]  ;;  %v1377_v54 = vld [vmem:[%s17207_s7 + $0x2398] sm:$0xff] }
 0x33e   : > { %12747 = vmatprep.mubr.bf16.mxu0 %v17560_v1  ;;  %13075 = vmatprep.mubr.bf16.mxu1 %v17560_v1  ;;  %v1385_v19 = vld [vmem:[%s17207_s7 + $0x23d8] sm:$0xff]  ;;  %v15809_v61 = vcombine.high %v1376_v51, %v1384_v52  ;;  %v15808_v4 = vcombine.low %v1376_v51, %v1384_v52 }
 0x33f   : > { %v15811_v62 = vcombine.high %v1377_v54, %v1385_v19  ;;  %v15810_v5 = vcombine.low %v1377_v54, %v1385_v19 }
 0x340   : > { %12718 = vmatpush1.bf16.msra.mxu0 %v15712_v63  ;;  %13046 = vmatpush1.bf16.msra.mxu1 %v15714_v39  ;;  %v1392_v63 = vld [vmem:[%s17207_s7 + $0x2410] sm:$0xff] }
 0x341   : > { %12719 = vmatprep.subr.bf16.mxu0 %v15729_v0  ;;  %13047 = vmatprep.subr.bf16.mxu1 %v15731_v3  ;;  %v1400_v39 = vld [vmem:[%s17207_s7 + $0x2450] sm:$0xff]  ;;  %v1393_v0 = vld [vmem:[%s17207_s7 + $0x2418] sm:$0xff] }
 0x342   : > { %v1401_v3 = vld [vmem:[%s17207_s7 + $0x2458] sm:$0xff]  ;;  %v15825_v6 = vcombine.high %v1392_v63, %v1400_v39  ;;  %v15824_v14 = vcombine.low %v1392_v63, %v1400_v39 }
 0x343   : > { %v15827_v7 = vcombine.high %v1393_v0, %v1401_v3  ;;  %v15826_v20 = vcombine.low %v1393_v0, %v1401_v3 }
 0x344   : > { %12720 = vmatpush1.bf16.msra.mxu0 %v15728_v8  ;;  %13048 = vmatpush1.bf16.msra.mxu1 %v15730_v10  ;;  %v1408_v8 = vld [vmem:[%s17207_s7 + $0x2490] sm:$0xff] }
 0x345   : > { %12721 = vmatprep.subr.bf16.mxu0 %v15745_v11  ;;  %13049 = vmatprep.subr.bf16.mxu1 %v15747_v13  ;;  %v1416_v10 = vld [vmem:[%s17207_s7 + $0x24d0] sm:$0xff]  ;;  %v1409_v11 = vld [vmem:[%s17207_s7 + $0x2498] sm:$0xff] }
 0x346   : > { %v1417_v13 = vld [vmem:[%s17207_s7 + $0x24d8] sm:$0xff]  ;;  %v15841_v24 = vcombine.high %v1408_v8, %v1416_v10  ;;  %v15840_v30 = vcombine.low %v1408_v8, %v1416_v10 }
 0x347   : > { %v15843_v59 = vcombine.high %v1409_v11, %v1417_v13  ;;  %v15842_v49 = vcombine.low %v1409_v11, %v1417_v13 }
 0x348   : > { %12722 = vmatpush1.bf16.msra.mxu0 %v15744_v26  ;;  %13050 = vmatpush1.bf16.msra.mxu1 %v15746_v28  ;;  %v1424_v26 = vld [vmem:[%s17207_s7 + $0x2510] sm:$0xff] }
 0x349   : > { %12723 = vmatprep.subr.bf16.mxu0 %v15761_v29  ;;  %13051 = vmatprep.subr.bf16.mxu1 %v15763_v15  ;;  %v1432_v28 = vld [vmem:[%s17207_s7 + $0x2550] sm:$0xff]  ;;  %v1425_v29 = vld [vmem:[%s17207_s7 + $0x2518] sm:$0xff] }
 0x34a   : > { %v1433_v15 = vld [vmem:[%s17207_s7 + $0x2558] sm:$0xff]  ;;  %v15857_v32 = vcombine.high %v1424_v26, %v1432_v28  ;;  %v15856_v41 = vcombine.low %v1424_v26, %v1432_v28 }
 0x34b   : > { %v15859_v33 = vcombine.high %v1425_v29, %v1433_v15  ;;  %v15858_v42 = vcombine.low %v1425_v29, %v1433_v15 }
 0x34c   : > { %12724 = vmatpush1.bf16.msra.mxu0 %v15760_v34  ;;  %13052 = vmatpush1.bf16.msra.mxu1 %v15762_v35  ;;  %v1440_v34 = vld [vmem:[%s17207_s7 + $0x2590] sm:$0xff] }
 0x34d   : > { %12725 = vmatprep.subr.bf16.mxu0 %v15777_v37  ;;  %13053 = vmatprep.subr.bf16.mxu1 %v15779_v38  ;;  %v1448_v35 = vld [vmem:[%s17207_s7 + $0x25d0] sm:$0xff]  ;;  %v1441_v37 = vld [vmem:[%s17207_s7 + $0x2598] sm:$0xff] }
 0x34e   : > { %v1449_v38 = vld [vmem:[%s17207_s7 + $0x25d8] sm:$0xff]  ;;  %v15873_v43 = vcombine.high %v1440_v34, %v1448_v35  ;;  %v15872_v51 = vcombine.low %v1440_v34, %v1448_v35 }
 0x34f   : > { %v15875_v25 = vcombine.high %v1441_v37, %v1449_v38  ;;  %v15874_v52 = vcombine.low %v1441_v37, %v1449_v38 }
 0x350   : > { %12726 = vmatpush1.bf16.msra.mxu0 %v15776_v44  ;;  %13054 = vmatpush1.bf16.msra.mxu1 %v15778_v47  ;;  %v1456_v44 = vld [vmem:[%s17207_s7 + $0x2610] sm:$0xff] }
 0x351   : > { %12727 = vmatprep.subr.bf16.mxu0 %v15793_v48  ;;  %13055 = vmatprep.subr.bf16.mxu1 %v15795_v50  ;;  %v1464_v47 = vld [vmem:[%s17207_s7 + $0x2650] sm:$0xff]  ;;  %v1457_v48 = vld [vmem:[%s17207_s7 + $0x2618] sm:$0xff] }
 0x352   : > { %v1465_v50 = vld [vmem:[%s17207_s7 + $0x2658] sm:$0xff]  ;;  %v15889_v54 = vcombine.high %v1456_v44, %v1464_v47  ;;  %v15888_v63 = vcombine.low %v1456_v44, %v1464_v47 }
 0x353   : > { %v15891_v19 = vcombine.high %v1457_v48, %v1465_v50  ;;  %v15890_v39 = vcombine.low %v1457_v48, %v1465_v50 }
 0x354   : > { %12728 = vmatpush1.bf16.msra.mxu0 %v15792_v56  ;;  %13056 = vmatpush1.bf16.msra.mxu1 %v15794_v60  ;;  %v1472_v56 = vld [vmem:[%s17207_s7 + $0x2690] sm:$0xff] }
 0x355   : > { %12729 = vmatprep.subr.bf16.mxu0 %v15809_v61  ;;  %13057 = vmatprep.subr.bf16.mxu1 %v15811_v62  ;;  %v1480_v60 = vld [vmem:[%s17207_s7 + $0x26d0] sm:$0xff]  ;;  %v1473_v61 = vld [vmem:[%s17207_s7 + $0x2698] sm:$0xff] }
 0x356   : > { %v1481_v62 = vld [vmem:[%s17207_s7 + $0x26d8] sm:$0xff]  ;;  %v15905_v0 = vcombine.high %v1472_v56, %v1480_v60  ;;  %v15904_v8 = vcombine.low %v1472_v56, %v1480_v60 }
 0x357   : > { %v15907_v3 = vcombine.high %v1473_v61, %v1481_v62  ;;  %v15906_v10 = vcombine.low %v1473_v61, %v1481_v62 }
 0x358   : > { %12730 = vmatpush1.bf16.msra.mxu0 %v15808_v4  ;;  %13058 = vmatpush1.bf16.msra.mxu1 %v15810_v5  ;;  %v1488_v4 = vld [vmem:[%s17207_s7 + $0x2710] sm:$0xff] }
 0x359   : > { %12731 = vmatprep.subr.bf16.mxu0 %v15825_v6  ;;  %13059 = vmatprep.subr.bf16.mxu1 %v15827_v7  ;;  %v1496_v5 = vld [vmem:[%s17207_s7 + $0x2750] sm:$0xff]  ;;  %v1489_v6 = vld [vmem:[%s17207_s7 + $0x2718] sm:$0xff] }
 0x35a   : > { %v1497_v7 = vld [vmem:[%s17207_s7 + $0x2758] sm:$0xff]  ;;  %v15921_v11 = vcombine.high %v1488_v4, %v1496_v5  ;;  %v15920_v26 = vcombine.low %v1488_v4, %v1496_v5 }
 0x35b   : > { %v15923_v13 = vcombine.high %v1489_v6, %v1497_v7  ;;  %v15922_v28 = vcombine.low %v1489_v6, %v1497_v7 }
 0x35c   : > { %12732 = vmatpush1.bf16.msra.mxu0 %v15824_v14  ;;  %13060 = vmatpush1.bf16.msra.mxu1 %v15826_v20  ;;  %v1504_v14 = vld [vmem:[%s17207_s7 + $0x2790] sm:$0xff] }
 0x35d   : > { %12733 = vmatprep.subr.bf16.mxu0 %v15841_v24  ;;  %13061 = vmatprep.subr.bf16.mxu1 %v15843_v59  ;;  %v1512_v20 = vld [vmem:[%s17207_s7 + $0x27d0] sm:$0xff]  ;;  %v1505_v24 = vld [vmem:[%s17207_s7 + $0x2798] sm:$0xff] }
 0x35e   : > { %v1513_v59 = vld [vmem:[%s17207_s7 + $0x27d8] sm:$0xff]  ;;  %v15937_v29 = vcombine.high %v1504_v14, %v1512_v20  ;;  %v15936_v34 = vcombine.low %v1504_v14, %v1512_v20 }
 0x35f   : > { %v15939_v15 = vcombine.high %v1505_v24, %v1513_v59  ;;  %v15938_v35 = vcombine.low %v1505_v24, %v1513_v59 }
 0x360   : > { %12734 = vmatpush1.bf16.msra.mxu0 %v15840_v30  ;;  %13062 = vmatpush1.bf16.msra.mxu1 %v15842_v49  ;;  %v1520_v30 = vld [vmem:[%s17207_s7 + $0x2810] sm:$0xff] }
 0x361   : > { %12735 = vmatprep.subr.bf16.mxu0 %v15857_v32  ;;  %13063 = vmatprep.subr.bf16.mxu1 %v15859_v33  ;;  %v1528_v49 = vld [vmem:[%s17207_s7 + $0x2850] sm:$0xff]  ;;  %v1521_v32 = vld [vmem:[%s17207_s7 + $0x2818] sm:$0xff] }
 0x362   : > { %v1529_v33 = vld [vmem:[%s17207_s7 + $0x2858] sm:$0xff]  ;;  %v15953_v37 = vcombine.high %v1520_v30, %v1528_v49  ;;  %v15952_v44 = vcombine.low %v1520_v30, %v1528_v49 }
 0x363   : > { %v15955_v38 = vcombine.high %v1521_v32, %v1529_v33  ;;  %v15954_v47 = vcombine.low %v1521_v32, %v1529_v33 }
 0x364   : > { %12736 = vmatpush1.bf16.msra.mxu0 %v15856_v41  ;;  %13064 = vmatpush1.bf16.msra.mxu1 %v15858_v42  ;;  %v1536_v41 = vld [vmem:[%s17207_s7 + $0x2890] sm:$0xff] }
 0x365   : > { %12737 = vmatprep.subr.bf16.mxu0 %v15873_v43  ;;  %13065 = vmatprep.subr.bf16.mxu1 %v15875_v25  ;;  %v1544_v42 = vld [vmem:[%s17207_s7 + $0x28d0] sm:$0xff]  ;;  %v1537_v43 = vld [vmem:[%s17207_s7 + $0x2898] sm:$0xff] }
 0x366   : > { %v1545_v25 = vld [vmem:[%s17207_s7 + $0x28d8] sm:$0xff]  ;;  %v15969_v48 = vcombine.high %v1536_v41, %v1544_v42  ;;  %v15968_v56 = vcombine.low %v1536_v41, %v1544_v42 }
 0x367   : > { %v15971_v50 = vcombine.high %v1537_v43, %v1545_v25  ;;  %v15970_v60 = vcombine.low %v1537_v43, %v1545_v25 }
 0x368   : > { %12738 = vmatpush1.bf16.msra.mxu0 %v15872_v51  ;;  %13066 = vmatpush1.bf16.msra.mxu1 %v15874_v52  ;;  %v1552_v51 = vld [vmem:[%s17207_s7 + $0x2910] sm:$0xff] }
 0x369   : > { %12739 = vmatprep.subr.bf16.mxu0 %v15889_v54  ;;  %13067 = vmatprep.subr.bf16.mxu1 %v15891_v19  ;;  %v1560_v52 = vld [vmem:[%s17207_s7 + $0x2950] sm:$0xff]  ;;  %v1553_v54 = vld [vmem:[%s17207_s7 + $0x2918] sm:$0xff] }
 0x36a   : > { %v1561_v19 = vld [vmem:[%s17207_s7 + $0x2958] sm:$0xff]  ;;  %v15985_v61 = vcombine.high %v1552_v51, %v1560_v52  ;;  %v15984_v4 = vcombine.low %v1552_v51, %v1560_v52 }
 0x36b   : > { %v15987_v62 = vcombine.high %v1553_v54, %v1561_v19  ;;  %v15986_v5 = vcombine.low %v1553_v54, %v1561_v19 }
 0x36c   : > { %12740 = vmatpush1.bf16.msra.mxu0 %v15888_v63  ;;  %13068 = vmatpush1.bf16.msra.mxu1 %v15890_v39  ;;  %v1568_v63 = vld [vmem:[%s17207_s7 + $0x2990] sm:$0xff] }
 0x36d   : > { %12741 = vmatprep.subr.bf16.mxu0 %v15905_v0  ;;  %13069 = vmatprep.subr.bf16.mxu1 %v15907_v3  ;;  %v1576_v39 = vld [vmem:[%s17207_s7 + $0x29d0] sm:$0xff]  ;;  %v1569_v0 = vld [vmem:[%s17207_s7 + $0x2998] sm:$0xff] }
 0x36e   : > { %v1577_v3 = vld [vmem:[%s17207_s7 + $0x29d8] sm:$0xff]  ;;  %v16001_v6 = vcombine.high %v1568_v63, %v1576_v39  ;;  %v16000_v14 = vcombine.low %v1568_v63, %v1576_v39 }
 0x36f   : > { %v16003_v7 = vcombine.high %v1569_v0, %v1577_v3  ;;  %v16002_v20 = vcombine.low %v1569_v0, %v1577_v3 }
 0x370   : > { %12742 = vmatpush1.bf16.msra.mxu0 %v15904_v8  ;;  %13070 = vmatpush1.bf16.msra.mxu1 %v15906_v10  ;;  %v1584_v8 = vld [vmem:[%s17207_s7 + $0x2a10] sm:$0xff] }
 0x371   : > { %12743 = vmatprep.subr.bf16.mxu0 %v15921_v11  ;;  %13071 = vmatprep.subr.bf16.mxu1 %v15923_v13  ;;  %v1592_v10 = vld [vmem:[%s17207_s7 + $0x2a50] sm:$0xff]  ;;  %v1585_v11 = vld [vmem:[%s17207_s7 + $0x2a18] sm:$0xff] }
 0x372   : > { %v1593_v13 = vld [vmem:[%s17207_s7 + $0x2a58] sm:$0xff]  ;;  %v16017_v24 = vcombine.high %v1584_v8, %v1592_v10  ;;  %v16016_v30 = vcombine.low %v1584_v8, %v1592_v10 }
 0x373   : > { %v16019_v59 = vcombine.high %v1585_v11, %v1593_v13  ;;  %v16018_v49 = vcombine.low %v1585_v11, %v1593_v13 }
 0x374   : > { %12744 = vmatpush1.bf16.msra.mxu0 %v15920_v26  ;;  %13072 = vmatpush1.bf16.msra.mxu1 %v15922_v28  ;;  %v1600_v26 = vld [vmem:[%s17207_s7 + $0x2a90] sm:$0xff] }
 0x375   : > { %12745 = vmatprep.subr.bf16.mxu0 %v15937_v29  ;;  %13073 = vmatprep.subr.bf16.mxu1 %v15939_v15  ;;  %v1608_v28 = vld [vmem:[%s17207_s7 + $0x2ad0] sm:$0xff]  ;;  %v1601_v29 = vld [vmem:[%s17207_s7 + $0x2a98] sm:$0xff] }
 0x376   : > { %v1609_v15 = vld [vmem:[%s17207_s7 + $0x2ad8] sm:$0xff]  ;;  %v16033_v32 = vcombine.high %v1600_v26, %v1608_v28  ;;  %v16032_v41 = vcombine.low %v1600_v26, %v1608_v28 }
 0x377   : > { %v16035_v33 = vcombine.high %v1601_v29, %v1609_v15  ;;  %v16034_v42 = vcombine.low %v1601_v29, %v1609_v15 }
 0x378   : > { %12746 = vmatpush1.bf16.msra.mxu0 %v15936_v34  ;;  %13074 = vmatpush1.bf16.msra.mxu1 %v15938_v35  ;;  %v1616_v34 = vld [vmem:[%s17207_s7 + $0x2b10] sm:$0xff] }
 0x379   : > { %12756 = vmatprep.subr.bf16.mxu0 %v15953_v37  ;;  %13084 = vmatprep.subr.bf16.mxu1 %v15955_v38  ;;  %v1624_v35 = vld [vmem:[%s17207_s7 + $0x2b50] sm:$0xff]  ;;  %v1617_v37 = vld [vmem:[%s17207_s7 + $0x2b18] sm:$0xff] }
 0x37a   : > { %v1625_v38 = vld [vmem:[%s17207_s7 + $0x2b58] sm:$0xff]  ;;  %v16049_v43 = vcombine.high %v1616_v34, %v1624_v35  ;;  %v16048_v51 = vcombine.low %v1616_v34, %v1624_v35 }
 0x37b   : > { %12748 = vmatmul.mubr.bf16.vlgmr.msra.gmra.mrb[4].mxu0 %v17628_v16  ;;  %13076 = vmatmul.mubr.bf16.vlgmr.msra.gmra.mrb[4].mxu1 %v17628_v16  ;;  %v16051_v25 = vcombine.high %v1617_v37, %v1625_v38  ;;  %v16050_v52 = vcombine.low %v1617_v37, %v1625_v38 }
 0x37c   : > { %12757 = vmatpush1.bf16.msra.mxu0 %v15952_v44  ;;  %13085 = vmatpush1.bf16.msra.mxu1 %v15954_v47  ;;  %v1632_v44 = vld [vmem:[%s17207_s7 + $0x2b90] sm:$0xff] }
 0x37d   : > { %12758 = vmatprep.subr.bf16.mxu0 %v15969_v48  ;;  %13086 = vmatprep.subr.bf16.mxu1 %v15971_v50  ;;  %v1640_v47 = vld [vmem:[%s17207_s7 + $0x2bd0] sm:$0xff]  ;;  %v1633_v48 = vld [vmem:[%s17207_s7 + $0x2b98] sm:$0xff] }
 0x37e   : > { %12788 = vmatprep.mubr.bf16.mxu0 %v17641_v27  ;;  %13116 = vmatprep.mubr.bf16.mxu1 %v17641_v27  ;;  %v1641_v50 = vld [vmem:[%s17207_s7 + $0x2bd8] sm:$0xff]  ;;  %v16065_v54 = vcombine.high %v1632_v44, %v1640_v47  ;;  %v16064_v63 = vcombine.low %v1632_v44, %v1640_v47 }
 0x37f   : > { %v16067_v19 = vcombine.high %v1633_v48, %v1641_v50  ;;  %v16066_v39 = vcombine.low %v1633_v48, %v1641_v50 }
 0x380   : > { %12759 = vmatpush1.bf16.msra.mxu0 %v15968_v56  ;;  %13087 = vmatpush1.bf16.msra.mxu1 %v15970_v60  ;;  %v1648_v56 = vld [vmem:[%s17207_s7 + $0x2c10] sm:$0xff] }
 0x381   : > { %12760 = vmatprep.subr.bf16.mxu0 %v15985_v61  ;;  %13088 = vmatprep.subr.bf16.mxu1 %v15987_v62  ;;  %v1656_v60 = vld [vmem:[%s17207_s7 + $0x2c50] sm:$0xff]  ;;  %v1649_v61 = vld [vmem:[%s17207_s7 + $0x2c18] sm:$0xff] }
 0x382   : > { %v1657_v62 = vld [vmem:[%s17207_s7 + $0x2c58] sm:$0xff]  ;;  %v16081_v0 = vcombine.high %v1648_v56, %v1656_v60  ;;  %v16080_v8 = vcombine.low %v1648_v56, %v1656_v60 }
 0x383   : > { %v16083_v3 = vcombine.high %v1649_v61, %v1657_v62  ;;  %v16082_v10 = vcombine.low %v1649_v61, %v1657_v62 }
 0x384   : > { %12761 = vmatpush1.bf16.msra.mxu0 %v15984_v4  ;;  %13089 = vmatpush1.bf16.msra.mxu1 %v15986_v5  ;;  %v1664_v4 = vld [vmem:[%s17207_s7 + $0x2c90] sm:$0xff] }
 0x385   : > { %12762 = vmatprep.subr.bf16.mxu0 %v16001_v6  ;;  %13090 = vmatprep.subr.bf16.mxu1 %v16003_v7  ;;  %v1672_v5 = vld [vmem:[%s17207_s7 + $0x2cd0] sm:$0xff]  ;;  %v1665_v6 = vld [vmem:[%s17207_s7 + $0x2c98] sm:$0xff] }
 0x386   : > { %v1673_v7 = vld [vmem:[%s17207_s7 + $0x2cd8] sm:$0xff]  ;;  %v16097_v11 = vcombine.high %v1664_v4, %v1672_v5  ;;  %v16096_v26 = vcombine.low %v1664_v4, %v1672_v5 }
 0x387   : > { %v16099_v13 = vcombine.high %v1665_v6, %v1673_v7  ;;  %v16098_v28 = vcombine.low %v1665_v6, %v1673_v7 }
 0x388   : > { %12763 = vmatpush1.bf16.msra.mxu0 %v16000_v14  ;;  %13091 = vmatpush1.bf16.msra.mxu1 %v16002_v20  ;;  %v1680_v14 = vld [vmem:[%s17207_s7 + $0x2d10] sm:$0xff] }
 0x389   : > { %12764 = vmatprep.subr.bf16.mxu0 %v16017_v24  ;;  %13092 = vmatprep.subr.bf16.mxu1 %v16019_v59  ;;  %v1688_v20 = vld [vmem:[%s17207_s7 + $0x2d50] sm:$0xff]  ;;  %v1681_v24 = vld [vmem:[%s17207_s7 + $0x2d18] sm:$0xff] }
 0x38a   : > { %v1689_v59 = vld [vmem:[%s17207_s7 + $0x2d58] sm:$0xff]  ;;  %v16113_v29 = vcombine.high %v1680_v14, %v1688_v20  ;;  %v16112_v34 = vcombine.low %v1680_v14, %v1688_v20 }
 0x38b   : > { %v16115_v15 = vcombine.high %v1681_v24, %v1689_v59  ;;  %v16114_v35 = vcombine.low %v1681_v24, %v1689_v59 }
 0x38c   : > { %12765 = vmatpush1.bf16.msra.mxu0 %v16016_v30  ;;  %13093 = vmatpush1.bf16.msra.mxu1 %v16018_v49  ;;  %v1696_v30 = vld [vmem:[%s17207_s7 + $0x2d90] sm:$0xff] }
 0x38d   : > { %12766 = vmatprep.subr.bf16.mxu0 %v16033_v32  ;;  %13094 = vmatprep.subr.bf16.mxu1 %v16035_v33  ;;  %v1704_v49 = vld [vmem:[%s17207_s7 + $0x2dd0] sm:$0xff]  ;;  %v1697_v32 = vld [vmem:[%s17207_s7 + $0x2d98] sm:$0xff] }
 0x38e   : > { %v1705_v33 = vld [vmem:[%s17207_s7 + $0x2dd8] sm:$0xff]  ;;  %v16129_v37 = vcombine.high %v1696_v30, %v1704_v49  ;;  %v16128_v44 = vcombine.low %v1696_v30, %v1704_v49 }
 0x38f   : > { %v16131_v38 = vcombine.high %v1697_v32, %v1705_v33  ;;  %v16130_v47 = vcombine.low %v1697_v32, %v1705_v33 }
 0x390   : > { %12767 = vmatpush1.bf16.msra.mxu0 %v16032_v41  ;;  %13095 = vmatpush1.bf16.msra.mxu1 %v16034_v42  ;;  %v1712_v41 = vld [vmem:[%s17207_s7 + $0x2e10] sm:$0xff] }
 0x391   : > { %12768 = vmatprep.subr.bf16.mxu0 %v16049_v43  ;;  %13096 = vmatprep.subr.bf16.mxu1 %v16051_v25  ;;  %v1720_v42 = vld [vmem:[%s17207_s7 + $0x2e50] sm:$0xff]  ;;  %v1713_v43 = vld [vmem:[%s17207_s7 + $0x2e18] sm:$0xff] }
 0x392   : > { %v1721_v25 = vld [vmem:[%s17207_s7 + $0x2e58] sm:$0xff]  ;;  %v16145_v48 = vcombine.high %v1712_v41, %v1720_v42  ;;  %v16144_v56 = vcombine.low %v1712_v41, %v1720_v42 }
 0x393   : > { %v16147_v50 = vcombine.high %v1713_v43, %v1721_v25  ;;  %v16146_v60 = vcombine.low %v1713_v43, %v1721_v25 }
 0x394   : > { %12769 = vmatpush1.bf16.msra.mxu0 %v16048_v51  ;;  %13097 = vmatpush1.bf16.msra.mxu1 %v16050_v52  ;;  %v1728_v51 = vld [vmem:[%s17207_s7 + $0x2e90] sm:$0xff] }
 0x395   : > { %12770 = vmatprep.subr.bf16.mxu0 %v16065_v54  ;;  %13098 = vmatprep.subr.bf16.mxu1 %v16067_v19  ;;  %v1736_v52 = vld [vmem:[%s17207_s7 + $0x2ed0] sm:$0xff]  ;;  %v1729_v54 = vld [vmem:[%s17207_s7 + $0x2e98] sm:$0xff] }
 0x396   : > { %v1737_v19 = vld [vmem:[%s17207_s7 + $0x2ed8] sm:$0xff]  ;;  %v16161_v61 = vcombine.high %v1728_v51, %v1736_v52  ;;  %v16160_v4 = vcombine.low %v1728_v51, %v1736_v52 }
 0x397   : > { %v16163_v62 = vcombine.high %v1729_v54, %v1737_v19  ;;  %v16162_v5 = vcombine.low %v1729_v54, %v1737_v19 }
 0x398   : > { %12771 = vmatpush1.bf16.msra.mxu0 %v16064_v63  ;;  %13099 = vmatpush1.bf16.msra.mxu1 %v16066_v39  ;;  %v1744_v63 = vld [vmem:[%s17207_s7 + $0x2f10] sm:$0xff] }
 0x399   : > { %12772 = vmatprep.subr.bf16.mxu0 %v16081_v0  ;;  %13100 = vmatprep.subr.bf16.mxu1 %v16083_v3  ;;  %v1752_v39 = vld [vmem:[%s17207_s7 + $0x2f50] sm:$0xff]  ;;  %v1745_v0 = vld [vmem:[%s17207_s7 + $0x2f18] sm:$0xff] }
 0x39a   : > { %v1753_v3 = vld [vmem:[%s17207_s7 + $0x2f58] sm:$0xff]  ;;  %v16177_v6 = vcombine.high %v1744_v63, %v1752_v39  ;;  %v16176_v14 = vcombine.low %v1744_v63, %v1752_v39 }
 0x39b   : > { %v16179_v7 = vcombine.high %v1745_v0, %v1753_v3  ;;  %v16178_v20 = vcombine.low %v1745_v0, %v1753_v3 }
 0x39c   : > { %12773 = vmatpush1.bf16.msra.mxu0 %v16080_v8  ;;  %13101 = vmatpush1.bf16.msra.mxu1 %v16082_v10  ;;  %v1760_v8 = vld [vmem:[%s17207_s7 + $0x2f90] sm:$0xff] }
 0x39d   : > { %12774 = vmatprep.subr.bf16.mxu0 %v16097_v11  ;;  %13102 = vmatprep.subr.bf16.mxu1 %v16099_v13  ;;  %v1768_v10 = vld [vmem:[%s17207_s7 + $0x2fd0] sm:$0xff]  ;;  %v1761_v11 = vld [vmem:[%s17207_s7 + $0x2f98] sm:$0xff] }
 0x39e   : > { %v1769_v13 = vld [vmem:[%s17207_s7 + $0x2fd8] sm:$0xff]  ;;  %v16193_v24 = vcombine.high %v1760_v8, %v1768_v10  ;;  %v16192_v30 = vcombine.low %v1760_v8, %v1768_v10 }
 0x39f   : > { %v16195_v59 = vcombine.high %v1761_v11, %v1769_v13  ;;  %v16194_v49 = vcombine.low %v1761_v11, %v1769_v13 }
 0x3a0   : > { %12775 = vmatpush1.bf16.msra.mxu0 %v16096_v26  ;;  %13103 = vmatpush1.bf16.msra.mxu1 %v16098_v28  ;;  %v1776_v26 = vld [vmem:[%s17207_s7 + $0x3010] sm:$0xff] }
 0x3a1   : > { %12776 = vmatprep.subr.bf16.mxu0 %v16113_v29  ;;  %13104 = vmatprep.subr.bf16.mxu1 %v16115_v15  ;;  %v1784_v28 = vld [vmem:[%s17207_s7 + $0x3050] sm:$0xff]  ;;  %v1777_v29 = vld [vmem:[%s17207_s7 + $0x3018] sm:$0xff] }
 0x3a2   : > { %v1785_v15 = vld [vmem:[%s17207_s7 + $0x3058] sm:$0xff]  ;;  %v16209_v32 = vcombine.high %v1776_v26, %v1784_v28  ;;  %v16208_v41 = vcombine.low %v1776_v26, %v1784_v28 }
 0x3a3   : > { %v16211_v33 = vcombine.high %v1777_v29, %v1785_v15  ;;  %v16210_v42 = vcombine.low %v1777_v29, %v1785_v15 }
 0x3a4   : > { %12777 = vmatpush1.bf16.msra.mxu0 %v16112_v34  ;;  %13105 = vmatpush1.bf16.msra.mxu1 %v16114_v35  ;;  %v1792_v34 = vld [vmem:[%s17207_s7 + $0x3090] sm:$0xff] }
 0x3a5   : > { %12778 = vmatprep.subr.bf16.mxu0 %v16129_v37  ;;  %13106 = vmatprep.subr.bf16.mxu1 %v16131_v38  ;;  %v1800_v35 = vld [vmem:[%s17207_s7 + $0x30d0] sm:$0xff]  ;;  %v1793_v37 = vld [vmem:[%s17207_s7 + $0x3098] sm:$0xff] }
 0x3a6   : > { %v1801_v38 = vld [vmem:[%s17207_s7 + $0x30d8] sm:$0xff]  ;;  %v16225_v43 = vcombine.high %v1792_v34, %v1800_v35  ;;  %v16224_v51 = vcombine.low %v1792_v34, %v1800_v35 }
 0x3a7   : > { %v16227_v25 = vcombine.high %v1793_v37, %v1801_v38  ;;  %v16226_v52 = vcombine.low %v1793_v37, %v1801_v38 }
 0x3a8   : > { %12779 = vmatpush1.bf16.msra.mxu0 %v16128_v44  ;;  %13107 = vmatpush1.bf16.msra.mxu1 %v16130_v47  ;;  %v1808_v44 = vld [vmem:[%s17207_s7 + $0x3110] sm:$0xff] }
 0x3a9   : > { %12780 = vmatprep.subr.bf16.mxu0 %v16145_v48  ;;  %13108 = vmatprep.subr.bf16.mxu1 %v16147_v50  ;;  %v1816_v47 = vld [vmem:[%s17207_s7 + $0x3150] sm:$0xff]  ;;  %v1809_v48 = vld [vmem:[%s17207_s7 + $0x3118] sm:$0xff] }
 0x3aa   : > { %v1817_v50 = vld [vmem:[%s17207_s7 + $0x3158] sm:$0xff]  ;;  %v16241_v54 = vcombine.high %v1808_v44, %v1816_v47  ;;  %v16240_v63 = vcombine.low %v1808_v44, %v1816_v47 }
 0x3ab   : > { %v16243_v19 = vcombine.high %v1809_v48, %v1817_v50  ;;  %v16242_v39 = vcombine.low %v1809_v48, %v1817_v50 }
 0x3ac   : > { %12781 = vmatpush1.bf16.msra.mxu0 %v16144_v56  ;;  %13109 = vmatpush1.bf16.msra.mxu1 %v16146_v60  ;;  %v1824_v56 = vld [vmem:[%s17207_s7 + $0x3190] sm:$0xff] }
 0x3ad   : > { %12782 = vmatprep.subr.bf16.mxu0 %v16161_v61  ;;  %13110 = vmatprep.subr.bf16.mxu1 %v16163_v62  ;;  %v1832_v60 = vld [vmem:[%s17207_s7 + $0x31d0] sm:$0xff]  ;;  %v1825_v61 = vld [vmem:[%s17207_s7 + $0x3198] sm:$0xff] }
 0x3ae   : > { %v1833_v62 = vld [vmem:[%s17207_s7 + $0x31d8] sm:$0xff]  ;;  %v16257_v0 = vcombine.high %v1824_v56, %v1832_v60  ;;  %v16256_v8 = vcombine.low %v1824_v56, %v1832_v60 }
 0x3af   : > { %v16259_v3 = vcombine.high %v1825_v61, %v1833_v62  ;;  %v16258_v10 = vcombine.low %v1825_v61, %v1833_v62 }
 0x3b0   : > { %12783 = vmatpush1.bf16.msra.mxu0 %v16160_v4  ;;  %13111 = vmatpush1.bf16.msra.mxu1 %v16162_v5  ;;  %v1840_v4 = vld [vmem:[%s17207_s7 + $0x3210] sm:$0xff] }
 0x3b1   : > { %12784 = vmatprep.subr.bf16.mxu0 %v16177_v6  ;;  %13112 = vmatprep.subr.bf16.mxu1 %v16179_v7  ;;  %v1848_v5 = vld [vmem:[%s17207_s7 + $0x3250] sm:$0xff]  ;;  %v1841_v6 = vld [vmem:[%s17207_s7 + $0x3218] sm:$0xff] }
 0x3b2   : > { %v1849_v7 = vld [vmem:[%s17207_s7 + $0x3258] sm:$0xff]  ;;  %v16273_v11 = vcombine.high %v1840_v4, %v1848_v5  ;;  %v16272_v26 = vcombine.low %v1840_v4, %v1848_v5 }
 0x3b3   : > { %v16275_v13 = vcombine.high %v1841_v6, %v1849_v7  ;;  %v16274_v28 = vcombine.low %v1841_v6, %v1849_v7 }
 0x3b4   : > { %12785 = vmatpush1.bf16.msra.mxu0 %v16176_v14  ;;  %13113 = vmatpush1.bf16.msra.mxu1 %v16178_v20  ;;  %v1856_v14 = vld [vmem:[%s17207_s7 + $0x3290] sm:$0xff] }
 0x3b5   : > { %12786 = vmatprep.subr.bf16.mxu0 %v16193_v24  ;;  %13114 = vmatprep.subr.bf16.mxu1 %v16195_v59  ;;  %v1864_v20 = vld [vmem:[%s17207_s7 + $0x32d0] sm:$0xff]  ;;  %v1857_v24 = vld [vmem:[%s17207_s7 + $0x3298] sm:$0xff] }
 0x3b6   : > { %v1865_v59 = vld [vmem:[%s17207_s7 + $0x32d8] sm:$0xff]  ;;  %v16289_v29 = vcombine.high %v1856_v14, %v1864_v20  ;;  %v16288_v34 = vcombine.low %v1856_v14, %v1864_v20 }
 0x3b7   : > { %v16291_v15 = vcombine.high %v1857_v24, %v1865_v59  ;;  %v16290_v35 = vcombine.low %v1857_v24, %v1865_v59 }
 0x3b8   : > { %12787 = vmatpush1.bf16.msra.mxu0 %v16192_v30  ;;  %13115 = vmatpush1.bf16.msra.mxu1 %v16194_v49  ;;  %v1872_v30 = vld [vmem:[%s17207_s7 + $0x3310] sm:$0xff] }
 0x3b9   : > { %12797 = vmatprep.subr.bf16.mxu0 %v16209_v32  ;;  %13125 = vmatprep.subr.bf16.mxu1 %v16211_v33  ;;  %v1880_v49 = vld [vmem:[%s17207_s7 + $0x3350] sm:$0xff]  ;;  %v1873_v32 = vld [vmem:[%s17207_s7 + $0x3318] sm:$0xff] }
 0x3ba   : > { %v1881_v33 = vld [vmem:[%s17207_s7 + $0x3358] sm:$0xff]  ;;  %v16305_v37 = vcombine.high %v1872_v30, %v1880_v49  ;;  %v16304_v44 = vcombine.low %v1872_v30, %v1880_v49 }
 0x3bb   : > { %12789 = vmatmul.mubr.bf16.vlgmr.msra.gmra.mrb[4].mxu0 %v17709_v46  ;;  %13117 = vmatmul.mubr.bf16.vlgmr.msra.gmra.mrb[4].mxu1 %v17709_v46  ;;  %v16307_v38 = vcombine.high %v1873_v32, %v1881_v33  ;;  %v16306_v47 = vcombine.low %v1873_v32, %v1881_v33 }
 0x3bc   : > { %12798 = vmatpush1.bf16.msra.mxu0 %v16208_v41  ;;  %13126 = vmatpush1.bf16.msra.mxu1 %v16210_v42  ;;  %v1888_v41 = vld [vmem:[%s17207_s7 + $0x3390] sm:$0xff] }
 0x3bd   : > { %12799 = vmatprep.subr.bf16.mxu0 %v16225_v43  ;;  %13127 = vmatprep.subr.bf16.mxu1 %v16227_v25  ;;  %v1896_v42 = vld [vmem:[%s17207_s7 + $0x33d0] sm:$0xff]  ;;  %v1889_v43 = vld [vmem:[%s17207_s7 + $0x3398] sm:$0xff] }
 0x3be   : > { %12829 = vmatprep.mubr.bf16.mxu0 %v17722_v58  ;;  %13157 = vmatprep.mubr.bf16.mxu1 %v17722_v58  ;;  %v1897_v25 = vld [vmem:[%s17207_s7 + $0x33d8] sm:$0xff]  ;;  %v16321_v48 = vcombine.high %v1888_v41, %v1896_v42  ;;  %v16320_v56 = vcombine.low %v1888_v41, %v1896_v42 }
 0x3bf   : > { %v16323_v50 = vcombine.high %v1889_v43, %v1897_v25  ;;  %v16322_v60 = vcombine.low %v1889_v43, %v1897_v25 }
 0x3c0   : > { %12800 = vmatpush1.bf16.msra.mxu0 %v16224_v51  ;;  %13128 = vmatpush1.bf16.msra.mxu1 %v16226_v52  ;;  %v1904_v51 = vld [vmem:[%s17207_s7 + $0x3410] sm:$0xff] }
 0x3c1   : > { %12801 = vmatprep.subr.bf16.mxu0 %v16241_v54  ;;  %13129 = vmatprep.subr.bf16.mxu1 %v16243_v19  ;;  %v1912_v52 = vld [vmem:[%s17207_s7 + $0x3450] sm:$0xff]  ;;  %v1905_v54 = vld [vmem:[%s17207_s7 + $0x3418] sm:$0xff] }
 0x3c2   : > { %v1913_v19 = vld [vmem:[%s17207_s7 + $0x3458] sm:$0xff]  ;;  %v16337_v61 = vcombine.high %v1904_v51, %v1912_v52  ;;  %v16336_v4 = vcombine.low %v1904_v51, %v1912_v52 }
 0x3c3   : > { %v16339_v62 = vcombine.high %v1905_v54, %v1913_v19  ;;  %v16338_v5 = vcombine.low %v1905_v54, %v1913_v19 }
 0x3c4   : > { %12802 = vmatpush1.bf16.msra.mxu0 %v16240_v63  ;;  %13130 = vmatpush1.bf16.msra.mxu1 %v16242_v39  ;;  %v1920_v63 = vld [vmem:[%s17207_s7 + $0x3490] sm:$0xff] }
 0x3c5   : > { %12803 = vmatprep.subr.bf16.mxu0 %v16257_v0  ;;  %13131 = vmatprep.subr.bf16.mxu1 %v16259_v3  ;;  %v1928_v39 = vld [vmem:[%s17207_s7 + $0x34d0] sm:$0xff]  ;;  %v1921_v0 = vld [vmem:[%s17207_s7 + $0x3498] sm:$0xff] }
 0x3c6   : > { %v1929_v3 = vld [vmem:[%s17207_s7 + $0x34d8] sm:$0xff]  ;;  %v16353_v6 = vcombine.high %v1920_v63, %v1928_v39  ;;  %v16352_v14 = vcombine.low %v1920_v63, %v1928_v39 }
 0x3c7   : > { %v16355_v7 = vcombine.high %v1921_v0, %v1929_v3  ;;  %v16354_v20 = vcombine.low %v1921_v0, %v1929_v3 }
 0x3c8   : > { %12804 = vmatpush1.bf16.msra.mxu0 %v16256_v8  ;;  %13132 = vmatpush1.bf16.msra.mxu1 %v16258_v10  ;;  %v1936_v8 = vld [vmem:[%s17207_s7 + $0x3510] sm:$0xff] }
 0x3c9   : > { %12805 = vmatprep.subr.bf16.mxu0 %v16273_v11  ;;  %13133 = vmatprep.subr.bf16.mxu1 %v16275_v13  ;;  %v1944_v10 = vld [vmem:[%s17207_s7 + $0x3550] sm:$0xff]  ;;  %v1937_v11 = vld [vmem:[%s17207_s7 + $0x3518] sm:$0xff] }
 0x3ca   : > { %v1945_v13 = vld [vmem:[%s17207_s7 + $0x3558] sm:$0xff]  ;;  %v16369_v24 = vcombine.high %v1936_v8, %v1944_v10  ;;  %v16368_v30 = vcombine.low %v1936_v8, %v1944_v10 }
 0x3cb   : > { %v16371_v59 = vcombine.high %v1937_v11, %v1945_v13  ;;  %v16370_v49 = vcombine.low %v1937_v11, %v1945_v13 }
 0x3cc   : > { %12806 = vmatpush1.bf16.msra.mxu0 %v16272_v26  ;;  %13134 = vmatpush1.bf16.msra.mxu1 %v16274_v28  ;;  %v1952_v26 = vld [vmem:[%s17207_s7 + $0x3590] sm:$0xff] }
 0x3cd   : > { %12807 = vmatprep.subr.bf16.mxu0 %v16289_v29  ;;  %13135 = vmatprep.subr.bf16.mxu1 %v16291_v15  ;;  %v1960_v28 = vld [vmem:[%s17207_s7 + $0x35d0] sm:$0xff]  ;;  %v1953_v29 = vld [vmem:[%s17207_s7 + $0x3598] sm:$0xff] }
 0x3ce   : > { %v1961_v15 = vld [vmem:[%s17207_s7 + $0x35d8] sm:$0xff]  ;;  %v16385_v32 = vcombine.high %v1952_v26, %v1960_v28  ;;  %v16384_v41 = vcombine.low %v1952_v26, %v1960_v28 }
 0x3cf   : > { %v16387_v33 = vcombine.high %v1953_v29, %v1961_v15  ;;  %v16386_v42 = vcombine.low %v1953_v29, %v1961_v15 }
 0x3d0   : > { %12808 = vmatpush1.bf16.msra.mxu0 %v16288_v34  ;;  %13136 = vmatpush1.bf16.msra.mxu1 %v16290_v35  ;;  %v1968_v34 = vld [vmem:[%s17207_s7 + $0x3610] sm:$0xff] }
 0x3d1   : > { %12809 = vmatprep.subr.bf16.mxu0 %v16305_v37  ;;  %13137 = vmatprep.subr.bf16.mxu1 %v16307_v38  ;;  %v1976_v35 = vld [vmem:[%s17207_s7 + $0x3650] sm:$0xff]  ;;  %v1969_v37 = vld [vmem:[%s17207_s7 + $0x3618] sm:$0xff] }
 0x3d2   : > { %v1977_v38 = vld [vmem:[%s17207_s7 + $0x3658] sm:$0xff]  ;;  %v16401_v43 = vcombine.high %v1968_v34, %v1976_v35  ;;  %v16400_v51 = vcombine.low %v1968_v34, %v1976_v35 }
 0x3d3   : > { %v16403_v25 = vcombine.high %v1969_v37, %v1977_v38  ;;  %v16402_v52 = vcombine.low %v1969_v37, %v1977_v38 }
 0x3d4   : > { %12810 = vmatpush1.bf16.msra.mxu0 %v16304_v44  ;;  %13138 = vmatpush1.bf16.msra.mxu1 %v16306_v47  ;;  %v1984_v44 = vld [vmem:[%s17207_s7 + $0x3690] sm:$0xff] }
 0x3d5   : > { %12811 = vmatprep.subr.bf16.mxu0 %v16321_v48  ;;  %13139 = vmatprep.subr.bf16.mxu1 %v16323_v50  ;;  %v1992_v47 = vld [vmem:[%s17207_s7 + $0x36d0] sm:$0xff]  ;;  %v1985_v48 = vld [vmem:[%s17207_s7 + $0x3698] sm:$0xff] }
 0x3d6   : > { %v1993_v50 = vld [vmem:[%s17207_s7 + $0x36d8] sm:$0xff]  ;;  %v16417_v54 = vcombine.high %v1984_v44, %v1992_v47  ;;  %v16416_v63 = vcombine.low %v1984_v44, %v1992_v47 }
 0x3d7   : > { %v16419_v19 = vcombine.high %v1985_v48, %v1993_v50  ;;  %v16418_v39 = vcombine.low %v1985_v48, %v1993_v50 }
 0x3d8   : > { %12812 = vmatpush1.bf16.msra.mxu0 %v16320_v56  ;;  %13140 = vmatpush1.bf16.msra.mxu1 %v16322_v60  ;;  %v2000_v56 = vld [vmem:[%s17207_s7 + $0x3710] sm:$0xff] }
 0x3d9   : > { %12813 = vmatprep.subr.bf16.mxu0 %v16337_v61  ;;  %13141 = vmatprep.subr.bf16.mxu1 %v16339_v62  ;;  %v2008_v60 = vld [vmem:[%s17207_s7 + $0x3750] sm:$0xff]  ;;  %v2001_v61 = vld [vmem:[%s17207_s7 + $0x3718] sm:$0xff] }
 0x3da   : > { %v2009_v62 = vld [vmem:[%s17207_s7 + $0x3758] sm:$0xff]  ;;  %v16433_v0 = vcombine.high %v2000_v56, %v2008_v60  ;;  %v16432_v8 = vcombine.low %v2000_v56, %v2008_v60 }
 0x3db   : > { %v16435_v3 = vcombine.high %v2001_v61, %v2009_v62  ;;  %v16434_v10 = vcombine.low %v2001_v61, %v2009_v62 }
 0x3dc   : > { %12814 = vmatpush1.bf16.msra.mxu0 %v16336_v4  ;;  %13142 = vmatpush1.bf16.msra.mxu1 %v16338_v5  ;;  %v2016_v4 = vld [vmem:[%s17207_s7 + $0x3790] sm:$0xff] }
 0x3dd   : > { %12815 = vmatprep.subr.bf16.mxu0 %v16353_v6  ;;  %13143 = vmatprep.subr.bf16.mxu1 %v16355_v7  ;;  %v2024_v5 = vld [vmem:[%s17207_s7 + $0x37d0] sm:$0xff]  ;;  %v2017_v6 = vld [vmem:[%s17207_s7 + $0x3798] sm:$0xff] }
 0x3de   : > { %v2025_v7 = vld [vmem:[%s17207_s7 + $0x37d8] sm:$0xff]  ;;  %v16449_v11 = vcombine.high %v2016_v4, %v2024_v5  ;;  %v16448_v26 = vcombine.low %v2016_v4, %v2024_v5 }
 0x3df   : > { %v16451_v13 = vcombine.high %v2017_v6, %v2025_v7  ;;  %v16450_v28 = vcombine.low %v2017_v6, %v2025_v7 }
 0x3e0   : > { %12816 = vmatpush1.bf16.msra.mxu0 %v16352_v14  ;;  %13144 = vmatpush1.bf16.msra.mxu1 %v16354_v20  ;;  %v2032_v14 = vld [vmem:[%s17207_s7 + $0x3810] sm:$0xff] }
 0x3e1   : > { %12817 = vmatprep.subr.bf16.mxu0 %v16369_v24  ;;  %13145 = vmatprep.subr.bf16.mxu1 %v16371_v59  ;;  %v2040_v20 = vld [vmem:[%s17207_s7 + $0x3850] sm:$0xff]  ;;  %v2033_v24 = vld [vmem:[%s17207_s7 + $0x3818] sm:$0xff] }
 0x3e2   : > { %v2041_v59 = vld [vmem:[%s17207_s7 + $0x3858] sm:$0xff]  ;;  %v16465_v29 = vcombine.high %v2032_v14, %v2040_v20  ;;  %v16464_v34 = vcombine.low %v2032_v14, %v2040_v20 }
 0x3e3   : > { %v16467_v15 = vcombine.high %v2033_v24, %v2041_v59  ;;  %v16466_v35 = vcombine.low %v2033_v24, %v2041_v59 }
 0x3e4   : > { %12818 = vmatpush1.bf16.msra.mxu0 %v16368_v30  ;;  %13146 = vmatpush1.bf16.msra.mxu1 %v16370_v49  ;;  %v2048_v30 = vld [vmem:[%s17207_s7 + $0x3890] sm:$0xff] }
 0x3e5   : > { %12819 = vmatprep.subr.bf16.mxu0 %v16385_v32  ;;  %13147 = vmatprep.subr.bf16.mxu1 %v16387_v33  ;;  %v2056_v49 = vld [vmem:[%s17207_s7 + $0x38d0] sm:$0xff]  ;;  %v2049_v32 = vld [vmem:[%s17207_s7 + $0x3898] sm:$0xff] }
 0x3e6   : > { %v2057_v33 = vld [vmem:[%s17207_s7 + $0x38d8] sm:$0xff]  ;;  %v16481_v37 = vcombine.high %v2048_v30, %v2056_v49  ;;  %v16480_v44 = vcombine.low %v2048_v30, %v2056_v49 }
 0x3e7   : > { %v16483_v38 = vcombine.high %v2049_v32, %v2057_v33  ;;  %v16482_v47 = vcombine.low %v2049_v32, %v2057_v33 }
 0x3e8   : > { %12820 = vmatpush1.bf16.msra.mxu0 %v16384_v41  ;;  %13148 = vmatpush1.bf16.msra.mxu1 %v16386_v42  ;;  %v2064_v41 = vld [vmem:[%s17207_s7 + $0x3910] sm:$0xff] }
 0x3e9   : > { %12821 = vmatprep.subr.bf16.mxu0 %v16401_v43  ;;  %13149 = vmatprep.subr.bf16.mxu1 %v16403_v25  ;;  %v2072_v42 = vld [vmem:[%s17207_s7 + $0x3950] sm:$0xff]  ;;  %v2065_v43 = vld [vmem:[%s17207_s7 + $0x3918] sm:$0xff] }
 0x3ea   : > { %v2073_v25 = vld [vmem:[%s17207_s7 + $0x3958] sm:$0xff]  ;;  %v16497_v48 = vcombine.high %v2064_v41, %v2072_v42  ;;  %v16496_v56 = vcombine.low %v2064_v41, %v2072_v42 }
 0x3eb   : > { %v16499_v50 = vcombine.high %v2065_v43, %v2073_v25  ;;  %v16498_v60 = vcombine.low %v2065_v43, %v2073_v25 }
 0x3ec   : > { %12822 = vmatpush1.bf16.msra.mxu0 %v16400_v51  ;;  %13150 = vmatpush1.bf16.msra.mxu1 %v16402_v52  ;;  %v2080_v51 = vld [vmem:[%s17207_s7 + $0x3990] sm:$0xff] }
 0x3ed   : > { %12823 = vmatprep.subr.bf16.mxu0 %v16417_v54  ;;  %13151 = vmatprep.subr.bf16.mxu1 %v16419_v19  ;;  %v2088_v52 = vld [vmem:[%s17207_s7 + $0x39d0] sm:$0xff]  ;;  %v2081_v54 = vld [vmem:[%s17207_s7 + $0x3998] sm:$0xff] }
 0x3ee   : > { %v2089_v19 = vld [vmem:[%s17207_s7 + $0x39d8] sm:$0xff]  ;;  %v16513_v61 = vcombine.high %v2080_v51, %v2088_v52  ;;  %v16512_v4 = vcombine.low %v2080_v51, %v2088_v52 }
 0x3ef   : > { %v16515_v62 = vcombine.high %v2081_v54, %v2089_v19  ;;  %v16514_v5 = vcombine.low %v2081_v54, %v2089_v19 }
 0x3f0   : > { %12824 = vmatpush1.bf16.msra.mxu0 %v16416_v63  ;;  %13152 = vmatpush1.bf16.msra.mxu1 %v16418_v39  ;;  %v2096_v63 = vld [vmem:[%s17207_s7 + $0x3a10] sm:$0xff] }
 0x3f1   : > { %12825 = vmatprep.subr.bf16.mxu0 %v16433_v0  ;;  %13153 = vmatprep.subr.bf16.mxu1 %v16435_v3  ;;  %v2104_v39 = vld [vmem:[%s17207_s7 + $0x3a50] sm:$0xff]  ;;  %v2097_v0 = vld [vmem:[%s17207_s7 + $0x3a18] sm:$0xff] }
 0x3f2   : > { %v2105_v3 = vld [vmem:[%s17207_s7 + $0x3a58] sm:$0xff]  ;;  %v16529_v6 = vcombine.high %v2096_v63, %v2104_v39  ;;  %v16528_v14 = vcombine.low %v2096_v63, %v2104_v39 }
 0x3f3   : > { %v16531_v7 = vcombine.high %v2097_v0, %v2105_v3  ;;  %v16530_v20 = vcombine.low %v2097_v0, %v2105_v3 }
 0x3f4   : > { %12826 = vmatpush1.bf16.msra.mxu0 %v16432_v8  ;;  %13154 = vmatpush1.bf16.msra.mxu1 %v16434_v10  ;;  %v2112_v8 = vld [vmem:[%s17207_s7 + $0x3a90] sm:$0xff] }
 0x3f5   : > { %12827 = vmatprep.subr.bf16.mxu0 %v16449_v11  ;;  %13155 = vmatprep.subr.bf16.mxu1 %v16451_v13  ;;  %v2120_v10 = vld [vmem:[%s17207_s7 + $0x3ad0] sm:$0xff]  ;;  %v2113_v11 = vld [vmem:[%s17207_s7 + $0x3a98] sm:$0xff] }
 0x3f6   : > { %v2121_v13 = vld [vmem:[%s17207_s7 + $0x3ad8] sm:$0xff]  ;;  %v16545_v24 = vcombine.high %v2112_v8, %v2120_v10  ;;  %v16544_v30 = vcombine.low %v2112_v8, %v2120_v10  ;;  %v283_v8 = vld [vmem:[%s17207_s7 + $0x168] sm:$0xff] }
 0x3f7   : > { %v16547_v59 = vcombine.high %v2113_v11, %v2121_v13  ;;  %v16546_v49 = vcombine.low %v2113_v11, %v2121_v13 }
 0x3f8   : > { %12828 = vmatpush1.bf16.msra.mxu0 %v16448_v26  ;;  %13156 = vmatpush1.bf16.msra.mxu1 %v16450_v28  ;;  %v2128_v26 = vld [vmem:[%s17207_s7 + $0x3b10] sm:$0xff] }
 0x3f9   : > { %12838 = vmatprep.subr.bf16.mxu0 %v16465_v29  ;;  %13166 = vmatprep.subr.bf16.mxu1 %v16467_v15  ;;  %v2136_v28 = vld [vmem:[%s17207_s7 + $0x3b50] sm:$0xff]  ;;  %v2129_v29 = vld [vmem:[%s17207_s7 + $0x3b18] sm:$0xff] }
 0x3fa   : > { %v2137_v15 = vld [vmem:[%s17207_s7 + $0x3b58] sm:$0xff]  ;;  %v16561_v32 = vcombine.high %v2128_v26, %v2136_v28  ;;  %v16560_v41 = vcombine.low %v2128_v26, %v2136_v28  ;;  %v299_v26 = vld [vmem:[%s17207_s7 + $0x1e8] sm:$0xff] }
 0x3fb   : > { %12830 = vmatmul.mubr.bf16.vlgmr.msra.gmra.mrb[4].mxu0 %v17790_v53  ;;  %13158 = vmatmul.mubr.bf16.vlgmr.msra.gmra.mrb[4].mxu1 %v17790_v53  ;;  %v16563_v33 = vcombine.high %v2129_v29, %v2137_v15  ;;  %v16562_v42 = vcombine.low %v2129_v29, %v2137_v15 }
 0x3fc   : > { %12839 = vmatpush1.bf16.msra.mxu0 %v16464_v34  ;;  %13167 = vmatpush1.bf16.msra.mxu1 %v16466_v35  ;;  %v2144_v34 = vld [vmem:[%s17207_s7 + $0x3b90] sm:$0xff] }
 0x3fd   : > { %12840 = vmatprep.subr.bf16.mxu0 %v16481_v37  ;;  %13168 = vmatprep.subr.bf16.mxu1 %v16483_v38  ;;  %v2152_v35 = vld [vmem:[%s17207_s7 + $0x3bd0] sm:$0xff]  ;;  %v2145_v37 = vld [vmem:[%s17207_s7 + $0x3b98] sm:$0xff] }
 0x3fe   : > { %12870 = vmatprep.mubr.bf16.mxu0 %v17048_v40  ;;  %13198 = vmatprep.mubr.bf16.mxu1 %v17048_v40  ;;  %v2153_v38 = vld [vmem:[%s17207_s7 + $0x3bd8] sm:$0xff]  ;;  %v16577_v43 = vcombine.high %v2144_v34, %v2152_v35  ;;  %v16576_v51 = vcombine.low %v2144_v34, %v2152_v35  ;;  %v315_v34 = vld [vmem:[%s17207_s7 + $0x268] sm:$0xff] }
 0x3ff   : > { %v16579_v25 = vcombine.high %v2145_v37, %v2153_v38  ;;  %v16578_v52 = vcombine.low %v2145_v37, %v2153_v38 }
 0x400   : > { %12841 = vmatpush1.bf16.msra.mxu0 %v16480_v44  ;;  %13169 = vmatpush1.bf16.msra.mxu1 %v16482_v47  ;;  %v242_v44 = vld [vmem:[%s17207_s7 + $0x20] sm:$0xff] }
 0x401   : > { %12842 = vmatprep.subr.bf16.mxu0 %v16497_v48  ;;  %13170 = vmatprep.subr.bf16.mxu1 %v16499_v50  ;;  %v250_v47 = vld [vmem:[%s17207_s7 + $0x60] sm:$0xff]  ;;  %v243_v48 = vld [vmem:[%s17207_s7 + $0x28] sm:$0xff] }
 0x402   : > { %v251_v50 = vld [vmem:[%s17207_s7 + $0x68] sm:$0xff]  ;;  %v14677_v54 = vcombine.high %v242_v44, %v250_v47  ;;  %v14676_v63 = vcombine.low %v242_v44, %v250_v47 }
 0x403   : > { %v14679_v19 = vcombine.high %v243_v48, %v251_v50  ;;  %v14678_v39 = vcombine.low %v243_v48, %v251_v50  ;;  %v331_v44 = vld [vmem:[%s17207_s7 + $0x2e8] sm:$0xff] }
 0x404   : > { %12843 = vmatpush1.bf16.msra.mxu0 %v16496_v56  ;;  %13171 = vmatpush1.bf16.msra.mxu1 %v16498_v60  ;;  %v258_v56 = vld [vmem:[%s17207_s7 + $0xa0] sm:$0xff] }
 0x405   : > { %12844 = vmatprep.subr.bf16.mxu0 %v16513_v61  ;;  %13172 = vmatprep.subr.bf16.mxu1 %v16515_v62  ;;  %v266_v60 = vld [vmem:[%s17207_s7 + $0xe0] sm:$0xff]  ;;  %v259_v61 = vld [vmem:[%s17207_s7 + $0xa8] sm:$0xff] }
 0x406   : > { %v267_v62 = vld [vmem:[%s17207_s7 + $0xe8] sm:$0xff]  ;;  %v14693_v0 = vcombine.high %v258_v56, %v266_v60  ;;  %v14692_v10 = vcombine.low %v258_v56, %v266_v60 }
 0x407   : > { %v14695_v3 = vcombine.high %v259_v61, %v267_v62  ;;  %v14694_v11 = vcombine.low %v259_v61, %v267_v62  ;;  %v347_v56 = vld [vmem:[%s17207_s7 + $0x368] sm:$0xff] }
 0x408   : > { %12845 = vmatpush1.bf16.msra.mxu0 %v16512_v4  ;;  %13173 = vmatpush1.bf16.msra.mxu1 %v16514_v5  ;;  %v274_v4 = vld [vmem:[%s17207_s7 + $0x120] sm:$0xff] }
 0x409   : > { %12846 = vmatprep.subr.bf16.mxu0 %v16529_v6  ;;  %13174 = vmatprep.subr.bf16.mxu1 %v16531_v7  ;;  %v282_v5 = vld [vmem:[%s17207_s7 + $0x160] sm:$0xff]  ;;  %v16907_v6 = vld [vmem:[%s19477_s0 + $0x38] ss:$0 sps:$4 sm:$0xff]   ;;  %v275_v7 = vld [vmem:[%s17207_s7 + $0x128] sm:$0xff] }
 0x40a   : > { %v14709_v13 = vcombine.high %v274_v4, %v282_v5  ;;  %v14708_v28 = vcombine.low %v274_v4, %v282_v5  ;;  %v14710_v29 = vcombine.low %v275_v7, %v283_v8  ;;  %v363_v4 = vld [vmem:[%s17207_s7 + $0x3e8] sm:$0xff] }
 0x40c   : > { %12847 = vmatpush1.bf16.msra.mxu0 %v16528_v14  ;;  %13175 = vmatpush1.bf16.msra.mxu1 %v16530_v20  ;;  %v14711_v14 = vcombine.high %v275_v7, %v283_v8  ;;  %v290_v20 = vld [vmem:[%s17207_s7 + $0x1a0] sm:$0xff] }
 0x40d   : > { %12848 = vmatprep.subr.bf16.mxu0 %v16545_v24  ;;  %13176 = vmatprep.subr.bf16.mxu1 %v16547_v59  ;;  %v298_v24 = vld [vmem:[%s17207_s7 + $0x1e0] sm:$0xff]  ;;  %v291_v59 = vld [vmem:[%s17207_s7 + $0x1a8] sm:$0xff] }
 0x40e   : > { %v14725_v15 = vcombine.high %v290_v20, %v298_v24  ;;  %v14724_v35 = vcombine.low %v290_v20, %v298_v24  ;;  %v14726_v37 = vcombine.low %v291_v59, %v299_v26 }
 0x410   : > { %12849 = vmatpush1.bf16.msra.mxu0 %v16544_v30  ;;  %13177 = vmatpush1.bf16.msra.mxu1 %v16546_v49  ;;  %v14727_v30 = vcombine.high %v291_v59, %v299_v26  ;;  %v306_v49 = vld [vmem:[%s17207_s7 + $0x220] sm:$0xff] }
 0x411   : > { %12850 = vmatprep.subr.bf16.mxu0 %v16561_v32  ;;  %13178 = vmatprep.subr.bf16.mxu1 %v16563_v33  ;;  %v314_v32 = vld [vmem:[%s17207_s7 + $0x260] sm:$0xff]  ;;  %v307_v33 = vld [vmem:[%s17207_s7 + $0x228] sm:$0xff] }
 0x412   : > { %v14741_v38 = vcombine.high %v306_v49, %v314_v32  ;;  %v14740_v47 = vcombine.low %v306_v49, %v314_v32  ;;  %v14742_v48 = vcombine.low %v307_v33, %v315_v34 }
 0x414   : > { %12851 = vmatpush1.bf16.msra.mxu0 %v16560_v41  ;;  %13179 = vmatpush1.bf16.msra.mxu1 %v16562_v42  ;;  %v14743_v41 = vcombine.high %v307_v33, %v315_v34  ;;  %v322_v42 = vld [vmem:[%s17207_s7 + $0x2a0] sm:$0xff] }
 0x415   : > { %12852 = vmatprep.subr.bf16.mxu0 %v16577_v43  ;;  %13180 = vmatprep.subr.bf16.mxu1 %v16579_v25  ;;  %v330_v43 = vld [vmem:[%s17207_s7 + $0x2e0] sm:$0xff]  ;;  %v323_v25 = vld [vmem:[%s17207_s7 + $0x2a8] sm:$0xff] }
 0x416   : > { %v14757_v50 = vcombine.high %v322_v42, %v330_v43  ;;  %v14756_v60 = vcombine.low %v322_v42, %v330_v43  ;;  %v14758_v61 = vcombine.low %v323_v25, %v331_v44 }
 0x418   : > { %12853 = vmatpush1.bf16.msra.mxu0 %v16576_v51  ;;  %13181 = vmatpush1.bf16.msra.mxu1 %v16578_v52  ;;  %v14759_v51 = vcombine.high %v323_v25, %v331_v44  ;;  %v338_v52 = vld [vmem:[%s17207_s7 + $0x320] sm:$0xff] }
 0x419   : > { %13207 = vmatprep.subr.bf16.mxu0 %v14677_v54  ;;  %13535 = vmatprep.subr.bf16.mxu1 %v14679_v19  ;;  %v346_v54 = vld [vmem:[%s17207_s7 + $0x360] sm:$0xff]  ;;  %v339_v19 = vld [vmem:[%s17207_s7 + $0x328] sm:$0xff] }
 0x41a   : > { %v14773_v62 = vcombine.high %v338_v52, %v346_v54  ;;  %v14772_v5 = vcombine.low %v338_v52, %v346_v54 }
 0x41b   : > { %12871 = vmatmul.mubr.bf16.vlgmr.msra.gmra.mrb[4].mxu0 %v16907_v6  ;;  %13199 = vmatmul.mubr.bf16.vlgmr.msra.gmra.mrb[4].mxu1 %v16907_v6  ;;  %v14774_v6 = vcombine.low %v339_v19, %v347_v56 }
 0x41c   : > { %13208 = vmatpush1.bf16.msra.mxu0 %v14676_v63  ;;  %13536 = vmatpush1.bf16.msra.mxu1 %v14678_v39  ;;  %v14775_v63 = vcombine.high %v339_v19, %v347_v56  ;;  %v354_v39 = vld [vmem:[%s17207_s7 + $0x3a0] sm:$0xff] }
 0x41d   : > { %13209 = vmatprep.subr.bf16.mxu0 %v14693_v0  ;;  %13537 = vmatprep.subr.bf16.mxu1 %v14695_v3  ;;  %v362_v0 = vld [vmem:[%s17207_s7 + $0x3e0] sm:$0xff]  ;;  %v355_v3 = vld [vmem:[%s17207_s7 + $0x3a8] sm:$0xff] }
 0x41e   : > { %13239 = vmatprep.mubr.bf16.mxu0 %v17258_v57  ;;  %13567 = vmatprep.mubr.bf16.mxu1 %v17258_v57  ;;  %v14789_v7 = vcombine.high %v354_v39, %v362_v0  ;;  %v14791_v8 = vcombine.high %v355_v3, %v363_v4  ;;  %v14788_v20 = vcombine.low %v354_v39, %v362_v0 }
 0x41f   : > { %v14790_v24 = vcombine.low %v355_v3, %v363_v4 }
 0x420   : > { %13210 = vmatpush1.bf16.msra.mxu0 %v14692_v10  ;;  %13538 = vmatpush1.bf16.msra.mxu1 %v14694_v11  ;;  %v370_v10 = vld [vmem:[%s17207_s7 + $0x420] sm:$0xff] }
 0x421   : > { %13211 = vmatprep.subr.bf16.mxu0 %v14709_v13  ;;  %13539 = vmatprep.subr.bf16.mxu1 %v14711_v14  ;;  %v378_v11 = vld [vmem:[%s17207_s7 + $0x460] sm:$0xff]  ;;  %v371_v13 = vld [vmem:[%s17207_s7 + $0x428] sm:$0xff] }
 0x422   : > { %v379_v14 = vld [vmem:[%s17207_s7 + $0x468] sm:$0xff]  ;;  %v14805_v59 = vcombine.high %v370_v10, %v378_v11  ;;  %v14804_v49 = vcombine.low %v370_v10, %v378_v11 }
 0x423   : > { %v14807_v26 = vcombine.high %v371_v13, %v379_v14  ;;  %v14806_v32 = vcombine.low %v371_v13, %v379_v14 }
 0x424   : > { %13212 = vmatpush1.bf16.msra.mxu0 %v14708_v28  ;;  %13540 = vmatpush1.bf16.msra.mxu1 %v14710_v29  ;;  %v386_v28 = vld [vmem:[%s17207_s7 + $0x4a0] sm:$0xff] }
 0x425   : > { %13213 = vmatprep.subr.bf16.mxu0 %v14725_v15  ;;  %13541 = vmatprep.subr.bf16.mxu1 %v14727_v30  ;;  %v394_v29 = vld [vmem:[%s17207_s7 + $0x4e0] sm:$0xff]  ;;  %v387_v15 = vld [vmem:[%s17207_s7 + $0x4a8] sm:$0xff] }
 0x426   : > { %v395_v30 = vld [vmem:[%s17207_s7 + $0x4e8] sm:$0xff]  ;;  %v14821_v33 = vcombine.high %v386_v28, %v394_v29  ;;  %v14820_v42 = vcombine.low %v386_v28, %v394_v29 }
 0x427   : > { %v14823_v34 = vcombine.high %v387_v15, %v395_v30  ;;  %v14822_v43 = vcombine.low %v387_v15, %v395_v30 }
 0x428   : > { %13214 = vmatpush1.bf16.msra.mxu0 %v14724_v35  ;;  %13542 = vmatpush1.bf16.msra.mxu1 %v14726_v37  ;;  %v402_v35 = vld [vmem:[%s17207_s7 + $0x520] sm:$0xff] }
 0x429   : > { %13215 = vmatprep.subr.bf16.mxu0 %v14741_v38  ;;  %13543 = vmatprep.subr.bf16.mxu1 %v14743_v41  ;;  %v410_v37 = vld [vmem:[%s17207_s7 + $0x560] sm:$0xff]  ;;  %v403_v38 = vld [vmem:[%s17207_s7 + $0x528] sm:$0xff] }
 0x42a   : > { %v411_v41 = vld [vmem:[%s17207_s7 + $0x568] sm:$0xff]  ;;  %v14837_v25 = vcombine.high %v402_v35, %v410_v37  ;;  %v14836_v52 = vcombine.low %v402_v35, %v410_v37 }
 0x42b   : > { %v14839_v44 = vcombine.high %v403_v38, %v411_v41  ;;  %v14838_v54 = vcombine.low %v403_v38, %v411_v41 }
 0x42c   : > { %13216 = vmatpush1.bf16.msra.mxu0 %v14740_v47  ;;  %13544 = vmatpush1.bf16.msra.mxu1 %v14742_v48  ;;  %v418_v47 = vld [vmem:[%s17207_s7 + $0x5a0] sm:$0xff] }
 0x42d   : > { %13217 = vmatprep.subr.bf16.mxu0 %v14757_v50  ;;  %13545 = vmatprep.subr.bf16.mxu1 %v14759_v51  ;;  %v426_v48 = vld [vmem:[%s17207_s7 + $0x5e0] sm:$0xff]  ;;  %v419_v50 = vld [vmem:[%s17207_s7 + $0x5a8] sm:$0xff] }
 0x42e   : > { %v427_v51 = vld [vmem:[%s17207_s7 + $0x5e8] sm:$0xff]  ;;  %v14853_v19 = vcombine.high %v418_v47, %v426_v48  ;;  %v14852_v39 = vcombine.low %v418_v47, %v426_v48 }
 0x42f   : > { %v14855_v56 = vcombine.high %v419_v50, %v427_v51  ;;  %v14854_v0 = vcombine.low %v419_v50, %v427_v51 }
 0x430   : > { %13218 = vmatpush1.bf16.msra.mxu0 %v14756_v60  ;;  %13546 = vmatpush1.bf16.msra.mxu1 %v14758_v61  ;;  %v434_v60 = vld [vmem:[%s17207_s7 + $0x620] sm:$0xff] }
 0x431   : > { %13219 = vmatprep.subr.bf16.mxu0 %v14773_v62  ;;  %13547 = vmatprep.subr.bf16.mxu1 %v14775_v63  ;;  %v442_v61 = vld [vmem:[%s17207_s7 + $0x660] sm:$0xff]  ;;  %v435_v62 = vld [vmem:[%s17207_s7 + $0x628] sm:$0xff] }
 0x432   : > { %v443_v63 = vld [vmem:[%s17207_s7 + $0x668] sm:$0xff]  ;;  %v14869_v3 = vcombine.high %v434_v60, %v442_v61  ;;  %v14868_v10 = vcombine.low %v434_v60, %v442_v61 }
 0x433   : > { %v14871_v4 = vcombine.high %v435_v62, %v443_v63  ;;  %v14870_v11 = vcombine.low %v435_v62, %v443_v63 }
 0x434   : > { %13220 = vmatpush1.bf16.msra.mxu0 %v14772_v5  ;;  %13548 = vmatpush1.bf16.msra.mxu1 %v14774_v6  ;;  %v450_v5 = vld [vmem:[%s17207_s7 + $0x6a0] sm:$0xff] }
 0x435   : > { %13221 = vmatprep.subr.bf16.mxu0 %v14789_v7  ;;  %13549 = vmatprep.subr.bf16.mxu1 %v14791_v8  ;;  %v458_v6 = vld [vmem:[%s17207_s7 + $0x6e0] sm:$0xff]  ;;  %v451_v7 = vld [vmem:[%s17207_s7 + $0x6a8] sm:$0xff] }
 0x436   : > { %v459_v8 = vld [vmem:[%s17207_s7 + $0x6e8] sm:$0xff]  ;;  %v14885_v13 = vcombine.high %v450_v5, %v458_v6  ;;  %v14884_v28 = vcombine.low %v450_v5, %v458_v6 }
 0x437   : > { %v14887_v14 = vcombine.high %v451_v7, %v459_v8  ;;  %v14886_v29 = vcombine.low %v451_v7, %v459_v8 }
 0x438   : > { %13222 = vmatpush1.bf16.msra.mxu0 %v14788_v20  ;;  %13550 = vmatpush1.bf16.msra.mxu1 %v14790_v24  ;;  %v466_v20 = vld [vmem:[%s17207_s7 + $0x720] sm:$0xff] }
 0x439   : > { %13223 = vmatprep.subr.bf16.mxu0 %v14805_v59  ;;  %13551 = vmatprep.subr.bf16.mxu1 %v14807_v26  ;;  %v474_v24 = vld [vmem:[%s17207_s7 + $0x760] sm:$0xff]  ;;  %v467_v59 = vld [vmem:[%s17207_s7 + $0x728] sm:$0xff] }
 0x43a   : > { %v475_v26 = vld [vmem:[%s17207_s7 + $0x768] sm:$0xff]  ;;  %v14901_v15 = vcombine.high %v466_v20, %v474_v24  ;;  %v14900_v35 = vcombine.low %v466_v20, %v474_v24 }
 0x43b   : > { %v14903_v30 = vcombine.high %v467_v59, %v475_v26  ;;  %v14902_v37 = vcombine.low %v467_v59, %v475_v26 }
 0x43c   : > { %13224 = vmatpush1.bf16.msra.mxu0 %v14804_v49  ;;  %13552 = vmatpush1.bf16.msra.mxu1 %v14806_v32  ;;  %v482_v49 = vld [vmem:[%s17207_s7 + $0x7a0] sm:$0xff] }
 0x43d   : > { %13225 = vmatprep.subr.bf16.mxu0 %v14821_v33  ;;  %13553 = vmatprep.subr.bf16.mxu1 %v14823_v34  ;;  %v490_v32 = vld [vmem:[%s17207_s7 + $0x7e0] sm:$0xff]  ;;  %v483_v33 = vld [vmem:[%s17207_s7 + $0x7a8] sm:$0xff] }
 0x43e   : > { %v491_v34 = vld [vmem:[%s17207_s7 + $0x7e8] sm:$0xff]  ;;  %v14917_v38 = vcombine.high %v482_v49, %v490_v32  ;;  %v14916_v47 = vcombine.low %v482_v49, %v490_v32 }
 0x43f   : > { %v14919_v41 = vcombine.high %v483_v33, %v491_v34  ;;  %v14918_v48 = vcombine.low %v483_v33, %v491_v34 }
 0x440   : > { %13226 = vmatpush1.bf16.msra.mxu0 %v14820_v42  ;;  %13554 = vmatpush1.bf16.msra.mxu1 %v14822_v43  ;;  %v498_v42 = vld [vmem:[%s17207_s7 + $0x820] sm:$0xff] }
 0x441   : > { %13227 = vmatprep.subr.bf16.mxu0 %v14837_v25  ;;  %13555 = vmatprep.subr.bf16.mxu1 %v14839_v44  ;;  %v506_v43 = vld [vmem:[%s17207_s7 + $0x860] sm:$0xff]  ;;  %v499_v25 = vld [vmem:[%s17207_s7 + $0x828] sm:$0xff] }
 0x442   : > { %v507_v44 = vld [vmem:[%s17207_s7 + $0x868] sm:$0xff]  ;;  %v14933_v50 = vcombine.high %v498_v42, %v506_v43  ;;  %v14932_v60 = vcombine.low %v498_v42, %v506_v43 }
 0x443   : > { %v14935_v51 = vcombine.high %v499_v25, %v507_v44  ;;  %v14934_v61 = vcombine.low %v499_v25, %v507_v44 }
 0x444   : > { %13228 = vmatpush1.bf16.msra.mxu0 %v14836_v52  ;;  %13556 = vmatpush1.bf16.msra.mxu1 %v14838_v54  ;;  %v514_v52 = vld [vmem:[%s17207_s7 + $0x8a0] sm:$0xff] }
 0x445   : > { %13229 = vmatprep.subr.bf16.mxu0 %v14853_v19  ;;  %13557 = vmatprep.subr.bf16.mxu1 %v14855_v56  ;;  %v522_v54 = vld [vmem:[%s17207_s7 + $0x8e0] sm:$0xff]  ;;  %v515_v19 = vld [vmem:[%s17207_s7 + $0x8a8] sm:$0xff] }
 0x446   : > { %v523_v56 = vld [vmem:[%s17207_s7 + $0x8e8] sm:$0xff]  ;;  %v14949_v62 = vcombine.high %v514_v52, %v522_v54  ;;  %v14948_v5 = vcombine.low %v514_v52, %v522_v54 }
 0x447   : > { %v14951_v63 = vcombine.high %v515_v19, %v523_v56  ;;  %v14950_v6 = vcombine.low %v515_v19, %v523_v56 }
 0x448   : > { %13230 = vmatpush1.bf16.msra.mxu0 %v14852_v39  ;;  %13558 = vmatpush1.bf16.msra.mxu1 %v14854_v0  ;;  %v530_v39 = vld [vmem:[%s17207_s7 + $0x920] sm:$0xff] }
 0x449   : > { %13231 = vmatprep.subr.bf16.mxu0 %v14869_v3  ;;  %13559 = vmatprep.subr.bf16.mxu1 %v14871_v4  ;;  %v538_v0 = vld [vmem:[%s17207_s7 + $0x960] sm:$0xff]  ;;  %v531_v3 = vld [vmem:[%s17207_s7 + $0x928] sm:$0xff] }
 0x44a   : > { %v539_v4 = vld [vmem:[%s17207_s7 + $0x968] sm:$0xff]  ;;  %v14965_v7 = vcombine.high %v530_v39, %v538_v0  ;;  %v14964_v20 = vcombine.low %v530_v39, %v538_v0 }
 0x44b   : > { %v14967_v8 = vcombine.high %v531_v3, %v539_v4  ;;  %v14966_v24 = vcombine.low %v531_v3, %v539_v4 }
 0x44c   : > { %13232 = vmatpush1.bf16.msra.mxu0 %v14868_v10  ;;  %13560 = vmatpush1.bf16.msra.mxu1 %v14870_v11  ;;  %v546_v10 = vld [vmem:[%s17207_s7 + $0x9a0] sm:$0xff] }
 0x44d   : > { %13233 = vmatprep.subr.bf16.mxu0 %v14885_v13  ;;  %13561 = vmatprep.subr.bf16.mxu1 %v14887_v14  ;;  %v554_v11 = vld [vmem:[%s17207_s7 + $0x9e0] sm:$0xff]  ;;  %v547_v13 = vld [vmem:[%s17207_s7 + $0x9a8] sm:$0xff] }
 0x44e   : > { %v555_v14 = vld [vmem:[%s17207_s7 + $0x9e8] sm:$0xff]  ;;  %v14981_v59 = vcombine.high %v546_v10, %v554_v11  ;;  %v14980_v49 = vcombine.low %v546_v10, %v554_v11 }
 0x44f   : > { %v14983_v26 = vcombine.high %v547_v13, %v555_v14  ;;  %v14982_v32 = vcombine.low %v547_v13, %v555_v14 }
 0x450   : > { %13234 = vmatpush1.bf16.msra.mxu0 %v14884_v28  ;;  %13562 = vmatpush1.bf16.msra.mxu1 %v14886_v29  ;;  %v562_v28 = vld [vmem:[%s17207_s7 + $0xa20] sm:$0xff] }
 0x451   : > { %13235 = vmatprep.subr.bf16.mxu0 %v14901_v15  ;;  %13563 = vmatprep.subr.bf16.mxu1 %v14903_v30  ;;  %v570_v29 = vld [vmem:[%s17207_s7 + $0xa60] sm:$0xff]  ;;  %v563_v15 = vld [vmem:[%s17207_s7 + $0xa28] sm:$0xff] }
 0x452   : > { %v571_v30 = vld [vmem:[%s17207_s7 + $0xa68] sm:$0xff]  ;;  %v14997_v33 = vcombine.high %v562_v28, %v570_v29  ;;  %v14996_v42 = vcombine.low %v562_v28, %v570_v29 }
 0x453   : > { %v14999_v34 = vcombine.high %v563_v15, %v571_v30  ;;  %v14998_v43 = vcombine.low %v563_v15, %v571_v30 }
 0x454   : > { %13236 = vmatpush1.bf16.msra.mxu0 %v14900_v35  ;;  %13564 = vmatpush1.bf16.msra.mxu1 %v14902_v37  ;;  %v578_v35 = vld [vmem:[%s17207_s7 + $0xaa0] sm:$0xff] }
 0x455   : > { %13237 = vmatprep.subr.bf16.mxu0 %v14917_v38  ;;  %13565 = vmatprep.subr.bf16.mxu1 %v14919_v41  ;;  %v586_v37 = vld [vmem:[%s17207_s7 + $0xae0] sm:$0xff]  ;;  %v579_v38 = vld [vmem:[%s17207_s7 + $0xaa8] sm:$0xff] }
 0x456   : > { %v587_v41 = vld [vmem:[%s17207_s7 + $0xae8] sm:$0xff]  ;;  %v15013_v25 = vcombine.high %v578_v35, %v586_v37  ;;  %v15012_v52 = vcombine.low %v578_v35, %v586_v37 }
 0x457   : > { %v15015_v44 = vcombine.high %v579_v38, %v587_v41  ;;  %v15014_v54 = vcombine.low %v579_v38, %v587_v41 }
 0x458   : > { %13238 = vmatpush1.bf16.msra.mxu0 %v14916_v47  ;;  %13566 = vmatpush1.bf16.msra.mxu1 %v14918_v48  ;;  %v594_v47 = vld [vmem:[%s17207_s7 + $0xb20] sm:$0xff] }
 0x459   : > { %13248 = vmatprep.subr.bf16.mxu0 %v14933_v50  ;;  %13576 = vmatprep.subr.bf16.mxu1 %v14935_v51  ;;  %v602_v48 = vld [vmem:[%s17207_s7 + $0xb60] sm:$0xff]  ;;  %v595_v50 = vld [vmem:[%s17207_s7 + $0xb28] sm:$0xff] }
 0x45a   : > { %v603_v51 = vld [vmem:[%s17207_s7 + $0xb68] sm:$0xff]  ;;  %v15029_v19 = vcombine.high %v594_v47, %v602_v48  ;;  %v15028_v39 = vcombine.low %v594_v47, %v602_v48 }
 0x45b   : > { %13240 = vmatmul.mubr.bf16.vlgmr.msra.gmra.mrb[8].mxu0 %v17304_v12  ;;  %13568 = vmatmul.mubr.bf16.vlgmr.msra.gmra.mrb[8].mxu1 %v17304_v12  ;;  %v15031_v56 = vcombine.high %v595_v50, %v603_v51  ;;  %v15030_v0 = vcombine.low %v595_v50, %v603_v51 }
 0x45c   : > { %13249 = vmatpush1.bf16.msra.mxu0 %v14932_v60  ;;  %13577 = vmatpush1.bf16.msra.mxu1 %v14934_v61  ;;  %v610_v60 = vld [vmem:[%s17207_s7 + $0xba0] sm:$0xff] }
 0x45d   : > { %13250 = vmatprep.subr.bf16.mxu0 %v14949_v62  ;;  %13578 = vmatprep.subr.bf16.mxu1 %v14951_v63  ;;  %v618_v61 = vld [vmem:[%s17207_s7 + $0xbe0] sm:$0xff]  ;;  %v611_v62 = vld [vmem:[%s17207_s7 + $0xba8] sm:$0xff] }
 0x45e   : > { %13280 = vmatprep.mubr.bf16.mxu0 %v17317_v21  ;;  %13608 = vmatprep.mubr.bf16.mxu1 %v17317_v21  ;;  %v619_v63 = vld [vmem:[%s17207_s7 + $0xbe8] sm:$0xff]  ;;  %v15045_v3 = vcombine.high %v610_v60, %v618_v61  ;;  %v15044_v10 = vcombine.low %v610_v60, %v618_v61 }
 0x45f   : > { %v15047_v4 = vcombine.high %v611_v62, %v619_v63  ;;  %v15046_v11 = vcombine.low %v611_v62, %v619_v63 }
 0x460   : > { %13251 = vmatpush1.bf16.msra.mxu0 %v14948_v5  ;;  %13579 = vmatpush1.bf16.msra.mxu1 %v14950_v6  ;;  %v626_v5 = vld [vmem:[%s17207_s7 + $0xc20] sm:$0xff] }
 0x461   : > { %13252 = vmatprep.subr.bf16.mxu0 %v14965_v7  ;;  %13580 = vmatprep.subr.bf16.mxu1 %v14967_v8  ;;  %v634_v6 = vld [vmem:[%s17207_s7 + $0xc60] sm:$0xff]  ;;  %v627_v7 = vld [vmem:[%s17207_s7 + $0xc28] sm:$0xff] }
 0x462   : > { %v635_v8 = vld [vmem:[%s17207_s7 + $0xc68] sm:$0xff]  ;;  %v15061_v13 = vcombine.high %v626_v5, %v634_v6  ;;  %v15060_v28 = vcombine.low %v626_v5, %v634_v6 }
 0x463   : > { %v15063_v14 = vcombine.high %v627_v7, %v635_v8  ;;  %v15062_v29 = vcombine.low %v627_v7, %v635_v8 }
 0x464   : > { %13253 = vmatpush1.bf16.msra.mxu0 %v14964_v20  ;;  %13581 = vmatpush1.bf16.msra.mxu1 %v14966_v24  ;;  %v642_v20 = vld [vmem:[%s17207_s7 + $0xca0] sm:$0xff] }
 0x465   : > { %13254 = vmatprep.subr.bf16.mxu0 %v14981_v59  ;;  %13582 = vmatprep.subr.bf16.mxu1 %v14983_v26  ;;  %v650_v24 = vld [vmem:[%s17207_s7 + $0xce0] sm:$0xff]  ;;  %v643_v59 = vld [vmem:[%s17207_s7 + $0xca8] sm:$0xff] }
 0x466   : > { %v651_v26 = vld [vmem:[%s17207_s7 + $0xce8] sm:$0xff]  ;;  %v15077_v15 = vcombine.high %v642_v20, %v650_v24  ;;  %v15076_v35 = vcombine.low %v642_v20, %v650_v24 }
 0x467   : > { %v15079_v30 = vcombine.high %v643_v59, %v651_v26  ;;  %v15078_v37 = vcombine.low %v643_v59, %v651_v26 }
 0x468   : > { %13255 = vmatpush1.bf16.msra.mxu0 %v14980_v49  ;;  %13583 = vmatpush1.bf16.msra.mxu1 %v14982_v32  ;;  %v658_v49 = vld [vmem:[%s17207_s7 + $0xd20] sm:$0xff] }
 0x469   : > { %13256 = vmatprep.subr.bf16.mxu0 %v14997_v33  ;;  %13584 = vmatprep.subr.bf16.mxu1 %v14999_v34  ;;  %v666_v32 = vld [vmem:[%s17207_s7 + $0xd60] sm:$0xff]  ;;  %v659_v33 = vld [vmem:[%s17207_s7 + $0xd28] sm:$0xff] }
 0x46a   : > { %v667_v34 = vld [vmem:[%s17207_s7 + $0xd68] sm:$0xff]  ;;  %v15093_v38 = vcombine.high %v658_v49, %v666_v32  ;;  %v15092_v47 = vcombine.low %v658_v49, %v666_v32 }
 0x46b   : > { %v15095_v41 = vcombine.high %v659_v33, %v667_v34  ;;  %v15094_v48 = vcombine.low %v659_v33, %v667_v34 }
 0x46c   : > { %13257 = vmatpush1.bf16.msra.mxu0 %v14996_v42  ;;  %13585 = vmatpush1.bf16.msra.mxu1 %v14998_v43  ;;  %v674_v42 = vld [vmem:[%s17207_s7 + $0xda0] sm:$0xff] }
 0x46d   : > { %13258 = vmatprep.subr.bf16.mxu0 %v15013_v25  ;;  %13586 = vmatprep.subr.bf16.mxu1 %v15015_v44  ;;  %v682_v43 = vld [vmem:[%s17207_s7 + $0xde0] sm:$0xff]  ;;  %v675_v25 = vld [vmem:[%s17207_s7 + $0xda8] sm:$0xff] }
 0x46e   : > { %v683_v44 = vld [vmem:[%s17207_s7 + $0xde8] sm:$0xff]  ;;  %v15109_v50 = vcombine.high %v674_v42, %v682_v43  ;;  %v15108_v60 = vcombine.low %v674_v42, %v682_v43 }
 0x46f   : > { %v15111_v51 = vcombine.high %v675_v25, %v683_v44  ;;  %v15110_v61 = vcombine.low %v675_v25, %v683_v44 }
 0x470   : > { %13259 = vmatpush1.bf16.msra.mxu0 %v15012_v52  ;;  %13587 = vmatpush1.bf16.msra.mxu1 %v15014_v54  ;;  %v690_v52 = vld [vmem:[%s17207_s7 + $0xe20] sm:$0xff] }
 0x471   : > { %13260 = vmatprep.subr.bf16.mxu0 %v15029_v19  ;;  %13588 = vmatprep.subr.bf16.mxu1 %v15031_v56  ;;  %v698_v54 = vld [vmem:[%s17207_s7 + $0xe60] sm:$0xff]  ;;  %v691_v19 = vld [vmem:[%s17207_s7 + $0xe28] sm:$0xff] }
 0x472   : > { %v699_v56 = vld [vmem:[%s17207_s7 + $0xe68] sm:$0xff]  ;;  %v15125_v62 = vcombine.high %v690_v52, %v698_v54  ;;  %v15124_v5 = vcombine.low %v690_v52, %v698_v54 }
 0x473   : > { %v15127_v63 = vcombine.high %v691_v19, %v699_v56  ;;  %v15126_v6 = vcombine.low %v691_v19, %v699_v56 }
 0x474   : > { %13261 = vmatpush1.bf16.msra.mxu0 %v15028_v39  ;;  %13589 = vmatpush1.bf16.msra.mxu1 %v15030_v0  ;;  %v706_v39 = vld [vmem:[%s17207_s7 + $0xea0] sm:$0xff] }
 0x475   : > { %13262 = vmatprep.subr.bf16.mxu0 %v15045_v3  ;;  %13590 = vmatprep.subr.bf16.mxu1 %v15047_v4  ;;  %v714_v0 = vld [vmem:[%s17207_s7 + $0xee0] sm:$0xff]  ;;  %v707_v3 = vld [vmem:[%s17207_s7 + $0xea8] sm:$0xff] }
 0x476   : > { %v715_v4 = vld [vmem:[%s17207_s7 + $0xee8] sm:$0xff]  ;;  %v15141_v7 = vcombine.high %v706_v39, %v714_v0  ;;  %v15140_v20 = vcombine.low %v706_v39, %v714_v0 }
 0x477   : > { %v15143_v8 = vcombine.high %v707_v3, %v715_v4  ;;  %v15142_v24 = vcombine.low %v707_v3, %v715_v4 }
 0x478   : > { %13263 = vmatpush1.bf16.msra.mxu0 %v15044_v10  ;;  %13591 = vmatpush1.bf16.msra.mxu1 %v15046_v11  ;;  %v722_v10 = vld [vmem:[%s17207_s7 + $0xf20] sm:$0xff] }
 0x479   : > { %13264 = vmatprep.subr.bf16.mxu0 %v15061_v13  ;;  %13592 = vmatprep.subr.bf16.mxu1 %v15063_v14  ;;  %v730_v11 = vld [vmem:[%s17207_s7 + $0xf60] sm:$0xff]  ;;  %v723_v13 = vld [vmem:[%s17207_s7 + $0xf28] sm:$0xff] }
 0x47a   : > { %v731_v14 = vld [vmem:[%s17207_s7 + $0xf68] sm:$0xff]  ;;  %v15157_v59 = vcombine.high %v722_v10, %v730_v11  ;;  %v15156_v49 = vcombine.low %v722_v10, %v730_v11 }
 0x47b   : > { %v15159_v26 = vcombine.high %v723_v13, %v731_v14  ;;  %v15158_v32 = vcombine.low %v723_v13, %v731_v14 }
 0x47c   : > { %13265 = vmatpush1.bf16.msra.mxu0 %v15060_v28  ;;  %13593 = vmatpush1.bf16.msra.mxu1 %v15062_v29  ;;  %v738_v28 = vld [vmem:[%s17207_s7 + $0xfa0] sm:$0xff] }
 0x47d   : > { %13266 = vmatprep.subr.bf16.mxu0 %v15077_v15  ;;  %13594 = vmatprep.subr.bf16.mxu1 %v15079_v30  ;;  %v746_v29 = vld [vmem:[%s17207_s7 + $0xfe0] sm:$0xff]  ;;  %v739_v15 = vld [vmem:[%s17207_s7 + $0xfa8] sm:$0xff] }
 0x47e   : > { %v747_v30 = vld [vmem:[%s17207_s7 + $0xfe8] sm:$0xff]  ;;  %v15173_v33 = vcombine.high %v738_v28, %v746_v29  ;;  %v15172_v42 = vcombine.low %v738_v28, %v746_v29 }
 0x47f   : > { %v15175_v34 = vcombine.high %v739_v15, %v747_v30  ;;  %v15174_v43 = vcombine.low %v739_v15, %v747_v30 }
 0x480   : > { %13267 = vmatpush1.bf16.msra.mxu0 %v15076_v35  ;;  %13595 = vmatpush1.bf16.msra.mxu1 %v15078_v37  ;;  %v754_v35 = vld [vmem:[%s17207_s7 + $0x1020] sm:$0xff] }
 0x481   : > { %13268 = vmatprep.subr.bf16.mxu0 %v15093_v38  ;;  %13596 = vmatprep.subr.bf16.mxu1 %v15095_v41  ;;  %v762_v37 = vld [vmem:[%s17207_s7 + $0x1060] sm:$0xff]  ;;  %v755_v38 = vld [vmem:[%s17207_s7 + $0x1028] sm:$0xff] }
 0x482   : > { %v763_v41 = vld [vmem:[%s17207_s7 + $0x1068] sm:$0xff]  ;;  %v15189_v25 = vcombine.high %v754_v35, %v762_v37  ;;  %v15188_v52 = vcombine.low %v754_v35, %v762_v37 }
 0x483   : > { %v15191_v44 = vcombine.high %v755_v38, %v763_v41  ;;  %v15190_v54 = vcombine.low %v755_v38, %v763_v41 }
 0x484   : > { %13269 = vmatpush1.bf16.msra.mxu0 %v15092_v47  ;;  %13597 = vmatpush1.bf16.msra.mxu1 %v15094_v48  ;;  %v770_v47 = vld [vmem:[%s17207_s7 + $0x10a0] sm:$0xff] }
 0x485   : > { %13270 = vmatprep.subr.bf16.mxu0 %v15109_v50  ;;  %13598 = vmatprep.subr.bf16.mxu1 %v15111_v51  ;;  %v778_v48 = vld [vmem:[%s17207_s7 + $0x10e0] sm:$0xff]  ;;  %v771_v50 = vld [vmem:[%s17207_s7 + $0x10a8] sm:$0xff] }
 0x486   : > { %v779_v51 = vld [vmem:[%s17207_s7 + $0x10e8] sm:$0xff]  ;;  %v15205_v19 = vcombine.high %v770_v47, %v778_v48  ;;  %v15204_v39 = vcombine.low %v770_v47, %v778_v48 }
 0x487   : > { %v15207_v56 = vcombine.high %v771_v50, %v779_v51  ;;  %v15206_v0 = vcombine.low %v771_v50, %v779_v51 }
 0x488   : > { %13271 = vmatpush1.bf16.msra.mxu0 %v15108_v60  ;;  %13599 = vmatpush1.bf16.msra.mxu1 %v15110_v61  ;;  %v786_v60 = vld [vmem:[%s17207_s7 + $0x1120] sm:$0xff] }
 0x489   : > { %13272 = vmatprep.subr.bf16.mxu0 %v15125_v62  ;;  %13600 = vmatprep.subr.bf16.mxu1 %v15127_v63  ;;  %v794_v61 = vld [vmem:[%s17207_s7 + $0x1160] sm:$0xff]  ;;  %v787_v62 = vld [vmem:[%s17207_s7 + $0x1128] sm:$0xff] }
 0x48a   : > { %v795_v63 = vld [vmem:[%s17207_s7 + $0x1168] sm:$0xff]  ;;  %v15221_v3 = vcombine.high %v786_v60, %v794_v61  ;;  %v15220_v10 = vcombine.low %v786_v60, %v794_v61 }
 0x48b   : > { %v15223_v4 = vcombine.high %v787_v62, %v795_v63  ;;  %v15222_v11 = vcombine.low %v787_v62, %v795_v63 }
 0x48c   : > { %13273 = vmatpush1.bf16.msra.mxu0 %v15124_v5  ;;  %13601 = vmatpush1.bf16.msra.mxu1 %v15126_v6  ;;  %v802_v5 = vld [vmem:[%s17207_s7 + $0x11a0] sm:$0xff] }
 0x48d   : > { %13274 = vmatprep.subr.bf16.mxu0 %v15141_v7  ;;  %13602 = vmatprep.subr.bf16.mxu1 %v15143_v8  ;;  %v810_v6 = vld [vmem:[%s17207_s7 + $0x11e0] sm:$0xff]  ;;  %v803_v7 = vld [vmem:[%s17207_s7 + $0x11a8] sm:$0xff] }
 0x48e   : > { %v811_v8 = vld [vmem:[%s17207_s7 + $0x11e8] sm:$0xff]  ;;  %v15237_v13 = vcombine.high %v802_v5, %v810_v6  ;;  %v15236_v28 = vcombine.low %v802_v5, %v810_v6 }
 0x48f   : > { %v15239_v14 = vcombine.high %v803_v7, %v811_v8  ;;  %v15238_v29 = vcombine.low %v803_v7, %v811_v8 }
 0x490   : > { %13275 = vmatpush1.bf16.msra.mxu0 %v15140_v20  ;;  %13603 = vmatpush1.bf16.msra.mxu1 %v15142_v24  ;;  %v818_v20 = vld [vmem:[%s17207_s7 + $0x1220] sm:$0xff] }
 0x491   : > { %13276 = vmatprep.subr.bf16.mxu0 %v15157_v59  ;;  %13604 = vmatprep.subr.bf16.mxu1 %v15159_v26  ;;  %v826_v24 = vld [vmem:[%s17207_s7 + $0x1260] sm:$0xff]  ;;  %v819_v59 = vld [vmem:[%s17207_s7 + $0x1228] sm:$0xff] }
 0x492   : > { %v827_v26 = vld [vmem:[%s17207_s7 + $0x1268] sm:$0xff]  ;;  %v15253_v15 = vcombine.high %v818_v20, %v826_v24  ;;  %v15252_v35 = vcombine.low %v818_v20, %v826_v24 }
 0x493   : > { %v15255_v30 = vcombine.high %v819_v59, %v827_v26  ;;  %v15254_v37 = vcombine.low %v819_v59, %v827_v26 }
 0x494   : > { %13277 = vmatpush1.bf16.msra.mxu0 %v15156_v49  ;;  %13605 = vmatpush1.bf16.msra.mxu1 %v15158_v32  ;;  %v834_v49 = vld [vmem:[%s17207_s7 + $0x12a0] sm:$0xff] }
 0x495   : > { %13278 = vmatprep.subr.bf16.mxu0 %v15173_v33  ;;  %13606 = vmatprep.subr.bf16.mxu1 %v15175_v34  ;;  %v842_v32 = vld [vmem:[%s17207_s7 + $0x12e0] sm:$0xff]  ;;  %v835_v33 = vld [vmem:[%s17207_s7 + $0x12a8] sm:$0xff] }
 0x496   : > { %v843_v34 = vld [vmem:[%s17207_s7 + $0x12e8] sm:$0xff]  ;;  %v15269_v38 = vcombine.high %v834_v49, %v842_v32  ;;  %v15268_v47 = vcombine.low %v834_v49, %v842_v32 }
 0x497   : > { %v15271_v41 = vcombine.high %v835_v33, %v843_v34  ;;  %v15270_v48 = vcombine.low %v835_v33, %v843_v34 }
 0x498   : > { %13279 = vmatpush1.bf16.msra.mxu0 %v15172_v42  ;;  %13607 = vmatpush1.bf16.msra.mxu1 %v15174_v43  ;;  %v850_v42 = vld [vmem:[%s17207_s7 + $0x1320] sm:$0xff] }
 0x499   : > { %13289 = vmatprep.subr.bf16.mxu0 %v15189_v25  ;;  %13617 = vmatprep.subr.bf16.mxu1 %v15191_v44  ;;  %v858_v43 = vld [vmem:[%s17207_s7 + $0x1360] sm:$0xff]  ;;  %v851_v25 = vld [vmem:[%s17207_s7 + $0x1328] sm:$0xff] }
 0x49a   : > { %v859_v44 = vld [vmem:[%s17207_s7 + $0x1368] sm:$0xff]  ;;  %v15285_v50 = vcombine.high %v850_v42, %v858_v43  ;;  %v15284_v60 = vcombine.low %v850_v42, %v858_v43 }
 0x49b   : > { %13281 = vmatmul.mubr.bf16.vlgmr.msra.gmra.mrb[8].mxu0 %v17385_v22  ;;  %13609 = vmatmul.mubr.bf16.vlgmr.msra.gmra.mrb[8].mxu1 %v17385_v22  ;;  %v15287_v51 = vcombine.high %v851_v25, %v859_v44  ;;  %v15286_v61 = vcombine.low %v851_v25, %v859_v44 }
 0x49c   : > { %13290 = vmatpush1.bf16.msra.mxu0 %v15188_v52  ;;  %13618 = vmatpush1.bf16.msra.mxu1 %v15190_v54  ;;  %v866_v52 = vld [vmem:[%s17207_s7 + $0x13a0] sm:$0xff] }
 0x49d   : > { %13291 = vmatprep.subr.bf16.mxu0 %v15205_v19  ;;  %13619 = vmatprep.subr.bf16.mxu1 %v15207_v56  ;;  %v874_v54 = vld [vmem:[%s17207_s7 + $0x13e0] sm:$0xff]  ;;  %v867_v19 = vld [vmem:[%s17207_s7 + $0x13a8] sm:$0xff] }
 0x49e   : > { %13321 = vmatprep.mubr.bf16.mxu0 %v17398_v31  ;;  %13649 = vmatprep.mubr.bf16.mxu1 %v17398_v31  ;;  %v875_v56 = vld [vmem:[%s17207_s7 + $0x13e8] sm:$0xff]  ;;  %v15301_v62 = vcombine.high %v866_v52, %v874_v54  ;;  %v15300_v5 = vcombine.low %v866_v52, %v874_v54 }
 0x49f   : > { %v15303_v63 = vcombine.high %v867_v19, %v875_v56  ;;  %v15302_v6 = vcombine.low %v867_v19, %v875_v56 }
 0x4a0   : > { %13292 = vmatpush1.bf16.msra.mxu0 %v15204_v39  ;;  %13620 = vmatpush1.bf16.msra.mxu1 %v15206_v0  ;;  %v882_v39 = vld [vmem:[%s17207_s7 + $0x1420] sm:$0xff] }
 0x4a1   : > { %13293 = vmatprep.subr.bf16.mxu0 %v15221_v3  ;;  %13621 = vmatprep.subr.bf16.mxu1 %v15223_v4  ;;  %v890_v0 = vld [vmem:[%s17207_s7 + $0x1460] sm:$0xff]  ;;  %v883_v3 = vld [vmem:[%s17207_s7 + $0x1428] sm:$0xff] }
 0x4a2   : > { %v891_v4 = vld [vmem:[%s17207_s7 + $0x1468] sm:$0xff]  ;;  %v15317_v7 = vcombine.high %v882_v39, %v890_v0  ;;  %v15316_v20 = vcombine.low %v882_v39, %v890_v0 }
 0x4a3   : > { %v15319_v8 = vcombine.high %v883_v3, %v891_v4  ;;  %v15318_v24 = vcombine.low %v883_v3, %v891_v4 }
 0x4a4   : > { %13294 = vmatpush1.bf16.msra.mxu0 %v15220_v10  ;;  %13622 = vmatpush1.bf16.msra.mxu1 %v15222_v11  ;;  %v898_v10 = vld [vmem:[%s17207_s7 + $0x14a0] sm:$0xff] }
 0x4a5   : > { %13295 = vmatprep.subr.bf16.mxu0 %v15237_v13  ;;  %13623 = vmatprep.subr.bf16.mxu1 %v15239_v14  ;;  %v906_v11 = vld [vmem:[%s17207_s7 + $0x14e0] sm:$0xff]  ;;  %v899_v13 = vld [vmem:[%s17207_s7 + $0x14a8] sm:$0xff] }
 0x4a6   : > { %v907_v14 = vld [vmem:[%s17207_s7 + $0x14e8] sm:$0xff]  ;;  %v15333_v59 = vcombine.high %v898_v10, %v906_v11  ;;  %v15332_v49 = vcombine.low %v898_v10, %v906_v11 }
 0x4a7   : > { %v15335_v26 = vcombine.high %v899_v13, %v907_v14  ;;  %v15334_v32 = vcombine.low %v899_v13, %v907_v14 }
 0x4a8   : > { %13296 = vmatpush1.bf16.msra.mxu0 %v15236_v28  ;;  %13624 = vmatpush1.bf16.msra.mxu1 %v15238_v29  ;;  %v914_v28 = vld [vmem:[%s17207_s7 + $0x1520] sm:$0xff] }
 0x4a9   : > { %13297 = vmatprep.subr.bf16.mxu0 %v15253_v15  ;;  %13625 = vmatprep.subr.bf16.mxu1 %v15255_v30  ;;  %v922_v29 = vld [vmem:[%s17207_s7 + $0x1560] sm:$0xff]  ;;  %v915_v15 = vld [vmem:[%s17207_s7 + $0x1528] sm:$0xff] }
 0x4aa   : > { %v923_v30 = vld [vmem:[%s17207_s7 + $0x1568] sm:$0xff]  ;;  %v15349_v33 = vcombine.high %v914_v28, %v922_v29  ;;  %v15348_v42 = vcombine.low %v914_v28, %v922_v29 }
 0x4ab   : > { %v15351_v34 = vcombine.high %v915_v15, %v923_v30  ;;  %v15350_v43 = vcombine.low %v915_v15, %v923_v30 }
 0x4ac   : > { %13298 = vmatpush1.bf16.msra.mxu0 %v15252_v35  ;;  %13626 = vmatpush1.bf16.msra.mxu1 %v15254_v37  ;;  %v930_v35 = vld [vmem:[%s17207_s7 + $0x15a0] sm:$0xff] }
 0x4ad   : > { %13299 = vmatprep.subr.bf16.mxu0 %v15269_v38  ;;  %13627 = vmatprep.subr.bf16.mxu1 %v15271_v41  ;;  %v938_v37 = vld [vmem:[%s17207_s7 + $0x15e0] sm:$0xff]  ;;  %v931_v38 = vld [vmem:[%s17207_s7 + $0x15a8] sm:$0xff] }
 0x4ae   : > { %v939_v41 = vld [vmem:[%s17207_s7 + $0x15e8] sm:$0xff]  ;;  %v15365_v25 = vcombine.high %v930_v35, %v938_v37  ;;  %v15364_v52 = vcombine.low %v930_v35, %v938_v37 }
 0x4af   : > { %v15367_v44 = vcombine.high %v931_v38, %v939_v41  ;;  %v15366_v54 = vcombine.low %v931_v38, %v939_v41 }
 0x4b0   : > { %13300 = vmatpush1.bf16.msra.mxu0 %v15268_v47  ;;  %13628 = vmatpush1.bf16.msra.mxu1 %v15270_v48  ;;  %v946_v47 = vld [vmem:[%s17207_s7 + $0x1620] sm:$0xff] }
 0x4b1   : > { %13301 = vmatprep.subr.bf16.mxu0 %v15285_v50  ;;  %13629 = vmatprep.subr.bf16.mxu1 %v15287_v51  ;;  %v954_v48 = vld [vmem:[%s17207_s7 + $0x1660] sm:$0xff]  ;;  %v947_v50 = vld [vmem:[%s17207_s7 + $0x1628] sm:$0xff] }
 0x4b2   : > { %v955_v51 = vld [vmem:[%s17207_s7 + $0x1668] sm:$0xff]  ;;  %v15381_v19 = vcombine.high %v946_v47, %v954_v48  ;;  %v15380_v39 = vcombine.low %v946_v47, %v954_v48 }
 0x4b3   : > { %v15383_v56 = vcombine.high %v947_v50, %v955_v51  ;;  %v15382_v0 = vcombine.low %v947_v50, %v955_v51 }
 0x4b4   : > { %13302 = vmatpush1.bf16.msra.mxu0 %v15284_v60  ;;  %13630 = vmatpush1.bf16.msra.mxu1 %v15286_v61  ;;  %v962_v60 = vld [vmem:[%s17207_s7 + $0x16a0] sm:$0xff] }
 0x4b5   : > { %13303 = vmatprep.subr.bf16.mxu0 %v15301_v62  ;;  %13631 = vmatprep.subr.bf16.mxu1 %v15303_v63  ;;  %v970_v61 = vld [vmem:[%s17207_s7 + $0x16e0] sm:$0xff]  ;;  %v963_v62 = vld [vmem:[%s17207_s7 + $0x16a8] sm:$0xff] }
 0x4b6   : > { %v971_v63 = vld [vmem:[%s17207_s7 + $0x16e8] sm:$0xff]  ;;  %v15397_v3 = vcombine.high %v962_v60, %v970_v61  ;;  %v15396_v10 = vcombine.low %v962_v60, %v970_v61 }
 0x4b7   : > { %v15399_v4 = vcombine.high %v963_v62, %v971_v63  ;;  %v15398_v11 = vcombine.low %v963_v62, %v971_v63 }
 0x4b8   : > { %13304 = vmatpush1.bf16.msra.mxu0 %v15300_v5  ;;  %13632 = vmatpush1.bf16.msra.mxu1 %v15302_v6  ;;  %v978_v5 = vld [vmem:[%s17207_s7 + $0x1720] sm:$0xff] }
 0x4b9   : > { %13305 = vmatprep.subr.bf16.mxu0 %v15317_v7  ;;  %13633 = vmatprep.subr.bf16.mxu1 %v15319_v8  ;;  %v986_v6 = vld [vmem:[%s17207_s7 + $0x1760] sm:$0xff]  ;;  %v979_v7 = vld [vmem:[%s17207_s7 + $0x1728] sm:$0xff] }
 0x4ba   : > { %v987_v8 = vld [vmem:[%s17207_s7 + $0x1768] sm:$0xff]  ;;  %v15413_v13 = vcombine.high %v978_v5, %v986_v6  ;;  %v15412_v28 = vcombine.low %v978_v5, %v986_v6 }
 0x4bb   : > { %v15415_v14 = vcombine.high %v979_v7, %v987_v8  ;;  %v15414_v29 = vcombine.low %v979_v7, %v987_v8 }
 0x4bc   : > { %13306 = vmatpush1.bf16.msra.mxu0 %v15316_v20  ;;  %13634 = vmatpush1.bf16.msra.mxu1 %v15318_v24  ;;  %v994_v20 = vld [vmem:[%s17207_s7 + $0x17a0] sm:$0xff] }
 0x4bd   : > { %13307 = vmatprep.subr.bf16.mxu0 %v15333_v59  ;;  %13635 = vmatprep.subr.bf16.mxu1 %v15335_v26  ;;  %v1002_v24 = vld [vmem:[%s17207_s7 + $0x17e0] sm:$0xff]  ;;  %v995_v59 = vld [vmem:[%s17207_s7 + $0x17a8] sm:$0xff] }
 0x4be   : > { %v1003_v26 = vld [vmem:[%s17207_s7 + $0x17e8] sm:$0xff]  ;;  %v15429_v15 = vcombine.high %v994_v20, %v1002_v24  ;;  %v15428_v35 = vcombine.low %v994_v20, %v1002_v24 }
 0x4bf   : > { %v15431_v30 = vcombine.high %v995_v59, %v1003_v26  ;;  %v15430_v37 = vcombine.low %v995_v59, %v1003_v26 }
 0x4c0   : > { %13308 = vmatpush1.bf16.msra.mxu0 %v15332_v49  ;;  %13636 = vmatpush1.bf16.msra.mxu1 %v15334_v32  ;;  %v1010_v49 = vld [vmem:[%s17207_s7 + $0x1820] sm:$0xff] }
 0x4c1   : > { %13309 = vmatprep.subr.bf16.mxu0 %v15349_v33  ;;  %13637 = vmatprep.subr.bf16.mxu1 %v15351_v34  ;;  %v1018_v32 = vld [vmem:[%s17207_s7 + $0x1860] sm:$0xff]  ;;  %v1011_v33 = vld [vmem:[%s17207_s7 + $0x1828] sm:$0xff] }
 0x4c2   : > { %v1019_v34 = vld [vmem:[%s17207_s7 + $0x1868] sm:$0xff]  ;;  %v15445_v38 = vcombine.high %v1010_v49, %v1018_v32  ;;  %v15444_v47 = vcombine.low %v1010_v49, %v1018_v32 }
 0x4c3   : > { %v15447_v41 = vcombine.high %v1011_v33, %v1019_v34  ;;  %v15446_v48 = vcombine.low %v1011_v33, %v1019_v34  ;;  %v1099_v49 = vld [vmem:[%s17207_s7 + $0x1ae8] sm:$0xff]  ;;  %v2188_v33 = vsub.s32 6, %v18051_v2  ;;  %v2184_v34 = vsub.s32 5, %v18051_v2 }
 0x4c4   : > { %13310 = vmatpush1.bf16.msra.mxu0 %v15348_v42  ;;  %13638 = vmatpush1.bf16.msra.mxu1 %v15350_v43  ;;  %v1026_v42 = vld [vmem:[%s17207_s7 + $0x18a0] sm:$0xff] }
 0x4c5   : > { %13311 = vmatprep.subr.bf16.mxu0 %v15365_v25  ;;  %13639 = vmatprep.subr.bf16.mxu1 %v15367_v44  ;;  %v1034_v43 = vld [vmem:[%s17207_s7 + $0x18e0] sm:$0xff]  ;;  %v1027_v25 = vld [vmem:[%s17207_s7 + $0x18a8] sm:$0xff] }
 0x4c6   : > { %v1035_v44 = vld [vmem:[%s17207_s7 + $0x18e8] sm:$0xff]  ;;  %v15461_v50 = vcombine.high %v1026_v42, %v1034_v43  ;;  %v15460_v60 = vcombine.low %v1026_v42, %v1034_v43  ;;  %v1106_v42 = vld [vmem:[%s17207_s7 + $0x1b20] sm:$0xff] }
 0x4c7   : > { %v15463_v51 = vcombine.high %v1027_v25, %v1035_v44  ;;  %v15462_v61 = vcombine.low %v1027_v25, %v1035_v44  ;;  %v1114_v43 = vld [vmem:[%s17207_s7 + $0x1b60] sm:$0xff] }
 0x4c8   : > { %13312 = vmatpush1.bf16.msra.mxu0 %v15364_v52  ;;  %13640 = vmatpush1.bf16.msra.mxu1 %v15366_v54  ;;  %v1042_v52 = vld [vmem:[%s17207_s7 + $0x1920] sm:$0xff] }
 0x4c9   : > { %13313 = vmatprep.subr.bf16.mxu0 %v15381_v19  ;;  %13641 = vmatprep.subr.bf16.mxu1 %v15383_v56  ;;  %v1050_v54 = vld [vmem:[%s17207_s7 + $0x1960] sm:$0xff]  ;;  %v1043_v19 = vld [vmem:[%s17207_s7 + $0x1928] sm:$0xff] }
 0x4ca   : > { %v1051_v56 = vld [vmem:[%s17207_s7 + $0x1968] sm:$0xff]  ;;  %v15477_v62 = vcombine.high %v1042_v52, %v1050_v54  ;;  %v15476_v5 = vcombine.low %v1042_v52, %v1050_v54  ;;  %v16908_v25 = vld [vmem:[%s17215_s17] sm:$0xff] }
 0x4cb   : > { %v15479_v63 = vcombine.high %v1043_v19, %v1051_v56  ;;  %v15478_v6 = vcombine.low %v1043_v19, %v1051_v56  ;;  %v15541_v56 = vcombine.high %v1106_v42, %v1114_v43 }
 0x4cc   : > { %13314 = vmatpush1.bf16.msra.mxu0 %v15380_v39  ;;  %13642 = vmatpush1.bf16.msra.mxu1 %v15382_v0  ;;  %v1058_v39 = vld [vmem:[%s17207_s7 + $0x19a0] sm:$0xff] }
 0x4cd   : > { %13315 = vmatprep.subr.bf16.mxu0 %v15397_v3  ;;  %13643 = vmatprep.subr.bf16.mxu1 %v15399_v4  ;;  %v1066_v0 = vld [vmem:[%s17207_s7 + $0x19e0] sm:$0xff]  ;;  %v1059_v3 = vld [vmem:[%s17207_s7 + $0x19a8] sm:$0xff] }
 0x4ce   : > { %v1067_v4 = vld [vmem:[%s17207_s7 + $0x19e8] sm:$0xff]  ;;  %v15493_v7 = vcombine.high %v1058_v39, %v1066_v0  ;;  %v15492_v20 = vcombine.low %v1058_v39, %v1066_v0 }
 0x4cf   : > { %v15495_v8 = vcombine.high %v1059_v3, %v1067_v4  ;;  %v15494_v24 = vcombine.low %v1059_v3, %v1067_v4  ;;  %v1123_v4 = vld [vmem:[%s17207_s7 + $0x1ba8] sm:$0xff] }
 0x4d0   : > { %13316 = vmatpush1.bf16.msra.mxu0 %v15396_v10  ;;  %13644 = vmatpush1.bf16.msra.mxu1 %v15398_v11  ;;  %v1074_v10 = vld [vmem:[%s17207_s7 + $0x1a20] sm:$0xff] }
 0x4d1   : > { %13317 = vmatprep.subr.bf16.mxu0 %v15413_v13  ;;  %13645 = vmatprep.subr.bf16.mxu1 %v15415_v14  ;;  %v1082_v11 = vld [vmem:[%s17207_s7 + $0x1a60] sm:$0xff]  ;;  %v1075_v13 = vld [vmem:[%s17207_s7 + $0x1a28] sm:$0xff] }
 0x4d2   : > { %v1083_v14 = vld [vmem:[%s17207_s7 + $0x1a68] sm:$0xff]  ;;  %v15509_v59 = vcombine.high %v1074_v10, %v1082_v11  ;;  %v15508_v32 = vcombine.low %v1074_v10, %v1082_v11  ;;  %v15540_v11 = vcombine.low %v1106_v42, %v1114_v43  ;;  %v1154_v43 = vld [vmem:[%s17207_s7 + $0x1ca0] sm:$0xff] }
 0x4d3   : > { %v15511_v26 = vcombine.high %v1075_v13, %v1083_v14 }
 0x4d4   : > { %13318 = vmatpush1.bf16.msra.mxu0 %v15412_v28  ;;  %13646 = vmatpush1.bf16.msra.mxu1 %v15414_v29  ;;  %v1090_v28 = vld [vmem:[%s17207_s7 + $0x1aa0] sm:$0xff] }
 0x4d5   : > { %13319 = vmatprep.subr.bf16.mxu0 %v15429_v15  ;;  %13647 = vmatprep.subr.bf16.mxu1 %v15431_v30  ;;  %v1098_v29 = vld [vmem:[%s17207_s7 + $0x1ae0] sm:$0xff]  ;;  %v2180_v15 = vsub.s32 4, %v18051_v2  ;;  %v1091_v30 = vld [vmem:[%s17207_s7 + $0x1aa8] sm:$0xff] }
 0x4d6   : > { %v15524_v52 = vcombine.low %v1090_v28, %v1098_v29  ;;  %v15526_v19 = vcombine.low %v1091_v30, %v1099_v49 }
 0x4d7   : > { %v2181_v44 = vrot.slane %v16908_v25, %v2180_v15 }
 0x4d8   : > { %13320 = vmatpush1.bf16.msra.mxu0 %v15428_v35  ;;  %13648 = vmatpush1.bf16.msra.mxu1 %v15430_v37  ;;  %v15510_v35 = vcombine.low %v1075_v13, %v1083_v14  ;;  %v2192_v37 = vsub.s32 7, %v18051_v2 }
 0x4d9   : > { %13330 = vmatprep.subr.bf16.mxu0 %v15445_v38  ;;  %13658 = vmatprep.subr.bf16.mxu1 %v15447_v41  ;;  %v15525_v38 = vcombine.high %v1090_v28, %v1098_v29  ;;  %v15527_v41 = vcombine.high %v1091_v30, %v1099_v49  ;;  %v1138_v29 = vld [vmem:[%s17207_s7 + $0x1c20] sm:$0xff]  ;;  %v1139_v49 = vld [vmem:[%s17207_s7 + $0x1c28] sm:$0xff] }
 0x4da   : > { %v2193_v54 = vrot.slane %v16908_v25, %v2192_v37  ;;  %v1146_v30 = vld [vmem:[%s17207_s7 + $0x1c60] sm:$0xff] }
 0x4db   : > { %13322 = vmatmul.mubr.bf16.vlgmr.msra.gmra.mrb[8].mxu0 %v17466_v36  ;;  %13650 = vmatmul.mubr.bf16.vlgmr.msra.gmra.mrb[8].mxu1 %v17466_v36 }
 0x4dc   : > { %13331 = vmatpush1.bf16.msra.mxu0 %v15444_v47  ;;  %13659 = vmatpush1.bf16.msra.mxu1 %v15446_v48  ;;  %v1107_v47 = vld [vmem:[%s17207_s7 + $0x1b28] sm:$0xff] }
 0x4dd   : > { %13332 = vmatprep.subr.bf16.mxu0 %v15461_v50  ;;  %13660 = vmatprep.subr.bf16.mxu1 %v15463_v51  ;;  %v1115_v48 = vld [vmem:[%s17207_s7 + $0x1b68] sm:$0xff]  ;;  %v2189_v50 = vrot.slane %v16908_v25, %v2188_v33  ;;  %v2185_v51 = vrot.slane %v16908_v25, %v2184_v34  ;;  %v1162_v25 = vld [vmem:[%s17207_s7 + $0x1ce0] sm:$0xff] }
 0x4de   : > { %13362 = vmatprep.mubr.bf16.mxu0 %v17479_v45  ;;  %13690 = vmatprep.mubr.bf16.mxu1 %v17479_v45 }
 0x4e0   : > { %13333 = vmatpush1.bf16.msra.mxu0 %v15460_v60  ;;  %13661 = vmatpush1.bf16.msra.mxu1 %v15462_v61  ;;  %v15543_v61 = vcombine.high %v1107_v47, %v1115_v48 }
 0x4e1   : > { %13334 = vmatprep.subr.bf16.mxu0 %v15477_v62  ;;  %13662 = vmatprep.subr.bf16.mxu1 %v15479_v63  ;;  %v1122_v62 = vld [vmem:[%s17207_s7 + $0x1ba0] sm:$0xff] }
 0x4e2   : > { %v1130_v63 = vld [vmem:[%s17207_s7 + $0x1be0] sm:$0xff] }
 0x4e4   : > { %13335 = vmatpush1.bf16.msra.mxu0 %v15476_v5  ;;  %13663 = vmatpush1.bf16.msra.mxu1 %v15478_v6  ;;  %v1131_v5 = vld [vmem:[%s17207_s7 + $0x1be8] sm:$0xff] }
 0x4e5   : > { %13336 = vmatprep.subr.bf16.mxu0 %v15493_v7  ;;  %13664 = vmatprep.subr.bf16.mxu1 %v15495_v8  ;;  %v15559_v28 = vcombine.high %v1123_v4, %v1131_v5 }
 0x4e8   : > { %13337 = vmatpush1.bf16.msra.mxu0 %v15492_v20  ;;  %13665 = vmatpush1.bf16.msra.mxu1 %v15494_v24  ;;  %v15542_v24 = vcombine.low %v1107_v47, %v1115_v48  ;;  %v1163_v47 = vld [vmem:[%s17207_s7 + $0x1ce8] sm:$0xff]  ;;  %v15572_v48 = vcombine.low %v1138_v29, %v1146_v30 }
 0x4e9   : > { %13338 = vmatprep.subr.bf16.mxu0 %v15509_v59  ;;  %13666 = vmatprep.subr.bf16.mxu1 %v15511_v26  ;;  %v15557_v59 = vcombine.high %v1122_v62, %v1130_v63 }
 0x4ec   : > { %13339 = vmatpush1.bf16.msra.mxu0 %v15508_v32  ;;  %13667 = vmatpush1.bf16.msra.mxu1 %v15510_v35  ;;  %v1147_v32 = vld [vmem:[%s17207_s7 + $0x1c68] sm:$0xff]  ;;  %v15556_v35 = vcombine.low %v1122_v62, %v1130_v63 }
 0x4ed   : > { %13340 = vmatprep.subr.bf16.mxu0 %v15525_v38  ;;  %13668 = vmatprep.subr.bf16.mxu1 %v15527_v41  ;;  %v15558_v38 = vcombine.low %v1123_v4, %v1131_v5  ;;  %v15573_v41 = vcombine.high %v1138_v29, %v1146_v30  ;;  %v15575_v42 = vcombine.high %v1139_v49, %v1147_v32  ;;  %v1187_v4 = vld [vmem:[%s17207_s7 + $0x1da8] sm:$0xff]  ;;  %v1218_v29 = vld [vmem:[%s17207_s7 + $0x1ea0] sm:$0xff] }
 0x4ee   : > { %v12872_v60 = vpop.f32.mrb[4].mxu0  ;;  %v13200_v0 = vpop.f32.mrb[4].mxu1  ;;  %v1195_v5 = vld [vmem:[%s17207_s7 + $0x1de8] sm:$0xff]  ;;  %v1226_v30 = vld [vmem:[%s17207_s7 + $0x1ee0] sm:$0xff] }
 0x4ef   : > { %v16599_v39 = vadd.f32 %v12872_v60, %v2181_v44  ;;  %v12874_v3 = vpop.f32.mrb[5].mxu0  ;;  %v16601_v6 = vadd.f32 %v13200_v0, %v2189_v50  ;;  %v13202_v8 = vpop.f32.mrb[5].mxu1  ;;  %v1155_v44 = vld [vmem:[%s17207_s7 + $0x1ca8] sm:$0xff]  ;;  %v15574_v50 = vcombine.low %v1139_v49, %v1147_v32  ;;  %v1186_v0 = vld [vmem:[%s17207_s7 + $0x1da0] sm:$0xff] }
 0x4f0   : > { %v16600_v7 = vadd.f32 %v12874_v3, %v2185_v51  ;;  %v12876_v10 = vpop.f32.mrb[6].mxu0  ;;  %13341 = vmatpush1.bf16.msra.mxu0 %v15524_v52  ;;  %v16602_v13 = vadd.f32 %v13202_v8, %v2193_v54  ;;  %v13204_v14 = vpop.f32.mrb[6].mxu1  ;;  %13669 = vmatpush1.bf16.msra.mxu1 %v15526_v19  ;;  %v15589_v51 = vcombine.high %v1154_v43, %v1162_v25  ;;  %v1170_v54 = vld [vmem:[%s17207_s7 + $0x1d20] sm:$0xff]  ;;  %v1179_v60 = vld [vmem:[%s17207_s7 + $0x1d68] sm:$0xff] }
 0x4f1   : > { %14523 = vst [vmem:[%s18079_s30 + $0x20] sm:$0xff] %v16599_v39  ;;  %v12877_v20 = vpop.f32.mrb[7].mxu0  ;;  %13342 = vmatprep.subr.bf16.mxu0 %v15541_v56  ;;  %14525 = vst [vmem:[%s18079_s30 + $0x30] sm:$0xff] %v16601_v6  ;;  %v13205_v26 = vpop.f32.mrb[7].mxu1  ;;  %13670 = vmatprep.subr.bf16.mxu1 %v15543_v61  ;;  %v15591_v52 = vcombine.high %v1155_v44, %v1163_v47  ;;  %v1178_v19 = vld [vmem:[%s17207_s7 + $0x1d60] sm:$0xff]  ;;  %v1171_v56 = vld [vmem:[%s17207_s7 + $0x1d28] sm:$0xff]  ;;  %v15588_v61 = vcombine.low %v1154_v43, %v1162_v25 }
 0x4f2   : > { %14524 = vst [vmem:[%s18079_s30 + $0x28] sm:$0xff] %v16600_v7  ;;  %14526 = vst [vmem:[%s18079_s30 + $0x38] sm:$0xff] %v16602_v13  ;;  %v15590_v62 = vcombine.low %v1155_v44, %v1163_v47  ;;  %v15605_v63 = vcombine.high %v1170_v54, %v1178_v19  ;;  %v15607_v39 = vcombine.high %v1171_v56, %v1179_v60  ;;  %v1194_v3 = vld [vmem:[%s17207_s7 + $0x1de0] sm:$0xff]  ;;  %v1203_v14 = vld [vmem:[%s17207_s7 + $0x1e28] sm:$0xff] }
 0x4f3   : > { %v15604_v6 = vcombine.low %v1170_v54, %v1178_v19  ;;  %v15606_v7 = vcombine.low %v1171_v56, %v1179_v60  ;;  %v15621_v8 = vcombine.high %v1186_v0, %v1194_v3  ;;  %v15623_v10 = vcombine.high %v1187_v4, %v1195_v5  ;;  %v1210_v13 = vld [vmem:[%s17207_s7 + $0x1e60] sm:$0xff]  ;;  %v1211_v20 = vld [vmem:[%s17207_s7 + $0x1e68] sm:$0xff] }
 0x4f4   : > { %13343 = vmatpush1.bf16.msra.mxu0 %v15540_v11  ;;  %13671 = vmatpush1.bf16.msra.mxu1 %v15542_v24  ;;  %v1202_v11 = vld [vmem:[%s17207_s7 + $0x1e20] sm:$0xff]  ;;  %v15620_v24 = vcombine.low %v1186_v0, %v1194_v3  ;;  %v1219_v49 = vld [vmem:[%s17207_s7 + $0x1ea8] sm:$0xff] }
 0x4f5   : > { %13344 = vmatprep.subr.bf16.mxu0 %v15557_v59  ;;  %13672 = vmatprep.subr.bf16.mxu1 %v15559_v28  ;;  %v15622_v59 = vcombine.low %v1187_v4, %v1195_v5  ;;  %v15637_v26 = vcombine.high %v1202_v11, %v1210_v13  ;;  %v15639_v28 = vcombine.high %v1203_v14, %v1211_v20  ;;  %v1227_v32 = vld [vmem:[%s17207_s7 + $0x1ee8] sm:$0xff]  ;;  %v1234_v43 = vld [vmem:[%s17207_s7 + $0x1f20] sm:$0xff] }
 0x4f6   : > { %v1242_v25 = vld [vmem:[%s17207_s7 + $0x1f60] sm:$0xff]  ;;  %v1235_v44 = vld [vmem:[%s17207_s7 + $0x1f28] sm:$0xff] }
 0x4f7   : > { %v1243_v47 = vld [vmem:[%s17207_s7 + $0x1f68] sm:$0xff]  ;;  %v1250_v54 = vld [vmem:[%s17207_s7 + $0x1fa0] sm:$0xff] }
 0x4f8   : > { %13345 = vmatpush1.bf16.msra.mxu0 %v15556_v35  ;;  %13673 = vmatpush1.bf16.msra.mxu1 %v15558_v38  ;;  %v15636_v35 = vcombine.low %v1202_v11, %v1210_v13  ;;  %v15638_v38 = vcombine.low %v1203_v14, %v1211_v20  ;;  %v1258_v19 = vld [vmem:[%s17207_s7 + $0x1fe0] sm:$0xff]  ;;  %v1251_v56 = vld [vmem:[%s17207_s7 + $0x1fa8] sm:$0xff] }
 0x4f9   : > { %13346 = vmatprep.subr.bf16.mxu0 %v15573_v41  ;;  %13674 = vmatprep.subr.bf16.mxu1 %v15575_v42  ;;  %v15653_v41 = vcombine.high %v1218_v29, %v1226_v30  ;;  %v15655_v42 = vcombine.high %v1219_v49, %v1227_v32  ;;  %v1259_v60 = vld [vmem:[%s17207_s7 + $0x1fe8] sm:$0xff]  ;;  %v1266_v0 = vld [vmem:[%s17207_s7 + $0x2020] sm:$0xff] }
 0x4fa   : > { %v1274_v3 = vld [vmem:[%s17207_s7 + $0x2060] sm:$0xff]  ;;  %v1267_v4 = vld [vmem:[%s17207_s7 + $0x2028] sm:$0xff] }
 0x4fb   : > { %v1275_v5 = vld [vmem:[%s17207_s7 + $0x2068] sm:$0xff]  ;;  %v1282_v11 = vld [vmem:[%s17207_s7 + $0x20a0] sm:$0xff] }
 0x4fc   : > { %13347 = vmatpush1.bf16.msra.mxu0 %v15572_v48  ;;  %13675 = vmatpush1.bf16.msra.mxu1 %v15574_v50  ;;  %v15652_v48 = vcombine.low %v1218_v29, %v1226_v30  ;;  %v15654_v50 = vcombine.low %v1219_v49, %v1227_v32  ;;  %v1290_v13 = vld [vmem:[%s17207_s7 + $0x20e0] sm:$0xff]  ;;  %v1283_v14 = vld [vmem:[%s17207_s7 + $0x20a8] sm:$0xff] }
 0x4fd   : > { %13348 = vmatprep.subr.bf16.mxu0 %v15589_v51  ;;  %13676 = vmatprep.subr.bf16.mxu1 %v15591_v52  ;;  %v15669_v51 = vcombine.high %v1234_v43, %v1242_v25  ;;  %v15671_v52 = vcombine.high %v1235_v44, %v1243_v47  ;;  %v1291_v20 = vld [vmem:[%s17207_s7 + $0x20e8] sm:$0xff]  ;;  %v1298_v29 = vld [vmem:[%s17207_s7 + $0x2120] sm:$0xff] }
 0x4fe   : > { %v1306_v30 = vld [vmem:[%s17207_s7 + $0x2160] sm:$0xff]  ;;  %v1299_v49 = vld [vmem:[%s17207_s7 + $0x2128] sm:$0xff] }
 0x4ff   : > { %v1307_v32 = vld [vmem:[%s17207_s7 + $0x2168] sm:$0xff] }
 0x500   : > { %13349 = vmatpush1.bf16.msra.mxu0 %v15588_v61  ;;  %13677 = vmatpush1.bf16.msra.mxu1 %v15590_v62  ;;  %v15668_v61 = vcombine.low %v1234_v43, %v1242_v25  ;;  %v15670_v62 = vcombine.low %v1235_v44, %v1243_v47  ;;  %v1314_v43 = vld [vmem:[%s17207_s7 + $0x21a0] sm:$0xff]  ;;  %v1315_v44 = vld [vmem:[%s17207_s7 + $0x21a8] sm:$0xff] }
 0x501   : > { %13350 = vmatprep.subr.bf16.mxu0 %v15605_v63  ;;  %13678 = vmatprep.subr.bf16.mxu1 %v15607_v39  ;;  %v15685_v63 = vcombine.high %v1250_v54, %v1258_v19  ;;  %v15687_v39 = vcombine.high %v1251_v56, %v1259_v60  ;;  %v1322_v25 = vld [vmem:[%s17207_s7 + $0x21e0] sm:$0xff]  ;;  %v1323_v47 = vld [vmem:[%s17207_s7 + $0x21e8] sm:$0xff] }
 0x504   : > { %13351 = vmatpush1.bf16.msra.mxu0 %v15604_v6  ;;  %13679 = vmatpush1.bf16.msra.mxu1 %v15606_v7  ;;  %v15684_v6 = vcombine.low %v1250_v54, %v1258_v19  ;;  %v15686_v7 = vcombine.low %v1251_v56, %v1259_v60  ;;  %v1330_v54 = vld [vmem:[%s17207_s7 + $0x2220] sm:$0xff]  ;;  %v1331_v56 = vld [vmem:[%s17207_s7 + $0x2228] sm:$0xff] }
 0x505   : > { %13352 = vmatprep.subr.bf16.mxu0 %v15621_v8  ;;  %13680 = vmatprep.subr.bf16.mxu1 %v15623_v10  ;;  %v15701_v8 = vcombine.high %v1266_v0, %v1274_v3  ;;  %v15703_v10 = vcombine.high %v1267_v4, %v1275_v5  ;;  %v1338_v19 = vld [vmem:[%s17207_s7 + $0x2260] sm:$0xff]  ;;  %v1339_v60 = vld [vmem:[%s17207_s7 + $0x2268] sm:$0xff] }
 0x508   : > { %13353 = vmatpush1.bf16.msra.mxu0 %v15620_v24  ;;  %13681 = vmatpush1.bf16.msra.mxu1 %v15622_v59  ;;  %v15700_v24 = vcombine.low %v1266_v0, %v1274_v3  ;;  %v15702_v59 = vcombine.low %v1267_v4, %v1275_v5  ;;  %v1346_v0 = vld [vmem:[%s17207_s7 + $0x22a0] sm:$0xff]  ;;  %v1347_v4 = vld [vmem:[%s17207_s7 + $0x22a8] sm:$0xff] }
 0x509   : > { %13354 = vmatprep.subr.bf16.mxu0 %v15637_v26  ;;  %13682 = vmatprep.subr.bf16.mxu1 %v15639_v28  ;;  %v15717_v26 = vcombine.high %v1282_v11, %v1290_v13  ;;  %v15719_v28 = vcombine.high %v1283_v14, %v1291_v20  ;;  %v1354_v3 = vld [vmem:[%s17207_s7 + $0x22e0] sm:$0xff]  ;;  %v1355_v5 = vld [vmem:[%s17207_s7 + $0x22e8] sm:$0xff] }
 0x50c   : > { %13355 = vmatpush1.bf16.msra.mxu0 %v15636_v35  ;;  %13683 = vmatpush1.bf16.msra.mxu1 %v15638_v38  ;;  %v15716_v35 = vcombine.low %v1282_v11, %v1290_v13  ;;  %v15718_v38 = vcombine.low %v1283_v14, %v1291_v20  ;;  %v1362_v11 = vld [vmem:[%s17207_s7 + $0x2320] sm:$0xff]  ;;  %v1363_v14 = vld [vmem:[%s17207_s7 + $0x2328] sm:$0xff] }
 0x50d   : > { %13356 = vmatprep.subr.bf16.mxu0 %v15653_v41  ;;  %13684 = vmatprep.subr.bf16.mxu1 %v15655_v42  ;;  %v15733_v41 = vcombine.high %v1298_v29, %v1306_v30  ;;  %v15735_v42 = vcombine.high %v1299_v49, %v1307_v32  ;;  %v1370_v13 = vld [vmem:[%s17207_s7 + $0x2360] sm:$0xff]  ;;  %v1371_v20 = vld [vmem:[%s17207_s7 + $0x2368] sm:$0xff] }
 0x510   : > { %13357 = vmatpush1.bf16.msra.mxu0 %v15652_v48  ;;  %13685 = vmatpush1.bf16.msra.mxu1 %v15654_v50  ;;  %v15732_v48 = vcombine.low %v1298_v29, %v1306_v30  ;;  %v15734_v50 = vcombine.low %v1299_v49, %v1307_v32  ;;  %v1378_v29 = vld [vmem:[%s17207_s7 + $0x23a0] sm:$0xff]  ;;  %v1379_v49 = vld [vmem:[%s17207_s7 + $0x23a8] sm:$0xff] }
 0x511   : > { %13358 = vmatprep.subr.bf16.mxu0 %v15669_v51  ;;  %13686 = vmatprep.subr.bf16.mxu1 %v15671_v52  ;;  %v15749_v51 = vcombine.high %v1314_v43, %v1322_v25  ;;  %v15751_v52 = vcombine.high %v1315_v44, %v1323_v47  ;;  %v1386_v30 = vld [vmem:[%s17207_s7 + $0x23e0] sm:$0xff]  ;;  %v1387_v32 = vld [vmem:[%s17207_s7 + $0x23e8] sm:$0xff] }
 0x514   : > { %13359 = vmatpush1.bf16.msra.mxu0 %v15668_v61  ;;  %13687 = vmatpush1.bf16.msra.mxu1 %v15670_v62  ;;  %v15748_v61 = vcombine.low %v1314_v43, %v1322_v25  ;;  %v15750_v62 = vcombine.low %v1315_v44, %v1323_v47  ;;  %v1394_v43 = vld [vmem:[%s17207_s7 + $0x2420] sm:$0xff]  ;;  %v1395_v44 = vld [vmem:[%s17207_s7 + $0x2428] sm:$0xff] }
 0x515   : > { %13360 = vmatprep.subr.bf16.mxu0 %v15685_v63  ;;  %13688 = vmatprep.subr.bf16.mxu1 %v15687_v39  ;;  %v15765_v63 = vcombine.high %v1330_v54, %v1338_v19  ;;  %v15767_v39 = vcombine.high %v1331_v56, %v1339_v60  ;;  %v1402_v25 = vld [vmem:[%s17207_s7 + $0x2460] sm:$0xff]  ;;  %v1403_v47 = vld [vmem:[%s17207_s7 + $0x2468] sm:$0xff] }
 0x518   : > { %13361 = vmatpush1.bf16.msra.mxu0 %v15684_v6  ;;  %13689 = vmatpush1.bf16.msra.mxu1 %v15686_v7  ;;  %v15764_v6 = vcombine.low %v1330_v54, %v1338_v19  ;;  %v15766_v7 = vcombine.low %v1331_v56, %v1339_v60  ;;  %v1410_v54 = vld [vmem:[%s17207_s7 + $0x24a0] sm:$0xff]  ;;  %v1411_v56 = vld [vmem:[%s17207_s7 + $0x24a8] sm:$0xff] }
 0x519   : > { %13371 = vmatprep.subr.bf16.mxu0 %v15701_v8  ;;  %13699 = vmatprep.subr.bf16.mxu1 %v15703_v10  ;;  %v15781_v8 = vcombine.high %v1346_v0, %v1354_v3  ;;  %v15783_v10 = vcombine.high %v1347_v4, %v1355_v5  ;;  %v1418_v19 = vld [vmem:[%s17207_s7 + $0x24e0] sm:$0xff]  ;;  %v1419_v60 = vld [vmem:[%s17207_s7 + $0x24e8] sm:$0xff] }
 0x51b   : > { %13363 = vmatmul.mubr.bf16.vlgmr.msra.gmra.mrb[8].mxu0 %v17547_v55  ;;  %13691 = vmatmul.mubr.bf16.vlgmr.msra.gmra.mrb[8].mxu1 %v17547_v55 }
 0x51c   : > { %13372 = vmatpush1.bf16.msra.mxu0 %v15700_v24  ;;  %13700 = vmatpush1.bf16.msra.mxu1 %v15702_v59  ;;  %v15780_v24 = vcombine.low %v1346_v0, %v1354_v3  ;;  %v15782_v59 = vcombine.low %v1347_v4, %v1355_v5  ;;  %v1426_v0 = vld [vmem:[%s17207_s7 + $0x2520] sm:$0xff]  ;;  %v1427_v4 = vld [vmem:[%s17207_s7 + $0x2528] sm:$0xff] }
 0x51d   : > { %13373 = vmatprep.subr.bf16.mxu0 %v15717_v26  ;;  %13701 = vmatprep.subr.bf16.mxu1 %v15719_v28  ;;  %v15797_v26 = vcombine.high %v1362_v11, %v1370_v13  ;;  %v15799_v28 = vcombine.high %v1363_v14, %v1371_v20  ;;  %v1434_v3 = vld [vmem:[%s17207_s7 + $0x2560] sm:$0xff]  ;;  %v1435_v5 = vld [vmem:[%s17207_s7 + $0x2568] sm:$0xff] }
 0x51e   : > { %13403 = vmatprep.mubr.bf16.mxu0 %v17560_v1  ;;  %13731 = vmatprep.mubr.bf16.mxu1 %v17560_v1 }
 0x520   : > { %13374 = vmatpush1.bf16.msra.mxu0 %v15716_v35  ;;  %13702 = vmatpush1.bf16.msra.mxu1 %v15718_v38  ;;  %v15796_v35 = vcombine.low %v1362_v11, %v1370_v13  ;;  %v15798_v38 = vcombine.low %v1363_v14, %v1371_v20  ;;  %v1442_v11 = vld [vmem:[%s17207_s7 + $0x25a0] sm:$0xff]  ;;  %v1443_v14 = vld [vmem:[%s17207_s7 + $0x25a8] sm:$0xff] }
 0x521   : > { %13375 = vmatprep.subr.bf16.mxu0 %v15733_v41  ;;  %13703 = vmatprep.subr.bf16.mxu1 %v15735_v42  ;;  %v15813_v41 = vcombine.high %v1378_v29, %v1386_v30  ;;  %v15815_v42 = vcombine.high %v1379_v49, %v1387_v32  ;;  %v1450_v13 = vld [vmem:[%s17207_s7 + $0x25e0] sm:$0xff]  ;;  %v1451_v20 = vld [vmem:[%s17207_s7 + $0x25e8] sm:$0xff] }
 0x524   : > { %13376 = vmatpush1.bf16.msra.mxu0 %v15732_v48  ;;  %13704 = vmatpush1.bf16.msra.mxu1 %v15734_v50  ;;  %v15812_v48 = vcombine.low %v1378_v29, %v1386_v30  ;;  %v15814_v50 = vcombine.low %v1379_v49, %v1387_v32  ;;  %v1458_v29 = vld [vmem:[%s17207_s7 + $0x2620] sm:$0xff]  ;;  %v1459_v49 = vld [vmem:[%s17207_s7 + $0x2628] sm:$0xff] }
 0x525   : > { %13377 = vmatprep.subr.bf16.mxu0 %v15749_v51  ;;  %13705 = vmatprep.subr.bf16.mxu1 %v15751_v52  ;;  %v15829_v51 = vcombine.high %v1394_v43, %v1402_v25  ;;  %v15831_v52 = vcombine.high %v1395_v44, %v1403_v47  ;;  %v1466_v30 = vld [vmem:[%s17207_s7 + $0x2660] sm:$0xff]  ;;  %v1467_v32 = vld [vmem:[%s17207_s7 + $0x2668] sm:$0xff] }
 0x528   : > { %13378 = vmatpush1.bf16.msra.mxu0 %v15748_v61  ;;  %13706 = vmatpush1.bf16.msra.mxu1 %v15750_v62  ;;  %v15828_v61 = vcombine.low %v1394_v43, %v1402_v25  ;;  %v15830_v62 = vcombine.low %v1395_v44, %v1403_v47  ;;  %v1474_v43 = vld [vmem:[%s17207_s7 + $0x26a0] sm:$0xff]  ;;  %v1475_v44 = vld [vmem:[%s17207_s7 + $0x26a8] sm:$0xff] }
 0x529   : > { %13379 = vmatprep.subr.bf16.mxu0 %v15765_v63  ;;  %13707 = vmatprep.subr.bf16.mxu1 %v15767_v39  ;;  %v15845_v63 = vcombine.high %v1410_v54, %v1418_v19  ;;  %v15847_v39 = vcombine.high %v1411_v56, %v1419_v60  ;;  %v1482_v25 = vld [vmem:[%s17207_s7 + $0x26e0] sm:$0xff]  ;;  %v1483_v47 = vld [vmem:[%s17207_s7 + $0x26e8] sm:$0xff] }
 0x52c   : > { %13380 = vmatpush1.bf16.msra.mxu0 %v15764_v6  ;;  %13708 = vmatpush1.bf16.msra.mxu1 %v15766_v7  ;;  %v15844_v6 = vcombine.low %v1410_v54, %v1418_v19  ;;  %v15846_v7 = vcombine.low %v1411_v56, %v1419_v60  ;;  %v1490_v54 = vld [vmem:[%s17207_s7 + $0x2720] sm:$0xff]  ;;  %v1491_v56 = vld [vmem:[%s17207_s7 + $0x2728] sm:$0xff] }
 0x52d   : > { %13381 = vmatprep.subr.bf16.mxu0 %v15781_v8  ;;  %13709 = vmatprep.subr.bf16.mxu1 %v15783_v10  ;;  %v15861_v8 = vcombine.high %v1426_v0, %v1434_v3  ;;  %v15863_v10 = vcombine.high %v1427_v4, %v1435_v5  ;;  %v1498_v19 = vld [vmem:[%s17207_s7 + $0x2760] sm:$0xff]  ;;  %v1499_v60 = vld [vmem:[%s17207_s7 + $0x2768] sm:$0xff] }
 0x530   : > { %13382 = vmatpush1.bf16.msra.mxu0 %v15780_v24  ;;  %13710 = vmatpush1.bf16.msra.mxu1 %v15782_v59  ;;  %v15860_v24 = vcombine.low %v1426_v0, %v1434_v3  ;;  %v15862_v59 = vcombine.low %v1427_v4, %v1435_v5  ;;  %v1506_v0 = vld [vmem:[%s17207_s7 + $0x27a0] sm:$0xff]  ;;  %v1507_v4 = vld [vmem:[%s17207_s7 + $0x27a8] sm:$0xff] }
 0x531   : > { %13383 = vmatprep.subr.bf16.mxu0 %v15797_v26  ;;  %13711 = vmatprep.subr.bf16.mxu1 %v15799_v28  ;;  %v15877_v26 = vcombine.high %v1442_v11, %v1450_v13  ;;  %v15879_v28 = vcombine.high %v1443_v14, %v1451_v20  ;;  %v1514_v3 = vld [vmem:[%s17207_s7 + $0x27e0] sm:$0xff]  ;;  %v1515_v5 = vld [vmem:[%s17207_s7 + $0x27e8] sm:$0xff] }
 0x534   : > { %13384 = vmatpush1.bf16.msra.mxu0 %v15796_v35  ;;  %13712 = vmatpush1.bf16.msra.mxu1 %v15798_v38  ;;  %v15876_v35 = vcombine.low %v1442_v11, %v1450_v13  ;;  %v15878_v38 = vcombine.low %v1443_v14, %v1451_v20  ;;  %v1522_v11 = vld [vmem:[%s17207_s7 + $0x2820] sm:$0xff]  ;;  %v1523_v14 = vld [vmem:[%s17207_s7 + $0x2828] sm:$0xff] }
 0x535   : > { %13385 = vmatprep.subr.bf16.mxu0 %v15813_v41  ;;  %13713 = vmatprep.subr.bf16.mxu1 %v15815_v42  ;;  %v15893_v41 = vcombine.high %v1458_v29, %v1466_v30  ;;  %v15895_v42 = vcombine.high %v1459_v49, %v1467_v32  ;;  %v1530_v13 = vld [vmem:[%s17207_s7 + $0x2860] sm:$0xff]  ;;  %v1531_v20 = vld [vmem:[%s17207_s7 + $0x2868] sm:$0xff] }
 0x538   : > { %13386 = vmatpush1.bf16.msra.mxu0 %v15812_v48  ;;  %13714 = vmatpush1.bf16.msra.mxu1 %v15814_v50  ;;  %v15892_v48 = vcombine.low %v1458_v29, %v1466_v30  ;;  %v15894_v50 = vcombine.low %v1459_v49, %v1467_v32  ;;  %v1538_v29 = vld [vmem:[%s17207_s7 + $0x28a0] sm:$0xff]  ;;  %v1539_v49 = vld [vmem:[%s17207_s7 + $0x28a8] sm:$0xff] }
 0x539   : > { %13387 = vmatprep.subr.bf16.mxu0 %v15829_v51  ;;  %13715 = vmatprep.subr.bf16.mxu1 %v15831_v52  ;;  %v15909_v51 = vcombine.high %v1474_v43, %v1482_v25  ;;  %v15911_v52 = vcombine.high %v1475_v44, %v1483_v47  ;;  %v1546_v30 = vld [vmem:[%s17207_s7 + $0x28e0] sm:$0xff]  ;;  %v1547_v32 = vld [vmem:[%s17207_s7 + $0x28e8] sm:$0xff] }
 0x53c   : > { %13388 = vmatpush1.bf16.msra.mxu0 %v15828_v61  ;;  %13716 = vmatpush1.bf16.msra.mxu1 %v15830_v62  ;;  %v15908_v61 = vcombine.low %v1474_v43, %v1482_v25  ;;  %v15910_v62 = vcombine.low %v1475_v44, %v1483_v47  ;;  %v1554_v43 = vld [vmem:[%s17207_s7 + $0x2920] sm:$0xff]  ;;  %v1555_v44 = vld [vmem:[%s17207_s7 + $0x2928] sm:$0xff] }
 0x53d   : > { %13389 = vmatprep.subr.bf16.mxu0 %v15845_v63  ;;  %13717 = vmatprep.subr.bf16.mxu1 %v15847_v39  ;;  %v15925_v63 = vcombine.high %v1490_v54, %v1498_v19  ;;  %v15927_v39 = vcombine.high %v1491_v56, %v1499_v60  ;;  %v1562_v25 = vld [vmem:[%s17207_s7 + $0x2960] sm:$0xff]  ;;  %v1563_v47 = vld [vmem:[%s17207_s7 + $0x2968] sm:$0xff] }
 0x540   : > { %13390 = vmatpush1.bf16.msra.mxu0 %v15844_v6  ;;  %13718 = vmatpush1.bf16.msra.mxu1 %v15846_v7  ;;  %v15924_v6 = vcombine.low %v1490_v54, %v1498_v19  ;;  %v15926_v7 = vcombine.low %v1491_v56, %v1499_v60  ;;  %v1570_v54 = vld [vmem:[%s17207_s7 + $0x29a0] sm:$0xff]  ;;  %v1571_v56 = vld [vmem:[%s17207_s7 + $0x29a8] sm:$0xff] }
 0x541   : > { %13391 = vmatprep.subr.bf16.mxu0 %v15861_v8  ;;  %13719 = vmatprep.subr.bf16.mxu1 %v15863_v10  ;;  %v15941_v8 = vcombine.high %v1506_v0, %v1514_v3  ;;  %v15943_v10 = vcombine.high %v1507_v4, %v1515_v5  ;;  %v1578_v19 = vld [vmem:[%s17207_s7 + $0x29e0] sm:$0xff]  ;;  %v1579_v60 = vld [vmem:[%s17207_s7 + $0x29e8] sm:$0xff] }
 0x544   : > { %13392 = vmatpush1.bf16.msra.mxu0 %v15860_v24  ;;  %13720 = vmatpush1.bf16.msra.mxu1 %v15862_v59  ;;  %v15940_v24 = vcombine.low %v1506_v0, %v1514_v3  ;;  %v15942_v59 = vcombine.low %v1507_v4, %v1515_v5  ;;  %v1586_v0 = vld [vmem:[%s17207_s7 + $0x2a20] sm:$0xff]  ;;  %v1587_v4 = vld [vmem:[%s17207_s7 + $0x2a28] sm:$0xff] }
 0x545   : > { %13393 = vmatprep.subr.bf16.mxu0 %v15877_v26  ;;  %13721 = vmatprep.subr.bf16.mxu1 %v15879_v28  ;;  %v15957_v26 = vcombine.high %v1522_v11, %v1530_v13  ;;  %v15959_v28 = vcombine.high %v1523_v14, %v1531_v20  ;;  %v1594_v3 = vld [vmem:[%s17207_s7 + $0x2a60] sm:$0xff]  ;;  %v1595_v5 = vld [vmem:[%s17207_s7 + $0x2a68] sm:$0xff] }
 0x548   : > { %13394 = vmatpush1.bf16.msra.mxu0 %v15876_v35  ;;  %13722 = vmatpush1.bf16.msra.mxu1 %v15878_v38  ;;  %v15956_v35 = vcombine.low %v1522_v11, %v1530_v13  ;;  %v15958_v38 = vcombine.low %v1523_v14, %v1531_v20  ;;  %v1602_v11 = vld [vmem:[%s17207_s7 + $0x2aa0] sm:$0xff]  ;;  %v1603_v14 = vld [vmem:[%s17207_s7 + $0x2aa8] sm:$0xff] }
 0x549   : > { %13395 = vmatprep.subr.bf16.mxu0 %v15893_v41  ;;  %13723 = vmatprep.subr.bf16.mxu1 %v15895_v42  ;;  %v15973_v41 = vcombine.high %v1538_v29, %v1546_v30  ;;  %v15975_v42 = vcombine.high %v1539_v49, %v1547_v32  ;;  %v1610_v13 = vld [vmem:[%s17207_s7 + $0x2ae0] sm:$0xff]  ;;  %v1611_v20 = vld [vmem:[%s17207_s7 + $0x2ae8] sm:$0xff] }
 0x54c   : > { %13396 = vmatpush1.bf16.msra.mxu0 %v15892_v48  ;;  %13724 = vmatpush1.bf16.msra.mxu1 %v15894_v50  ;;  %v15972_v48 = vcombine.low %v1538_v29, %v1546_v30  ;;  %v15974_v50 = vcombine.low %v1539_v49, %v1547_v32  ;;  %v1618_v29 = vld [vmem:[%s17207_s7 + $0x2b20] sm:$0xff]  ;;  %v1619_v49 = vld [vmem:[%s17207_s7 + $0x2b28] sm:$0xff] }
 0x54d   : > { %13397 = vmatprep.subr.bf16.mxu0 %v15909_v51  ;;  %13725 = vmatprep.subr.bf16.mxu1 %v15911_v52  ;;  %v15989_v51 = vcombine.high %v1554_v43, %v1562_v25  ;;  %v15991_v52 = vcombine.high %v1555_v44, %v1563_v47  ;;  %v1626_v30 = vld [vmem:[%s17207_s7 + $0x2b60] sm:$0xff]  ;;  %v1627_v32 = vld [vmem:[%s17207_s7 + $0x2b68] sm:$0xff] }
 0x550   : > { %13398 = vmatpush1.bf16.msra.mxu0 %v15908_v61  ;;  %13726 = vmatpush1.bf16.msra.mxu1 %v15910_v62  ;;  %v15988_v61 = vcombine.low %v1554_v43, %v1562_v25  ;;  %v15990_v62 = vcombine.low %v1555_v44, %v1563_v47  ;;  %v1634_v43 = vld [vmem:[%s17207_s7 + $0x2ba0] sm:$0xff]  ;;  %v1635_v44 = vld [vmem:[%s17207_s7 + $0x2ba8] sm:$0xff] }
 0x551   : > { %13399 = vmatprep.subr.bf16.mxu0 %v15925_v63  ;;  %13727 = vmatprep.subr.bf16.mxu1 %v15927_v39  ;;  %v16005_v63 = vcombine.high %v1570_v54, %v1578_v19  ;;  %v16007_v39 = vcombine.high %v1571_v56, %v1579_v60  ;;  %v1642_v25 = vld [vmem:[%s17207_s7 + $0x2be0] sm:$0xff]  ;;  %v1643_v47 = vld [vmem:[%s17207_s7 + $0x2be8] sm:$0xff] }
 0x554   : > { %13400 = vmatpush1.bf16.msra.mxu0 %v15924_v6  ;;  %13728 = vmatpush1.bf16.msra.mxu1 %v15926_v7  ;;  %v16004_v6 = vcombine.low %v1570_v54, %v1578_v19  ;;  %v16006_v7 = vcombine.low %v1571_v56, %v1579_v60  ;;  %v1650_v54 = vld [vmem:[%s17207_s7 + $0x2c20] sm:$0xff]  ;;  %v1651_v56 = vld [vmem:[%s17207_s7 + $0x2c28] sm:$0xff] }
 0x555   : > { %13401 = vmatprep.subr.bf16.mxu0 %v15941_v8  ;;  %13729 = vmatprep.subr.bf16.mxu1 %v15943_v10  ;;  %v16021_v8 = vcombine.high %v1586_v0, %v1594_v3  ;;  %v16023_v10 = vcombine.high %v1587_v4, %v1595_v5  ;;  %v1658_v19 = vld [vmem:[%s17207_s7 + $0x2c60] sm:$0xff]  ;;  %v1659_v60 = vld [vmem:[%s17207_s7 + $0x2c68] sm:$0xff] }
 0x558   : > { %13402 = vmatpush1.bf16.msra.mxu0 %v15940_v24  ;;  %13730 = vmatpush1.bf16.msra.mxu1 %v15942_v59  ;;  %v16020_v24 = vcombine.low %v1586_v0, %v1594_v3  ;;  %v16022_v59 = vcombine.low %v1587_v4, %v1595_v5  ;;  %v1666_v0 = vld [vmem:[%s17207_s7 + $0x2ca0] sm:$0xff]  ;;  %v1667_v4 = vld [vmem:[%s17207_s7 + $0x2ca8] sm:$0xff] }
 0x559   : > { %13412 = vmatprep.subr.bf16.mxu0 %v15957_v26  ;;  %13740 = vmatprep.subr.bf16.mxu1 %v15959_v28  ;;  %v16037_v26 = vcombine.high %v1602_v11, %v1610_v13  ;;  %v16039_v28 = vcombine.high %v1603_v14, %v1611_v20  ;;  %v1674_v3 = vld [vmem:[%s17207_s7 + $0x2ce0] sm:$0xff]  ;;  %v1675_v5 = vld [vmem:[%s17207_s7 + $0x2ce8] sm:$0xff] }
 0x55b   : > { %13404 = vmatmul.mubr.bf16.vlgmr.msra.gmra.mrb[8].mxu0 %v17628_v16  ;;  %13732 = vmatmul.mubr.bf16.vlgmr.msra.gmra.mrb[8].mxu1 %v17628_v16 }
 0x55c   : > { %13413 = vmatpush1.bf16.msra.mxu0 %v15956_v35  ;;  %13741 = vmatpush1.bf16.msra.mxu1 %v15958_v38  ;;  %v16036_v35 = vcombine.low %v1602_v11, %v1610_v13  ;;  %v16038_v38 = vcombine.low %v1603_v14, %v1611_v20  ;;  %v1682_v11 = vld [vmem:[%s17207_s7 + $0x2d20] sm:$0xff]  ;;  %v1683_v14 = vld [vmem:[%s17207_s7 + $0x2d28] sm:$0xff] }
 0x55d   : > { %13414 = vmatprep.subr.bf16.mxu0 %v15973_v41  ;;  %13742 = vmatprep.subr.bf16.mxu1 %v15975_v42  ;;  %v16053_v41 = vcombine.high %v1618_v29, %v1626_v30  ;;  %v16055_v42 = vcombine.high %v1619_v49, %v1627_v32  ;;  %v1690_v13 = vld [vmem:[%s17207_s7 + $0x2d60] sm:$0xff]  ;;  %v1691_v20 = vld [vmem:[%s17207_s7 + $0x2d68] sm:$0xff] }
 0x55e   : > { %13444 = vmatprep.mubr.bf16.mxu0 %v17641_v27  ;;  %13772 = vmatprep.mubr.bf16.mxu1 %v17641_v27 }
 0x560   : > { %13415 = vmatpush1.bf16.msra.mxu0 %v15972_v48  ;;  %13743 = vmatpush1.bf16.msra.mxu1 %v15974_v50  ;;  %v16052_v48 = vcombine.low %v1618_v29, %v1626_v30  ;;  %v16054_v50 = vcombine.low %v1619_v49, %v1627_v32  ;;  %v1698_v29 = vld [vmem:[%s17207_s7 + $0x2da0] sm:$0xff]  ;;  %v1699_v49 = vld [vmem:[%s17207_s7 + $0x2da8] sm:$0xff] }
 0x561   : > { %13416 = vmatprep.subr.bf16.mxu0 %v15989_v51  ;;  %13744 = vmatprep.subr.bf16.mxu1 %v15991_v52  ;;  %v16069_v51 = vcombine.high %v1634_v43, %v1642_v25  ;;  %v16071_v52 = vcombine.high %v1635_v44, %v1643_v47  ;;  %v1706_v30 = vld [vmem:[%s17207_s7 + $0x2de0] sm:$0xff]  ;;  %v1707_v32 = vld [vmem:[%s17207_s7 + $0x2de8] sm:$0xff] }
 0x564   : > { %13417 = vmatpush1.bf16.msra.mxu0 %v15988_v61  ;;  %13745 = vmatpush1.bf16.msra.mxu1 %v15990_v62  ;;  %v16068_v61 = vcombine.low %v1634_v43, %v1642_v25  ;;  %v16070_v62 = vcombine.low %v1635_v44, %v1643_v47  ;;  %v1714_v43 = vld [vmem:[%s17207_s7 + $0x2e20] sm:$0xff]  ;;  %v1715_v44 = vld [vmem:[%s17207_s7 + $0x2e28] sm:$0xff] }
 0x565   : > { %13418 = vmatprep.subr.bf16.mxu0 %v16005_v63  ;;  %13746 = vmatprep.subr.bf16.mxu1 %v16007_v39  ;;  %v16085_v63 = vcombine.high %v1650_v54, %v1658_v19  ;;  %v16087_v39 = vcombine.high %v1651_v56, %v1659_v60  ;;  %v1722_v25 = vld [vmem:[%s17207_s7 + $0x2e60] sm:$0xff]  ;;  %v1723_v47 = vld [vmem:[%s17207_s7 + $0x2e68] sm:$0xff] }
 0x568   : > { %13419 = vmatpush1.bf16.msra.mxu0 %v16004_v6  ;;  %13747 = vmatpush1.bf16.msra.mxu1 %v16006_v7  ;;  %v16084_v6 = vcombine.low %v1650_v54, %v1658_v19  ;;  %v16086_v7 = vcombine.low %v1651_v56, %v1659_v60  ;;  %v1730_v54 = vld [vmem:[%s17207_s7 + $0x2ea0] sm:$0xff]  ;;  %v1731_v56 = vld [vmem:[%s17207_s7 + $0x2ea8] sm:$0xff] }
 0x569   : > { %13420 = vmatprep.subr.bf16.mxu0 %v16021_v8  ;;  %13748 = vmatprep.subr.bf16.mxu1 %v16023_v10  ;;  %v16101_v8 = vcombine.high %v1666_v0, %v1674_v3  ;;  %v16103_v10 = vcombine.high %v1667_v4, %v1675_v5  ;;  %v1738_v19 = vld [vmem:[%s17207_s7 + $0x2ee0] sm:$0xff]  ;;  %v1739_v60 = vld [vmem:[%s17207_s7 + $0x2ee8] sm:$0xff] }
 0x56c   : > { %13421 = vmatpush1.bf16.msra.mxu0 %v16020_v24  ;;  %13749 = vmatpush1.bf16.msra.mxu1 %v16022_v59  ;;  %v16100_v24 = vcombine.low %v1666_v0, %v1674_v3  ;;  %v16102_v59 = vcombine.low %v1667_v4, %v1675_v5  ;;  %v1746_v0 = vld [vmem:[%s17207_s7 + $0x2f20] sm:$0xff]  ;;  %v1747_v4 = vld [vmem:[%s17207_s7 + $0x2f28] sm:$0xff] }
 0x56d   : > { %13422 = vmatprep.subr.bf16.mxu0 %v16037_v26  ;;  %13750 = vmatprep.subr.bf16.mxu1 %v16039_v28  ;;  %v16117_v26 = vcombine.high %v1682_v11, %v1690_v13  ;;  %v16119_v28 = vcombine.high %v1683_v14, %v1691_v20  ;;  %v1754_v3 = vld [vmem:[%s17207_s7 + $0x2f60] sm:$0xff]  ;;  %v1755_v5 = vld [vmem:[%s17207_s7 + $0x2f68] sm:$0xff] }
 0x570   : > { %13423 = vmatpush1.bf16.msra.mxu0 %v16036_v35  ;;  %13751 = vmatpush1.bf16.msra.mxu1 %v16038_v38  ;;  %v16116_v35 = vcombine.low %v1682_v11, %v1690_v13  ;;  %v16118_v38 = vcombine.low %v1683_v14, %v1691_v20  ;;  %v1762_v11 = vld [vmem:[%s17207_s7 + $0x2fa0] sm:$0xff]  ;;  %v1763_v14 = vld [vmem:[%s17207_s7 + $0x2fa8] sm:$0xff] }
 0x571   : > { %13424 = vmatprep.subr.bf16.mxu0 %v16053_v41  ;;  %13752 = vmatprep.subr.bf16.mxu1 %v16055_v42  ;;  %v16133_v41 = vcombine.high %v1698_v29, %v1706_v30  ;;  %v16135_v42 = vcombine.high %v1699_v49, %v1707_v32  ;;  %v1770_v13 = vld [vmem:[%s17207_s7 + $0x2fe0] sm:$0xff]  ;;  %v1771_v20 = vld [vmem:[%s17207_s7 + $0x2fe8] sm:$0xff] }
 0x574   : > { %13425 = vmatpush1.bf16.msra.mxu0 %v16052_v48  ;;  %13753 = vmatpush1.bf16.msra.mxu1 %v16054_v50  ;;  %v16132_v48 = vcombine.low %v1698_v29, %v1706_v30  ;;  %v16134_v50 = vcombine.low %v1699_v49, %v1707_v32  ;;  %v1778_v29 = vld [vmem:[%s17207_s7 + $0x3020] sm:$0xff]  ;;  %v1779_v49 = vld [vmem:[%s17207_s7 + $0x3028] sm:$0xff] }
 0x575   : > { %13426 = vmatprep.subr.bf16.mxu0 %v16069_v51  ;;  %13754 = vmatprep.subr.bf16.mxu1 %v16071_v52  ;;  %v16149_v51 = vcombine.high %v1714_v43, %v1722_v25  ;;  %v16151_v52 = vcombine.high %v1715_v44, %v1723_v47  ;;  %v1786_v30 = vld [vmem:[%s17207_s7 + $0x3060] sm:$0xff]  ;;  %v1787_v32 = vld [vmem:[%s17207_s7 + $0x3068] sm:$0xff] }
 0x578   : > { %13427 = vmatpush1.bf16.msra.mxu0 %v16068_v61  ;;  %13755 = vmatpush1.bf16.msra.mxu1 %v16070_v62  ;;  %v16148_v61 = vcombine.low %v1714_v43, %v1722_v25  ;;  %v16150_v62 = vcombine.low %v1715_v44, %v1723_v47  ;;  %v1794_v43 = vld [vmem:[%s17207_s7 + $0x30a0] sm:$0xff]  ;;  %v1795_v44 = vld [vmem:[%s17207_s7 + $0x30a8] sm:$0xff] }
 0x579   : > { %13428 = vmatprep.subr.bf16.mxu0 %v16085_v63  ;;  %13756 = vmatprep.subr.bf16.mxu1 %v16087_v39  ;;  %v16165_v63 = vcombine.high %v1730_v54, %v1738_v19  ;;  %v16167_v39 = vcombine.high %v1731_v56, %v1739_v60  ;;  %v1802_v25 = vld [vmem:[%s17207_s7 + $0x30e0] sm:$0xff]  ;;  %v1803_v47 = vld [vmem:[%s17207_s7 + $0x30e8] sm:$0xff] }
 0x57c   : > { %13429 = vmatpush1.bf16.msra.mxu0 %v16084_v6  ;;  %13757 = vmatpush1.bf16.msra.mxu1 %v16086_v7  ;;  %v16164_v6 = vcombine.low %v1730_v54, %v1738_v19  ;;  %v16166_v7 = vcombine.low %v1731_v56, %v1739_v60  ;;  %v1810_v54 = vld [vmem:[%s17207_s7 + $0x3120] sm:$0xff]  ;;  %v1811_v56 = vld [vmem:[%s17207_s7 + $0x3128] sm:$0xff] }
 0x57d   : > { %13430 = vmatprep.subr.bf16.mxu0 %v16101_v8  ;;  %13758 = vmatprep.subr.bf16.mxu1 %v16103_v10  ;;  %v16181_v8 = vcombine.high %v1746_v0, %v1754_v3  ;;  %v16183_v10 = vcombine.high %v1747_v4, %v1755_v5  ;;  %v1818_v19 = vld [vmem:[%s17207_s7 + $0x3160] sm:$0xff]  ;;  %v1819_v60 = vld [vmem:[%s17207_s7 + $0x3168] sm:$0xff] }
 0x580   : > { %13431 = vmatpush1.bf16.msra.mxu0 %v16100_v24  ;;  %13759 = vmatpush1.bf16.msra.mxu1 %v16102_v59  ;;  %v16180_v24 = vcombine.low %v1746_v0, %v1754_v3  ;;  %v16182_v59 = vcombine.low %v1747_v4, %v1755_v5  ;;  %v1826_v0 = vld [vmem:[%s17207_s7 + $0x31a0] sm:$0xff]  ;;  %v1827_v4 = vld [vmem:[%s17207_s7 + $0x31a8] sm:$0xff] }
 0x581   : > { %13432 = vmatprep.subr.bf16.mxu0 %v16117_v26  ;;  %13760 = vmatprep.subr.bf16.mxu1 %v16119_v28  ;;  %v16197_v26 = vcombine.high %v1762_v11, %v1770_v13  ;;  %v16199_v28 = vcombine.high %v1763_v14, %v1771_v20  ;;  %v1834_v3 = vld [vmem:[%s17207_s7 + $0x31e0] sm:$0xff]  ;;  %v1835_v5 = vld [vmem:[%s17207_s7 + $0x31e8] sm:$0xff] }
 0x584   : > { %13433 = vmatpush1.bf16.msra.mxu0 %v16116_v35  ;;  %13761 = vmatpush1.bf16.msra.mxu1 %v16118_v38  ;;  %v16196_v35 = vcombine.low %v1762_v11, %v1770_v13  ;;  %v16198_v38 = vcombine.low %v1763_v14, %v1771_v20  ;;  %v1842_v11 = vld [vmem:[%s17207_s7 + $0x3220] sm:$0xff]  ;;  %v1843_v14 = vld [vmem:[%s17207_s7 + $0x3228] sm:$0xff] }
 0x585   : > { %13434 = vmatprep.subr.bf16.mxu0 %v16133_v41  ;;  %13762 = vmatprep.subr.bf16.mxu1 %v16135_v42  ;;  %v16213_v41 = vcombine.high %v1778_v29, %v1786_v30  ;;  %v16215_v42 = vcombine.high %v1779_v49, %v1787_v32  ;;  %v1850_v13 = vld [vmem:[%s17207_s7 + $0x3260] sm:$0xff]  ;;  %v1851_v20 = vld [vmem:[%s17207_s7 + $0x3268] sm:$0xff] }
 0x588   : > { %13435 = vmatpush1.bf16.msra.mxu0 %v16132_v48  ;;  %13763 = vmatpush1.bf16.msra.mxu1 %v16134_v50  ;;  %v16212_v48 = vcombine.low %v1778_v29, %v1786_v30  ;;  %v16214_v50 = vcombine.low %v1779_v49, %v1787_v32  ;;  %v1858_v29 = vld [vmem:[%s17207_s7 + $0x32a0] sm:$0xff]  ;;  %v1859_v49 = vld [vmem:[%s17207_s7 + $0x32a8] sm:$0xff] }
 0x589   : > { %13436 = vmatprep.subr.bf16.mxu0 %v16149_v51  ;;  %13764 = vmatprep.subr.bf16.mxu1 %v16151_v52  ;;  %v16229_v51 = vcombine.high %v1794_v43, %v1802_v25  ;;  %v16231_v52 = vcombine.high %v1795_v44, %v1803_v47  ;;  %v1866_v30 = vld [vmem:[%s17207_s7 + $0x32e0] sm:$0xff]  ;;  %v1867_v32 = vld [vmem:[%s17207_s7 + $0x32e8] sm:$0xff] }
 0x58c   : > { %13437 = vmatpush1.bf16.msra.mxu0 %v16148_v61  ;;  %13765 = vmatpush1.bf16.msra.mxu1 %v16150_v62  ;;  %v16228_v61 = vcombine.low %v1794_v43, %v1802_v25  ;;  %v16230_v62 = vcombine.low %v1795_v44, %v1803_v47  ;;  %v1874_v43 = vld [vmem:[%s17207_s7 + $0x3320] sm:$0xff]  ;;  %v1875_v44 = vld [vmem:[%s17207_s7 + $0x3328] sm:$0xff] }
 0x58d   : > { %13438 = vmatprep.subr.bf16.mxu0 %v16165_v63  ;;  %13766 = vmatprep.subr.bf16.mxu1 %v16167_v39  ;;  %v16245_v63 = vcombine.high %v1810_v54, %v1818_v19  ;;  %v16247_v39 = vcombine.high %v1811_v56, %v1819_v60  ;;  %v1882_v25 = vld [vmem:[%s17207_s7 + $0x3360] sm:$0xff]  ;;  %v1883_v47 = vld [vmem:[%s17207_s7 + $0x3368] sm:$0xff] }
 0x590   : > { %13439 = vmatpush1.bf16.msra.mxu0 %v16164_v6  ;;  %13767 = vmatpush1.bf16.msra.mxu1 %v16166_v7  ;;  %v16244_v6 = vcombine.low %v1810_v54, %v1818_v19  ;;  %v16246_v7 = vcombine.low %v1811_v56, %v1819_v60  ;;  %v1890_v54 = vld [vmem:[%s17207_s7 + $0x33a0] sm:$0xff]  ;;  %v1891_v56 = vld [vmem:[%s17207_s7 + $0x33a8] sm:$0xff] }
 0x591   : > { %13440 = vmatprep.subr.bf16.mxu0 %v16181_v8  ;;  %13768 = vmatprep.subr.bf16.mxu1 %v16183_v10  ;;  %v16261_v8 = vcombine.high %v1826_v0, %v1834_v3  ;;  %v16263_v10 = vcombine.high %v1827_v4, %v1835_v5  ;;  %v1898_v19 = vld [vmem:[%s17207_s7 + $0x33e0] sm:$0xff]  ;;  %v1899_v60 = vld [vmem:[%s17207_s7 + $0x33e8] sm:$0xff] }
 0x594   : > { %13441 = vmatpush1.bf16.msra.mxu0 %v16180_v24  ;;  %13769 = vmatpush1.bf16.msra.mxu1 %v16182_v59  ;;  %v16260_v24 = vcombine.low %v1826_v0, %v1834_v3  ;;  %v16262_v59 = vcombine.low %v1827_v4, %v1835_v5  ;;  %v1906_v0 = vld [vmem:[%s17207_s7 + $0x3420] sm:$0xff]  ;;  %v1907_v4 = vld [vmem:[%s17207_s7 + $0x3428] sm:$0xff] }
 0x595   : > { %13442 = vmatprep.subr.bf16.mxu0 %v16197_v26  ;;  %13770 = vmatprep.subr.bf16.mxu1 %v16199_v28  ;;  %v16277_v26 = vcombine.high %v1842_v11, %v1850_v13  ;;  %v16279_v28 = vcombine.high %v1843_v14, %v1851_v20  ;;  %v1914_v3 = vld [vmem:[%s17207_s7 + $0x3460] sm:$0xff]  ;;  %v1915_v5 = vld [vmem:[%s17207_s7 + $0x3468] sm:$0xff] }
 0x598   : > { %13443 = vmatpush1.bf16.msra.mxu0 %v16196_v35  ;;  %13771 = vmatpush1.bf16.msra.mxu1 %v16198_v38  ;;  %v16276_v35 = vcombine.low %v1842_v11, %v1850_v13  ;;  %v16278_v38 = vcombine.low %v1843_v14, %v1851_v20  ;;  %v1922_v11 = vld [vmem:[%s17207_s7 + $0x34a0] sm:$0xff]  ;;  %v1923_v14 = vld [vmem:[%s17207_s7 + $0x34a8] sm:$0xff] }
 0x599   : > { %13453 = vmatprep.subr.bf16.mxu0 %v16213_v41  ;;  %13781 = vmatprep.subr.bf16.mxu1 %v16215_v42  ;;  %v16293_v41 = vcombine.high %v1858_v29, %v1866_v30  ;;  %v16295_v42 = vcombine.high %v1859_v49, %v1867_v32  ;;  %v1930_v13 = vld [vmem:[%s17207_s7 + $0x34e0] sm:$0xff]  ;;  %v1931_v20 = vld [vmem:[%s17207_s7 + $0x34e8] sm:$0xff] }
 0x59b   : > { %13445 = vmatmul.mubr.bf16.vlgmr.msra.gmra.mrb[8].mxu0 %v17709_v46  ;;  %13773 = vmatmul.mubr.bf16.vlgmr.msra.gmra.mrb[8].mxu1 %v17709_v46 }
 0x59c   : > { %13454 = vmatpush1.bf16.msra.mxu0 %v16212_v48  ;;  %13782 = vmatpush1.bf16.msra.mxu1 %v16214_v50  ;;  %v16292_v48 = vcombine.low %v1858_v29, %v1866_v30  ;;  %v16294_v50 = vcombine.low %v1859_v49, %v1867_v32  ;;  %v1938_v29 = vld [vmem:[%s17207_s7 + $0x3520] sm:$0xff]  ;;  %v1939_v49 = vld [vmem:[%s17207_s7 + $0x3528] sm:$0xff] }
 0x59d   : > { %13455 = vmatprep.subr.bf16.mxu0 %v16229_v51  ;;  %13783 = vmatprep.subr.bf16.mxu1 %v16231_v52  ;;  %v16309_v51 = vcombine.high %v1874_v43, %v1882_v25  ;;  %v16311_v52 = vcombine.high %v1875_v44, %v1883_v47  ;;  %v1946_v30 = vld [vmem:[%s17207_s7 + $0x3560] sm:$0xff]  ;;  %v1947_v32 = vld [vmem:[%s17207_s7 + $0x3568] sm:$0xff] }
 0x59e   : > { %13485 = vmatprep.mubr.bf16.mxu0 %v17722_v58  ;;  %13813 = vmatprep.mubr.bf16.mxu1 %v17722_v58 }
 0x5a0   : > { %13456 = vmatpush1.bf16.msra.mxu0 %v16228_v61  ;;  %13784 = vmatpush1.bf16.msra.mxu1 %v16230_v62  ;;  %v16308_v61 = vcombine.low %v1874_v43, %v1882_v25  ;;  %v16310_v62 = vcombine.low %v1875_v44, %v1883_v47  ;;  %v1954_v43 = vld [vmem:[%s17207_s7 + $0x35a0] sm:$0xff]  ;;  %v1955_v44 = vld [vmem:[%s17207_s7 + $0x35a8] sm:$0xff] }
 0x5a1   : > { %13457 = vmatprep.subr.bf16.mxu0 %v16245_v63  ;;  %13785 = vmatprep.subr.bf16.mxu1 %v16247_v39  ;;  %v16325_v63 = vcombine.high %v1890_v54, %v1898_v19  ;;  %v16327_v39 = vcombine.high %v1891_v56, %v1899_v60  ;;  %v1962_v25 = vld [vmem:[%s17207_s7 + $0x35e0] sm:$0xff]  ;;  %v1963_v47 = vld [vmem:[%s17207_s7 + $0x35e8] sm:$0xff] }
 0x5a4   : > { %13458 = vmatpush1.bf16.msra.mxu0 %v16244_v6  ;;  %13786 = vmatpush1.bf16.msra.mxu1 %v16246_v7  ;;  %v16324_v6 = vcombine.low %v1890_v54, %v1898_v19  ;;  %v16326_v7 = vcombine.low %v1891_v56, %v1899_v60  ;;  %v1970_v54 = vld [vmem:[%s17207_s7 + $0x3620] sm:$0xff]  ;;  %v1971_v56 = vld [vmem:[%s17207_s7 + $0x3628] sm:$0xff] }
 0x5a5   : > { %13459 = vmatprep.subr.bf16.mxu0 %v16261_v8  ;;  %13787 = vmatprep.subr.bf16.mxu1 %v16263_v10  ;;  %v16341_v8 = vcombine.high %v1906_v0, %v1914_v3  ;;  %v16343_v10 = vcombine.high %v1907_v4, %v1915_v5  ;;  %v1978_v19 = vld [vmem:[%s17207_s7 + $0x3660] sm:$0xff]  ;;  %v1979_v60 = vld [vmem:[%s17207_s7 + $0x3668] sm:$0xff] }
 0x5a8   : > { %13460 = vmatpush1.bf16.msra.mxu0 %v16260_v24  ;;  %13788 = vmatpush1.bf16.msra.mxu1 %v16262_v59  ;;  %v16340_v24 = vcombine.low %v1906_v0, %v1914_v3  ;;  %v16342_v59 = vcombine.low %v1907_v4, %v1915_v5  ;;  %v1986_v0 = vld [vmem:[%s17207_s7 + $0x36a0] sm:$0xff]  ;;  %v1987_v4 = vld [vmem:[%s17207_s7 + $0x36a8] sm:$0xff] }
 0x5a9   : > { %13461 = vmatprep.subr.bf16.mxu0 %v16277_v26  ;;  %13789 = vmatprep.subr.bf16.mxu1 %v16279_v28  ;;  %v16357_v26 = vcombine.high %v1922_v11, %v1930_v13  ;;  %v16359_v28 = vcombine.high %v1923_v14, %v1931_v20  ;;  %v1994_v3 = vld [vmem:[%s17207_s7 + $0x36e0] sm:$0xff]  ;;  %v1995_v5 = vld [vmem:[%s17207_s7 + $0x36e8] sm:$0xff] }
 0x5ac   : > { %13462 = vmatpush1.bf16.msra.mxu0 %v16276_v35  ;;  %13790 = vmatpush1.bf16.msra.mxu1 %v16278_v38  ;;  %v16356_v35 = vcombine.low %v1922_v11, %v1930_v13  ;;  %v16358_v38 = vcombine.low %v1923_v14, %v1931_v20  ;;  %v2002_v11 = vld [vmem:[%s17207_s7 + $0x3720] sm:$0xff]  ;;  %v2003_v14 = vld [vmem:[%s17207_s7 + $0x3728] sm:$0xff] }
 0x5ad   : > { %13463 = vmatprep.subr.bf16.mxu0 %v16293_v41  ;;  %13791 = vmatprep.subr.bf16.mxu1 %v16295_v42  ;;  %v16373_v41 = vcombine.high %v1938_v29, %v1946_v30  ;;  %v16375_v42 = vcombine.high %v1939_v49, %v1947_v32  ;;  %v2010_v13 = vld [vmem:[%s17207_s7 + $0x3760] sm:$0xff]  ;;  %v2011_v20 = vld [vmem:[%s17207_s7 + $0x3768] sm:$0xff] }
 0x5b0   : > { %13464 = vmatpush1.bf16.msra.mxu0 %v16292_v48  ;;  %13792 = vmatpush1.bf16.msra.mxu1 %v16294_v50  ;;  %v16372_v48 = vcombine.low %v1938_v29, %v1946_v30  ;;  %v16374_v50 = vcombine.low %v1939_v49, %v1947_v32  ;;  %v2018_v29 = vld [vmem:[%s17207_s7 + $0x37a0] sm:$0xff]  ;;  %v2019_v49 = vld [vmem:[%s17207_s7 + $0x37a8] sm:$0xff] }
 0x5b1   : > { %13465 = vmatprep.subr.bf16.mxu0 %v16309_v51  ;;  %13793 = vmatprep.subr.bf16.mxu1 %v16311_v52  ;;  %v16389_v51 = vcombine.high %v1954_v43, %v1962_v25  ;;  %v16391_v52 = vcombine.high %v1955_v44, %v1963_v47  ;;  %v2026_v30 = vld [vmem:[%s17207_s7 + $0x37e0] sm:$0xff]  ;;  %v2027_v32 = vld [vmem:[%s17207_s7 + $0x37e8] sm:$0xff] }
 0x5b4   : > { %13466 = vmatpush1.bf16.msra.mxu0 %v16308_v61  ;;  %13794 = vmatpush1.bf16.msra.mxu1 %v16310_v62  ;;  %v16388_v61 = vcombine.low %v1954_v43, %v1962_v25  ;;  %v16390_v62 = vcombine.low %v1955_v44, %v1963_v47  ;;  %v2034_v43 = vld [vmem:[%s17207_s7 + $0x3820] sm:$0xff]  ;;  %v2035_v44 = vld [vmem:[%s17207_s7 + $0x3828] sm:$0xff] }
 0x5b5   : > { %13467 = vmatprep.subr.bf16.mxu0 %v16325_v63  ;;  %13795 = vmatprep.subr.bf16.mxu1 %v16327_v39  ;;  %v16405_v63 = vcombine.high %v1970_v54, %v1978_v19  ;;  %v16407_v39 = vcombine.high %v1971_v56, %v1979_v60  ;;  %v2042_v25 = vld [vmem:[%s17207_s7 + $0x3860] sm:$0xff]  ;;  %v2043_v47 = vld [vmem:[%s17207_s7 + $0x3868] sm:$0xff] }
 0x5b8   : > { %13468 = vmatpush1.bf16.msra.mxu0 %v16324_v6  ;;  %13796 = vmatpush1.bf16.msra.mxu1 %v16326_v7  ;;  %v16404_v6 = vcombine.low %v1970_v54, %v1978_v19  ;;  %v16406_v7 = vcombine.low %v1971_v56, %v1979_v60  ;;  %v2050_v54 = vld [vmem:[%s17207_s7 + $0x38a0] sm:$0xff]  ;;  %v2051_v56 = vld [vmem:[%s17207_s7 + $0x38a8] sm:$0xff] }
 0x5b9   : > { %13469 = vmatprep.subr.bf16.mxu0 %v16341_v8  ;;  %13797 = vmatprep.subr.bf16.mxu1 %v16343_v10  ;;  %v16421_v8 = vcombine.high %v1986_v0, %v1994_v3  ;;  %v16423_v10 = vcombine.high %v1987_v4, %v1995_v5  ;;  %v2058_v19 = vld [vmem:[%s17207_s7 + $0x38e0] sm:$0xff]  ;;  %v2059_v60 = vld [vmem:[%s17207_s7 + $0x38e8] sm:$0xff] }
 0x5bc   : > { %13470 = vmatpush1.bf16.msra.mxu0 %v16340_v24  ;;  %13798 = vmatpush1.bf16.msra.mxu1 %v16342_v59  ;;  %v16420_v24 = vcombine.low %v1986_v0, %v1994_v3  ;;  %v16422_v59 = vcombine.low %v1987_v4, %v1995_v5  ;;  %v2066_v0 = vld [vmem:[%s17207_s7 + $0x3920] sm:$0xff]  ;;  %v2067_v4 = vld [vmem:[%s17207_s7 + $0x3928] sm:$0xff] }
 0x5bd   : > { %13471 = vmatprep.subr.bf16.mxu0 %v16357_v26  ;;  %13799 = vmatprep.subr.bf16.mxu1 %v16359_v28  ;;  %v16437_v26 = vcombine.high %v2002_v11, %v2010_v13  ;;  %v16439_v28 = vcombine.high %v2003_v14, %v2011_v20  ;;  %v2074_v3 = vld [vmem:[%s17207_s7 + $0x3960] sm:$0xff]  ;;  %v2075_v5 = vld [vmem:[%s17207_s7 + $0x3968] sm:$0xff] }
 0x5c0   : > { %13472 = vmatpush1.bf16.msra.mxu0 %v16356_v35  ;;  %13800 = vmatpush1.bf16.msra.mxu1 %v16358_v38  ;;  %v16436_v35 = vcombine.low %v2002_v11, %v2010_v13  ;;  %v16438_v38 = vcombine.low %v2003_v14, %v2011_v20  ;;  %v2082_v11 = vld [vmem:[%s17207_s7 + $0x39a0] sm:$0xff]  ;;  %v2083_v14 = vld [vmem:[%s17207_s7 + $0x39a8] sm:$0xff] }
 0x5c1   : > { %13473 = vmatprep.subr.bf16.mxu0 %v16373_v41  ;;  %13801 = vmatprep.subr.bf16.mxu1 %v16375_v42  ;;  %v16453_v41 = vcombine.high %v2018_v29, %v2026_v30  ;;  %v16455_v42 = vcombine.high %v2019_v49, %v2027_v32  ;;  %v2090_v13 = vld [vmem:[%s17207_s7 + $0x39e0] sm:$0xff]  ;;  %v2091_v20 = vld [vmem:[%s17207_s7 + $0x39e8] sm:$0xff] }
 0x5c4   : > { %13474 = vmatpush1.bf16.msra.mxu0 %v16372_v48  ;;  %13802 = vmatpush1.bf16.msra.mxu1 %v16374_v50  ;;  %v16452_v48 = vcombine.low %v2018_v29, %v2026_v30  ;;  %v16454_v50 = vcombine.low %v2019_v49, %v2027_v32  ;;  %v2098_v29 = vld [vmem:[%s17207_s7 + $0x3a20] sm:$0xff]  ;;  %v2099_v49 = vld [vmem:[%s17207_s7 + $0x3a28] sm:$0xff] }
 0x5c5   : > { %13475 = vmatprep.subr.bf16.mxu0 %v16389_v51  ;;  %13803 = vmatprep.subr.bf16.mxu1 %v16391_v52  ;;  %v16469_v51 = vcombine.high %v2034_v43, %v2042_v25  ;;  %v16471_v52 = vcombine.high %v2035_v44, %v2043_v47  ;;  %v2106_v30 = vld [vmem:[%s17207_s7 + $0x3a60] sm:$0xff]  ;;  %v2107_v32 = vld [vmem:[%s17207_s7 + $0x3a68] sm:$0xff] }
 0x5c8   : > { %13476 = vmatpush1.bf16.msra.mxu0 %v16388_v61  ;;  %13804 = vmatpush1.bf16.msra.mxu1 %v16390_v62  ;;  %v16468_v61 = vcombine.low %v2034_v43, %v2042_v25  ;;  %v16470_v62 = vcombine.low %v2035_v44, %v2043_v47  ;;  %v2114_v43 = vld [vmem:[%s17207_s7 + $0x3aa0] sm:$0xff]  ;;  %v2115_v44 = vld [vmem:[%s17207_s7 + $0x3aa8] sm:$0xff] }
 0x5c9   : > { %13477 = vmatprep.subr.bf16.mxu0 %v16405_v63  ;;  %13805 = vmatprep.subr.bf16.mxu1 %v16407_v39  ;;  %v16485_v63 = vcombine.high %v2050_v54, %v2058_v19  ;;  %v16487_v39 = vcombine.high %v2051_v56, %v2059_v60  ;;  %v2122_v25 = vld [vmem:[%s17207_s7 + $0x3ae0] sm:$0xff]  ;;  %v2123_v47 = vld [vmem:[%s17207_s7 + $0x3ae8] sm:$0xff] }
 0x5cc   : > { %13478 = vmatpush1.bf16.msra.mxu0 %v16404_v6  ;;  %13806 = vmatpush1.bf16.msra.mxu1 %v16406_v7  ;;  %v16484_v6 = vcombine.low %v2050_v54, %v2058_v19  ;;  %v16486_v7 = vcombine.low %v2051_v56, %v2059_v60  ;;  %v2130_v54 = vld [vmem:[%s17207_s7 + $0x3b20] sm:$0xff]  ;;  %v2131_v56 = vld [vmem:[%s17207_s7 + $0x3b28] sm:$0xff] }
 0x5cd   : > { %13479 = vmatprep.subr.bf16.mxu0 %v16421_v8  ;;  %13807 = vmatprep.subr.bf16.mxu1 %v16423_v10  ;;  %v16501_v8 = vcombine.high %v2066_v0, %v2074_v3  ;;  %v16503_v10 = vcombine.high %v2067_v4, %v2075_v5  ;;  %v2138_v19 = vld [vmem:[%s17207_s7 + $0x3b60] sm:$0xff]  ;;  %v2139_v60 = vld [vmem:[%s17207_s7 + $0x3b68] sm:$0xff] }
 0x5d0   : > { %13480 = vmatpush1.bf16.msra.mxu0 %v16420_v24  ;;  %13808 = vmatpush1.bf16.msra.mxu1 %v16422_v59  ;;  %v16500_v24 = vcombine.low %v2066_v0, %v2074_v3  ;;  %v16502_v59 = vcombine.low %v2067_v4, %v2075_v5  ;;  %v2146_v0 = vld [vmem:[%s17207_s7 + $0x3ba0] sm:$0xff]  ;;  %v2147_v4 = vld [vmem:[%s17207_s7 + $0x3ba8] sm:$0xff] }
 0x5d1   : > { %13481 = vmatprep.subr.bf16.mxu0 %v16437_v26  ;;  %13809 = vmatprep.subr.bf16.mxu1 %v16439_v28  ;;  %v16517_v26 = vcombine.high %v2082_v11, %v2090_v13  ;;  %v16519_v28 = vcombine.high %v2083_v14, %v2091_v20  ;;  %v2154_v3 = vld [vmem:[%s17207_s7 + $0x3be0] sm:$0xff]  ;;  %v2155_v5 = vld [vmem:[%s17207_s7 + $0x3be8] sm:$0xff] }
 0x5d4   : > { %13482 = vmatpush1.bf16.msra.mxu0 %v16436_v35  ;;  %13810 = vmatpush1.bf16.msra.mxu1 %v16438_v38  ;;  %v16516_v35 = vcombine.low %v2082_v11, %v2090_v13  ;;  %v16518_v38 = vcombine.low %v2083_v14, %v2091_v20  ;;  %v244_v11 = vld [vmem:[%s17207_s7 + $0x30] sm:$0xff]  ;;  %v245_v14 = vld [vmem:[%s17207_s7 + $0x38] sm:$0xff] }
 0x5d5   : > { %13483 = vmatprep.subr.bf16.mxu0 %v16453_v41  ;;  %13811 = vmatprep.subr.bf16.mxu1 %v16455_v42  ;;  %v16533_v41 = vcombine.high %v2098_v29, %v2106_v30  ;;  %v16535_v42 = vcombine.high %v2099_v49, %v2107_v32  ;;  %v252_v13 = vld [vmem:[%s17207_s7 + $0x70] sm:$0xff]  ;;  %v253_v20 = vld [vmem:[%s17207_s7 + $0x78] sm:$0xff] }
 0x5d8   : > { %13484 = vmatpush1.bf16.msra.mxu0 %v16452_v48  ;;  %13812 = vmatpush1.bf16.msra.mxu1 %v16454_v50  ;;  %v16532_v48 = vcombine.low %v2098_v29, %v2106_v30  ;;  %v16534_v50 = vcombine.low %v2099_v49, %v2107_v32  ;;  %v260_v29 = vld [vmem:[%s17207_s7 + $0xb0] sm:$0xff]  ;;  %v261_v49 = vld [vmem:[%s17207_s7 + $0xb8] sm:$0xff] }
 0x5d9   : > { %13494 = vmatprep.subr.bf16.mxu0 %v16469_v51  ;;  %13822 = vmatprep.subr.bf16.mxu1 %v16471_v52  ;;  %v16549_v51 = vcombine.high %v2114_v43, %v2122_v25  ;;  %v16551_v52 = vcombine.high %v2115_v44, %v2123_v47  ;;  %v268_v30 = vld [vmem:[%s17207_s7 + $0xf0] sm:$0xff]  ;;  %v269_v32 = vld [vmem:[%s17207_s7 + $0xf8] sm:$0xff] }
 0x5db   : > { %13486 = vmatmul.mubr.bf16.vlgmr.msra.gmra.mrb[8].mxu0 %v17790_v53  ;;  %13814 = vmatmul.mubr.bf16.vlgmr.msra.gmra.mrb[8].mxu1 %v17790_v53 }
 0x5dc   : > { %13495 = vmatpush1.bf16.msra.mxu0 %v16468_v61  ;;  %13823 = vmatpush1.bf16.msra.mxu1 %v16470_v62  ;;  %v16548_v61 = vcombine.low %v2114_v43, %v2122_v25  ;;  %v16550_v62 = vcombine.low %v2115_v44, %v2123_v47  ;;  %v276_v43 = vld [vmem:[%s17207_s7 + $0x130] sm:$0xff]  ;;  %v16909_v44 = vld [vmem:[%s19477_s0 + $0x38] ss:$0 sps:$4 sm:$0xff]  }
 0x5dd   : > { %13496 = vmatprep.subr.bf16.mxu0 %v16485_v63  ;;  %13824 = vmatprep.subr.bf16.mxu1 %v16487_v39  ;;  %v16565_v63 = vcombine.high %v2130_v54, %v2138_v19  ;;  %v16567_v39 = vcombine.high %v2131_v56, %v2139_v60  ;;  %v284_v25 = vld [vmem:[%s17207_s7 + $0x170] sm:$0xff]  ;;  %v277_v47 = vld [vmem:[%s17207_s7 + $0x138] sm:$0xff] }
 0x5de   : > { %13526 = vmatprep.mubr.bf16.mxu0 %v17048_v40  ;;  %13854 = vmatprep.mubr.bf16.mxu1 %v17048_v40 }
 0x5e0   : > { %13497 = vmatpush1.bf16.msra.mxu0 %v16484_v6  ;;  %13825 = vmatpush1.bf16.msra.mxu1 %v16486_v7  ;;  %v16564_v6 = vcombine.low %v2130_v54, %v2138_v19  ;;  %v16566_v7 = vcombine.low %v2131_v56, %v2139_v60  ;;  %v292_v19 = vld [vmem:[%s17207_s7 + $0x1b0] sm:$0xff]  ;;  %v293_v60 = vld [vmem:[%s17207_s7 + $0x1b8] sm:$0xff] }
 0x5e1   : > { %13498 = vmatprep.subr.bf16.mxu0 %v16501_v8  ;;  %13826 = vmatprep.subr.bf16.mxu1 %v16503_v10  ;;  %v16581_v8 = vcombine.high %v2146_v0, %v2154_v3  ;;  %v16583_v10 = vcombine.high %v2147_v4, %v2155_v5  ;;  %v300_v56 = vld [vmem:[%s17207_s7 + $0x1f0] sm:$0xff] }
 0x5e4   : > { %13499 = vmatpush1.bf16.msra.mxu0 %v16500_v24  ;;  %13827 = vmatpush1.bf16.msra.mxu1 %v16502_v59  ;;  %v16580_v24 = vcombine.low %v2146_v0, %v2154_v3  ;;  %v16582_v59 = vcombine.low %v2147_v4, %v2155_v5  ;;  %v308_v3 = vld [vmem:[%s17207_s7 + $0x230] sm:$0xff]  ;;  %v309_v5 = vld [vmem:[%s17207_s7 + $0x238] sm:$0xff] }
 0x5e5   : > { %13500 = vmatprep.subr.bf16.mxu0 %v16517_v26  ;;  %13828 = vmatprep.subr.bf16.mxu1 %v16519_v28  ;;  %v14681_v26 = vcombine.high %v244_v11, %v252_v13  ;;  %v14683_v28 = vcombine.high %v245_v14, %v253_v20  ;;  %v316_v4 = vld [vmem:[%s17207_s7 + $0x270] sm:$0xff] }
 0x5e8   : > { %13501 = vmatpush1.bf16.msra.mxu0 %v16516_v35  ;;  %13829 = vmatpush1.bf16.msra.mxu1 %v16518_v38  ;;  %v14680_v35 = vcombine.low %v244_v11, %v252_v13  ;;  %v14682_v38 = vcombine.low %v245_v14, %v253_v20  ;;  %v324_v11 = vld [vmem:[%s17207_s7 + $0x2b0] sm:$0xff]  ;;  %v325_v14 = vld [vmem:[%s17207_s7 + $0x2b8] sm:$0xff] }
 0x5e9   : > { %13502 = vmatprep.subr.bf16.mxu0 %v16533_v41  ;;  %13830 = vmatprep.subr.bf16.mxu1 %v16535_v42  ;;  %v14697_v41 = vcombine.high %v260_v29, %v268_v30  ;;  %v14699_v42 = vcombine.high %v261_v49, %v269_v32  ;;  %v332_v13 = vld [vmem:[%s17207_s7 + $0x2f0] sm:$0xff]  ;;  %v333_v20 = vld [vmem:[%s17207_s7 + $0x2f8] sm:$0xff] }
 0x5ec   : > { %13503 = vmatpush1.bf16.msra.mxu0 %v16532_v48  ;;  %13831 = vmatpush1.bf16.msra.mxu1 %v16534_v50  ;;  %v285_v48 = vld [vmem:[%s17207_s7 + $0x178] sm:$0xff]  ;;  %v14696_v50 = vcombine.low %v260_v29, %v268_v30  ;;  %v340_v29 = vld [vmem:[%s17207_s7 + $0x330] sm:$0xff] }
 0x5ed   : > { %13504 = vmatprep.subr.bf16.mxu0 %v16549_v51  ;;  %13832 = vmatprep.subr.bf16.mxu1 %v16551_v52  ;;  %v14698_v51 = vcombine.low %v261_v49, %v269_v32  ;;  %v14713_v52 = vcombine.high %v276_v43, %v284_v25  ;;  %v14715_v54 = vcombine.high %v277_v47, %v285_v48  ;;  %v348_v30 = vld [vmem:[%s17207_s7 + $0x370] sm:$0xff]  ;;  %v341_v49 = vld [vmem:[%s17207_s7 + $0x338] sm:$0xff] }
 0x5ee   : > { %v349_v32 = vld [vmem:[%s17207_s7 + $0x378] sm:$0xff] }
 0x5f0   : > { %13505 = vmatpush1.bf16.msra.mxu0 %v16548_v61  ;;  %13833 = vmatpush1.bf16.msra.mxu1 %v16550_v62  ;;  %v301_v61 = vld [vmem:[%s17207_s7 + $0x1f8] sm:$0xff]  ;;  %v14712_v62 = vcombine.low %v276_v43, %v284_v25  ;;  %v356_v43 = vld [vmem:[%s17207_s7 + $0x3b0] sm:$0xff] }
 0x5f1   : > { %13506 = vmatprep.subr.bf16.mxu0 %v16565_v63  ;;  %13834 = vmatprep.subr.bf16.mxu1 %v16567_v39  ;;  %v14714_v63 = vcombine.low %v277_v47, %v285_v48  ;;  %v14729_v39 = vcombine.high %v292_v19, %v300_v56  ;;  %v14731_v0 = vcombine.high %v293_v60, %v301_v61  ;;  %v364_v25 = vld [vmem:[%s17207_s7 + $0x3f0] sm:$0xff]  ;;  %v365_v47 = vld [vmem:[%s17207_s7 + $0x3f8] sm:$0xff] }
 0x5f2   : > { %v14776_v48 = vcombine.low %v340_v29, %v348_v30 }
 0x5f4   : > { %13507 = vmatpush1.bf16.msra.mxu0 %v16564_v6  ;;  %13835 = vmatpush1.bf16.msra.mxu1 %v16566_v7  ;;  %v317_v6 = vld [vmem:[%s17207_s7 + $0x278] sm:$0xff]  ;;  %v14728_v7 = vcombine.low %v292_v19, %v300_v56  ;;  %v380_v19 = vld [vmem:[%s17207_s7 + $0x470] sm:$0xff] }
 0x5f5   : > { %13508 = vmatprep.subr.bf16.mxu0 %v16581_v8  ;;  %13836 = vmatprep.subr.bf16.mxu1 %v16583_v10  ;;  %v14745_v8 = vcombine.high %v308_v3, %v316_v4  ;;  %v14747_v10 = vcombine.high %v309_v5, %v317_v6  ;;  %v373_v56 = vld [vmem:[%s17207_s7 + $0x438] sm:$0xff] }
 0x5f8   : > { %13509 = vmatpush1.bf16.msra.mxu0 %v16580_v24  ;;  %13837 = vmatpush1.bf16.msra.mxu1 %v16582_v59  ;;  %v14744_v24 = vcombine.low %v308_v3, %v316_v4  ;;  %v14746_v59 = vcombine.low %v309_v5, %v317_v6  ;;  %v396_v3 = vld [vmem:[%s17207_s7 + $0x4f0] sm:$0xff]  ;;  %v389_v4 = vld [vmem:[%s17207_s7 + $0x4b8] sm:$0xff] }
 0x5f9   : > { %13863 = vmatprep.subr.bf16.mxu0 %v14681_v26  ;;  %14191 = vmatprep.subr.bf16.mxu1 %v14683_v28  ;;  %v14761_v26 = vcombine.high %v324_v11, %v332_v13  ;;  %v14763_v28 = vcombine.high %v325_v14, %v333_v20  ;;  %v397_v5 = vld [vmem:[%s17207_s7 + $0x4f8] sm:$0xff] }
 0x5fb   : > { %13527 = vmatmul.mubr.bf16.vlgmr.msra.gmra.mrb[8].mxu0 %v16909_v44  ;;  %13855 = vmatmul.mubr.bf16.vlgmr.msra.gmra.mrb[8].mxu1 %v16909_v44  ;;  %v357_v44 = vld [vmem:[%s17207_s7 + $0x3b8] sm:$0xff] }
 0x5fc   : > { %13864 = vmatpush1.bf16.msra.mxu0 %v14680_v35  ;;  %14192 = vmatpush1.bf16.msra.mxu1 %v14682_v38  ;;  %v14760_v35 = vcombine.low %v324_v11, %v332_v13  ;;  %v14762_v38 = vcombine.low %v325_v14, %v333_v20  ;;  %v412_v11 = vld [vmem:[%s17207_s7 + $0x570] sm:$0xff]  ;;  %v405_v13 = vld [vmem:[%s17207_s7 + $0x538] sm:$0xff] }
 0x5fd   : > { %13865 = vmatprep.subr.bf16.mxu0 %v14697_v41  ;;  %14193 = vmatprep.subr.bf16.mxu1 %v14699_v42  ;;  %v14777_v41 = vcombine.high %v340_v29, %v348_v30  ;;  %v14779_v42 = vcombine.high %v341_v49, %v349_v32  ;;  %v413_v14 = vld [vmem:[%s17207_s7 + $0x578] sm:$0xff]  ;;  %v428_v29 = vld [vmem:[%s17207_s7 + $0x5f0] sm:$0xff] }
 0x5fe   : > { %13895 = vmatprep.mubr.bf16.mxu0 %v17258_v57  ;;  %14223 = vmatprep.mubr.bf16.mxu1 %v17258_v57  ;;  %v14730_v57 = vcombine.low %v293_v60, %v301_v61  ;;  %v381_v60 = vld [vmem:[%s17207_s7 + $0x478] sm:$0xff]  ;;  %v14792_v61 = vcombine.low %v356_v43, %v364_v25 }
 0x5ff   : > { %v421_v30 = vld [vmem:[%s17207_s7 + $0x5b8] sm:$0xff] }
 0x600   : > { %13866 = vmatpush1.bf16.msra.mxu0 %v14696_v50  ;;  %14194 = vmatpush1.bf16.msra.mxu1 %v14698_v51  ;;  %v14778_v50 = vcombine.low %v341_v49, %v349_v32  ;;  %v14793_v51 = vcombine.high %v356_v43, %v364_v25  ;;  %v429_v49 = vld [vmem:[%s17207_s7 + $0x5f8] sm:$0xff]  ;;  %v444_v43 = vld [vmem:[%s17207_s7 + $0x670] sm:$0xff] }
 0x601   : > { %13867 = vmatprep.subr.bf16.mxu0 %v14713_v52  ;;  %14195 = vmatprep.subr.bf16.mxu1 %v14715_v54  ;;  %v14795_v52 = vcombine.high %v357_v44, %v365_v47  ;;  %v372_v54 = vld [vmem:[%s17207_s7 + $0x430] sm:$0xff]  ;;  %v437_v25 = vld [vmem:[%s17207_s7 + $0x638] sm:$0xff] }
 0x602   : > { %v14808_v6 = vcombine.low %v372_v54, %v380_v19 }
 0x604   : > { %13868 = vmatpush1.bf16.msra.mxu0 %v14712_v62  ;;  %14196 = vmatpush1.bf16.msra.mxu1 %v14714_v63  ;;  %v14794_v62 = vcombine.low %v357_v44, %v365_v47  ;;  %v14809_v63 = vcombine.high %v372_v54, %v380_v19  ;;  %v445_v44 = vld [vmem:[%s17207_s7 + $0x678] sm:$0xff]  ;;  %v460_v54 = vld [vmem:[%s17207_s7 + $0x6f0] sm:$0xff] }
 0x605   : > { %13869 = vmatprep.subr.bf16.mxu0 %v14729_v39  ;;  %14197 = vmatprep.subr.bf16.mxu1 %v14731_v0  ;;  %v14811_v39 = vcombine.high %v373_v56, %v381_v60  ;;  %v388_v0 = vld [vmem:[%s17207_s7 + $0x4b0] sm:$0xff]  ;;  %v453_v19 = vld [vmem:[%s17207_s7 + $0x6b8] sm:$0xff] }
 0x606   : > { %v14824_v20 = vcombine.low %v388_v0, %v396_v3 }
 0x608   : > { %13870 = vmatpush1.bf16.msra.mxu0 %v14728_v7  ;;  %14198 = vmatpush1.bf16.msra.mxu1 %v14730_v57  ;;  %v14810_v7 = vcombine.low %v373_v56, %v381_v60  ;;  %v14825_v57 = vcombine.high %v388_v0, %v396_v3  ;;  %v461_v56 = vld [vmem:[%s17207_s7 + $0x6f8] sm:$0xff]  ;;  %v476_v0 = vld [vmem:[%s17207_s7 + $0x770] sm:$0xff] }
 0x609   : > { %13871 = vmatprep.subr.bf16.mxu0 %v14745_v8  ;;  %14199 = vmatprep.subr.bf16.mxu1 %v14747_v10  ;;  %v14827_v8 = vcombine.high %v389_v4, %v397_v5  ;;  %v404_v10 = vld [vmem:[%s17207_s7 + $0x530] sm:$0xff]  ;;  %v469_v3 = vld [vmem:[%s17207_s7 + $0x738] sm:$0xff] }
 0x60a   : > { %v14840_v32 = vcombine.low %v404_v10, %v412_v11 }
 0x60c   : > { %13872 = vmatpush1.bf16.msra.mxu0 %v14744_v24  ;;  %14200 = vmatpush1.bf16.msra.mxu1 %v14746_v59  ;;  %v14826_v24 = vcombine.low %v389_v4, %v397_v5  ;;  %v14841_v59 = vcombine.high %v404_v10, %v412_v11  ;;  %v477_v4 = vld [vmem:[%s17207_s7 + $0x778] sm:$0xff]  ;;  %v492_v10 = vld [vmem:[%s17207_s7 + $0x7f0] sm:$0xff] }
 0x60d   : > { %13873 = vmatprep.subr.bf16.mxu0 %v14761_v26  ;;  %14201 = vmatprep.subr.bf16.mxu1 %v14763_v28  ;;  %v14843_v26 = vcombine.high %v405_v13, %v413_v14  ;;  %v420_v28 = vld [vmem:[%s17207_s7 + $0x5b0] sm:$0xff]  ;;  %v485_v11 = vld [vmem:[%s17207_s7 + $0x7b8] sm:$0xff] }
 0x60e   : > { %v14856_v47 = vcombine.low %v420_v28, %v428_v29 }
 0x610   : > { %13874 = vmatpush1.bf16.msra.mxu0 %v14760_v35  ;;  %14202 = vmatpush1.bf16.msra.mxu1 %v14762_v38  ;;  %v14842_v35 = vcombine.low %v405_v13, %v413_v14  ;;  %v14857_v38 = vcombine.high %v420_v28, %v428_v29  ;;  %v493_v13 = vld [vmem:[%s17207_s7 + $0x7f8] sm:$0xff]  ;;  %v508_v28 = vld [vmem:[%s17207_s7 + $0x870] sm:$0xff] }
 0x611   : > { %13875 = vmatprep.subr.bf16.mxu0 %v14777_v41  ;;  %14203 = vmatprep.subr.bf16.mxu1 %v14779_v42  ;;  %v14859_v41 = vcombine.high %v421_v30, %v429_v49  ;;  %v436_v42 = vld [vmem:[%s17207_s7 + $0x630] sm:$0xff]  ;;  %v501_v29 = vld [vmem:[%s17207_s7 + $0x838] sm:$0xff] }
 0x612   : > { %v14872_v60 = vcombine.low %v436_v42, %v444_v43 }
 0x614   : > { %13876 = vmatpush1.bf16.msra.mxu0 %v14776_v48  ;;  %14204 = vmatpush1.bf16.msra.mxu1 %v14778_v50  ;;  %v14858_v48 = vcombine.low %v421_v30, %v429_v49  ;;  %v14873_v50 = vcombine.high %v436_v42, %v444_v43  ;;  %v509_v30 = vld [vmem:[%s17207_s7 + $0x878] sm:$0xff]  ;;  %v524_v42 = vld [vmem:[%s17207_s7 + $0x8f0] sm:$0xff] }
 0x615   : > { %13877 = vmatprep.subr.bf16.mxu0 %v14793_v51  ;;  %14205 = vmatprep.subr.bf16.mxu1 %v14795_v52  ;;  %v14875_v51 = vcombine.high %v437_v25, %v445_v44  ;;  %v452_v52 = vld [vmem:[%s17207_s7 + $0x6b0] sm:$0xff]  ;;  %v517_v43 = vld [vmem:[%s17207_s7 + $0x8b8] sm:$0xff] }
 0x616   : > { %v14888_v5 = vcombine.low %v452_v52, %v460_v54 }
 0x618   : > { %13878 = vmatpush1.bf16.msra.mxu0 %v14792_v61  ;;  %14206 = vmatpush1.bf16.msra.mxu1 %v14794_v62  ;;  %v14874_v61 = vcombine.low %v437_v25, %v445_v44  ;;  %v14889_v62 = vcombine.high %v452_v52, %v460_v54  ;;  %v525_v25 = vld [vmem:[%s17207_s7 + $0x8f8] sm:$0xff]  ;;  %v540_v52 = vld [vmem:[%s17207_s7 + $0x970] sm:$0xff] }
 0x619   : > { %13879 = vmatprep.subr.bf16.mxu0 %v14809_v63  ;;  %14207 = vmatprep.subr.bf16.mxu1 %v14811_v39  ;;  %v14891_v63 = vcombine.high %v453_v19, %v461_v56  ;;  %v468_v39 = vld [vmem:[%s17207_s7 + $0x730] sm:$0xff]  ;;  %v533_v54 = vld [vmem:[%s17207_s7 + $0x938] sm:$0xff] }
 0x61a   : > { %v14904_v14 = vcombine.low %v468_v39, %v476_v0 }
 0x61c   : > { %13880 = vmatpush1.bf16.msra.mxu0 %v14808_v6  ;;  %14208 = vmatpush1.bf16.msra.mxu1 %v14810_v7  ;;  %v14890_v6 = vcombine.low %v453_v19, %v461_v56  ;;  %v14905_v7 = vcombine.high %v468_v39, %v476_v0  ;;  %v541_v19 = vld [vmem:[%s17207_s7 + $0x978] sm:$0xff]  ;;  %v556_v39 = vld [vmem:[%s17207_s7 + $0x9f0] sm:$0xff] }
 0x61d   : > { %13881 = vmatprep.subr.bf16.mxu0 %v14825_v57  ;;  %14209 = vmatprep.subr.bf16.mxu1 %v14827_v8  ;;  %v14907_v57 = vcombine.high %v469_v3, %v477_v4  ;;  %v484_v8 = vld [vmem:[%s17207_s7 + $0x7b0] sm:$0xff]  ;;  %v549_v0 = vld [vmem:[%s17207_s7 + $0x9b8] sm:$0xff] }
 0x61e   : > { %v14920_v49 = vcombine.low %v484_v8, %v492_v10 }
 0x620   : > { %13882 = vmatpush1.bf16.msra.mxu0 %v14824_v20  ;;  %14210 = vmatpush1.bf16.msra.mxu1 %v14826_v24  ;;  %v14906_v20 = vcombine.low %v469_v3, %v477_v4  ;;  %v14921_v24 = vcombine.high %v484_v8, %v492_v10  ;;  %v557_v3 = vld [vmem:[%s17207_s7 + $0x9f8] sm:$0xff]  ;;  %v14970_v4 = vcombine.low %v533_v54, %v541_v19 }
 0x621   : > { %13883 = vmatprep.subr.bf16.mxu0 %v14841_v59  ;;  %14211 = vmatprep.subr.bf16.mxu1 %v14843_v26  ;;  %v14923_v59 = vcombine.high %v485_v11, %v493_v13  ;;  %v500_v26 = vld [vmem:[%s17207_s7 + $0x830] sm:$0xff]  ;;  %v565_v8 = vld [vmem:[%s17207_s7 + $0xa38] sm:$0xff] }
 0x622   : > { %v14936_v44 = vcombine.low %v500_v26, %v508_v28  ;;  %v573_v10 = vld [vmem:[%s17207_s7 + $0xa78] sm:$0xff] }
 0x624   : > { %13884 = vmatpush1.bf16.msra.mxu0 %v14840_v32  ;;  %14212 = vmatpush1.bf16.msra.mxu1 %v14842_v35  ;;  %v14922_v32 = vcombine.low %v485_v11, %v493_v13  ;;  %v14937_v35 = vcombine.high %v500_v26, %v508_v28  ;;  %v589_v26 = vld [vmem:[%s17207_s7 + $0xaf8] sm:$0xff] }
 0x625   : > { %13885 = vmatprep.subr.bf16.mxu0 %v14857_v38  ;;  %14213 = vmatprep.subr.bf16.mxu1 %v14859_v41  ;;  %v14939_v38 = vcombine.high %v501_v29, %v509_v30  ;;  %v516_v41 = vld [vmem:[%s17207_s7 + $0x8b0] sm:$0xff] }
 0x626   : > { %v14952_v56 = vcombine.low %v516_v41, %v524_v42 }
 0x628   : > { %13886 = vmatpush1.bf16.msra.mxu0 %v14856_v47  ;;  %14214 = vmatpush1.bf16.msra.mxu1 %v14858_v48  ;;  %v14938_v47 = vcombine.low %v501_v29, %v509_v30  ;;  %v14953_v48 = vcombine.high %v516_v41, %v524_v42  ;;  %v15002_v29 = vcombine.low %v565_v8, %v573_v10  ;;  %v605_v41 = vld [vmem:[%s17207_s7 + $0xb78] sm:$0xff] }
 0x629   : > { %13887 = vmatprep.subr.bf16.mxu0 %v14873_v50  ;;  %14215 = vmatprep.subr.bf16.mxu1 %v14875_v51  ;;  %v14955_v50 = vcombine.high %v517_v43, %v525_v25  ;;  %v532_v51 = vld [vmem:[%s17207_s7 + $0x930] sm:$0xff] }
 0x62c   : > { %13888 = vmatpush1.bf16.msra.mxu0 %v14872_v60  ;;  %14216 = vmatpush1.bf16.msra.mxu1 %v14874_v61  ;;  %v14954_v60 = vcombine.low %v517_v43, %v525_v25  ;;  %v14969_v61 = vcombine.high %v532_v51, %v540_v52 }
 0x62d   : > { %13889 = vmatprep.subr.bf16.mxu0 %v14889_v62  ;;  %14217 = vmatprep.subr.bf16.mxu1 %v14891_v63  ;;  %v14971_v62 = vcombine.high %v533_v54, %v541_v19  ;;  %v548_v63 = vld [vmem:[%s17207_s7 + $0x9b0] sm:$0xff] }
 0x62e   : > { %v14984_v11 = vcombine.low %v548_v63, %v556_v39 }
 0x630   : > { %13890 = vmatpush1.bf16.msra.mxu0 %v14888_v5  ;;  %14218 = vmatpush1.bf16.msra.mxu1 %v14890_v6  ;;  %v14985_v5 = vcombine.high %v548_v63, %v556_v39  ;;  %v14987_v6 = vcombine.high %v549_v0, %v557_v3  ;;  %v637_v63 = vld [vmem:[%s17207_s7 + $0xc78] sm:$0xff] }
 0x631   : > { %13891 = vmatprep.subr.bf16.mxu0 %v14905_v7  ;;  %14219 = vmatprep.subr.bf16.mxu1 %v14907_v57  ;;  %v564_v7 = vld [vmem:[%s17207_s7 + $0xa30] sm:$0xff] }
 0x632   : > { %v572_v57 = vld [vmem:[%s17207_s7 + $0xa70] sm:$0xff] }
 0x633   : > { %v15001_v13 = vcombine.high %v564_v7, %v572_v57  ;;  %v15000_v28 = vcombine.low %v564_v7, %v572_v57  ;;  %v653_v7 = vld [vmem:[%s17207_s7 + $0xcf8] sm:$0xff] }
 0x634   : > { %13892 = vmatpush1.bf16.msra.mxu0 %v14904_v14  ;;  %14220 = vmatpush1.bf16.msra.mxu1 %v14906_v20  ;;  %v15003_v14 = vcombine.high %v565_v8, %v573_v10  ;;  %v580_v20 = vld [vmem:[%s17207_s7 + $0xab0] sm:$0xff] }
 0x635   : > { %13893 = vmatprep.subr.bf16.mxu0 %v14921_v24  ;;  %14221 = vmatprep.subr.bf16.mxu1 %v14923_v59  ;;  %v588_v24 = vld [vmem:[%s17207_s7 + $0xaf0] sm:$0xff]  ;;  %v581_v59 = vld [vmem:[%s17207_s7 + $0xab8] sm:$0xff] }
 0x636   : > { %v15017_v30 = vcombine.high %v580_v20, %v588_v24  ;;  %v15016_v42 = vcombine.low %v580_v20, %v588_v24  ;;  %v15018_v43 = vcombine.low %v581_v59, %v589_v26  ;;  %v669_v20 = vld [vmem:[%s17207_s7 + $0xd78] sm:$0xff] }
 0x638   : > { %13894 = vmatpush1.bf16.msra.mxu0 %v14920_v49  ;;  %14222 = vmatpush1.bf16.msra.mxu1 %v14922_v32  ;;  %v15019_v49 = vcombine.high %v581_v59, %v589_v26  ;;  %v596_v32 = vld [vmem:[%s17207_s7 + $0xb30] sm:$0xff] }
 0x639   : > { %13904 = vmatprep.subr.bf16.mxu0 %v14937_v35  ;;  %14232 = vmatprep.subr.bf16.mxu1 %v14939_v38  ;;  %v604_v35 = vld [vmem:[%s17207_s7 + $0xb70] sm:$0xff]  ;;  %v597_v38 = vld [vmem:[%s17207_s7 + $0xb38] sm:$0xff] }
 0x63a   : > { %v15033_v25 = vcombine.high %v596_v32, %v604_v35  ;;  %v15034_v54 = vcombine.low %v597_v38, %v605_v41 }
 0x63b   : > { %13896 = vmatmul.mubr.bf16.vlgmr.msra.gmra.mrb[12].mxu0 %v17304_v12  ;;  %14224 = vmatmul.mubr.bf16.vlgmr.msra.gmra.mrb[12].mxu1 %v17304_v12  ;;  %v14968_v12 = vcombine.low %v532_v51, %v540_v52  ;;  %v621_v51 = vld [vmem:[%s17207_s7 + $0xbf8] sm:$0xff]  ;;  %v15032_v52 = vcombine.low %v596_v32, %v604_v35 }
 0x63c   : > { %13905 = vmatpush1.bf16.msra.mxu0 %v14936_v44  ;;  %14233 = vmatpush1.bf16.msra.mxu1 %v14938_v47  ;;  %v15035_v44 = vcombine.high %v597_v38, %v605_v41  ;;  %v612_v47 = vld [vmem:[%s17207_s7 + $0xbb0] sm:$0xff]  ;;  %v685_v32 = vld [vmem:[%s17207_s7 + $0xdf8] sm:$0xff] }
 0x63d   : > { %13906 = vmatprep.subr.bf16.mxu0 %v14953_v48  ;;  %14234 = vmatprep.subr.bf16.mxu1 %v14955_v50  ;;  %v620_v48 = vld [vmem:[%s17207_s7 + $0xbf0] sm:$0xff]  ;;  %v613_v50 = vld [vmem:[%s17207_s7 + $0xbb8] sm:$0xff] }
 0x63e   : > { %13936 = vmatprep.mubr.bf16.mxu0 %v17317_v21  ;;  %14264 = vmatprep.mubr.bf16.mxu1 %v17317_v21  ;;  %v14986_v21 = vcombine.low %v549_v0, %v557_v3  ;;  %v15049_v19 = vcombine.high %v612_v47, %v620_v48  ;;  %v15048_v39 = vcombine.low %v612_v47, %v620_v48  ;;  %v701_v47 = vld [vmem:[%s17207_s7 + $0xe78] sm:$0xff] }
 0x63f   : > { %v15050_v0 = vcombine.low %v613_v50, %v621_v51 }
 0x640   : > { %13907 = vmatpush1.bf16.msra.mxu0 %v14952_v56  ;;  %14235 = vmatpush1.bf16.msra.mxu1 %v14954_v60  ;;  %v15051_v56 = vcombine.high %v613_v50, %v621_v51  ;;  %v628_v60 = vld [vmem:[%s17207_s7 + $0xc30] sm:$0xff] }
 0x641   : > { %13908 = vmatprep.subr.bf16.mxu0 %v14969_v61  ;;  %14236 = vmatprep.subr.bf16.mxu1 %v14971_v62  ;;  %v636_v61 = vld [vmem:[%s17207_s7 + $0xc70] sm:$0xff]  ;;  %v629_v62 = vld [vmem:[%s17207_s7 + $0xc38] sm:$0xff] }
 0x642   : > { %v15065_v3 = vcombine.high %v628_v60, %v636_v61  ;;  %v15064_v57 = vcombine.low %v628_v60, %v636_v61  ;;  %v15066_v8 = vcombine.low %v629_v62, %v637_v63  ;;  %v717_v60 = vld [vmem:[%s17207_s7 + $0xef8] sm:$0xff] }
 0x644   : > { %13909 = vmatpush1.bf16.msra.mxu0 %v14968_v12  ;;  %14237 = vmatpush1.bf16.msra.mxu1 %v14970_v4  ;;  %v15067_v12 = vcombine.high %v629_v62, %v637_v63  ;;  %v644_v4 = vld [vmem:[%s17207_s7 + $0xcb0] sm:$0xff] }
 0x645   : > { %13910 = vmatprep.subr.bf16.mxu0 %v14985_v5  ;;  %14238 = vmatprep.subr.bf16.mxu1 %v14987_v6  ;;  %v652_v5 = vld [vmem:[%s17207_s7 + $0xcf0] sm:$0xff]  ;;  %v645_v6 = vld [vmem:[%s17207_s7 + $0xcb8] sm:$0xff] }
 0x646   : > { %v15081_v10 = vcombine.high %v644_v4, %v652_v5  ;;  %v15080_v24 = vcombine.low %v644_v4, %v652_v5  ;;  %v15082_v59 = vcombine.low %v645_v6, %v653_v7  ;;  %v733_v4 = vld [vmem:[%s17207_s7 + $0xf78] sm:$0xff] }
 0x648   : > { %13911 = vmatpush1.bf16.msra.mxu0 %v14984_v11  ;;  %14239 = vmatpush1.bf16.msra.mxu1 %v14986_v21  ;;  %v15083_v11 = vcombine.high %v645_v6, %v653_v7  ;;  %v660_v21 = vld [vmem:[%s17207_s7 + $0xd30] sm:$0xff] }
 0x649   : > { %13912 = vmatprep.subr.bf16.mxu0 %v15001_v13  ;;  %14240 = vmatprep.subr.bf16.mxu1 %v15003_v14  ;;  %v668_v13 = vld [vmem:[%s17207_s7 + $0xd70] sm:$0xff]  ;;  %v661_v14 = vld [vmem:[%s17207_s7 + $0xd38] sm:$0xff] }
 0x64a   : > { %v15097_v26 = vcombine.high %v660_v21, %v668_v13  ;;  %v15096_v35 = vcombine.low %v660_v21, %v668_v13  ;;  %v15098_v38 = vcombine.low %v661_v14, %v669_v20  ;;  %v749_v21 = vld [vmem:[%s17207_s7 + $0xff8] sm:$0xff] }
 0x64c   : > { %13913 = vmatpush1.bf16.msra.mxu0 %v15000_v28  ;;  %14241 = vmatpush1.bf16.msra.mxu1 %v15002_v29  ;;  %v15099_v28 = vcombine.high %v661_v14, %v669_v20  ;;  %v676_v29 = vld [vmem:[%s17207_s7 + $0xdb0] sm:$0xff] }
 0x64d   : > { %13914 = vmatprep.subr.bf16.mxu0 %v15017_v30  ;;  %14242 = vmatprep.subr.bf16.mxu1 %v15019_v49  ;;  %v684_v30 = vld [vmem:[%s17207_s7 + $0xdf0] sm:$0xff]  ;;  %v677_v49 = vld [vmem:[%s17207_s7 + $0xdb8] sm:$0xff] }
 0x64e   : > { %v15113_v41 = vcombine.high %v676_v29, %v684_v30  ;;  %v15112_v48 = vcombine.low %v676_v29, %v684_v30  ;;  %v15114_v50 = vcombine.low %v677_v49, %v685_v32  ;;  %v765_v29 = vld [vmem:[%s17207_s7 + $0x1078] sm:$0xff] }
 0x650   : > { %13915 = vmatpush1.bf16.msra.mxu0 %v15016_v42  ;;  %14243 = vmatpush1.bf16.msra.mxu1 %v15018_v43  ;;  %v15115_v42 = vcombine.high %v677_v49, %v685_v32  ;;  %v692_v43 = vld [vmem:[%s17207_s7 + $0xe30] sm:$0xff] }
 0x651   : > { %13916 = vmatprep.subr.bf16.mxu0 %v15033_v25  ;;  %14244 = vmatprep.subr.bf16.mxu1 %v15035_v44  ;;  %v700_v25 = vld [vmem:[%s17207_s7 + $0xe70] sm:$0xff]  ;;  %v693_v44 = vld [vmem:[%s17207_s7 + $0xe38] sm:$0xff] }
 0x652   : > { %v15129_v51 = vcombine.high %v692_v43, %v700_v25  ;;  %v15128_v61 = vcombine.low %v692_v43, %v700_v25  ;;  %v15130_v62 = vcombine.low %v693_v44, %v701_v47  ;;  %v781_v43 = vld [vmem:[%s17207_s7 + $0x10f8] sm:$0xff] }
 0x654   : > { %13917 = vmatpush1.bf16.msra.mxu0 %v15032_v52  ;;  %14245 = vmatpush1.bf16.msra.mxu1 %v15034_v54  ;;  %v15131_v52 = vcombine.high %v693_v44, %v701_v47  ;;  %v708_v54 = vld [vmem:[%s17207_s7 + $0xeb0] sm:$0xff] }
 0x655   : > { %13918 = vmatprep.subr.bf16.mxu0 %v15049_v19  ;;  %14246 = vmatprep.subr.bf16.mxu1 %v15051_v56  ;;  %v716_v19 = vld [vmem:[%s17207_s7 + $0xef0] sm:$0xff]  ;;  %v709_v56 = vld [vmem:[%s17207_s7 + $0xeb8] sm:$0xff] }
 0x656   : > { %v15145_v63 = vcombine.high %v708_v54, %v716_v19  ;;  %v15144_v5 = vcombine.low %v708_v54, %v716_v19  ;;  %v15146_v6 = vcombine.low %v709_v56, %v717_v60  ;;  %v797_v54 = vld [vmem:[%s17207_s7 + $0x1178] sm:$0xff] }
 0x658   : > { %13919 = vmatpush1.bf16.msra.mxu0 %v15048_v39  ;;  %14247 = vmatpush1.bf16.msra.mxu1 %v15050_v0  ;;  %v15147_v39 = vcombine.high %v709_v56, %v717_v60  ;;  %v724_v0 = vld [vmem:[%s17207_s7 + $0xf30] sm:$0xff] }
 0x659   : > { %13920 = vmatprep.subr.bf16.mxu0 %v15065_v3  ;;  %14248 = vmatprep.subr.bf16.mxu1 %v15067_v12  ;;  %v732_v3 = vld [vmem:[%s17207_s7 + $0xf70] sm:$0xff]  ;;  %v725_v12 = vld [vmem:[%s17207_s7 + $0xf38] sm:$0xff] }
 0x65a   : > { %v15161_v7 = vcombine.high %v724_v0, %v732_v3  ;;  %v15160_v13 = vcombine.low %v724_v0, %v732_v3  ;;  %v15162_v14 = vcombine.low %v725_v12, %v733_v4  ;;  %v813_v0 = vld [vmem:[%s17207_s7 + $0x11f8] sm:$0xff] }
 0x65c   : > { %13921 = vmatpush1.bf16.msra.mxu0 %v15064_v57  ;;  %14249 = vmatpush1.bf16.msra.mxu1 %v15066_v8  ;;  %v15163_v57 = vcombine.high %v725_v12, %v733_v4  ;;  %v740_v8 = vld [vmem:[%s17207_s7 + $0xfb0] sm:$0xff] }
 0x65d   : > { %13922 = vmatprep.subr.bf16.mxu0 %v15081_v10  ;;  %14250 = vmatprep.subr.bf16.mxu1 %v15083_v11  ;;  %v748_v10 = vld [vmem:[%s17207_s7 + $0xff0] sm:$0xff]  ;;  %v741_v11 = vld [vmem:[%s17207_s7 + $0xfb8] sm:$0xff] }
 0x65e   : > { %v15177_v20 = vcombine.high %v740_v8, %v748_v10  ;;  %v15176_v30 = vcombine.low %v740_v8, %v748_v10  ;;  %v15178_v49 = vcombine.low %v741_v11, %v749_v21 }
 0x660   : > { %13923 = vmatpush1.bf16.msra.mxu0 %v15080_v24  ;;  %14251 = vmatpush1.bf16.msra.mxu1 %v15082_v59  ;;  %v15179_v24 = vcombine.high %v741_v11, %v749_v21  ;;  %v756_v59 = vld [vmem:[%s17207_s7 + $0x1030] sm:$0xff] }
 0x661   : > { %13924 = vmatprep.subr.bf16.mxu0 %v15097_v26  ;;  %14252 = vmatprep.subr.bf16.mxu1 %v15099_v28  ;;  %v764_v26 = vld [vmem:[%s17207_s7 + $0x1070] sm:$0xff]  ;;  %v757_v28 = vld [vmem:[%s17207_s7 + $0x1038] sm:$0xff] }
 0x662   : > { %v15193_v32 = vcombine.high %v756_v59, %v764_v26  ;;  %v15192_v25 = vcombine.low %v756_v59, %v764_v26  ;;  %v15194_v44 = vcombine.low %v757_v28, %v765_v29  ;;  %v836_v21 = vld [vmem:[%s17207_s7 + $0x12b0] sm:$0xff] }
 0x664   : > { %13925 = vmatpush1.bf16.msra.mxu0 %v15096_v35  ;;  %14253 = vmatpush1.bf16.msra.mxu1 %v15098_v38  ;;  %v15195_v35 = vcombine.high %v757_v28, %v765_v29  ;;  %v772_v38 = vld [vmem:[%s17207_s7 + $0x10b0] sm:$0xff] }
 0x665   : > { %13926 = vmatprep.subr.bf16.mxu0 %v15113_v41  ;;  %14254 = vmatprep.subr.bf16.mxu1 %v15115_v42  ;;  %v780_v41 = vld [vmem:[%s17207_s7 + $0x10f0] sm:$0xff]  ;;  %v773_v42 = vld [vmem:[%s17207_s7 + $0x10b8] sm:$0xff] }
 0x666   : > { %v15209_v47 = vcombine.high %v772_v38, %v780_v41  ;;  %v15208_v19 = vcombine.low %v772_v38, %v780_v41  ;;  %v15210_v56 = vcombine.low %v773_v42, %v781_v43  ;;  %v852_v29 = vld [vmem:[%s17207_s7 + $0x1330] sm:$0xff] }
 0x668   : > { %13927 = vmatpush1.bf16.msra.mxu0 %v15112_v48  ;;  %14255 = vmatpush1.bf16.msra.mxu1 %v15114_v50  ;;  %v15211_v48 = vcombine.high %v773_v42, %v781_v43  ;;  %v788_v50 = vld [vmem:[%s17207_s7 + $0x1130] sm:$0xff] }
 0x669   : > { %13928 = vmatprep.subr.bf16.mxu0 %v15129_v51  ;;  %14256 = vmatprep.subr.bf16.mxu1 %v15131_v52  ;;  %v796_v51 = vld [vmem:[%s17207_s7 + $0x1170] sm:$0xff]  ;;  %v789_v52 = vld [vmem:[%s17207_s7 + $0x1138] sm:$0xff] }
 0x66a   : > { %v15225_v60 = vcombine.high %v788_v50, %v796_v51  ;;  %v15226_v3 = vcombine.low %v789_v52, %v797_v54  ;;  %v868_v43 = vld [vmem:[%s17207_s7 + $0x13b0] sm:$0xff] }
 0x66c   : > { %13929 = vmatpush1.bf16.msra.mxu0 %v15128_v61  ;;  %14257 = vmatpush1.bf16.msra.mxu1 %v15130_v62  ;;  %v15227_v61 = vcombine.high %v789_v52, %v797_v54  ;;  %v804_v62 = vld [vmem:[%s17207_s7 + $0x11b0] sm:$0xff] }
 0x66d   : > { %13930 = vmatprep.subr.bf16.mxu0 %v15145_v63  ;;  %14258 = vmatprep.subr.bf16.mxu1 %v15147_v39  ;;  %v812_v63 = vld [vmem:[%s17207_s7 + $0x11f0] sm:$0xff]  ;;  %v805_v39 = vld [vmem:[%s17207_s7 + $0x11b8] sm:$0xff] }
 0x66e   : > { %v15241_v12 = vcombine.high %v804_v62, %v812_v63  ;;  %v15243_v4 = vcombine.high %v805_v39, %v813_v0  ;;  %v15240_v8 = vcombine.low %v804_v62, %v812_v63  ;;  %v884_v54 = vld [vmem:[%s17207_s7 + $0x1430] sm:$0xff] }
 0x670   : > { %13931 = vmatpush1.bf16.msra.mxu0 %v15144_v5  ;;  %14259 = vmatpush1.bf16.msra.mxu1 %v15146_v6  ;;  %v820_v5 = vld [vmem:[%s17207_s7 + $0x1230] sm:$0xff] }
 0x671   : > { %13932 = vmatprep.subr.bf16.mxu0 %v15161_v7  ;;  %14260 = vmatprep.subr.bf16.mxu1 %v15163_v57  ;;  %v828_v6 = vld [vmem:[%s17207_s7 + $0x1270] sm:$0xff]  ;;  %v821_v7 = vld [vmem:[%s17207_s7 + $0x1238] sm:$0xff] }
 0x672   : > { %v829_v57 = vld [vmem:[%s17207_s7 + $0x1278] sm:$0xff]  ;;  %v15257_v10 = vcombine.high %v820_v5, %v828_v6 }
 0x673   : > { %v15259_v11 = vcombine.high %v821_v7, %v829_v57  ;;  %v15258_v59 = vcombine.low %v821_v7, %v829_v57  ;;  %v916_v57 = vld [vmem:[%s17207_s7 + $0x1530] sm:$0xff] }
 0x674   : > { %13933 = vmatpush1.bf16.msra.mxu0 %v15160_v13  ;;  %14261 = vmatpush1.bf16.msra.mxu1 %v15162_v14  ;;  %v844_v13 = vld [vmem:[%s17207_s7 + $0x12f0] sm:$0xff]  ;;  %v837_v14 = vld [vmem:[%s17207_s7 + $0x12b8] sm:$0xff] }
 0x675   : > { %13934 = vmatprep.subr.bf16.mxu0 %v15177_v20  ;;  %14262 = vmatprep.subr.bf16.mxu1 %v15179_v24  ;;  %v845_v20 = vld [vmem:[%s17207_s7 + $0x12f8] sm:$0xff]  ;;  %v15256_v24 = vcombine.low %v820_v5, %v828_v6  ;;  %v15273_v26 = vcombine.high %v836_v21, %v844_v13 }
 0x676   : > { %v15275_v28 = vcombine.high %v837_v14, %v845_v20  ;;  %v15274_v38 = vcombine.low %v837_v14, %v845_v20  ;;  %v932_v20 = vld [vmem:[%s17207_s7 + $0x15b0] sm:$0xff] }
 0x678   : > { %13935 = vmatpush1.bf16.msra.mxu0 %v15176_v30  ;;  %14263 = vmatpush1.bf16.msra.mxu1 %v15178_v49  ;;  %v860_v30 = vld [vmem:[%s17207_s7 + $0x1370] sm:$0xff]  ;;  %v853_v49 = vld [vmem:[%s17207_s7 + $0x1338] sm:$0xff] }
 0x679   : > { %13945 = vmatprep.subr.bf16.mxu0 %v15193_v32  ;;  %14273 = vmatprep.subr.bf16.mxu1 %v15195_v35  ;;  %v861_v32 = vld [vmem:[%s17207_s7 + $0x1378] sm:$0xff]  ;;  %v15272_v35 = vcombine.low %v836_v21, %v844_v13  ;;  %v15289_v41 = vcombine.high %v852_v29, %v860_v30 }
 0x67a   : > { %v15291_v42 = vcombine.high %v853_v49, %v861_v32 }
 0x67b   : > { %13937 = vmatmul.mubr.bf16.vlgmr.msra.gmra.mrb[12].mxu0 %v17385_v22  ;;  %14265 = vmatmul.mubr.bf16.vlgmr.msra.gmra.mrb[12].mxu1 %v17385_v22  ;;  %v15224_v22 = vcombine.low %v788_v50, %v796_v51  ;;  %v15290_v50 = vcombine.low %v853_v49, %v861_v32  ;;  %v948_v32 = vld [vmem:[%s17207_s7 + $0x1630] sm:$0xff] }
 0x67c   : > { %13946 = vmatpush1.bf16.msra.mxu0 %v15192_v25  ;;  %14274 = vmatpush1.bf16.msra.mxu1 %v15194_v44  ;;  %v876_v25 = vld [vmem:[%s17207_s7 + $0x13f0] sm:$0xff]  ;;  %v869_v44 = vld [vmem:[%s17207_s7 + $0x13b8] sm:$0xff] }
 0x67d   : > { %13947 = vmatprep.subr.bf16.mxu0 %v15209_v47  ;;  %14275 = vmatprep.subr.bf16.mxu1 %v15211_v48  ;;  %v877_v47 = vld [vmem:[%s17207_s7 + $0x13f8] sm:$0xff]  ;;  %v15288_v48 = vcombine.low %v852_v29, %v860_v30  ;;  %v15305_v51 = vcombine.high %v868_v43, %v876_v25 }
 0x67e   : > { %13977 = vmatprep.mubr.bf16.mxu0 %v17398_v31  ;;  %14305 = vmatprep.mubr.bf16.mxu1 %v17398_v31  ;;  %v15242_v31 = vcombine.low %v805_v39, %v813_v0  ;;  %v15307_v52 = vcombine.high %v869_v44, %v877_v47  ;;  %v15306_v62 = vcombine.low %v869_v44, %v877_v47  ;;  %v900_v0 = vld [vmem:[%s17207_s7 + $0x14b0] sm:$0xff] }
 0x67f   : > { %v964_v47 = vld [vmem:[%s17207_s7 + $0x16b0] sm:$0xff] }
 0x680   : > { %13948 = vmatpush1.bf16.msra.mxu0 %v15208_v19  ;;  %14276 = vmatpush1.bf16.msra.mxu1 %v15210_v56  ;;  %v892_v19 = vld [vmem:[%s17207_s7 + $0x1470] sm:$0xff]  ;;  %v885_v56 = vld [vmem:[%s17207_s7 + $0x1438] sm:$0xff] }
 0x681   : > { %13949 = vmatprep.subr.bf16.mxu0 %v15225_v60  ;;  %14277 = vmatprep.subr.bf16.mxu1 %v15227_v61  ;;  %v893_v60 = vld [vmem:[%s17207_s7 + $0x1478] sm:$0xff]  ;;  %v15304_v61 = vcombine.low %v868_v43, %v876_v25  ;;  %v15321_v63 = vcombine.high %v884_v54, %v892_v19 }
 0x682   : > { %v15323_v39 = vcombine.high %v885_v56, %v893_v60  ;;  %v15322_v5 = vcombine.low %v885_v56, %v893_v60  ;;  %v980_v60 = vld [vmem:[%s17207_s7 + $0x1730] sm:$0xff] }
 0x684   : > { %13950 = vmatpush1.bf16.msra.mxu0 %v15224_v22  ;;  %14278 = vmatpush1.bf16.msra.mxu1 %v15226_v3  ;;  %v908_v22 = vld [vmem:[%s17207_s7 + $0x14f0] sm:$0xff]  ;;  %v901_v3 = vld [vmem:[%s17207_s7 + $0x14b8] sm:$0xff] }
 0x685   : > { %13951 = vmatprep.subr.bf16.mxu0 %v15241_v12  ;;  %14279 = vmatprep.subr.bf16.mxu1 %v15243_v4  ;;  %v909_v12 = vld [vmem:[%s17207_s7 + $0x14f8] sm:$0xff]  ;;  %v15320_v4 = vcombine.low %v884_v54, %v892_v19  ;;  %v15337_v6 = vcombine.high %v900_v0, %v908_v22 }
 0x686   : > { %v15339_v7 = vcombine.high %v901_v3, %v909_v12  ;;  %v15338_v21 = vcombine.low %v901_v3, %v909_v12  ;;  %v996_v12 = vld [vmem:[%s17207_s7 + $0x17b0] sm:$0xff] }
 0x688   : > { %13952 = vmatpush1.bf16.msra.mxu0 %v15240_v8  ;;  %14280 = vmatpush1.bf16.msra.mxu1 %v15242_v31  ;;  %v924_v8 = vld [vmem:[%s17207_s7 + $0x1570] sm:$0xff]  ;;  %v917_v31 = vld [vmem:[%s17207_s7 + $0x1538] sm:$0xff] }
 0x689   : > { %13953 = vmatprep.subr.bf16.mxu0 %v15257_v10  ;;  %14281 = vmatprep.subr.bf16.mxu1 %v15259_v11  ;;  %v925_v10 = vld [vmem:[%s17207_s7 + $0x1578] sm:$0xff]  ;;  %v15336_v11 = vcombine.low %v900_v0, %v908_v22  ;;  %v15353_v13 = vcombine.high %v916_v57, %v924_v8 }
 0x68a   : > { %v15355_v14 = vcombine.high %v917_v31, %v925_v10  ;;  %v15354_v29 = vcombine.low %v917_v31, %v925_v10  ;;  %v1012_v10 = vld [vmem:[%s17207_s7 + $0x1830] sm:$0xff] }
 0x68c   : > { %13954 = vmatpush1.bf16.msra.mxu0 %v15256_v24  ;;  %14282 = vmatpush1.bf16.msra.mxu1 %v15258_v59  ;;  %v940_v24 = vld [vmem:[%s17207_s7 + $0x15f0] sm:$0xff]  ;;  %v933_v59 = vld [vmem:[%s17207_s7 + $0x15b8] sm:$0xff] }
 0x68d   : > { %13955 = vmatprep.subr.bf16.mxu0 %v15273_v26  ;;  %14283 = vmatprep.subr.bf16.mxu1 %v15275_v28  ;;  %v941_v26 = vld [vmem:[%s17207_s7 + $0x15f8] sm:$0xff]  ;;  %v15352_v28 = vcombine.low %v916_v57, %v924_v8  ;;  %v15369_v30 = vcombine.high %v932_v20, %v940_v24 }
 0x68e   : > { %v15371_v49 = vcombine.high %v933_v59, %v941_v26  ;;  %v15370_v43 = vcombine.low %v933_v59, %v941_v26  ;;  %v1028_v26 = vld [vmem:[%s17207_s7 + $0x18b0] sm:$0xff] }
 0x690   : > { %13956 = vmatpush1.bf16.msra.mxu0 %v15272_v35  ;;  %14284 = vmatpush1.bf16.msra.mxu1 %v15274_v38  ;;  %v956_v35 = vld [vmem:[%s17207_s7 + $0x1670] sm:$0xff]  ;;  %v949_v38 = vld [vmem:[%s17207_s7 + $0x1638] sm:$0xff] }
 0x691   : > { %13957 = vmatprep.subr.bf16.mxu0 %v15289_v41  ;;  %14285 = vmatprep.subr.bf16.mxu1 %v15291_v42  ;;  %v957_v41 = vld [vmem:[%s17207_s7 + $0x1678] sm:$0xff]  ;;  %v15368_v42 = vcombine.low %v932_v20, %v940_v24  ;;  %v15385_v25 = vcombine.high %v948_v32, %v956_v35 }
 0x692   : > { %v15387_v44 = vcombine.high %v949_v38, %v957_v41  ;;  %v15386_v54 = vcombine.low %v949_v38, %v957_v41  ;;  %v1044_v41 = vld [vmem:[%s17207_s7 + $0x1930] sm:$0xff] }
 0x694   : > { %13958 = vmatpush1.bf16.msra.mxu0 %v15288_v48  ;;  %14286 = vmatpush1.bf16.msra.mxu1 %v15290_v50  ;;  %v972_v48 = vld [vmem:[%s17207_s7 + $0x16f0] sm:$0xff]  ;;  %v965_v50 = vld [vmem:[%s17207_s7 + $0x16b8] sm:$0xff] }
 0x695   : > { %13959 = vmatprep.subr.bf16.mxu0 %v15305_v51  ;;  %14287 = vmatprep.subr.bf16.mxu1 %v15307_v52  ;;  %v973_v51 = vld [vmem:[%s17207_s7 + $0x16f8] sm:$0xff]  ;;  %v15384_v52 = vcombine.low %v948_v32, %v956_v35  ;;  %v15401_v19 = vcombine.high %v964_v47, %v972_v48 }
 0x696   : > { %v15403_v56 = vcombine.high %v965_v50, %v973_v51  ;;  %v15402_v0 = vcombine.low %v965_v50, %v973_v51  ;;  %v1060_v51 = vld [vmem:[%s17207_s7 + $0x19b0] sm:$0xff] }
 0x698   : > { %13960 = vmatpush1.bf16.msra.mxu0 %v15304_v61  ;;  %14288 = vmatpush1.bf16.msra.mxu1 %v15306_v62  ;;  %v988_v61 = vld [vmem:[%s17207_s7 + $0x1770] sm:$0xff]  ;;  %v981_v62 = vld [vmem:[%s17207_s7 + $0x1738] sm:$0xff] }
 0x699   : > { %13961 = vmatprep.subr.bf16.mxu0 %v15321_v63  ;;  %14289 = vmatprep.subr.bf16.mxu1 %v15323_v39  ;;  %v989_v63 = vld [vmem:[%s17207_s7 + $0x1778] sm:$0xff]  ;;  %v15400_v39 = vcombine.low %v964_v47, %v972_v48  ;;  %v15417_v22 = vcombine.high %v980_v60, %v988_v61 }
 0x69a   : > { %v15419_v3 = vcombine.high %v981_v62, %v989_v63  ;;  %v15418_v57 = vcombine.low %v981_v62, %v989_v63  ;;  %v1076_v62 = vld [vmem:[%s17207_s7 + $0x1a30] sm:$0xff] }
 0x69b   : > { %v1084_v63 = vld [vmem:[%s17207_s7 + $0x1a70] sm:$0xff] }
 0x69c   : > { %13962 = vmatpush1.bf16.msra.mxu0 %v15320_v4  ;;  %14290 = vmatpush1.bf16.msra.mxu1 %v15322_v5  ;;  %v1004_v4 = vld [vmem:[%s17207_s7 + $0x17f0] sm:$0xff]  ;;  %v997_v5 = vld [vmem:[%s17207_s7 + $0x17b8] sm:$0xff] }
 0x69d   : > { %13963 = vmatprep.subr.bf16.mxu0 %v15337_v6  ;;  %14291 = vmatprep.subr.bf16.mxu1 %v15339_v7  ;;  %v1005_v6 = vld [vmem:[%s17207_s7 + $0x17f8] sm:$0xff]  ;;  %v15416_v7 = vcombine.low %v980_v60, %v988_v61  ;;  %v15433_v8 = vcombine.high %v996_v12, %v1004_v4 }
 0x69e   : > { %v15435_v31 = vcombine.high %v997_v5, %v1005_v6  ;;  %v15434_v20 = vcombine.low %v997_v5, %v1005_v6  ;;  %v1100_v5 = vld [vmem:[%s17207_s7 + $0x1af0] sm:$0xff]  ;;  %v1093_v6 = vld [vmem:[%s17207_s7 + $0x1ab8] sm:$0xff] }
 0x6a0   : > { %13964 = vmatpush1.bf16.msra.mxu0 %v15336_v11  ;;  %14292 = vmatpush1.bf16.msra.mxu1 %v15338_v21  ;;  %v1020_v11 = vld [vmem:[%s17207_s7 + $0x1870] sm:$0xff]  ;;  %v1013_v21 = vld [vmem:[%s17207_s7 + $0x1838] sm:$0xff] }
 0x6a1   : > { %13965 = vmatprep.subr.bf16.mxu0 %v15353_v13  ;;  %14293 = vmatprep.subr.bf16.mxu1 %v15355_v14  ;;  %v1021_v13 = vld [vmem:[%s17207_s7 + $0x1878] sm:$0xff]  ;;  %v15432_v14 = vcombine.low %v996_v12, %v1004_v4  ;;  %v15449_v24 = vcombine.high %v1012_v10, %v1020_v11  ;;  %v1092_v4 = vld [vmem:[%s17207_s7 + $0x1ab0] sm:$0xff] }
 0x6a2   : > { %v15451_v59 = vcombine.high %v1013_v21, %v1021_v13  ;;  %v15450_v32 = vcombine.low %v1013_v21, %v1021_v13  ;;  %v1108_v21 = vld [vmem:[%s17207_s7 + $0x1b30] sm:$0xff] }
 0x6a3   : > { %v1116_v13 = vld [vmem:[%s17207_s7 + $0x1b70] sm:$0xff] }
 0x6a4   : > { %13966 = vmatpush1.bf16.msra.mxu0 %v15352_v28  ;;  %14294 = vmatpush1.bf16.msra.mxu1 %v15354_v29  ;;  %v1036_v28 = vld [vmem:[%s17207_s7 + $0x18f0] sm:$0xff]  ;;  %v1029_v29 = vld [vmem:[%s17207_s7 + $0x18b8] sm:$0xff] }
 0x6a5   : > { %13967 = vmatprep.subr.bf16.mxu0 %v15369_v30  ;;  %14295 = vmatprep.subr.bf16.mxu1 %v15371_v49  ;;  %v1037_v30 = vld [vmem:[%s17207_s7 + $0x18f8] sm:$0xff]  ;;  %v15448_v49 = vcombine.low %v1012_v10, %v1020_v11  ;;  %v15465_v35 = vcombine.high %v1028_v26, %v1036_v28  ;;  %v15529_v10 = vcombine.high %v1092_v4, %v1100_v5 }
 0x6a6   : > { %v15467_v38 = vcombine.high %v1029_v29, %v1037_v30  ;;  %v15466_v47 = vcombine.low %v1029_v29, %v1037_v30 }
 0x6a8   : > { %13968 = vmatpush1.bf16.msra.mxu0 %v15368_v42  ;;  %14296 = vmatpush1.bf16.msra.mxu1 %v15370_v43  ;;  %v1052_v42 = vld [vmem:[%s17207_s7 + $0x1970] sm:$0xff]  ;;  %v1045_v43 = vld [vmem:[%s17207_s7 + $0x1938] sm:$0xff] }
 0x6a9   : > { %13969 = vmatprep.subr.bf16.mxu0 %v15385_v25  ;;  %14297 = vmatprep.subr.bf16.mxu1 %v15387_v44  ;;  %v1053_v25 = vld [vmem:[%s17207_s7 + $0x1978] sm:$0xff]  ;;  %v15464_v44 = vcombine.low %v1028_v26, %v1036_v28  ;;  %v15481_v48 = vcombine.high %v1044_v41, %v1052_v42  ;;  %v15528_v28 = vcombine.low %v1092_v4, %v1100_v5 }
 0x6aa   : > { %v15483_v50 = vcombine.high %v1045_v43, %v1053_v25  ;;  %v1157_v4 = vld [vmem:[%s17207_s7 + $0x1cb8] sm:$0xff] }
 0x6ab   : > { %v1165_v5 = vld [vmem:[%s17207_s7 + $0x1cf8] sm:$0xff] }
 0x6ac   : > { %13970 = vmatpush1.bf16.msra.mxu0 %v15384_v52  ;;  %14298 = vmatpush1.bf16.msra.mxu1 %v15386_v54  ;;  %v1068_v52 = vld [vmem:[%s17207_s7 + $0x19f0] sm:$0xff]  ;;  %v1061_v54 = vld [vmem:[%s17207_s7 + $0x19b8] sm:$0xff] }
 0x6ad   : > { %13971 = vmatprep.subr.bf16.mxu0 %v15401_v19  ;;  %14299 = vmatprep.subr.bf16.mxu1 %v15403_v56  ;;  %v1069_v19 = vld [vmem:[%s17207_s7 + $0x19f8] sm:$0xff]  ;;  %v15482_v56 = vcombine.low %v1045_v43, %v1053_v25  ;;  %v15497_v60 = vcombine.high %v1060_v51, %v1068_v52 }
 0x6ae   : > { %v15499_v61 = vcombine.high %v1061_v54, %v1069_v19  ;;  %v1125_v43 = vld [vmem:[%s17207_s7 + $0x1bb8] sm:$0xff] }
 0x6b0   : > { %13972 = vmatpush1.bf16.msra.mxu0 %v15400_v39  ;;  %14300 = vmatpush1.bf16.msra.mxu1 %v15402_v0  ;;  %v1077_v39 = vld [vmem:[%s17207_s7 + $0x1a38] sm:$0xff] }
 0x6b1   : > { %13973 = vmatprep.subr.bf16.mxu0 %v15417_v22  ;;  %14301 = vmatprep.subr.bf16.mxu1 %v15419_v3  ;;  %v1085_v0 = vld [vmem:[%s17207_s7 + $0x1a78] sm:$0xff]  ;;  %v15496_v22 = vcombine.low %v1060_v51, %v1068_v52  ;;  %v15513_v3 = vcombine.high %v1076_v62, %v1084_v63 }
 0x6b2   : > { %v15515_v12 = vcombine.high %v1077_v39, %v1085_v0 }
 0x6b4   : > { %13974 = vmatpush1.bf16.msra.mxu0 %v15416_v7  ;;  %14302 = vmatpush1.bf16.msra.mxu1 %v15418_v57  ;;  %v1101_v7 = vld [vmem:[%s17207_s7 + $0x1af8] sm:$0xff]  ;;  %v15512_v57 = vcombine.low %v1076_v62, %v1084_v63 }
 0x6b5   : > { %13975 = vmatprep.subr.bf16.mxu0 %v15433_v8  ;;  %14303 = vmatprep.subr.bf16.mxu1 %v15435_v31  ;;  %v2159_v8 = vld [vmem:[%s17215_s17 + $0x8] sm:$0xff]  ;;  %v15514_v31 = vcombine.low %v1077_v39, %v1085_v0  ;;  %v15531_v11 = vcombine.high %v1093_v6, %v1101_v7  ;;  %v15530_v30 = vcombine.low %v1093_v6, %v1101_v7 }
 0x6b6   : > { %v2201_v26 = vrot.slane %v2159_v8, %v2168_v18  ;;  %v2209_v29 = vrot.slane %v2159_v8, %v2176_v23  ;;  %v1133_v18 = vld [vmem:[%s17207_s7 + $0x1bf8] sm:$0xff] }
 0x6b7   : > { %v1141_v62 = vld [vmem:[%s17207_s7 + $0x1c38] sm:$0xff]  ;;  %v15562_v0 = vcombine.low %v1125_v43, %v1133_v18 }
 0x6b8   : > { %13976 = vmatpush1.bf16.msra.mxu0 %v15432_v14  ;;  %14304 = vmatpush1.bf16.msra.mxu1 %v15434_v20  ;;  %v2197_v14 = vrot.slane %v2159_v8, %v2164_v9  ;;  %v1109_v20 = vld [vmem:[%s17207_s7 + $0x1b38] sm:$0xff]  ;;  %v15545_v9 = vcombine.high %v1108_v21, %v1116_v13 }
 0x6b9   : > { %13986 = vmatprep.subr.bf16.mxu0 %v15449_v24  ;;  %14314 = vmatprep.subr.bf16.mxu1 %v15451_v59  ;;  %v1117_v24 = vld [vmem:[%s17207_s7 + $0x1b78] sm:$0xff]  ;;  %v2205_v59 = vrot.slane %v2159_v8, %v2172_v17  ;;  %v15595_v8 = vcombine.high %v1157_v4, %v1165_v5 }
 0x6ba   : > { %v1149_v63 = vld [vmem:[%s17207_s7 + $0x1c78] sm:$0xff] }
 0x6bb   : > { %13978 = vmatmul.mubr.bf16.vlgmr.msra.gmra.mrb[12].mxu0 %v17466_v36  ;;  %14306 = vmatmul.mubr.bf16.vlgmr.msra.gmra.mrb[12].mxu1 %v17466_v36  ;;  %v15480_v36 = vcombine.low %v1044_v41, %v1052_v42  ;;  %v15578_v7 = vcombine.low %v1141_v62, %v1149_v63 }
 0x6bc   : > { %13987 = vmatpush1.bf16.msra.mxu0 %v15448_v49  ;;  %14315 = vmatpush1.bf16.msra.mxu1 %v15450_v32  ;;  %v15547_v32 = vcombine.high %v1109_v20, %v1117_v24 }
 0x6bd   : > { %13988 = vmatprep.subr.bf16.mxu0 %v15465_v35  ;;  %14316 = vmatprep.subr.bf16.mxu1 %v15467_v38  ;;  %v1124_v35 = vld [vmem:[%s17207_s7 + $0x1bb0] sm:$0xff] }
 0x6be   : > { %14018 = vmatprep.mubr.bf16.mxu0 %v17479_v45  ;;  %14346 = vmatprep.mubr.bf16.mxu1 %v17479_v45  ;;  %v15498_v45 = vcombine.low %v1061_v54, %v1069_v19  ;;  %v1132_v38 = vld [vmem:[%s17207_s7 + $0x1bf0] sm:$0xff]  ;;  %v15546_v54 = vcombine.low %v1109_v20, %v1117_v24 }
 0x6bf   : > { %v15561_v19 = vcombine.high %v1124_v35, %v1132_v38  ;;  %v15560_v39 = vcombine.low %v1124_v35, %v1132_v38  ;;  %v1204_v35 = vld [vmem:[%s17207_s7 + $0x1e30] sm:$0xff] }
 0x6c0   : > { %13989 = vmatpush1.bf16.msra.mxu0 %v15464_v44  ;;  %14317 = vmatpush1.bf16.msra.mxu1 %v15466_v47  ;;  %v1212_v38 = vld [vmem:[%s17207_s7 + $0x1e70] sm:$0xff] }
 0x6c1   : > { %13990 = vmatprep.subr.bf16.mxu0 %v15481_v48  ;;  %14318 = vmatprep.subr.bf16.mxu1 %v15483_v50  ;;  %v15544_v48 = vcombine.low %v1108_v21, %v1116_v13  ;;  %v1181_v21 = vld [vmem:[%s17207_s7 + $0x1d78] sm:$0xff] }
 0x6c4   : > { %13991 = vmatpush1.bf16.msra.mxu0 %v15480_v36  ;;  %14319 = vmatpush1.bf16.msra.mxu1 %v15482_v56  ;;  %v15563_v56 = vcombine.high %v1125_v43, %v1133_v18  ;;  %v15641_v18 = vcombine.high %v1204_v35, %v1212_v38 }
 0x6c5   : > { %13992 = vmatprep.subr.bf16.mxu0 %v15497_v60  ;;  %14320 = vmatprep.subr.bf16.mxu1 %v15499_v61  ;;  %v1140_v60 = vld [vmem:[%s17207_s7 + $0x1c30] sm:$0xff] }
 0x6c6   : > { %v1148_v61 = vld [vmem:[%s17207_s7 + $0x1c70] sm:$0xff] }
 0x6c7   : > { %v15576_v6 = vcombine.low %v1140_v60, %v1148_v61 }
 0x6c8   : > { %13993 = vmatpush1.bf16.msra.mxu0 %v15496_v22  ;;  %14321 = vmatpush1.bf16.msra.mxu1 %v15498_v45  ;;  %v15577_v22 = vcombine.high %v1140_v60, %v1148_v61  ;;  %v15579_v45 = vcombine.high %v1141_v62, %v1149_v63  ;;  %v1245_v60 = vld [vmem:[%s17207_s7 + $0x1f78] sm:$0xff] }
 0x6c9   : > { %13994 = vmatprep.subr.bf16.mxu0 %v15513_v3  ;;  %14322 = vmatprep.subr.bf16.mxu1 %v15515_v12  ;;  %v1156_v3 = vld [vmem:[%s17207_s7 + $0x1cb0] sm:$0xff] }
 0x6ca   : > { %v1164_v12 = vld [vmem:[%s17207_s7 + $0x1cf0] sm:$0xff] }
 0x6cb   : > { %v15592_v13 = vcombine.low %v1156_v3, %v1164_v12 }
 0x6cc   : > { %13995 = vmatpush1.bf16.msra.mxu0 %v15512_v57  ;;  %14323 = vmatpush1.bf16.msra.mxu1 %v15514_v31  ;;  %v15593_v57 = vcombine.high %v1156_v3, %v1164_v12  ;;  %v1172_v31 = vld [vmem:[%s17207_s7 + $0x1d30] sm:$0xff]  ;;  %v1261_v3 = vld [vmem:[%s17207_s7 + $0x1ff8] sm:$0xff] }
 0x6cd   : > { %13996 = vmatprep.subr.bf16.mxu0 %v15529_v10  ;;  %14324 = vmatprep.subr.bf16.mxu1 %v15531_v11  ;;  %v1180_v10 = vld [vmem:[%s17207_s7 + $0x1d70] sm:$0xff]  ;;  %v1173_v11 = vld [vmem:[%s17207_s7 + $0x1d38] sm:$0xff] }
 0x6ce   : > { %v13528_v49 = vpop.f32.mrb[8].mxu0  ;;  %v13856_v41 = vpop.f32.mrb[8].mxu1  ;;  %v15609_v20 = vcombine.high %v1172_v31, %v1180_v10  ;;  %v15611_v24 = vcombine.high %v1173_v11, %v1181_v21 }
 0x6cf   : > { %v16603_v17 = vadd.f32 %v13528_v49, %v2197_v14  ;;  %v13530_v42 = vpop.f32.mrb[9].mxu0  ;;  %v16605_v25 = vadd.f32 %v13856_v41, %v2205_v59  ;;  %v13858_v47 = vpop.f32.mrb[9].mxu1  ;;  %v15594_v14 = vcombine.low %v1157_v4, %v1165_v5  ;;  %v1188_v59 = vld [vmem:[%s17207_s7 + $0x1db0] sm:$0xff]  ;;  %v1213_v41 = vld [vmem:[%s17207_s7 + $0x1e78] sm:$0xff] }
 0x6d0   : > { %v16604_v44 = vadd.f32 %v13530_v42, %v2201_v26  ;;  %v13532_v23 = vpop.f32.mrb[10].mxu0  ;;  %13997 = vmatpush1.bf16.msra.mxu0 %v15528_v28  ;;  %v16606_v50 = vadd.f32 %v13858_v47, %v2209_v29  ;;  %v13860_v51 = vpop.f32.mrb[10].mxu1  ;;  %14325 = vmatpush1.bf16.msra.mxu1 %v15530_v30  ;;  %v1196_v26 = vld [vmem:[%s17207_s7 + $0x1df0] sm:$0xff]  ;;  %v1189_v28 = vld [vmem:[%s17207_s7 + $0x1db8] sm:$0xff]  ;;  %v15608_v30 = vcombine.low %v1172_v31, %v1180_v10 }
 0x6d1   : > { %14527 = vst [vmem:[%s18079_s30 + $0x40] sm:$0xff] %v16603_v17  ;;  %v13533_v52 = vpop.f32.mrb[11].mxu0  ;;  %13998 = vmatprep.subr.bf16.mxu0 %v15545_v9  ;;  %14529 = vst [vmem:[%s18079_s30 + $0x50] sm:$0xff] %v16605_v25  ;;  %v13861_v36 = vpop.f32.mrb[11].mxu1  ;;  %14326 = vmatprep.subr.bf16.mxu1 %v15547_v32  ;;  %v1197_v29 = vld [vmem:[%s17207_s7 + $0x1df8] sm:$0xff]  ;;  %v15610_v9 = vcombine.low %v1173_v11, %v1181_v21  ;;  %v15625_v49 = vcombine.high %v1188_v59, %v1196_v26  ;;  %v1228_v47 = vld [vmem:[%s17207_s7 + $0x1ef0] sm:$0xff] }
 0x6d2   : > { %14528 = vst [vmem:[%s18079_s30 + $0x48] sm:$0xff] %v16604_v44  ;;  %14530 = vst [vmem:[%s18079_s30 + $0x58] sm:$0xff] %v16606_v50  ;;  %v15627_v32 = vcombine.high %v1189_v28, %v1197_v29  ;;  %v1205_v17 = vld [vmem:[%s17207_s7 + $0x1e38] sm:$0xff]  ;;  %v15624_v42 = vcombine.low %v1188_v59, %v1196_v26  ;;  %v15626_v43 = vcombine.low %v1189_v28, %v1197_v29  ;;  %v1220_v44 = vld [vmem:[%s17207_s7 + $0x1eb0] sm:$0xff] }
 0x6d3   : > { %v15643_v25 = vcombine.high %v1205_v17, %v1213_v41  ;;  %v1221_v23 = vld [vmem:[%s17207_s7 + $0x1eb8] sm:$0xff]  ;;  %v15640_v50 = vcombine.low %v1204_v35, %v1212_v38  ;;  %v15642_v51 = vcombine.low %v1205_v17, %v1213_v41  ;;  %v15657_v52 = vcombine.high %v1220_v44, %v1228_v47  ;;  %v1244_v36 = vld [vmem:[%s17207_s7 + $0x1f70] sm:$0xff] }
 0x6d4   : > { %13999 = vmatpush1.bf16.msra.mxu0 %v15544_v48  ;;  %14327 = vmatpush1.bf16.msra.mxu1 %v15546_v54  ;;  %v1229_v48 = vld [vmem:[%s17207_s7 + $0x1ef8] sm:$0xff]  ;;  %v15656_v61 = vcombine.low %v1220_v44, %v1228_v47 }
 0x6d5   : > { %14000 = vmatprep.subr.bf16.mxu0 %v15561_v19  ;;  %14328 = vmatprep.subr.bf16.mxu1 %v15563_v56  ;;  %v15659_v54 = vcombine.high %v1221_v23, %v1229_v48  ;;  %v1236_v19 = vld [vmem:[%s17207_s7 + $0x1f30] sm:$0xff]  ;;  %v1237_v56 = vld [vmem:[%s17207_s7 + $0x1f38] sm:$0xff]  ;;  %v15658_v62 = vcombine.low %v1221_v23, %v1229_v48 }
 0x6d6   : > { %v15673_v63 = vcombine.high %v1236_v19, %v1244_v36  ;;  %v15672_v12 = vcombine.low %v1236_v19, %v1244_v36  ;;  %v15674_v4 = vcombine.low %v1237_v56, %v1245_v60  ;;  %v1277_v31 = vld [vmem:[%s17207_s7 + $0x2078] sm:$0xff] }
 0x6d7   : > { %v1293_v59 = vld [vmem:[%s17207_s7 + $0x20f8] sm:$0xff] }
 0x6d8   : > { %14001 = vmatpush1.bf16.msra.mxu0 %v15560_v39  ;;  %14329 = vmatpush1.bf16.msra.mxu1 %v15562_v0  ;;  %v15675_v39 = vcombine.high %v1237_v56, %v1245_v60  ;;  %v1252_v0 = vld [vmem:[%s17207_s7 + $0x1fb0] sm:$0xff]  ;;  %v1309_v35 = vld [vmem:[%s17207_s7 + $0x2178] sm:$0xff] }
 0x6d9   : > { %14002 = vmatprep.subr.bf16.mxu0 %v15577_v22  ;;  %14330 = vmatprep.subr.bf16.mxu1 %v15579_v45  ;;  %v1260_v22 = vld [vmem:[%s17207_s7 + $0x1ff0] sm:$0xff]  ;;  %v1253_v45 = vld [vmem:[%s17207_s7 + $0x1fb8] sm:$0xff] }
 0x6da   : > { %v15689_v5 = vcombine.high %v1252_v0, %v1260_v22  ;;  %v15688_v10 = vcombine.low %v1252_v0, %v1260_v22  ;;  %v15690_v11 = vcombine.low %v1253_v45, %v1261_v3  ;;  %v1325_v44 = vld [vmem:[%s17207_s7 + $0x21f8] sm:$0xff]  ;;  %v1348_v60 = vld [vmem:[%s17207_s7 + $0x22b0] sm:$0xff] }
 0x6dc   : > { %14003 = vmatpush1.bf16.msra.mxu0 %v15576_v6  ;;  %14331 = vmatpush1.bf16.msra.mxu1 %v15578_v7  ;;  %v15691_v6 = vcombine.high %v1253_v45, %v1261_v3  ;;  %v1268_v7 = vld [vmem:[%s17207_s7 + $0x2030] sm:$0xff] }
 0x6dd   : > { %14004 = vmatprep.subr.bf16.mxu0 %v15593_v57  ;;  %14332 = vmatprep.subr.bf16.mxu1 %v15595_v8  ;;  %v1276_v57 = vld [vmem:[%s17207_s7 + $0x2070] sm:$0xff]  ;;  %v1269_v8 = vld [vmem:[%s17207_s7 + $0x2038] sm:$0xff] }
 0x6de   : > { %v15705_v21 = vcombine.high %v1268_v7, %v1276_v57  ;;  %v15704_v26 = vcombine.low %v1268_v7, %v1276_v57  ;;  %v15706_v28 = vcombine.low %v1269_v8, %v1277_v31  ;;  %v1364_v3 = vld [vmem:[%s17207_s7 + $0x2330] sm:$0xff] }
 0x6e0   : > { %14005 = vmatpush1.bf16.msra.mxu0 %v15592_v13  ;;  %14333 = vmatpush1.bf16.msra.mxu1 %v15594_v14  ;;  %v15707_v13 = vcombine.high %v1269_v8, %v1277_v31  ;;  %v1284_v14 = vld [vmem:[%s17207_s7 + $0x20b0] sm:$0xff] }
 0x6e1   : > { %14006 = vmatprep.subr.bf16.mxu0 %v15609_v20  ;;  %14334 = vmatprep.subr.bf16.mxu1 %v15611_v24  ;;  %v1292_v20 = vld [vmem:[%s17207_s7 + $0x20f0] sm:$0xff]  ;;  %v1285_v24 = vld [vmem:[%s17207_s7 + $0x20b8] sm:$0xff] }
 0x6e2   : > { %v15721_v29 = vcombine.high %v1284_v14, %v1292_v20  ;;  %v15720_v38 = vcombine.low %v1284_v14, %v1292_v20  ;;  %v15722_v17 = vcombine.low %v1285_v24, %v1293_v59  ;;  %v1380_v31 = vld [vmem:[%s17207_s7 + $0x23b0] sm:$0xff] }
 0x6e4   : > { %14007 = vmatpush1.bf16.msra.mxu0 %v15608_v30  ;;  %14335 = vmatpush1.bf16.msra.mxu1 %v15610_v9  ;;  %v15723_v30 = vcombine.high %v1285_v24, %v1293_v59  ;;  %v1300_v9 = vld [vmem:[%s17207_s7 + $0x2130] sm:$0xff] }
 0x6e5   : > { %14008 = vmatprep.subr.bf16.mxu0 %v15625_v49  ;;  %14336 = vmatprep.subr.bf16.mxu1 %v15627_v32  ;;  %v1308_v49 = vld [vmem:[%s17207_s7 + $0x2170] sm:$0xff]  ;;  %v1301_v32 = vld [vmem:[%s17207_s7 + $0x2138] sm:$0xff] }
 0x6e6   : > { %v15737_v41 = vcombine.high %v1300_v9, %v1308_v49  ;;  %v15738_v47 = vcombine.low %v1301_v32, %v1309_v35  ;;  %v1396_v59 = vld [vmem:[%s17207_s7 + $0x2430] sm:$0xff] }
 0x6e8   : > { %14009 = vmatpush1.bf16.msra.mxu0 %v15624_v42  ;;  %14337 = vmatpush1.bf16.msra.mxu1 %v15626_v43  ;;  %v15739_v42 = vcombine.high %v1301_v32, %v1309_v35  ;;  %v1316_v43 = vld [vmem:[%s17207_s7 + $0x21b0] sm:$0xff] }
 0x6e9   : > { %14010 = vmatprep.subr.bf16.mxu0 %v15641_v18  ;;  %14338 = vmatprep.subr.bf16.mxu1 %v15643_v25  ;;  %v1324_v18 = vld [vmem:[%s17207_s7 + $0x21f0] sm:$0xff]  ;;  %v1317_v25 = vld [vmem:[%s17207_s7 + $0x21b8] sm:$0xff] }
 0x6ea   : > { %v15753_v23 = vcombine.high %v1316_v43, %v1324_v18  ;;  %v15755_v48 = vcombine.high %v1317_v25, %v1325_v44  ;;  %v15752_v19 = vcombine.low %v1316_v43, %v1324_v18  ;;  %v1412_v35 = vld [vmem:[%s17207_s7 + $0x24b0] sm:$0xff] }
 0x6ec   : > { %14011 = vmatpush1.bf16.msra.mxu0 %v15640_v50  ;;  %14339 = vmatpush1.bf16.msra.mxu1 %v15642_v51  ;;  %v1332_v50 = vld [vmem:[%s17207_s7 + $0x2230] sm:$0xff] }
 0x6ed   : > { %14012 = vmatprep.subr.bf16.mxu0 %v15657_v52  ;;  %14340 = vmatprep.subr.bf16.mxu1 %v15659_v54  ;;  %v1340_v51 = vld [vmem:[%s17207_s7 + $0x2270] sm:$0xff]  ;;  %v1333_v52 = vld [vmem:[%s17207_s7 + $0x2238] sm:$0xff] }
 0x6ee   : > { %v1341_v54 = vld [vmem:[%s17207_s7 + $0x2278] sm:$0xff]  ;;  %v15769_v36 = vcombine.high %v1332_v50, %v1340_v51 }
 0x6ef   : > { %v15771_v56 = vcombine.high %v1333_v52, %v1341_v54  ;;  %v15770_v0 = vcombine.low %v1333_v52, %v1341_v54  ;;  %v1444_v54 = vld [vmem:[%s17207_s7 + $0x25b0] sm:$0xff] }
 0x6f0   : > { %14013 = vmatpush1.bf16.msra.mxu0 %v15656_v61  ;;  %14341 = vmatpush1.bf16.msra.mxu1 %v15658_v62  ;;  %v1356_v61 = vld [vmem:[%s17207_s7 + $0x22f0] sm:$0xff]  ;;  %v1349_v62 = vld [vmem:[%s17207_s7 + $0x22b8] sm:$0xff] }
 0x6f1   : > { %14014 = vmatprep.subr.bf16.mxu0 %v15673_v63  ;;  %14342 = vmatprep.subr.bf16.mxu1 %v15675_v39  ;;  %v1357_v63 = vld [vmem:[%s17207_s7 + $0x22f8] sm:$0xff]  ;;  %v15768_v39 = vcombine.low %v1332_v50, %v1340_v51  ;;  %v15785_v22 = vcombine.high %v1348_v60, %v1356_v61 }
 0x6f2   : > { %v15787_v45 = vcombine.high %v1349_v62, %v1357_v63  ;;  %v15786_v7 = vcombine.low %v1349_v62, %v1357_v63  ;;  %v1460_v63 = vld [vmem:[%s17207_s7 + $0x2630] sm:$0xff] }
 0x6f4   : > { %14015 = vmatpush1.bf16.msra.mxu0 %v15672_v12  ;;  %14343 = vmatpush1.bf16.msra.mxu1 %v15674_v4  ;;  %v1372_v12 = vld [vmem:[%s17207_s7 + $0x2370] sm:$0xff]  ;;  %v1365_v4 = vld [vmem:[%s17207_s7 + $0x2338] sm:$0xff] }
 0x6f5   : > { %14016 = vmatprep.subr.bf16.mxu0 %v15689_v5  ;;  %14344 = vmatprep.subr.bf16.mxu1 %v15691_v6  ;;  %v1373_v5 = vld [vmem:[%s17207_s7 + $0x2378] sm:$0xff]  ;;  %v15784_v6 = vcombine.low %v1348_v60, %v1356_v61  ;;  %v15801_v57 = vcombine.high %v1364_v3, %v1372_v12 }
 0x6f6   : > { %v15803_v8 = vcombine.high %v1365_v4, %v1373_v5  ;;  %v15802_v14 = vcombine.low %v1365_v4, %v1373_v5  ;;  %v1476_v5 = vld [vmem:[%s17207_s7 + $0x26b0] sm:$0xff] }
 0x6f8   : > { %14017 = vmatpush1.bf16.msra.mxu0 %v15688_v10  ;;  %14345 = vmatpush1.bf16.msra.mxu1 %v15690_v11  ;;  %v1388_v10 = vld [vmem:[%s17207_s7 + $0x23f0] sm:$0xff]  ;;  %v1381_v11 = vld [vmem:[%s17207_s7 + $0x23b8] sm:$0xff] }
 0x6f9   : > { %14027 = vmatprep.subr.bf16.mxu0 %v15705_v21  ;;  %14355 = vmatprep.subr.bf16.mxu1 %v15707_v13  ;;  %v1389_v21 = vld [vmem:[%s17207_s7 + $0x23f8] sm:$0xff]  ;;  %v15800_v13 = vcombine.low %v1364_v3, %v1372_v12  ;;  %v15817_v20 = vcombine.high %v1380_v31, %v1388_v10 }
 0x6fa   : > { %v15819_v24 = vcombine.high %v1381_v11, %v1389_v21 }
 0x6fb   : > { %14019 = vmatmul.mubr.bf16.vlgmr.msra.gmra.mrb[12].mxu0 %v17547_v55  ;;  %14347 = vmatmul.mubr.bf16.vlgmr.msra.gmra.mrb[12].mxu1 %v17547_v55  ;;  %v15736_v55 = vcombine.low %v1300_v9, %v1308_v49  ;;  %v15818_v9 = vcombine.low %v1381_v11, %v1389_v21  ;;  %v1492_v21 = vld [vmem:[%s17207_s7 + $0x2730] sm:$0xff] }
 0x6fc   : > { %14028 = vmatpush1.bf16.msra.mxu0 %v15704_v26  ;;  %14356 = vmatpush1.bf16.msra.mxu1 %v15706_v28  ;;  %v1404_v26 = vld [vmem:[%s17207_s7 + $0x2470] sm:$0xff]  ;;  %v1397_v28 = vld [vmem:[%s17207_s7 + $0x2438] sm:$0xff] }
 0x6fd   : > { %14029 = vmatprep.subr.bf16.mxu0 %v15721_v29  ;;  %14357 = vmatprep.subr.bf16.mxu1 %v15723_v30  ;;  %v1405_v29 = vld [vmem:[%s17207_s7 + $0x2478] sm:$0xff]  ;;  %v15816_v30 = vcombine.low %v1380_v31, %v1388_v10  ;;  %v15833_v49 = vcombine.high %v1396_v59, %v1404_v26 }
 0x6fe   : > { %14059 = vmatprep.mubr.bf16.mxu0 %v17560_v1  ;;  %14387 = vmatprep.mubr.bf16.mxu1 %v17560_v1  ;;  %v15754_v1 = vcombine.low %v1317_v25, %v1325_v44  ;;  %v15835_v32 = vcombine.high %v1397_v28, %v1405_v29  ;;  %v15834_v43 = vcombine.low %v1397_v28, %v1405_v29  ;;  %v1428_v44 = vld [vmem:[%s17207_s7 + $0x2530] sm:$0xff] }
 0x6ff   : > { %v1508_v29 = vld [vmem:[%s17207_s7 + $0x27b0] sm:$0xff] }
 0x700   : > { %14030 = vmatpush1.bf16.msra.mxu0 %v15720_v38  ;;  %14358 = vmatpush1.bf16.msra.mxu1 %v15722_v17  ;;  %v1420_v38 = vld [vmem:[%s17207_s7 + $0x24f0] sm:$0xff]  ;;  %v1413_v17 = vld [vmem:[%s17207_s7 + $0x24b8] sm:$0xff] }
 0x701   : > { %14031 = vmatprep.subr.bf16.mxu0 %v15737_v41  ;;  %14359 = vmatprep.subr.bf16.mxu1 %v15739_v42  ;;  %v1421_v41 = vld [vmem:[%s17207_s7 + $0x24f8] sm:$0xff]  ;;  %v15832_v42 = vcombine.low %v1396_v59, %v1404_v26  ;;  %v15849_v18 = vcombine.high %v1412_v35, %v1420_v38 }
 0x702   : > { %v15851_v25 = vcombine.high %v1413_v17, %v1421_v41  ;;  %v15850_v50 = vcombine.low %v1413_v17, %v1421_v41  ;;  %v1524_v41 = vld [vmem:[%s17207_s7 + $0x2830] sm:$0xff] }
 0x704   : > { %14032 = vmatpush1.bf16.msra.mxu0 %v15736_v55  ;;  %14360 = vmatpush1.bf16.msra.mxu1 %v15738_v47  ;;  %v1436_v55 = vld [vmem:[%s17207_s7 + $0x2570] sm:$0xff]  ;;  %v1429_v47 = vld [vmem:[%s17207_s7 + $0x2538] sm:$0xff] }
 0x705   : > { %14033 = vmatprep.subr.bf16.mxu0 %v15753_v23  ;;  %14361 = vmatprep.subr.bf16.mxu1 %v15755_v48  ;;  %v1437_v23 = vld [vmem:[%s17207_s7 + $0x2578] sm:$0xff]  ;;  %v15848_v48 = vcombine.low %v1412_v35, %v1420_v38  ;;  %v15865_v51 = vcombine.high %v1428_v44, %v1436_v55 }
 0x706   : > { %v15867_v52 = vcombine.high %v1429_v47, %v1437_v23  ;;  %v15866_v60 = vcombine.low %v1429_v47, %v1437_v23  ;;  %v1540_v23 = vld [vmem:[%s17207_s7 + $0x28b0] sm:$0xff] }
 0x708   : > { %14034 = vmatpush1.bf16.msra.mxu0 %v15752_v19  ;;  %14362 = vmatpush1.bf16.msra.mxu1 %v15754_v1  ;;  %v1452_v19 = vld [vmem:[%s17207_s7 + $0x25f0] sm:$0xff]  ;;  %v1445_v1 = vld [vmem:[%s17207_s7 + $0x25b8] sm:$0xff] }
 0x709   : > { %14035 = vmatprep.subr.bf16.mxu0 %v15769_v36  ;;  %14363 = vmatprep.subr.bf16.mxu1 %v15771_v56  ;;  %v1453_v36 = vld [vmem:[%s17207_s7 + $0x25f8] sm:$0xff]  ;;  %v15864_v56 = vcombine.low %v1428_v44, %v1436_v55  ;;  %v15881_v61 = vcombine.high %v1444_v54, %v1452_v19 }
 0x70a   : > { %v15883_v62 = vcombine.high %v1445_v1, %v1453_v36  ;;  %v15882_v3 = vcombine.low %v1445_v1, %v1453_v36  ;;  %v1556_v36 = vld [vmem:[%s17207_s7 + $0x2930] sm:$0xff] }
 0x70c   : > { %14036 = vmatpush1.bf16.msra.mxu0 %v15768_v39  ;;  %14364 = vmatpush1.bf16.msra.mxu1 %v15770_v0  ;;  %v1468_v39 = vld [vmem:[%s17207_s7 + $0x2670] sm:$0xff]  ;;  %v1461_v0 = vld [vmem:[%s17207_s7 + $0x2638] sm:$0xff] }
 0x70d   : > { %14037 = vmatprep.subr.bf16.mxu0 %v15785_v22  ;;  %14365 = vmatprep.subr.bf16.mxu1 %v15787_v45  ;;  %v1469_v22 = vld [vmem:[%s17207_s7 + $0x2678] sm:$0xff]  ;;  %v15880_v45 = vcombine.low %v1444_v54, %v1452_v19  ;;  %v15897_v12 = vcombine.high %v1460_v63, %v1468_v39 }
 0x70e   : > { %v15899_v4 = vcombine.high %v1461_v0, %v1469_v22  ;;  %v15898_v31 = vcombine.low %v1461_v0, %v1469_v22  ;;  %v1572_v22 = vld [vmem:[%s17207_s7 + $0x29b0] sm:$0xff] }
 0x710   : > { %14038 = vmatpush1.bf16.msra.mxu0 %v15784_v6  ;;  %14366 = vmatpush1.bf16.msra.mxu1 %v15786_v7  ;;  %v1484_v6 = vld [vmem:[%s17207_s7 + $0x26f0] sm:$0xff]  ;;  %v1477_v7 = vld [vmem:[%s17207_s7 + $0x26b8] sm:$0xff] }
 0x711   : > { %14039 = vmatprep.subr.bf16.mxu0 %v15801_v57  ;;  %14367 = vmatprep.subr.bf16.mxu1 %v15803_v8  ;;  %v1485_v57 = vld [vmem:[%s17207_s7 + $0x26f8] sm:$0xff]  ;;  %v15896_v8 = vcombine.low %v1460_v63, %v1468_v39  ;;  %v15913_v10 = vcombine.high %v1476_v5, %v1484_v6 }
 0x712   : > { %v15915_v11 = vcombine.high %v1477_v7, %v1485_v57  ;;  %v15914_v59 = vcombine.low %v1477_v7, %v1485_v57  ;;  %v1588_v7 = vld [vmem:[%s17207_s7 + $0x2a30] sm:$0xff] }
 0x713   : > { %v1596_v57 = vld [vmem:[%s17207_s7 + $0x2a70] sm:$0xff] }
 0x714   : > { %14040 = vmatpush1.bf16.msra.mxu0 %v15800_v13  ;;  %14368 = vmatpush1.bf16.msra.mxu1 %v15802_v14  ;;  %v1500_v13 = vld [vmem:[%s17207_s7 + $0x2770] sm:$0xff]  ;;  %v1493_v14 = vld [vmem:[%s17207_s7 + $0x2738] sm:$0xff] }
 0x715   : > { %14041 = vmatprep.subr.bf16.mxu0 %v15817_v20  ;;  %14369 = vmatprep.subr.bf16.mxu1 %v15819_v24  ;;  %v1501_v20 = vld [vmem:[%s17207_s7 + $0x2778] sm:$0xff]  ;;  %v15912_v24 = vcombine.low %v1476_v5, %v1484_v6  ;;  %v15929_v26 = vcombine.high %v1492_v21, %v1500_v13 }
 0x716   : > { %v15931_v28 = vcombine.high %v1493_v14, %v1501_v20  ;;  %v15930_v35 = vcombine.low %v1493_v14, %v1501_v20  ;;  %v1612_v14 = vld [vmem:[%s17207_s7 + $0x2af0] sm:$0xff]  ;;  %v1605_v20 = vld [vmem:[%s17207_s7 + $0x2ab8] sm:$0xff] }
 0x718   : > { %14042 = vmatpush1.bf16.msra.mxu0 %v15816_v30  ;;  %14370 = vmatpush1.bf16.msra.mxu1 %v15818_v9  ;;  %v1516_v30 = vld [vmem:[%s17207_s7 + $0x27f0] sm:$0xff]  ;;  %v1509_v9 = vld [vmem:[%s17207_s7 + $0x27b8] sm:$0xff] }
 0x719   : > { %14043 = vmatprep.subr.bf16.mxu0 %v15833_v49  ;;  %14371 = vmatprep.subr.bf16.mxu1 %v15835_v32  ;;  %v1517_v49 = vld [vmem:[%s17207_s7 + $0x27f8] sm:$0xff]  ;;  %v15928_v32 = vcombine.low %v1492_v21, %v1500_v13  ;;  %v15945_v38 = vcombine.high %v1508_v29, %v1516_v30  ;;  %v1604_v13 = vld [vmem:[%s17207_s7 + $0x2ab0] sm:$0xff] }
 0x71a   : > { %v15947_v17 = vcombine.high %v1509_v9, %v1517_v49  ;;  %v15946_v44 = vcombine.low %v1509_v9, %v1517_v49  ;;  %v1628_v9 = vld [vmem:[%s17207_s7 + $0x2b70] sm:$0xff]  ;;  %v1621_v49 = vld [vmem:[%s17207_s7 + $0x2b38] sm:$0xff] }
 0x71c   : > { %14044 = vmatpush1.bf16.msra.mxu0 %v15832_v42  ;;  %14372 = vmatpush1.bf16.msra.mxu1 %v15834_v43  ;;  %v1532_v42 = vld [vmem:[%s17207_s7 + $0x2870] sm:$0xff]  ;;  %v1525_v43 = vld [vmem:[%s17207_s7 + $0x2838] sm:$0xff] }
 0x71d   : > { %14045 = vmatprep.subr.bf16.mxu0 %v15849_v18  ;;  %14373 = vmatprep.subr.bf16.mxu1 %v15851_v25  ;;  %v1533_v18 = vld [vmem:[%s17207_s7 + $0x2878] sm:$0xff]  ;;  %v15944_v25 = vcombine.low %v1508_v29, %v1516_v30  ;;  %v15961_v55 = vcombine.high %v1524_v41, %v1532_v42  ;;  %v1620_v30 = vld [vmem:[%s17207_s7 + $0x2b30] sm:$0xff] }
 0x71e   : > { %v15963_v47 = vcombine.high %v1525_v43, %v1533_v18  ;;  %v15962_v54 = vcombine.low %v1525_v43, %v1533_v18  ;;  %v1644_v43 = vld [vmem:[%s17207_s7 + $0x2bf0] sm:$0xff]  ;;  %v1637_v18 = vld [vmem:[%s17207_s7 + $0x2bb8] sm:$0xff] }
 0x720   : > { %14046 = vmatpush1.bf16.msra.mxu0 %v15848_v48  ;;  %14374 = vmatpush1.bf16.msra.mxu1 %v15850_v50  ;;  %v1548_v48 = vld [vmem:[%s17207_s7 + $0x28f0] sm:$0xff]  ;;  %v1541_v50 = vld [vmem:[%s17207_s7 + $0x28b8] sm:$0xff] }
 0x721   : > { %14047 = vmatprep.subr.bf16.mxu0 %v15865_v51  ;;  %14375 = vmatprep.subr.bf16.mxu1 %v15867_v52  ;;  %v1549_v51 = vld [vmem:[%s17207_s7 + $0x28f8] sm:$0xff]  ;;  %v15960_v52 = vcombine.low %v1524_v41, %v1532_v42  ;;  %v15977_v19 = vcombine.high %v1540_v23, %v1548_v48  ;;  %v1636_v42 = vld [vmem:[%s17207_s7 + $0x2bb0] sm:$0xff] }
 0x722   : > { %v15979_v1 = vcombine.high %v1541_v50, %v1549_v51  ;;  %v15978_v63 = vcombine.low %v1541_v50, %v1549_v51  ;;  %v1660_v50 = vld [vmem:[%s17207_s7 + $0x2c70] sm:$0xff]  ;;  %v1653_v51 = vld [vmem:[%s17207_s7 + $0x2c38] sm:$0xff] }
 0x724   : > { %14048 = vmatpush1.bf16.msra.mxu0 %v15864_v56  ;;  %14376 = vmatpush1.bf16.msra.mxu1 %v15866_v60  ;;  %v1564_v56 = vld [vmem:[%s17207_s7 + $0x2970] sm:$0xff]  ;;  %v1557_v60 = vld [vmem:[%s17207_s7 + $0x2938] sm:$0xff] }
 0x725   : > { %14049 = vmatprep.subr.bf16.mxu0 %v15881_v61  ;;  %14377 = vmatprep.subr.bf16.mxu1 %v15883_v62  ;;  %v1565_v61 = vld [vmem:[%s17207_s7 + $0x2978] sm:$0xff]  ;;  %v15976_v62 = vcombine.low %v1540_v23, %v1548_v48  ;;  %v15993_v39 = vcombine.high %v1556_v36, %v1564_v56  ;;  %v1652_v48 = vld [vmem:[%s17207_s7 + $0x2c30] sm:$0xff] }
 0x726   : > { %v15995_v0 = vcombine.high %v1557_v60, %v1565_v61 }
 0x728   : > { %14050 = vmatpush1.bf16.msra.mxu0 %v15880_v45  ;;  %14378 = vmatpush1.bf16.msra.mxu1 %v15882_v3  ;;  %v1580_v45 = vld [vmem:[%s17207_s7 + $0x29f0] sm:$0xff]  ;;  %v1573_v3 = vld [vmem:[%s17207_s7 + $0x29b8] sm:$0xff] }
 0x729   : > { %14051 = vmatprep.subr.bf16.mxu0 %v15897_v12  ;;  %14379 = vmatprep.subr.bf16.mxu1 %v15899_v4  ;;  %v1581_v12 = vld [vmem:[%s17207_s7 + $0x29f8] sm:$0xff]  ;;  %v15994_v4 = vcombine.low %v1557_v60, %v1565_v61  ;;  %v16009_v5 = vcombine.high %v1572_v22, %v1580_v45  ;;  %v1676_v60 = vld [vmem:[%s17207_s7 + $0x2cf0] sm:$0xff] }
 0x72a   : > { %v16011_v6 = vcombine.high %v1573_v3, %v1581_v12  ;;  %v1669_v61 = vld [vmem:[%s17207_s7 + $0x2cb8] sm:$0xff] }
 0x72c   : > { %14052 = vmatpush1.bf16.msra.mxu0 %v15896_v8  ;;  %14380 = vmatpush1.bf16.msra.mxu1 %v15898_v31  ;;  %v1589_v8 = vld [vmem:[%s17207_s7 + $0x2a38] sm:$0xff] }
 0x72d   : > { %14053 = vmatprep.subr.bf16.mxu0 %v15913_v10  ;;  %14381 = vmatprep.subr.bf16.mxu1 %v15915_v11  ;;  %v1597_v31 = vld [vmem:[%s17207_s7 + $0x2a78] sm:$0xff]  ;;  %v16008_v10 = vcombine.low %v1572_v22, %v1580_v45  ;;  %v16025_v11 = vcombine.high %v1588_v7, %v1596_v57  ;;  %v1684_v45 = vld [vmem:[%s17207_s7 + $0x2d30] sm:$0xff] }
 0x72e   : > { %v16027_v21 = vcombine.high %v1589_v8, %v1597_v31 }
 0x730   : > { %14054 = vmatpush1.bf16.msra.mxu0 %v15912_v24  ;;  %14382 = vmatpush1.bf16.msra.mxu1 %v15914_v59  ;;  %v1613_v24 = vld [vmem:[%s17207_s7 + $0x2af8] sm:$0xff]  ;;  %v16024_v59 = vcombine.low %v1588_v7, %v1596_v57  ;;  %v1700_v57 = vld [vmem:[%s17207_s7 + $0x2db0] sm:$0xff] }
 0x731   : > { %14055 = vmatprep.subr.bf16.mxu0 %v15929_v26  ;;  %14383 = vmatprep.subr.bf16.mxu1 %v15931_v28  ;;  %v16026_v26 = vcombine.low %v1589_v8, %v1597_v31  ;;  %v16041_v28 = vcombine.high %v1604_v13, %v1612_v14  ;;  %v16043_v29 = vcombine.high %v1605_v20, %v1613_v24  ;;  %v1708_v8 = vld [vmem:[%s17207_s7 + $0x2df0] sm:$0xff]  ;;  %v1701_v31 = vld [vmem:[%s17207_s7 + $0x2db8] sm:$0xff] }
 0x734   : > { %14056 = vmatpush1.bf16.msra.mxu0 %v15928_v32  ;;  %14384 = vmatpush1.bf16.msra.mxu1 %v15930_v35  ;;  %v1629_v32 = vld [vmem:[%s17207_s7 + $0x2b78] sm:$0xff]  ;;  %v16040_v35 = vcombine.low %v1604_v13, %v1612_v14  ;;  %v1716_v14 = vld [vmem:[%s17207_s7 + $0x2e30] sm:$0xff] }
 0x735   : > { %14057 = vmatprep.subr.bf16.mxu0 %v15945_v38  ;;  %14385 = vmatprep.subr.bf16.mxu1 %v15947_v17  ;;  %v16042_v38 = vcombine.low %v1605_v20, %v1613_v24  ;;  %v16057_v17 = vcombine.high %v1620_v30, %v1628_v9  ;;  %v16059_v41 = vcombine.high %v1621_v49, %v1629_v32  ;;  %v1724_v20 = vld [vmem:[%s17207_s7 + $0x2e70] sm:$0xff]  ;;  %v1717_v24 = vld [vmem:[%s17207_s7 + $0x2e38] sm:$0xff] }
 0x738   : > { %14058 = vmatpush1.bf16.msra.mxu0 %v15944_v25  ;;  %14386 = vmatpush1.bf16.msra.mxu1 %v15946_v44  ;;  %v1645_v25 = vld [vmem:[%s17207_s7 + $0x2bf8] sm:$0xff]  ;;  %v16056_v44 = vcombine.low %v1620_v30, %v1628_v9  ;;  %v1732_v9 = vld [vmem:[%s17207_s7 + $0x2eb0] sm:$0xff] }
 0x739   : > { %14068 = vmatprep.subr.bf16.mxu0 %v15961_v55  ;;  %14396 = vmatprep.subr.bf16.mxu1 %v15963_v47  ;;  %v16058_v55 = vcombine.low %v1621_v49, %v1629_v32  ;;  %v16073_v47 = vcombine.high %v1636_v42, %v1644_v43  ;;  %v16075_v23 = vcombine.high %v1637_v18, %v1645_v25  ;;  %v1740_v49 = vld [vmem:[%s17207_s7 + $0x2ef0] sm:$0xff]  ;;  %v1733_v32 = vld [vmem:[%s17207_s7 + $0x2eb8] sm:$0xff] }
 0x73b   : > { %14060 = vmatmul.mubr.bf16.vlgmr.msra.gmra.mrb[12].mxu0 %v17628_v16  ;;  %14388 = vmatmul.mubr.bf16.vlgmr.msra.gmra.mrb[12].mxu1 %v17628_v16  ;;  %v15992_v16 = vcombine.low %v1556_v36, %v1564_v56  ;;  %v1668_v56 = vld [vmem:[%s17207_s7 + $0x2cb0] sm:$0xff] }
 0x73c   : > { %14069 = vmatpush1.bf16.msra.mxu0 %v15960_v52  ;;  %14397 = vmatpush1.bf16.msra.mxu1 %v15962_v54  ;;  %v1661_v52 = vld [vmem:[%s17207_s7 + $0x2c78] sm:$0xff]  ;;  %v16072_v54 = vcombine.low %v1636_v42, %v1644_v43  ;;  %v1748_v43 = vld [vmem:[%s17207_s7 + $0x2f30] sm:$0xff] }
 0x73d   : > { %14070 = vmatprep.subr.bf16.mxu0 %v15977_v19  ;;  %14398 = vmatprep.subr.bf16.mxu1 %v15979_v1  ;;  %v16074_v19 = vcombine.low %v1637_v18, %v1645_v25  ;;  %v16089_v1 = vcombine.high %v1652_v48, %v1660_v50  ;;  %v16091_v36 = vcombine.high %v1653_v51, %v1661_v52  ;;  %v1756_v18 = vld [vmem:[%s17207_s7 + $0x2f70] sm:$0xff]  ;;  %v1749_v25 = vld [vmem:[%s17207_s7 + $0x2f38] sm:$0xff] }
 0x73e   : > { %14100 = vmatprep.mubr.bf16.mxu0 %v17641_v27  ;;  %14428 = vmatprep.mubr.bf16.mxu1 %v17641_v27  ;;  %v16010_v27 = vcombine.low %v1573_v3, %v1581_v12  ;;  %v1692_v3 = vld [vmem:[%s17207_s7 + $0x2d70] sm:$0xff]  ;;  %v1685_v12 = vld [vmem:[%s17207_s7 + $0x2d38] sm:$0xff] }
 0x740   : > { %14071 = vmatpush1.bf16.msra.mxu0 %v15976_v62  ;;  %14399 = vmatpush1.bf16.msra.mxu1 %v15978_v63  ;;  %v1677_v62 = vld [vmem:[%s17207_s7 + $0x2cf8] sm:$0xff]  ;;  %v16088_v63 = vcombine.low %v1652_v48, %v1660_v50  ;;  %v1764_v50 = vld [vmem:[%s17207_s7 + $0x2fb0] sm:$0xff] }
 0x741   : > { %14072 = vmatprep.subr.bf16.mxu0 %v15993_v39  ;;  %14400 = vmatprep.subr.bf16.mxu1 %v15995_v0  ;;  %v16090_v39 = vcombine.low %v1653_v51, %v1661_v52  ;;  %v16105_v0 = vcombine.high %v1668_v56, %v1676_v60  ;;  %v16107_v22 = vcombine.high %v1669_v61, %v1677_v62  ;;  %v1772_v51 = vld [vmem:[%s17207_s7 + $0x2ff0] sm:$0xff]  ;;  %v1765_v52 = vld [vmem:[%s17207_s7 + $0x2fb8] sm:$0xff] }
 0x744   : > { %14073 = vmatpush1.bf16.msra.mxu0 %v15992_v16  ;;  %14401 = vmatpush1.bf16.msra.mxu1 %v15994_v4  ;;  %v1693_v16 = vld [vmem:[%s17207_s7 + $0x2d78] sm:$0xff]  ;;  %v16104_v4 = vcombine.low %v1668_v56, %v1676_v60  ;;  %v1780_v60 = vld [vmem:[%s17207_s7 + $0x3030] sm:$0xff] }
 0x745   : > { %14074 = vmatprep.subr.bf16.mxu0 %v16009_v5  ;;  %14402 = vmatprep.subr.bf16.mxu1 %v16011_v6  ;;  %v16106_v5 = vcombine.low %v1669_v61, %v1677_v62  ;;  %v16121_v6 = vcombine.high %v1684_v45, %v1692_v3  ;;  %v16123_v7 = vcombine.high %v1685_v12, %v1693_v16  ;;  %v1788_v61 = vld [vmem:[%s17207_s7 + $0x3070] sm:$0xff]  ;;  %v1781_v62 = vld [vmem:[%s17207_s7 + $0x3038] sm:$0xff] }
 0x748   : > { %14075 = vmatpush1.bf16.msra.mxu0 %v16008_v10  ;;  %14403 = vmatpush1.bf16.msra.mxu1 %v16010_v27  ;;  %v1709_v10 = vld [vmem:[%s17207_s7 + $0x2df8] sm:$0xff]  ;;  %v16120_v27 = vcombine.low %v1684_v45, %v1692_v3  ;;  %v1796_v3 = vld [vmem:[%s17207_s7 + $0x30b0] sm:$0xff] }
 0x749   : > { %14076 = vmatprep.subr.bf16.mxu0 %v16025_v11  ;;  %14404 = vmatprep.subr.bf16.mxu1 %v16027_v21  ;;  %v16122_v11 = vcombine.low %v1685_v12, %v1693_v16  ;;  %v16137_v21 = vcombine.high %v1700_v57, %v1708_v8  ;;  %v16139_v13 = vcombine.high %v1701_v31, %v1709_v10  ;;  %v1804_v12 = vld [vmem:[%s17207_s7 + $0x30f0] sm:$0xff]  ;;  %v1797_v16 = vld [vmem:[%s17207_s7 + $0x30b8] sm:$0xff] }
 0x74c   : > { %14077 = vmatpush1.bf16.msra.mxu0 %v16024_v59  ;;  %14405 = vmatpush1.bf16.msra.mxu1 %v16026_v26  ;;  %v1725_v59 = vld [vmem:[%s17207_s7 + $0x2e78] sm:$0xff]  ;;  %v16136_v26 = vcombine.low %v1700_v57, %v1708_v8  ;;  %v1812_v8 = vld [vmem:[%s17207_s7 + $0x3130] sm:$0xff] }
 0x74d   : > { %14078 = vmatprep.subr.bf16.mxu0 %v16041_v28  ;;  %14406 = vmatprep.subr.bf16.mxu1 %v16043_v29  ;;  %v16138_v28 = vcombine.low %v1701_v31, %v1709_v10  ;;  %v16153_v29 = vcombine.high %v1716_v14, %v1724_v20  ;;  %v16155_v30 = vcombine.high %v1717_v24, %v1725_v59  ;;  %v1820_v31 = vld [vmem:[%s17207_s7 + $0x3170] sm:$0xff]  ;;  %v1813_v10 = vld [vmem:[%s17207_s7 + $0x3138] sm:$0xff] }
 0x750   : > { %14079 = vmatpush1.bf16.msra.mxu0 %v16040_v35  ;;  %14407 = vmatpush1.bf16.msra.mxu1 %v16042_v38  ;;  %v1741_v35 = vld [vmem:[%s17207_s7 + $0x2ef8] sm:$0xff]  ;;  %v16152_v38 = vcombine.low %v1716_v14, %v1724_v20  ;;  %v1828_v20 = vld [vmem:[%s17207_s7 + $0x31b0] sm:$0xff] }
 0x751   : > { %14080 = vmatprep.subr.bf16.mxu0 %v16057_v17  ;;  %14408 = vmatprep.subr.bf16.mxu1 %v16059_v41  ;;  %v16154_v17 = vcombine.low %v1717_v24, %v1725_v59  ;;  %v16169_v41 = vcombine.high %v1732_v9, %v1740_v49  ;;  %v16171_v42 = vcombine.high %v1733_v32, %v1741_v35  ;;  %v1836_v24 = vld [vmem:[%s17207_s7 + $0x31f0] sm:$0xff]  ;;  %v1829_v59 = vld [vmem:[%s17207_s7 + $0x31b8] sm:$0xff] }
 0x754   : > { %14081 = vmatpush1.bf16.msra.mxu0 %v16056_v44  ;;  %14409 = vmatpush1.bf16.msra.mxu1 %v16058_v55  ;;  %v1757_v44 = vld [vmem:[%s17207_s7 + $0x2f78] sm:$0xff]  ;;  %v16168_v55 = vcombine.low %v1732_v9, %v1740_v49  ;;  %v1844_v9 = vld [vmem:[%s17207_s7 + $0x3230] sm:$0xff] }
 0x755   : > { %14082 = vmatprep.subr.bf16.mxu0 %v16073_v47  ;;  %14410 = vmatprep.subr.bf16.mxu1 %v16075_v23  ;;  %v16170_v47 = vcombine.low %v1733_v32, %v1741_v35  ;;  %v16185_v23 = vcombine.high %v1748_v43, %v1756_v18  ;;  %v16187_v48 = vcombine.high %v1749_v25, %v1757_v44  ;;  %v1852_v49 = vld [vmem:[%s17207_s7 + $0x3270] sm:$0xff]  ;;  %v1845_v32 = vld [vmem:[%s17207_s7 + $0x3238] sm:$0xff] }
 0x756   : > { %v1853_v35 = vld [vmem:[%s17207_s7 + $0x3278] sm:$0xff] }
 0x758   : > { %14083 = vmatpush1.bf16.msra.mxu0 %v16072_v54  ;;  %14411 = vmatpush1.bf16.msra.mxu1 %v16074_v19  ;;  %v1773_v54 = vld [vmem:[%s17207_s7 + $0x2ff8] sm:$0xff]  ;;  %v16184_v19 = vcombine.low %v1748_v43, %v1756_v18  ;;  %v1868_v43 = vld [vmem:[%s17207_s7 + $0x32f0] sm:$0xff] }
 0x759   : > { %14084 = vmatprep.subr.bf16.mxu0 %v16089_v1  ;;  %14412 = vmatprep.subr.bf16.mxu1 %v16091_v36  ;;  %v16186_v1 = vcombine.low %v1749_v25, %v1757_v44  ;;  %v16201_v36 = vcombine.high %v1764_v50, %v1772_v51  ;;  %v16203_v56 = vcombine.high %v1765_v52, %v1773_v54  ;;  %v1861_v18 = vld [vmem:[%s17207_s7 + $0x32b8] sm:$0xff] }
 0x75a   : > { %v1869_v25 = vld [vmem:[%s17207_s7 + $0x32f8] sm:$0xff]  ;;  %v16280_v44 = vcombine.low %v1844_v9, %v1852_v49 }
 0x75c   : > { %14085 = vmatpush1.bf16.msra.mxu0 %v16088_v63  ;;  %14413 = vmatpush1.bf16.msra.mxu1 %v16090_v39  ;;  %v1789_v63 = vld [vmem:[%s17207_s7 + $0x3078] sm:$0xff]  ;;  %v16200_v39 = vcombine.low %v1764_v50, %v1772_v51  ;;  %v1884_v50 = vld [vmem:[%s17207_s7 + $0x3370] sm:$0xff] }
 0x75d   : > { %14086 = vmatprep.subr.bf16.mxu0 %v16105_v0  ;;  %14414 = vmatprep.subr.bf16.mxu1 %v16107_v22  ;;  %v16202_v0 = vcombine.low %v1765_v52, %v1773_v54  ;;  %v16217_v22 = vcombine.high %v1780_v60, %v1788_v61  ;;  %v16219_v45 = vcombine.high %v1781_v62, %v1789_v63  ;;  %v1877_v51 = vld [vmem:[%s17207_s7 + $0x3338] sm:$0xff] }
 0x75e   : > { %v1885_v52 = vld [vmem:[%s17207_s7 + $0x3378] sm:$0xff] }
 0x760   : > { %14087 = vmatpush1.bf16.msra.mxu0 %v16104_v4  ;;  %14415 = vmatpush1.bf16.msra.mxu1 %v16106_v5  ;;  %v1805_v4 = vld [vmem:[%s17207_s7 + $0x30f8] sm:$0xff]  ;;  %v16216_v5 = vcombine.low %v1780_v60, %v1788_v61  ;;  %v1900_v60 = vld [vmem:[%s17207_s7 + $0x33f0] sm:$0xff] }
 0x761   : > { %14088 = vmatprep.subr.bf16.mxu0 %v16121_v6  ;;  %14416 = vmatprep.subr.bf16.mxu1 %v16123_v7  ;;  %v16218_v6 = vcombine.low %v1781_v62, %v1789_v63  ;;  %v16233_v7 = vcombine.high %v1796_v3, %v1804_v12  ;;  %v16235_v57 = vcombine.high %v1797_v16, %v1805_v4  ;;  %v1893_v61 = vld [vmem:[%s17207_s7 + $0x33b8] sm:$0xff] }
 0x762   : > { %v1901_v62 = vld [vmem:[%s17207_s7 + $0x33f8] sm:$0xff] }
 0x764   : > { %14089 = vmatpush1.bf16.msra.mxu0 %v16120_v27  ;;  %14417 = vmatpush1.bf16.msra.mxu1 %v16122_v11  ;;  %v1821_v27 = vld [vmem:[%s17207_s7 + $0x3178] sm:$0xff]  ;;  %v16232_v11 = vcombine.low %v1796_v3, %v1804_v12  ;;  %v1916_v3 = vld [vmem:[%s17207_s7 + $0x3470] sm:$0xff] }
 0x765   : > { %14090 = vmatprep.subr.bf16.mxu0 %v16137_v21  ;;  %14418 = vmatprep.subr.bf16.mxu1 %v16139_v13  ;;  %v16234_v21 = vcombine.low %v1797_v16, %v1805_v4  ;;  %v16249_v13 = vcombine.high %v1812_v8, %v1820_v31  ;;  %v16251_v14 = vcombine.high %v1813_v10, %v1821_v27  ;;  %v1909_v12 = vld [vmem:[%s17207_s7 + $0x3438] sm:$0xff] }
 0x766   : > { %v1917_v16 = vld [vmem:[%s17207_s7 + $0x3478] sm:$0xff] }
 0x768   : > { %14091 = vmatpush1.bf16.msra.mxu0 %v16136_v26  ;;  %14419 = vmatpush1.bf16.msra.mxu1 %v16138_v28  ;;  %v1837_v26 = vld [vmem:[%s17207_s7 + $0x31f8] sm:$0xff]  ;;  %v16250_v28 = vcombine.low %v1813_v10, %v1821_v27 }
 0x769   : > { %14092 = vmatprep.subr.bf16.mxu0 %v16153_v29  ;;  %14420 = vmatprep.subr.bf16.mxu1 %v16155_v30  ;;  %v16265_v29 = vcombine.high %v1828_v20, %v1836_v24  ;;  %v16267_v30 = vcombine.high %v1829_v59, %v1837_v26  ;;  %v1933_v10 = vld [vmem:[%s17207_s7 + $0x34f8] sm:$0xff] }
 0x76c   : > { %14093 = vmatpush1.bf16.msra.mxu0 %v16152_v38  ;;  %14421 = vmatpush1.bf16.msra.mxu1 %v16154_v17  ;;  %v16264_v38 = vcombine.low %v1828_v20, %v1836_v24  ;;  %v16281_v17 = vcombine.high %v1844_v9, %v1852_v49  ;;  %v1948_v20 = vld [vmem:[%s17207_s7 + $0x3570] sm:$0xff]  ;;  %v1941_v24 = vld [vmem:[%s17207_s7 + $0x3538] sm:$0xff] }
 0x76d   : > { %14094 = vmatprep.subr.bf16.mxu0 %v16169_v41  ;;  %14422 = vmatprep.subr.bf16.mxu1 %v16171_v42  ;;  %v16283_v41 = vcombine.high %v1845_v32, %v1853_v35  ;;  %v1860_v42 = vld [vmem:[%s17207_s7 + $0x32b0] sm:$0xff]  ;;  %v1957_v49 = vld [vmem:[%s17207_s7 + $0x35b8] sm:$0xff] }
 0x76e   : > { %v16296_v54 = vcombine.low %v1860_v42, %v1868_v43  ;;  %v1964_v9 = vld [vmem:[%s17207_s7 + $0x35f0] sm:$0xff] }
 0x770   : > { %14095 = vmatpush1.bf16.msra.mxu0 %v16168_v55  ;;  %14423 = vmatpush1.bf16.msra.mxu1 %v16170_v47  ;;  %v16282_v55 = vcombine.low %v1845_v32, %v1853_v35  ;;  %v16297_v47 = vcombine.high %v1860_v42, %v1868_v43  ;;  %v1965_v32 = vld [vmem:[%s17207_s7 + $0x35f8] sm:$0xff]  ;;  %v1980_v42 = vld [vmem:[%s17207_s7 + $0x3670] sm:$0xff] }
 0x771   : > { %14096 = vmatprep.subr.bf16.mxu0 %v16185_v23  ;;  %14424 = vmatprep.subr.bf16.mxu1 %v16187_v48  ;;  %v16299_v23 = vcombine.high %v1861_v18, %v1869_v25  ;;  %v1876_v48 = vld [vmem:[%s17207_s7 + $0x3330] sm:$0xff]  ;;  %v1973_v43 = vld [vmem:[%s17207_s7 + $0x3638] sm:$0xff] }
 0x772   : > { %v16312_v63 = vcombine.low %v1876_v48, %v1884_v50 }
 0x774   : > { %14097 = vmatpush1.bf16.msra.mxu0 %v16184_v19  ;;  %14425 = vmatpush1.bf16.msra.mxu1 %v16186_v1  ;;  %v16298_v19 = vcombine.low %v1861_v18, %v1869_v25  ;;  %v16313_v1 = vcombine.high %v1876_v48, %v1884_v50  ;;  %v1981_v18 = vld [vmem:[%s17207_s7 + $0x3678] sm:$0xff]  ;;  %v1996_v48 = vld [vmem:[%s17207_s7 + $0x36f0] sm:$0xff] }
 0x775   : > { %14098 = vmatprep.subr.bf16.mxu0 %v16201_v36  ;;  %14426 = vmatprep.subr.bf16.mxu1 %v16203_v56  ;;  %v16315_v36 = vcombine.high %v1877_v51, %v1885_v52  ;;  %v1892_v56 = vld [vmem:[%s17207_s7 + $0x33b0] sm:$0xff]  ;;  %v1989_v50 = vld [vmem:[%s17207_s7 + $0x36b8] sm:$0xff] }
 0x776   : > { %v16328_v4 = vcombine.low %v1892_v56, %v1900_v60 }
 0x778   : > { %14099 = vmatpush1.bf16.msra.mxu0 %v16200_v39  ;;  %14427 = vmatpush1.bf16.msra.mxu1 %v16202_v0  ;;  %v16314_v39 = vcombine.low %v1877_v51, %v1885_v52  ;;  %v16329_v0 = vcombine.high %v1892_v56, %v1900_v60  ;;  %v1997_v51 = vld [vmem:[%s17207_s7 + $0x36f8] sm:$0xff]  ;;  %v2012_v56 = vld [vmem:[%s17207_s7 + $0x3770] sm:$0xff] }
 0x779   : > { %14109 = vmatprep.subr.bf16.mxu0 %v16217_v22  ;;  %14437 = vmatprep.subr.bf16.mxu1 %v16219_v45  ;;  %v16331_v22 = vcombine.high %v1893_v61, %v1901_v62  ;;  %v1908_v45 = vld [vmem:[%s17207_s7 + $0x3430] sm:$0xff]  ;;  %v2005_v60 = vld [vmem:[%s17207_s7 + $0x3738] sm:$0xff] }
 0x77a   : > { %v16344_v27 = vcombine.low %v1908_v45, %v1916_v3 }
 0x77b   : > { %14101 = vmatmul.mubr.bf16.vlgmr.msra.gmra.mrb[12].mxu0 %v17709_v46  ;;  %14429 = vmatmul.mubr.bf16.vlgmr.msra.gmra.mrb[12].mxu1 %v17709_v46  ;;  %v16248_v46 = vcombine.low %v1812_v8, %v1820_v31  ;;  %v1932_v8 = vld [vmem:[%s17207_s7 + $0x34f0] sm:$0xff]  ;;  %v1925_v31 = vld [vmem:[%s17207_s7 + $0x34b8] sm:$0xff] }
 0x77c   : > { %14110 = vmatpush1.bf16.msra.mxu0 %v16216_v5  ;;  %14438 = vmatpush1.bf16.msra.mxu1 %v16218_v6  ;;  %v16330_v5 = vcombine.low %v1893_v61, %v1901_v62  ;;  %v16345_v6 = vcombine.high %v1908_v45, %v1916_v3  ;;  %v2013_v61 = vld [vmem:[%s17207_s7 + $0x3778] sm:$0xff]  ;;  %v2028_v45 = vld [vmem:[%s17207_s7 + $0x37f0] sm:$0xff] }
 0x77d   : > { %14111 = vmatprep.subr.bf16.mxu0 %v16233_v7  ;;  %14439 = vmatprep.subr.bf16.mxu1 %v16235_v57  ;;  %v16347_v7 = vcombine.high %v1909_v12, %v1917_v16  ;;  %v1924_v57 = vld [vmem:[%s17207_s7 + $0x34b0] sm:$0xff]  ;;  %v2021_v3 = vld [vmem:[%s17207_s7 + $0x37b8] sm:$0xff] }
 0x77e   : > { %14141 = vmatprep.mubr.bf16.mxu0 %v17722_v58  ;;  %14469 = vmatprep.mubr.bf16.mxu1 %v17722_v58  ;;  %v16266_v58 = vcombine.low %v1829_v59, %v1837_v26  ;;  %v1949_v59 = vld [vmem:[%s17207_s7 + $0x3578] sm:$0xff]  ;;  %v16360_v26 = vcombine.low %v1924_v57, %v1932_v8 }
 0x780   : > { %14112 = vmatpush1.bf16.msra.mxu0 %v16232_v11  ;;  %14440 = vmatpush1.bf16.msra.mxu1 %v16234_v21  ;;  %v16346_v11 = vcombine.low %v1909_v12, %v1917_v16  ;;  %v16361_v21 = vcombine.high %v1924_v57, %v1932_v8  ;;  %v2029_v12 = vld [vmem:[%s17207_s7 + $0x37f8] sm:$0xff]  ;;  %v2044_v57 = vld [vmem:[%s17207_s7 + $0x3870] sm:$0xff] }
 0x781   : > { %14113 = vmatprep.subr.bf16.mxu0 %v16249_v13  ;;  %14441 = vmatprep.subr.bf16.mxu1 %v16251_v14  ;;  %v16363_v13 = vcombine.high %v1925_v31, %v1933_v10  ;;  %v1940_v14 = vld [vmem:[%s17207_s7 + $0x3530] sm:$0xff]  ;;  %v2037_v8 = vld [vmem:[%s17207_s7 + $0x3838] sm:$0xff] }
 0x782   : > { %v16376_v35 = vcombine.low %v1940_v14, %v1948_v20 }
 0x784   : > { %14114 = vmatpush1.bf16.msra.mxu0 %v16248_v46  ;;  %14442 = vmatpush1.bf16.msra.mxu1 %v16250_v28  ;;  %v16362_v46 = vcombine.low %v1925_v31, %v1933_v10  ;;  %v16377_v28 = vcombine.high %v1940_v14, %v1948_v20  ;;  %v2045_v31 = vld [vmem:[%s17207_s7 + $0x3878] sm:$0xff]  ;;  %v2060_v14 = vld [vmem:[%s17207_s7 + $0x38f0] sm:$0xff] }
 0x785   : > { %14115 = vmatprep.subr.bf16.mxu0 %v16265_v29  ;;  %14443 = vmatprep.subr.bf16.mxu1 %v16267_v30  ;;  %v16379_v29 = vcombine.high %v1941_v24, %v1949_v59  ;;  %v1956_v30 = vld [vmem:[%s17207_s7 + $0x35b0] sm:$0xff]  ;;  %v2053_v20 = vld [vmem:[%s17207_s7 + $0x38b8] sm:$0xff] }
 0x786   : > { %v16392_v25 = vcombine.low %v1956_v30, %v1964_v9 }
 0x788   : > { %14116 = vmatpush1.bf16.msra.mxu0 %v16264_v38  ;;  %14444 = vmatpush1.bf16.msra.mxu1 %v16266_v58  ;;  %v16378_v38 = vcombine.low %v1941_v24, %v1949_v59  ;;  %v16393_v58 = vcombine.high %v1956_v30, %v1964_v9  ;;  %v2061_v24 = vld [vmem:[%s17207_s7 + $0x38f8] sm:$0xff]  ;;  %v2076_v30 = vld [vmem:[%s17207_s7 + $0x3970] sm:$0xff] }
 0x789   : > { %14117 = vmatprep.subr.bf16.mxu0 %v16281_v17  ;;  %14445 = vmatprep.subr.bf16.mxu1 %v16283_v41  ;;  %v16395_v17 = vcombine.high %v1957_v49, %v1965_v32  ;;  %v1972_v41 = vld [vmem:[%s17207_s7 + $0x3630] sm:$0xff]  ;;  %v2069_v9 = vld [vmem:[%s17207_s7 + $0x3938] sm:$0xff] }
 0x78a   : > { %v16408_v52 = vcombine.low %v1972_v41, %v1980_v42 }
 0x78c   : > { %14118 = vmatpush1.bf16.msra.mxu0 %v16280_v44  ;;  %14446 = vmatpush1.bf16.msra.mxu1 %v16282_v55  ;;  %v16394_v44 = vcombine.low %v1957_v49, %v1965_v32  ;;  %v16409_v55 = vcombine.high %v1972_v41, %v1980_v42  ;;  %v2077_v49 = vld [vmem:[%s17207_s7 + $0x3978] sm:$0xff]  ;;  %v2092_v41 = vld [vmem:[%s17207_s7 + $0x39f0] sm:$0xff] }
 0x78d   : > { %14119 = vmatprep.subr.bf16.mxu0 %v16297_v47  ;;  %14447 = vmatprep.subr.bf16.mxu1 %v16299_v23  ;;  %v16411_v47 = vcombine.high %v1973_v43, %v1981_v18  ;;  %v1988_v23 = vld [vmem:[%s17207_s7 + $0x36b0] sm:$0xff]  ;;  %v2085_v42 = vld [vmem:[%s17207_s7 + $0x39b8] sm:$0xff] }
 0x78e   : > { %v16424_v62 = vcombine.low %v1988_v23, %v1996_v48 }
 0x790   : > { %14120 = vmatpush1.bf16.msra.mxu0 %v16296_v54  ;;  %14448 = vmatpush1.bf16.msra.mxu1 %v16298_v19  ;;  %v16410_v54 = vcombine.low %v1973_v43, %v1981_v18  ;;  %v16425_v19 = vcombine.high %v1988_v23, %v1996_v48  ;;  %v2093_v43 = vld [vmem:[%s17207_s7 + $0x39f8] sm:$0xff]  ;;  %v16506_v18 = vcombine.low %v2069_v9, %v2077_v49 }
 0x791   : > { %14121 = vmatprep.subr.bf16.mxu0 %v16313_v1  ;;  %14449 = vmatprep.subr.bf16.mxu1 %v16315_v36  ;;  %v16427_v1 = vcombine.high %v1989_v50, %v1997_v51  ;;  %v2004_v36 = vld [vmem:[%s17207_s7 + $0x3730] sm:$0xff]  ;;  %v2101_v23 = vld [vmem:[%s17207_s7 + $0x3a38] sm:$0xff] }
 0x792   : > { %v16440_v16 = vcombine.low %v2004_v36, %v2012_v56  ;;  %v2109_v48 = vld [vmem:[%s17207_s7 + $0x3a78] sm:$0xff] }
 0x794   : > { %14122 = vmatpush1.bf16.msra.mxu0 %v16312_v63  ;;  %14450 = vmatpush1.bf16.msra.mxu1 %v16314_v39  ;;  %v16426_v63 = vcombine.low %v1989_v50, %v1997_v51  ;;  %v16441_v39 = vcombine.high %v2004_v36, %v2012_v56  ;;  %v2125_v36 = vld [vmem:[%s17207_s7 + $0x3af8] sm:$0xff] }
 0x795   : > { %14123 = vmatprep.subr.bf16.mxu0 %v16329_v0  ;;  %14451 = vmatprep.subr.bf16.mxu1 %v16331_v22  ;;  %v16443_v0 = vcombine.high %v2005_v60, %v2013_v61  ;;  %v2020_v22 = vld [vmem:[%s17207_s7 + $0x37b0] sm:$0xff] }
 0x796   : > { %v16456_v10 = vcombine.low %v2020_v22, %v2028_v45 }
 0x798   : > { %14124 = vmatpush1.bf16.msra.mxu0 %v16328_v4  ;;  %14452 = vmatpush1.bf16.msra.mxu1 %v16330_v5  ;;  %v16442_v4 = vcombine.low %v2005_v60, %v2013_v61  ;;  %v16457_v5 = vcombine.high %v2020_v22, %v2028_v45  ;;  %v16538_v60 = vcombine.low %v2101_v23, %v2109_v48  ;;  %v2141_v22 = vld [vmem:[%s17207_s7 + $0x3b78] sm:$0xff] }
 0x799   : > { %14125 = vmatprep.subr.bf16.mxu0 %v16345_v6  ;;  %14453 = vmatprep.subr.bf16.mxu1 %v16347_v7  ;;  %v16459_v6 = vcombine.high %v2021_v3, %v2029_v12  ;;  %v2036_v7 = vld [vmem:[%s17207_s7 + $0x3830] sm:$0xff] }
 0x79a   : > { %v16472_v59 = vcombine.low %v2036_v7, %v2044_v57 }
 0x79c   : > { %14126 = vmatpush1.bf16.msra.mxu0 %v16344_v27  ;;  %14454 = vmatpush1.bf16.msra.mxu1 %v16346_v11  ;;  %v16458_v27 = vcombine.low %v2021_v3, %v2029_v12  ;;  %v16473_v11 = vcombine.high %v2036_v7, %v2044_v57  ;;  %v2157_v7 = vld [vmem:[%s17207_s7 + $0x3bf8] sm:$0xff] }
 0x79d   : > { %14127 = vmatprep.subr.bf16.mxu0 %v16361_v21  ;;  %14455 = vmatprep.subr.bf16.mxu1 %v16363_v13  ;;  %v16475_v21 = vcombine.high %v2037_v8, %v2045_v31  ;;  %v2052_v13 = vld [vmem:[%s17207_s7 + $0x38b0] sm:$0xff] }
 0x79e   : > { %v16488_v32 = vcombine.low %v2052_v13, %v2060_v14 }
 0x7a0   : > { %14128 = vmatpush1.bf16.msra.mxu0 %v16360_v26  ;;  %14456 = vmatpush1.bf16.msra.mxu1 %v16362_v46  ;;  %v16474_v26 = vcombine.low %v2037_v8, %v2045_v31  ;;  %v16489_v46 = vcombine.high %v2052_v13, %v2060_v14  ;;  %v16911_v13 = vld [vmem:[%s17215_s17 + $0x8] sm:$0xff] }
 0x7a1   : > { %14129 = vmatprep.subr.bf16.mxu0 %v16377_v28  ;;  %14457 = vmatprep.subr.bf16.mxu1 %v16379_v29  ;;  %v16491_v28 = vcombine.high %v2053_v20, %v2061_v24  ;;  %v2068_v29 = vld [vmem:[%s17207_s7 + $0x3930] sm:$0xff]  ;;  %v2213_v14 = vrot.slane %v16911_v13, %v2180_v15 }
 0x7a4   : > { %14130 = vmatpush1.bf16.msra.mxu0 %v16376_v35  ;;  %14458 = vmatpush1.bf16.msra.mxu1 %v16378_v38  ;;  %v16490_v35 = vcombine.low %v2053_v20, %v2061_v24  ;;  %v16505_v38 = vcombine.high %v2068_v29, %v2076_v30  ;;  %v2221_v20 = vrot.slane %v16911_v13, %v2188_v33 }
 0x7a5   : > { %14131 = vmatprep.subr.bf16.mxu0 %v16393_v58  ;;  %14459 = vmatprep.subr.bf16.mxu1 %v16395_v17  ;;  %v16507_v58 = vcombine.high %v2069_v9, %v2077_v49  ;;  %v2084_v17 = vld [vmem:[%s17207_s7 + $0x39b0] sm:$0xff]  ;;  %v2217_v24 = vrot.slane %v16911_v13, %v2184_v34 }
 0x7a6   : > { %v16520_v50 = vcombine.low %v2084_v17, %v2092_v41 }
 0x7a8   : > { %14132 = vmatpush1.bf16.msra.mxu0 %v16392_v25  ;;  %14460 = vmatpush1.bf16.msra.mxu1 %v16394_v44  ;;  %v16521_v25 = vcombine.high %v2084_v17, %v2092_v41  ;;  %v16523_v44 = vcombine.high %v2085_v42, %v2093_v43 }
 0x7a9   : > { %14133 = vmatprep.subr.bf16.mxu0 %v16409_v55  ;;  %14461 = vmatprep.subr.bf16.mxu1 %v16411_v47  ;;  %v2100_v55 = vld [vmem:[%s17207_s7 + $0x3a30] sm:$0xff] }
 0x7aa   : > { %v2108_v47 = vld [vmem:[%s17207_s7 + $0x3a70] sm:$0xff] }
 0x7ab   : > { %v16537_v51 = vcombine.high %v2100_v55, %v2108_v47  ;;  %v16536_v56 = vcombine.low %v2100_v55, %v2108_v47 }
 0x7ac   : > { %14134 = vmatpush1.bf16.msra.mxu0 %v16408_v52  ;;  %14462 = vmatpush1.bf16.msra.mxu1 %v16410_v54  ;;  %v16539_v52 = vcombine.high %v2101_v23, %v2109_v48  ;;  %v2116_v54 = vld [vmem:[%s17207_s7 + $0x3ab0] sm:$0xff] }
 0x7ad   : > { %14135 = vmatprep.subr.bf16.mxu0 %v16425_v19  ;;  %14463 = vmatprep.subr.bf16.mxu1 %v16427_v1  ;;  %v2124_v19 = vld [vmem:[%s17207_s7 + $0x3af0] sm:$0xff]  ;;  %v2117_v1 = vld [vmem:[%s17207_s7 + $0x3ab8] sm:$0xff] }
 0x7ae   : > { %v16553_v61 = vcombine.high %v2116_v54, %v2124_v19  ;;  %v16552_v45 = vcombine.low %v2116_v54, %v2124_v19  ;;  %v16554_v3 = vcombine.low %v2117_v1, %v2125_v36 }
 0x7b0   : > { %14136 = vmatpush1.bf16.msra.mxu0 %v16424_v62  ;;  %14464 = vmatpush1.bf16.msra.mxu1 %v16426_v63  ;;  %v16555_v62 = vcombine.high %v2117_v1, %v2125_v36  ;;  %v2132_v63 = vld [vmem:[%s17207_s7 + $0x3b30] sm:$0xff] }
 0x7b1   : > { %14137 = vmatprep.subr.bf16.mxu0 %v16441_v39  ;;  %14465 = vmatprep.subr.bf16.mxu1 %v16443_v0  ;;  %v2140_v39 = vld [vmem:[%s17207_s7 + $0x3b70] sm:$0xff]  ;;  %v2133_v0 = vld [vmem:[%s17207_s7 + $0x3b38] sm:$0xff] }
 0x7b2   : > { %v16569_v12 = vcombine.high %v2132_v63, %v2140_v39  ;;  %v16568_v57 = vcombine.low %v2132_v63, %v2140_v39  ;;  %v16570_v8 = vcombine.low %v2133_v0, %v2141_v22 }
 0x7b4   : > { %14138 = vmatpush1.bf16.msra.mxu0 %v16440_v16  ;;  %14466 = vmatpush1.bf16.msra.mxu1 %v16442_v4  ;;  %v16571_v16 = vcombine.high %v2133_v0, %v2141_v22  ;;  %v2148_v4 = vld [vmem:[%s17207_s7 + $0x3bb0] sm:$0xff] }
 0x7b5   : > { %14139 = vmatprep.subr.bf16.mxu0 %v16457_v5  ;;  %14467 = vmatprep.subr.bf16.mxu1 %v16459_v6  ;;  %v2156_v5 = vld [vmem:[%s17207_s7 + $0x3bf0] sm:$0xff]  ;;  %v2149_v6 = vld [vmem:[%s17207_s7 + $0x3bb8] sm:$0xff] }
 0x7b6   : > { %v16585_v31 = vcombine.high %v2148_v4, %v2156_v5 }
 0x7b8   : > { %14140 = vmatpush1.bf16.msra.mxu0 %v16456_v10  ;;  %14468 = vmatpush1.bf16.msra.mxu1 %v16458_v27  ;;  %v16587_v10 = vcombine.high %v2149_v6, %v2157_v7  ;;  %v16584_v27 = vcombine.low %v2148_v4, %v2156_v5 }
 0x7b9   : > { %14150 = vmatprep.subr.bf16.mxu0 %v16473_v11  ;;  %14478 = vmatprep.subr.bf16.mxu1 %v16475_v21  ;;  %v16586_v11 = vcombine.low %v2149_v6, %v2157_v7  ;;  %v16910_v21 = vld [vmem:[%s19477_s0 + $0x38] ss:$0 sps:$4 sm:$0xff]  }
 0x7bb   : > { %14142 = vmatmul.mubr.bf16.vlgmr.msra.gmra.mrb[12].mxu0 %v17790_v53  ;;  %14470 = vmatmul.mubr.bf16.vlgmr.msra.gmra.mrb[12].mxu1 %v17790_v53  ;;  %v16504_v53 = vcombine.low %v2068_v29, %v2076_v30 }
 0x7bc   : > { %14151 = vmatpush1.bf16.msra.mxu0 %v16472_v59  ;;  %14479 = vmatpush1.bf16.msra.mxu1 %v16474_v26  ;;  %v2225_v59 = vrot.slane %v16911_v13, %v2192_v37 }
 0x7bd   : > { %14152 = vmatprep.subr.bf16.mxu0 %v16489_v46  ;;  %14480 = vmatprep.subr.bf16.mxu1 %v16491_v28 }
 0x7be   : > { %14182 = vmatprep.mubr.bf16.mxu0 %v17048_v40  ;;  %14510 = vmatprep.mubr.bf16.mxu1 %v17048_v40  ;;  %v16522_v40 = vcombine.low %v2085_v42, %v2093_v43 }
 0x7c0   : > { %14153 = vmatpush1.bf16.msra.mxu0 %v16488_v32  ;;  %14481 = vmatpush1.bf16.msra.mxu1 %v16490_v35 }
 0x7c1   : > { %14154 = vmatprep.subr.bf16.mxu0 %v16505_v38  ;;  %14482 = vmatprep.subr.bf16.mxu1 %v16507_v58 }
 0x7c4   : > { %14155 = vmatpush1.bf16.msra.mxu0 %v16504_v53  ;;  %14483 = vmatpush1.bf16.msra.mxu1 %v16506_v18 }
 0x7c5   : > { %14156 = vmatprep.subr.bf16.mxu0 %v16521_v25  ;;  %14484 = vmatprep.subr.bf16.mxu1 %v16523_v44 }
 0x7c8   : > { %14157 = vmatpush1.bf16.msra.mxu0 %v16520_v50  ;;  %14485 = vmatpush1.bf16.msra.mxu1 %v16522_v40 }
 0x7c9   : > { %14158 = vmatprep.subr.bf16.mxu0 %v16537_v51  ;;  %14486 = vmatprep.subr.bf16.mxu1 %v16539_v52 }
 0x7cc   : > { %14159 = vmatpush1.bf16.msra.mxu0 %v16536_v56  ;;  %14487 = vmatpush1.bf16.msra.mxu1 %v16538_v60 }
 0x7cd   : > { %14160 = vmatprep.subr.bf16.mxu0 %v16553_v61  ;;  %14488 = vmatprep.subr.bf16.mxu1 %v16555_v62 }
 0x7d0   : > { %14161 = vmatpush1.bf16.msra.mxu0 %v16552_v45  ;;  %14489 = vmatpush1.bf16.msra.mxu1 %v16554_v3 }
 0x7d1   : > { %14162 = vmatprep.subr.bf16.mxu0 %v16569_v12  ;;  %14490 = vmatprep.subr.bf16.mxu1 %v16571_v16 }
 0x7d4   : > { %14163 = vmatpush1.bf16.msra.mxu0 %v16568_v57  ;;  %14491 = vmatpush1.bf16.msra.mxu1 %v16570_v8 }
 0x7d5   : > { %14164 = vmatprep.subr.bf16.mxu0 %v16585_v31  ;;  %14492 = vmatprep.subr.bf16.mxu1 %v16587_v10 }
 0x7d8   : > { %14165 = vmatpush1.bf16.msra.mxu0 %v16584_v27  ;;  %14493 = vmatpush1.bf16.msra.mxu1 %v16586_v11 }
 0x7db   : > { %14183 = vmatmul.mubr.bf16.vlgmr.msra.gmra.mrb[12].mxu0 %v16910_v21  ;;  %14511 = vmatmul.mubr.bf16.vlgmr.msra.gmra.mrb[12].mxu1 %v16910_v21 }
 0x8ae   : > { %v14184_v26 = vpop.f32.mrb[12].mxu0  ;;  %v14512_v28 = vpop.f32.mrb[12].mxu1 }
 0x8af   : > { %v16607_v46 = vadd.f32 %v14184_v26, %v2213_v14  ;;  %v14186_v29 = vpop.f32.mrb[13].mxu0  ;;  %v16609_v15 = vadd.f32 %v14512_v28, %v2221_v20  ;;  %v14514_v33 = vpop.f32.mrb[13].mxu1 }
 0x8b0   : > { %v16608_v30 = vadd.f32 %v14186_v29, %v2217_v24  ;;  %v14188_v9 = vpop.f32.mrb[14].mxu0  ;;  %v16610_v34 = vadd.f32 %v14514_v33, %v2225_v59  ;;  %v14516_v49 = vpop.f32.mrb[14].mxu1 }
 0x8b1   : > { %14531 = vst [vmem:[%s18079_s30 + $0x60] sm:$0xff] %v16607_v46  ;;  %v14189_v2 = vpop.f32.mrb[15].mxu0  ;;  %14533 = vst [vmem:[%s18079_s30 + $0x70] sm:$0xff] %v16609_v15  ;;  %v14517_v37 = vpop.f32.mrb[15].mxu1 }
 0x8b2   : > { %14532 = vst [vmem:[%s18079_s30 + $0x68] sm:$0xff] %v16608_v30  ;;  %14534 = vst [vmem:[%s18079_s30 + $0x78] sm:$0xff] %v16610_v34 }
 0x8b3   : > { %16985 = shalt.err (!%p16982_p7)
}
 0x8b4   : > { %s16986_s19 = scalar_lea.hbm %s19431_s16, 2048  ;;  %s16990_s27 = scalar_lea.hbm %s19480_s3, 12288 }
 0x8b5   : > { %p16987_p11 = scmp.ne.s32.totalorder %s19431_s16, %s16986_s19  ;;  %p16991_p13 = scmp.lt.u32.totalorder %s19431_s16, %s19480_s3 }
 0x8b6   : > { %p16992_p9 = scmp.lt.u32.totalorder %s16990_s27, %s16986_s19  ;;  %p16994_p12 = scmp.lt.u32.totalorder %s16986_s19, %s19431_s16 }
 0x8b7   : > { %p16988_p8 = pnand %p16987_p11, %p19490_p0 }
 0x8b8   : > { %p16993_p6 = por %p16992_p9, %p16991_p13 }
 0x8b9   : > { %p16989_p1 = pneg %p16988_p8 }
 0x8ba   : > { %p16995_p10 = por %p16994_p12, %p16993_p6 }
 0x8bc   : > { %p16996_p3 = pnand %p16995_p10, %p16989_p1 }
 0x8be   : > { %16999 = shalt.err (!%p16996_p3)
}
 0x8bf   : > { %16842 = dma.vmem_to_hbm [thread:$0]  (%p19490_p0), %s19433_s10, 2048, %s19431_s16, %s14536_s20  }
 0x8c0 PF: > { %p16856_p4 = scmp.ge.s32.totalorder %s17042_s15, 2  ;;  %s14562_s5 = sand.u32 1, %s17030_s12  }
 0x8c1   : > { %p19491_p5 = scmp.ne.s32.totalorder %s19485_s24, 0  ;;  %s14563_s7 = scalar_lea.sflag [#allocation4], %s14562_s5 }
 0x8c3   : > { %p16852_p2 = pnand %p16856_p4, %p19491_p5 }
 0x8c5   : > { %17025 = dma.done.wait (!%p16852_p2), %s14563_s7, 2048  }
 0x8c6   : > { %17027 = vsyncadd (!%p16852_p2), %s14563_s7, 4294965248  ;;  %p19_p7 = scmp.ge.s32.totalorder %s17095_s18, 8   ;;  %s19492_s12 = smov %s17034_s13 }
 0x8c7   : > { %s19493_s13 = smov %s17038_s14  ;;  %s19494_s14 = smov %s17107_s21 }
 0x8c8   : > { %s19495_s15 = smov %s17095_s18  ;;  %21 = sbr.rel (!%p19_p7) target bundleno = 7 (0x7), region = 90 }
 0x8cf   :  { %14568 = vsyncpa [#allocation3], 1 }
 0x8d0   :  { %14570 = vsyncpa [#allocation3 + $0x1], 1 }
 0x8d1   :  { %14571 = vsyncpa [#allocation6], 1 }
 0x8d2   :  { %14573 = vsyncpa [#allocation6 + $0x1], 1 }
 0x8d3   :  { %14574 = vsyncpa [#allocation4], 1 }
 0x8d4   :  { %14576 = vsyncpa [#allocation4 + $0x1], 1 }

</bundles_post_ra>
